<compile_context>
chip_gen: v5e
topology: v5e:2x2
jax: 0.10.0
libtpu: 0.0.40
codegen_flags: <defaults>
</compile_context>

<pallas_src>
import types
import numpy as np
import jax
import jax.numpy as jnp
from jax.experimental import pallas as pl
from jax.experimental.pallas import tpu as pltpu


def _leaky(h):
    # LeakyReLU(0.2) as a single VPU max instead of cmp+mul+select.
    return jnp.maximum(h, 0.2 * h)


# ----------------------------------------------------------------------------
# Pallas kernels
# ----------------------------------------------------------------------------

def pdist_kernel(x_ref, out_ref):
    """Per-batch scores whose per-row top_k equals kNN.  x:(N,C) -> (N,N)."""
    x = x_ref[...]
    xx = jnp.sum(x * x, axis=-1, keepdims=True)                       # (N, 1)
    inner = jax.lax.dot_general(x, x, (((1,), (1,)), ((), ())),
                                preferred_element_type=jnp.float32)   # (N, N)
    # Row-constant "- xx" term dropped: it cannot change top_k along axis -1.
    out_ref[...] = 2.0 * inner - jnp.transpose(xx)


def make_edgeconv_kernel(N, K, C):
    """EdgeConv block for one batch: gather + 2x(1x1 conv/BN/LReLU) + max-K."""

    def kernel(x_ref, idx_ref, w1d_ref, w1c_ref, b1_ref, w2_ref, b2_ref,
               out_ref):
        x = x_ref[...]                                   # (N, C)  f32
        xb = x.astype(jnp.bfloat16)
        idx = idx_ref[...]                               # (K, N)  int32

        # kNN gather as a one-hot MXU matmul: onehot[k*N+n, m] = (idx[k,n]==m)
        cols = jax.lax.broadcasted_iota(jnp.int32, (K, N, N), 2)
        onehot = jnp.where(idx[:, :, None] == cols, 1.0, 0.0)
        onehot = onehot.reshape(K * N, N).astype(jnp.bfloat16)
        knn = jnp.dot(onehot, xb,
                      preferred_element_type=jnp.float32)             # (K*N,C)

        central = jnp.broadcast_to(xb[None, :, :], (K, N, C)).reshape(K * N, C)
        diff = (knn - central.astype(jnp.float32)).astype(jnp.bfloat16)

        # edge_feat = cat([knn - central, central]) @ w1  ==  split matmuls
        h = (jnp.dot(diff, w1d_ref[...], preferred_element_type=jnp.float32)
             + jnp.dot(central, w1c_ref[...],
                       preferred_element_type=jnp.float32)
             + b1_ref[...])
        h = _leaky(h)
        h = jnp.dot(h.astype(jnp.bfloat16), w2_ref[...],
                    preferred_element_type=jnp.float32) + b2_ref[...]
        h = _leaky(h)

        cout = h.shape[-1]
        out_ref[...] = jnp.max(h.reshape(K, N, cout), axis=0)         # (N,Cout)

    return kernel


def make_tail_kernel(temperature):
    """Fused conv1d MLP -> SelfAttention -> segmenter, one batch per step."""
    inv_t = 1.0 / float(temperature)

    def kernel(ec1_ref, ec2_ref, ec3_ref,
               wm1a_ref, wm1b_ref, wm1c_ref, bm1_ref, wm2_ref, bm2_ref,
               wq_ref, wk_ref, wv_ref,
               ws1a_ref, ws1b_ref, bs1_ref, ws2_ref, bs2_ref, ws3_ref, bs3_ref,
               out_ref):
        ec1 = ec1_ref[...].astype(jnp.bfloat16)
        ec2 = ec2_ref[...].astype(jnp.bfloat16)
        ec3 = ec3_ref[...].astype(jnp.bfloat16)

        # conv1d MLP on concat(ec1, ec2, ec3): weight split avoids lane concat.
        h = (jnp.dot(ec1, wm1a_ref[...], preferred_element_type=jnp.float32)
             + jnp.dot(ec2, wm1b_ref[...], preferred_element_type=jnp.float32)
             + jnp.dot(ec3, wm1c_ref[...], preferred_element_type=jnp.float32)
             + bm1_ref[...])
        h = _leaky(h)
        h = jnp.dot(h.astype(jnp.bfloat16), wm2_ref[...],
                    preferred_element_type=jnp.float32) + bm2_ref[...]
        h = _leaky(h)

        # SelfAttention (attMPTI style: scaled dot-product over points).
        # TODO(synk): SelfAttention class not in the prompt; temperature
        # assumed sqrt(out_dim), matching attMPTI.
        hb = h.astype(jnp.bfloat16)
        q = jnp.dot(hb, wq_ref[...], preferred_element_type=jnp.float32)
        k = jnp.dot(hb, wk_ref[...], preferred_element_type=jnp.float32)
        v = jnp.dot(hb, wv_ref[...], preferred_element_type=jnp.float32)
        scores = jax.lax.dot_general(
            q.astype(jnp.bfloat16), k.astype(jnp.bfloat16),
            (((1,), (1,)), ((), ())),
            preferred_element_type=jnp.float32) * inv_t
        scores = scores - jnp.max(scores, axis=-1, keepdims=True)
        e = jnp.exp(scores)
        attn = e * pl.reciprocal(jnp.sum(e, axis=-1, keepdims=True),
                                 approx=True)
        pf = jnp.dot(attn.astype(jnp.bfloat16), v.astype(jnp.bfloat16),
                     preferred_element_type=jnp.float32)        # (N, atten)

        # Segmenter: cat([ec1, pf]) @ ws1 == ec1 @ ws1a + pf @ ws1b.
        s = (jnp.dot(ec1, ws1a_ref[...], preferred_element_type=jnp.float32)
             + jnp.dot(pf.astype(jnp.bfloat16), ws1b_ref[...],
                       preferred_element_type=jnp.float32)
             + bs1_ref[...])
        s = _leaky(s)
        s = jnp.dot(s.astype(jnp.bfloat16), ws2_ref[...],
                    preferred_element_type=jnp.float32) + bs2_ref[...]
        s = _leaky(s)
        # Dropout(0.3) is eval-mode identity.
        out_ref[...] = (jnp.dot(s.astype(jnp.bfloat16), ws3_ref[...],
                                preferred_element_type=jnp.float32)
                        + bs3_ref[...])

    return kernel


# ----------------------------------------------------------------------------
# pallas_call wrappers
# ----------------------------------------------------------------------------

def pairwise_scores(x):
    """x: (B, N, C) -> (B, N, N) scores whose per-row top_k == kNN."""
    B, N, C = x.shape
    return pl.pallas_call(
        pdist_kernel,
        out_shape=jax.ShapeDtypeStruct((B, N, N), jnp.float32),
        grid=(B,),
        in_specs=[pl.BlockSpec((None, N, C), lambda b: (b, 0, 0))],
        out_specs=pl.BlockSpec((None, N, N), lambda b: (b, 0, 0)),
        compiler_params=pltpu.CompilerParams(dimension_semantics=("parallel",)),
    )(x)


def edgeconv_apply(x, idx_t, w1, b1, w2, b2):
    """x: (B,N,C) f32, idx_t: (B,K,N) int32 -> (B,N,Cout) f32 (max over K)."""
    B, N, C = x.shape
    K = idx_t.shape[1]
    Cout = w2.shape[1]
    # bf16 matmul operands (f32 accumulation in-kernel).
    w1d = w1[:C].astype(jnp.bfloat16)     # acts on (knn - central)
    w1c = w1[C:].astype(jnp.bfloat16)     # acts on central
    w2b = w2.astype(jnp.bfloat16)
    kernel = make_edgeconv_kernel(N, K, C)
    return pl.pallas_call(
        kernel,
        out_shape=jax.ShapeDtypeStruct((B, N, Cout), jnp.float32),
        grid=(B,),
        in_specs=[
            pl.BlockSpec((None, N, C), lambda b: (b, 0, 0)),
            pl.BlockSpec((None, K, N), lambda b: (b, 0, 0)),
            pl.BlockSpec(w1d.shape, lambda b: (0, 0)),
            pl.BlockSpec(w1c.shape, lambda b: (0, 0)),
            pl.BlockSpec(b1.shape, lambda b: (0, 0)),
            pl.BlockSpec(w2b.shape, lambda b: (0, 0)),
            pl.BlockSpec(b2.shape, lambda b: (0, 0)),
        ],
        out_specs=pl.BlockSpec((None, N, Cout), lambda b: (b, 0, 0)),
        compiler_params=pltpu.CompilerParams(dimension_semantics=("parallel",)),
    )(x, idx_t, w1d, w1c, b1, w2b, b2)


def tail_apply(ec1, ec2, ec3, params, num_classes):
    """Fused mlp -> attention -> segmenter.  Returns (B, N, num_classes)."""
    B, N, C1 = ec1.shape
    C2, C3 = ec2.shape[-1], ec3.shape[-1]
    (wm1, bm1), (wm2, bm2) = params['mlp']
    wq, wk, wv = params['attn']
    (ws1, bs1), (ws2, bs2), (ws3, bs3) = params['seg']
    atten_dim = wq.shape[1]

    bf = lambda w: w.astype(jnp.bfloat16)
    wm1a, wm1b, wm1c = bf(wm1[:C1]), bf(wm1[C1:C1 + C2]), bf(wm1[C1 + C2:])
    ws1a, ws1b = bf(ws1[:C1]), bf(ws1[C1:])

    # Lane-dense classifier output: pad num_classes -> 128, slice in wrapper.
    CPAD = 128
    ws3p = jnp.zeros((ws3.shape[0], CPAD), jnp.float32).at[:, :num_classes].set(ws3)
    bs3p = jnp.zeros((1, CPAD), jnp.float32).at[:, :num_classes].set(bs3)

    weights = [wm1a, wm1b, wm1c, bm1, bf(wm2), bm2,
               bf(wq), bf(wk), bf(wv),
               ws1a, ws1b, bs1, bf(ws2), bs2, bf(ws3p), bs3p]

    in_specs = [pl.BlockSpec((None, N, C1), lambda b: (b, 0, 0)),
                pl.BlockSpec((None, N, C2), lambda b: (b, 0, 0)),
                pl.BlockSpec((None, N, C3), lambda b: (b, 0, 0))]
    for w in weights:
        in_specs.append(pl.BlockSpec(w.shape, lambda b: (0, 0)))

    kernel = make_tail_kernel(np.sqrt(atten_dim))
    out = pl.pallas_call(
        kernel,
        out_shape=jax.ShapeDtypeStruct((B, N, CPAD), jnp.float32),
        grid=(B,),
        in_specs=in_specs,
        out_specs=pl.BlockSpec((None, N, CPAD), lambda b: (b, 0, 0)),
        compiler_params=pltpu.CompilerParams(dimension_semantics=("parallel",)),
    )(ec1, ec2, ec3, *weights)
    return out[:, :, :num_classes]


# ----------------------------------------------------------------------------
# Parameters (deterministic init; conv+BN folded into W_eff, b_eff)
# ----------------------------------------------------------------------------

def fold_conv_bn(key, cin, cout, with_bias=False, with_bn=True, eps=1e-5):
    k1, k2, k3, k4, k5, k6 = jax.random.split(key, 6)
    W = jax.random.normal(k1, (cin, cout), jnp.float32) * (1.0 / np.sqrt(cin))
    bias = (0.1 * jax.random.normal(k2, (cout,), jnp.float32)
            if with_bias else jnp.zeros((cout,), jnp.float32))
    if with_bn:
        gamma = 1.0 + 0.1 * jax.random.normal(k3, (cout,), jnp.float32)
        beta = 0.1 * jax.random.normal(k4, (cout,), jnp.float32)
        mean = 0.1 * jax.random.normal(k5, (cout,), jnp.float32)
        var = 1.0 + 0.1 * jax.random.uniform(k6, (cout,), jnp.float32)
        scale = gamma / jnp.sqrt(var + eps)
        W_eff = W * scale[None, :]
        b_eff = scale * (bias - mean) + beta
    else:
        W_eff, b_eff = W, bias
    return W_eff, b_eff.reshape(1, cout)


def build_params(key, args, num_classes, dg_atten_dim):
    keys = iter(jax.random.split(key, 64))
    params = {}

    # EdgeConv blocks (Conv2d 1x1 bias=False + BN + LeakyReLU per layer).
    edgeconv = []
    prev_out = args.pc_in_dim
    for widths in args.edgeconv_widths:
        layers = []
        in_feat = prev_out * 2
        for w in widths:
            layers.append(fold_conv_bn(next(keys), in_feat, w,
                                       with_bias=False, with_bn=True))
            in_feat = w
        edgeconv.append(layers)
        prev_out = widths[-1]
    params['edgeconv'] = edgeconv

    # conv1d MLP after edgeconv concat.
    in_dim = sum(w[-1] for w in args.edgeconv_widths)
    mlp = []
    for w in args.dgcnn_mlp_widths:
        mlp.append(fold_conv_bn(next(keys), in_dim, w,
                                with_bias=False, with_bn=True))
        in_dim = w
    params['mlp'] = mlp

    # SelfAttention q/k/v maps (Conv1d 1x1, bias=False, no BN).
    cin = args.dgcnn_mlp_widths[-1]
    wq, _ = fold_conv_bn(next(keys), cin, dg_atten_dim, with_bn=False)
    wk, _ = fold_conv_bn(next(keys), cin, dg_atten_dim, with_bn=False)
    wv, _ = fold_conv_bn(next(keys), cin, dg_atten_dim, with_bn=False)
    params['attn'] = (wq, wk, wv)

    # Segmenter.
    seg_in = dg_atten_dim + args.edgeconv_widths[0][-1]
    seg = [
        fold_conv_bn(next(keys), seg_in, 256, with_bias=False, with_bn=True),
        fold_conv_bn(next(keys), 256, 128, with_bias=True, with_bn=True),
        fold_conv_bn(next(keys), 128, num_classes, with_bias=True,
                     with_bn=False),
    ]
    params['seg'] = seg
    return params


# ----------------------------------------------------------------------------
# Forward pass (thin JAX glue around the Pallas kernels)
# ----------------------------------------------------------------------------

def dgcnn_seg_attention_v2_forward(pc, params, k):
    """pc: (B, C_in, N) PyTorch layout -> logits (B, num_classes, N)."""
    x = jnp.transpose(pc, (0, 2, 1)).astype(jnp.float32)     # (B, N, C)
    edgeconv_outputs = []
    for (w1, b1), (w2, b2) in params['edgeconv']:
        d = pairwise_scores(x)                                # (B, N, N)
        idx = jax.lax.top_k(d, k)[1].astype(jnp.int32)        # (B, N, K)
        idx_t = jnp.transpose(idx, (0, 2, 1))                 # (B, K, N)
        x = edgeconv_apply(x, idx_t, w1, b1, w2, b2)          # (B, N, Cout)
        edgeconv_outputs.append(x)

    ec1, ec2, ec3 = edgeconv_outputs
    num_classes = params['seg'][-1][0].shape[1]
    assert params['attn'][0].shape[1] + ec1.shape[-1] == 192  # pc_feat == 192

    logits = tail_apply(ec1, ec2, ec3, params, num_classes)   # (B, N, classes)
    return jnp.transpose(logits, (0, 2, 1))                   # (B, classes, N)


# ----------------------------------------------------------------------------
# Main
# ----------------------------------------------------------------------------

if __name__ == "__main__":
    args = types.SimpleNamespace(
        edgeconv_widths=[[64, 64], [64, 64], [64, 64]],
        dgcnn_mlp_widths=[128, 128],
        pc_in_dim=3,
        dgcnn_k=8,
    )
    num_classes = 5
    dg_atten_dim = 128          # 128 + 64 = 192 (assert in the module)
    B, N = 2, 64

    key = jax.random.PRNGKey(0)
    kp, kx = jax.random.split(key)
    params = build_params(kp, args, num_classes, dg_atten_dim)
    pc = jax.random.normal(kx, (B, args.pc_in_dim, N), jnp.float32)

    fwd = jax.jit(
        lambda p: dgcnn_seg_attention_v2_forward(p, params, args.dgcnn_k))
    logits = fwd(pc)
    jax.block_until_ready(logits)
    assert logits.shape == (B, num_classes, N)
    print("KERNEL_OK")
</pallas_src>

<mosaic_0001>
module attributes {stable_mosaic.version = 11 : i64} {
  func.func @pdist_kernel(%arg0: i32, %arg1: memref<1x64x3xf32, #tpu.memory_space<vmem>>, %arg2: memref<1x64x64xf32, #tpu.memory_space<vmem>>) attributes {dimension_semantics = [#tpu.dimension_semantics<parallel>], iteration_bounds = array<i64: 2>, scalar_prefetch = 0 : i64, scratch_operands = 0 : i64, tpu.core_type = #tpu.core_type<tc>, window_params = [{transform_indices = @transform_0, window_bounds = array<i64: 1, 64, 3>}, {transform_indices = @transform_1, window_bounds = array<i64: 1, 64, 64>}]} {
    %c0 = arith.constant 0 : index
    %c0_0 = arith.constant 0 : index
    %c0_1 = arith.constant 0 : index
    %0 = vector.load %arg1[%c0, %c0_0, %c0_1] : memref<1x64x3xf32, #tpu.memory_space<vmem>>, vector<1x64x3xf32>
    %1 = vector.shape_cast %0 : vector<1x64x3xf32> to vector<64x3xf32>
    %2 = arith.mulf %1, %1 : vector<64x3xf32>
    %cst = arith.constant dense<0.000000e+00> : vector<64xf32>
    %3 = vector.multi_reduction <add>, %2, %cst [1] : vector<64x3xf32> to vector<64xf32>
    %4 = vector.shape_cast %3 : vector<64xf32> to vector<64x1xf32>
    %cst_2 = arith.constant dense<0.000000e+00> : vector<64x64xf32>
    %5 = tpu.matmul %1, %1, %cst_2 {dimension_numbers = #tpu.dot_dimension_numbers<[1], [1], [0], [0], [0, 0, 1, 0], [], []>} : vector<64x3xf32>, vector<64x3xf32>, vector<64x64xf32> -> vector<64x64xf32>
    %cst_3 = arith.constant 2.000000e+00 : f32
    %6 = vector.broadcast %cst_3 : f32 to vector<64x64xf32>
    %7 = arith.mulf %6, %5 : vector<64x64xf32>
    %8 = tpu.transpose %4, [1, 0] : vector<64x1xf32> -> vector<1x64xf32>
    %9 = vector.broadcast %8 : vector<1x64xf32> to vector<64x64xf32>
    %10 = arith.subf %7, %9 : vector<64x64xf32>
    %c0_4 = arith.constant 0 : index
    %c0_5 = arith.constant 0 : index
    %c0_6 = arith.constant 0 : index
    %11 = vector.load %arg2[%c0_4, %c0_5, %c0_6] : memref<1x64x64xf32, #tpu.memory_space<vmem>>, vector<1x64x64xf32>
    %12 = vector.shape_cast %11 : vector<1x64x64xf32> to vector<64x64xf32>
    %13 = vector.shape_cast %10 : vector<64x64xf32> to vector<1x64x64xf32>
    tpu.vector_store %arg2[%c0_4, %c0_5, %c0_6], %13 {strides = array<i32>} : memref<1x64x64xf32, #tpu.memory_space<vmem>>, vector<1x64x64xf32>,
    return
  }
  func.func @transform_0(%arg0: i32) -> (i32, i32, i32) {
    %c0_i32 = arith.constant 0 : i32
    %c0_i32_0 = arith.constant 0 : i32
    %c0_i32_1 = arith.constant 0 : i32
    return %arg0, %c0_i32, %c0_i32_0 : i32, i32, i32
  }
  func.func @transform_1(%arg0: i32) -> (i32, i32, i32) {
    %c0_i32 = arith.constant 0 : i32
    %c0_i32_0 = arith.constant 0 : i32
    %c0_i32_1 = arith.constant 0 : i32
    return %arg0, %c0_i32, %c0_i32_0 : i32, i32, i32
  }
}

module attributes {stable_mosaic.version = 11 : i64} {
  func.func @pdist_kernel(%arg0: i32, %arg1: memref<1x64x64xf32, #tpu.memory_space<vmem>>, %arg2: memref<1x64x64xf32, #tpu.memory_space<vmem>>) attributes {dimension_semantics = [#tpu.dimension_semantics<parallel>], iteration_bounds = array<i64: 2>, scalar_prefetch = 0 : i64, scratch_operands = 0 : i64, tpu.core_type = #tpu.core_type<tc>, window_params = [{transform_indices = @transform_0, window_bounds = array<i64: 1, 64, 64>}, {transform_indices = @transform_1, window_bounds = array<i64: 1, 64, 64>}]} {
    %c0 = arith.constant 0 : index
    %c0_0 = arith.constant 0 : index
    %c0_1 = arith.constant 0 : index
    %0 = vector.load %arg1[%c0, %c0_0, %c0_1] : memref<1x64x64xf32, #tpu.memory_space<vmem>>, vector<1x64x64xf32>
    %1 = vector.shape_cast %0 : vector<1x64x64xf32> to vector<64x64xf32>
    %2 = arith.mulf %1, %1 : vector<64x64xf32>
    %cst = arith.constant dense<0.000000e+00> : vector<64xf32>
    %3 = vector.multi_reduction <add>, %2, %cst [1] : vector<64x64xf32> to vector<64xf32>
    %4 = vector.shape_cast %3 : vector<64xf32> to vector<64x1xf32>
    %cst_2 = arith.constant dense<0.000000e+00> : vector<64x64xf32>
    %5 = tpu.matmul %1, %1, %cst_2 {dimension_numbers = #tpu.dot_dimension_numbers<[1], [1], [0], [0], [0, 0, 1, 0], [], []>} : vector<64x64xf32>, vector<64x64xf32>, vector<64x64xf32> -> vector<64x64xf32>
    %cst_3 = arith.constant 2.000000e+00 : f32
    %6 = vector.broadcast %cst_3 : f32 to vector<64x64xf32>
    %7 = arith.mulf %6, %5 : vector<64x64xf32>
    %8 = tpu.transpose %4, [1, 0] : vector<64x1xf32> -> vector<1x64xf32>
    %9 = vector.broadcast %8 : vector<1x64xf32> to vector<64x64xf32>
    %10 = arith.subf %7, %9 : vector<64x64xf32>
    %c0_4 = arith.constant 0 : index
    %c0_5 = arith.constant 0 : index
    %c0_6 = arith.constant 0 : index
    %11 = vector.load %arg2[%c0_4, %c0_5, %c0_6] : memref<1x64x64xf32, #tpu.memory_space<vmem>>, vector<1x64x64xf32>
    %12 = vector.shape_cast %11 : vector<1x64x64xf32> to vector<64x64xf32>
    %13 = vector.shape_cast %10 : vector<64x64xf32> to vector<1x64x64xf32>
    tpu.vector_store %arg2[%c0_4, %c0_5, %c0_6], %13 {strides = array<i32>} : memref<1x64x64xf32, #tpu.memory_space<vmem>>, vector<1x64x64xf32>,
    return
  }
  func.func @transform_0(%arg0: i32) -> (i32, i32, i32) {
    %c0_i32 = arith.constant 0 : i32
    %c0_i32_0 = arith.constant 0 : i32
    %c0_i32_1 = arith.constant 0 : i32
    return %arg0, %c0_i32, %c0_i32_0 : i32, i32, i32
  }
  func.func @transform_1(%arg0: i32) -> (i32, i32, i32) {
    %c0_i32 = arith.constant 0 : i32
    %c0_i32_0 = arith.constant 0 : i32
    %c0_i32_1 = arith.constant 0 : i32
    return %arg0, %c0_i32, %c0_i32_0 : i32, i32, i32
  }
}

module attributes {stable_mosaic.version = 11 : i64} {
  func.func @kernel(%arg0: i32, %arg1: memref<1x64x3xf32, #tpu.memory_space<vmem>>, %arg2: memref<1x8x64xi32, #tpu.memory_space<vmem>>, %arg3: memref<3x64xbf16, #tpu.memory_space<vmem>>, %arg4: memref<3x64xbf16, #tpu.memory_space<vmem>>, %arg5: memref<1x64xf32, #tpu.memory_space<vmem>>, %arg6: memref<64x64xbf16, #tpu.memory_space<vmem>>, %arg7: memref<1x64xf32, #tpu.memory_space<vmem>>, %arg8: memref<1x64x64xf32, #tpu.memory_space<vmem>>) attributes {dimension_semantics = [#tpu.dimension_semantics<parallel>], iteration_bounds = array<i64: 2>, scalar_prefetch = 0 : i64, scratch_operands = 0 : i64, tpu.core_type = #tpu.core_type<tc>, window_params = [{transform_indices = @transform_0, window_bounds = array<i64: 1, 64, 3>}, {transform_indices = @transform_1, window_bounds = array<i64: 1, 8, 64>}, {pipeline_mode = #tpu.pipeline_mode<synchronous>, transform_indices = @transform_2, window_bounds = array<i64: 3, 64>}, {pipeline_mode = #tpu.pipeline_mode<synchronous>, transform_indices = @transform_3, window_bounds = array<i64: 3, 64>}, {pipeline_mode = #tpu.pipeline_mode<synchronous>, transform_indices = @transform_4, window_bounds = array<i64: 1, 64>}, {pipeline_mode = #tpu.pipeline_mode<synchronous>, transform_indices = @transform_5, window_bounds = array<i64: 64, 64>}, {pipeline_mode = #tpu.pipeline_mode<synchronous>, transform_indices = @transform_6, window_bounds = array<i64: 1, 64>}, {transform_indices = @transform_7, window_bounds = array<i64: 1, 64, 64>}]} {
    %c0 = arith.constant 0 : index
    %c0_0 = arith.constant 0 : index
    %c0_1 = arith.constant 0 : index
    %0 = vector.load %arg1[%c0, %c0_0, %c0_1] : memref<1x64x3xf32, #tpu.memory_space<vmem>>, vector<1x64x3xf32>
    %1 = vector.shape_cast %0 : vector<1x64x3xf32> to vector<64x3xf32>
    %2 = arith.truncf %1 : vector<64x3xf32> to vector<64x3xbf16>
    %c0_2 = arith.constant 0 : index
    %c0_3 = arith.constant 0 : index
    %c0_4 = arith.constant 0 : index
    %3 = vector.load %arg2[%c0_2, %c0_3, %c0_4] : memref<1x8x64xi32, #tpu.memory_space<vmem>>, vector<1x8x64xi32>
    %4 = vector.shape_cast %3 : vector<1x8x64xi32> to vector<8x64xi32>
    %5 = tpu.iota {dimensions = array<i32: 2>} : vector<8x64x64xi32>
    %6 = vector.shape_cast %4 : vector<8x64xi32> to vector<8x64x1xi32>
    %7 = vector.broadcast %6 : vector<8x64x1xi32> to vector<8x64x64xi32>
    %8 = arith.cmpi eq, %7, %5 : vector<8x64x64xi32>
    %cst = arith.constant 1.000000e+00 : f32
    %cst_5 = arith.constant 0.000000e+00 : f32
    %9 = vector.broadcast %cst : f32 to vector<8x64x64xf32>
    %10 = vector.broadcast %cst_5 : f32 to vector<8x64x64xf32>
    %11 = arith.select %8, %9, %10 : vector<8x64x64xi1>, vector<8x64x64xf32>
    %12 = vector.shape_cast %11 : vector<8x64x64xf32> to vector<512x64xf32>
    %13 = arith.truncf %12 : vector<512x64xf32> to vector<512x64xbf16>
    %cst_6 = arith.constant dense<0.000000e+00> : vector<512x3xf32>
    %14 = tpu.matmul %13, %2, %cst_6 {dimension_numbers = #tpu.dot_dimension_numbers<[1], [0], [0], [1], [0, 0, 1, 1], [], []>} : vector<512x64xbf16>, vector<64x3xbf16>, vector<512x3xf32> -> vector<512x3xf32>
    %15 = vector.shape_cast %2 : vector<64x3xbf16> to vector<1x64x3xbf16>
    %16 = vector.shape_cast %15 : vector<1x64x3xbf16> to vector<1x64x3xbf16>
    %17 = vector.broadcast %16 : vector<1x64x3xbf16> to vector<8x64x3xbf16>
    %18 = vector.shape_cast %17 : vector<8x64x3xbf16> to vector<512x3xbf16>
    %19 = arith.extf %18 : vector<512x3xbf16> to vector<512x3xf32>
    %20 = arith.subf %14, %19 : vector<512x3xf32>
    %21 = arith.truncf %20 : vector<512x3xf32> to vector<512x3xbf16>
    %c0_7 = arith.constant 0 : index
    %c0_8 = arith.constant 0 : index
    %22 = vector.load %arg3[%c0_7, %c0_8] : memref<3x64xbf16, #tpu.memory_space<vmem>>, vector<3x64xbf16>
    %cst_9 = arith.constant dense<0.000000e+00> : vector<512x64xf32>
    %23 = tpu.matmul %21, %22, %cst_9 {dimension_numbers = #tpu.dot_dimension_numbers<[1], [0], [0], [1], [0, 0, 1, 1], [], []>} : vector<512x3xbf16>, vector<3x64xbf16>, vector<512x64xf32> -> vector<512x64xf32>
    %c0_10 = arith.constant 0 : index
    %c0_11 = arith.constant 0 : index
    %24 = vector.load %arg4[%c0_10, %c0_11] : memref<3x64xbf16, #tpu.memory_space<vmem>>, vector<3x64xbf16>
    %cst_12 = arith.constant dense<0.000000e+00> : vector<512x64xf32>
    %25 = tpu.matmul %18, %24, %cst_12 {dimension_numbers = #tpu.dot_dimension_numbers<[1], [0], [0], [1], [0, 0, 1, 1], [], []>} : vector<512x3xbf16>, vector<3x64xbf16>, vector<512x64xf32> -> vector<512x64xf32>
    %26 = arith.addf %23, %25 : vector<512x64xf32>
    %c0_13 = arith.constant 0 : index
    %c0_14 = arith.constant 0 : index
    %27 = vector.load %arg5[%c0_13, %c0_14] : memref<1x64xf32, #tpu.memory_space<vmem>>, vector<1x64xf32>
    %28 = vector.broadcast %27 : vector<1x64xf32> to vector<512x64xf32>
    %29 = arith.addf %26, %28 : vector<512x64xf32>
    %cst_15 = arith.constant 2.000000e-01 : f32
    %30 = vector.broadcast %cst_15 : f32 to vector<512x64xf32>
    %31 = arith.mulf %30, %29 : vector<512x64xf32>
    %32 = arith.maximumf %29, %31 : vector<512x64xf32>
    %33 = arith.truncf %32 : vector<512x64xf32> to vector<512x64xbf16>
    %c0_16 = arith.constant 0 : index
    %c0_17 = arith.constant 0 : index
    %34 = vector.load %arg6[%c0_16, %c0_17] : memref<64x64xbf16, #tpu.memory_space<vmem>>, vector<64x64xbf16>
    %cst_18 = arith.constant dense<0.000000e+00> : vector<512x64xf32>
    %35 = tpu.matmul %33, %34, %cst_18 {dimension_numbers = #tpu.dot_dimension_numbers<[1], [0], [0], [1], [0, 0, 1, 1], [], []>} : vector<512x64xbf16>, vector<64x64xbf16>, vector<512x64xf32> -> vector<512x64xf32>
    %c0_19 = arith.constant 0 : index
    %c0_20 = arith.constant 0 : index
    %36 = vector.load %arg7[%c0_19, %c0_20] : memref<1x64xf32, #tpu.memory_space<vmem>>, vector<1x64xf32>
    %37 = vector.broadcast %36 : vector<1x64xf32> to vector<512x64xf32>
    %38 = arith.addf %35, %37 : vector<512x64xf32>
    %cst_21 = arith.constant 2.000000e-01 : f32
    %39 = vector.broadcast %cst_21 : f32 to vector<512x64xf32>
    %40 = arith.mulf %39, %38 : vector<512x64xf32>
    %41 = arith.maximumf %38, %40 : vector<512x64xf32>
    %42 = vector.shape_cast %41 : vector<512x64xf32> to vector<8x64x64xf32>
    %cst_22 = arith.constant dense<0xFF800000> : vector<64x64xf32>
    %43 = vector.multi_reduction <maximumf>, %42, %cst_22 [0] : vector<8x64x64xf32> to vector<64x64xf32>
    %c0_23 = arith.constant 0 : index
    %c0_24 = arith.constant 0 : index
    %c0_25 = arith.constant 0 : index
    %44 = vector.load %arg8[%c0_23, %c0_24, %c0_25] : memref<1x64x64xf32, #tpu.memory_space<vmem>>, vector<1x64x64xf32>
    %45 = vector.shape_cast %44 : vector<1x64x64xf32> to vector<64x64xf32>
    %46 = vector.shape_cast %43 : vector<64x64xf32> to vector<1x64x64xf32>
    tpu.vector_store %arg8[%c0_23, %c0_24, %c0_25], %46 {strides = array<i32>} : memref<1x64x64xf32, #tpu.memory_space<vmem>>, vector<1x64x64xf32>,
    return
  }
  func.func @transform_0(%arg0: i32) -> (i32, i32, i32) {
    %c0_i32 = arith.constant 0 : i32
    %c0_i32_0 = arith.constant 0 : i32
    %c0_i32_1 = arith.constant 0 : i32
    return %arg0, %c0_i32, %c0_i32_0 : i32, i32, i32
  }
  func.func @transform_1(%arg0: i32) -> (i32, i32, i32) {
    %c0_i32 = arith.constant 0 : i32
    %c0_i32_0 = arith.constant 0 : i32
    %c0_i32_1 = arith.constant 0 : i32
    return %arg0, %c0_i32, %c0_i32_0 : i32, i32, i32
  }
  func.func @transform_2(%arg0: i32) -> (i32, i32) {
    %c0_i32 = arith.constant 0 : i32
    %c0_i32_0 = arith.constant 0 : i32
    %c0_i32_1 = arith.constant 0 : i32
    return %c0_i32, %c0_i32_0 : i32, i32
  }
  func.func @transform_3(%arg0: i32) -> (i32, i32) {
    %c0_i32 = arith.constant 0 : i32
    %c0_i32_0 = arith.constant 0 : i32
    %c0_i32_1 = arith.constant 0 : i32
    return %c0_i32, %c0_i32_0 : i32, i32
  }
  func.func @transform_4(%arg0: i32) -> (i32, i32) {
    %c0_i32 = arith.constant 0 : i32
    %c0_i32_0 = arith.constant 0 : i32
    %c0_i32_1 = arith.constant 0 : i32
    return %c0_i32, %c0_i32_0 : i32, i32
  }
  func.func @transform_5(%arg0: i32) -> (i32, i32) {
    %c0_i32 = arith.constant 0 : i32
    %c0_i32_0 = arith.constant 0 : i32
    %c0_i32_1 = arith.constant 0 : i32
    return %c0_i32, %c0_i32_0 : i32, i32
  }
  func.func @transform_6(%arg0: i32) -> (i32, i32) {
    %c0_i32 = arith.constant 0 : i32
    %c0_i32_0 = arith.constant 0 : i32
    %c0_i32_1 = arith.constant 0 : i32
    return %c0_i32, %c0_i32_0 : i32, i32
  }
  func.func @transform_7(%arg0: i32) -> (i32, i32, i32) {
    %c0_i32 = arith.constant 0 : i32
    %c0_i32_0 = arith.constant 0 : i32
    %c0_i32_1 = arith.constant 0 : i32
    return %arg0, %c0_i32, %c0_i32_0 : i32, i32, i32
  }
}

module attributes {stable_mosaic.version = 11 : i64} {
  func.func @kernel(%arg0: i32, %arg1: memref<1x64x64xf32, #tpu.memory_space<vmem>>, %arg2: memref<1x8x64xi32, #tpu.memory_space<vmem>>, %arg3: memref<64x64xbf16, #tpu.memory_space<vmem>>, %arg4: memref<64x64xbf16, #tpu.memory_space<vmem>>, %arg5: memref<1x64xf32, #tpu.memory_space<vmem>>, %arg6: memref<64x64xbf16, #tpu.memory_space<vmem>>, %arg7: memref<1x64xf32, #tpu.memory_space<vmem>>, %arg8: memref<1x64x64xf32, #tpu.memory_space<vmem>>) attributes {dimension_semantics = [#tpu.dimension_semantics<parallel>], iteration_bounds = array<i64: 2>, scalar_prefetch = 0 : i64, scratch_operands = 0 : i64, tpu.core_type = #tpu.core_type<tc>, window_params = [{transform_indices = @transform_0, window_bounds = array<i64: 1, 64, 64>}, {transform_indices = @transform_1, window_bounds = array<i64: 1, 8, 64>}, {pipeline_mode = #tpu.pipeline_mode<synchronous>, transform_indices = @transform_2, window_bounds = array<i64: 64, 64>}, {pipeline_mode = #tpu.pipeline_mode<synchronous>, transform_indices = @transform_3, window_bounds = array<i64: 64, 64>}, {pipeline_mode = #tpu.pipeline_mode<synchronous>, transform_indices = @transform_4, window_bounds = array<i64: 1, 64>}, {pipeline_mode = #tpu.pipeline_mode<synchronous>, transform_indices = @transform_5, window_bounds = array<i64: 64, 64>}, {pipeline_mode = #tpu.pipeline_mode<synchronous>, transform_indices = @transform_6, window_bounds = array<i64: 1, 64>}, {transform_indices = @transform_7, window_bounds = array<i64: 1, 64, 64>}]} {
    %c0 = arith.constant 0 : index
    %c0_0 = arith.constant 0 : index
    %c0_1 = arith.constant 0 : index
    %0 = vector.load %arg1[%c0, %c0_0, %c0_1] : memref<1x64x64xf32, #tpu.memory_space<vmem>>, vector<1x64x64xf32>
    %1 = vector.shape_cast %0 : vector<1x64x64xf32> to vector<64x64xf32>
    %2 = arith.truncf %1 : vector<64x64xf32> to vector<64x64xbf16>
    %c0_2 = arith.constant 0 : index
    %c0_3 = arith.constant 0 : index
    %c0_4 = arith.constant 0 : index
    %3 = vector.load %arg2[%c0_2, %c0_3, %c0_4] : memref<1x8x64xi32, #tpu.memory_space<vmem>>, vector<1x8x64xi32>
    %4 = vector.shape_cast %3 : vector<1x8x64xi32> to vector<8x64xi32>
    %5 = tpu.iota {dimensions = array<i32: 2>} : vector<8x64x64xi32>
    %6 = vector.shape_cast %4 : vector<8x64xi32> to vector<8x64x1xi32>
    %7 = vector.broadcast %6 : vector<8x64x1xi32> to vector<8x64x64xi32>
    %8 = arith.cmpi eq, %7, %5 : vector<8x64x64xi32>
    %cst = arith.constant 1.000000e+00 : f32
    %cst_5 = arith.constant 0.000000e+00 : f32
    %9 = vector.broadcast %cst : f32 to vector<8x64x64xf32>
    %10 = vector.broadcast %cst_5 : f32 to vector<8x64x64xf32>
    %11 = arith.select %8, %9, %10 : vector<8x64x64xi1>, vector<8x64x64xf32>
    %12 = vector.shape_cast %11 : vector<8x64x64xf32> to vector<512x64xf32>
    %13 = arith.truncf %12 : vector<512x64xf32> to vector<512x64xbf16>
    %cst_6 = arith.constant dense<0.000000e+00> : vector<512x64xf32>
    %14 = tpu.matmul %13, %2, %cst_6 {dimension_numbers = #tpu.dot_dimension_numbers<[1], [0], [0], [1], [0, 0, 1, 1], [], []>} : vector<512x64xbf16>, vector<64x64xbf16>, vector<512x64xf32> -> vector<512x64xf32>
    %15 = vector.shape_cast %2 : vector<64x64xbf16> to vector<1x64x64xbf16>
    %16 = vector.shape_cast %15 : vector<1x64x64xbf16> to vector<1x64x64xbf16>
    %17 = vector.broadcast %16 : vector<1x64x64xbf16> to vector<8x64x64xbf16>
    %18 = vector.shape_cast %17 : vector<8x64x64xbf16> to vector<512x64xbf16>
    %19 = arith.extf %18 : vector<512x64xbf16> to vector<512x64xf32>
    %20 = arith.subf %14, %19 : vector<512x64xf32>
    %21 = arith.truncf %20 : vector<512x64xf32> to vector<512x64xbf16>
    %c0_7 = arith.constant 0 : index
    %c0_8 = arith.constant 0 : index
    %22 = vector.load %arg3[%c0_7, %c0_8] : memref<64x64xbf16, #tpu.memory_space<vmem>>, vector<64x64xbf16>
    %cst_9 = arith.constant dense<0.000000e+00> : vector<512x64xf32>
    %23 = tpu.matmul %21, %22, %cst_9 {dimension_numbers = #tpu.dot_dimension_numbers<[1], [0], [0], [1], [0, 0, 1, 1], [], []>} : vector<512x64xbf16>, vector<64x64xbf16>, vector<512x64xf32> -> vector<512x64xf32>
    %c0_10 = arith.constant 0 : index
    %c0_11 = arith.constant 0 : index
    %24 = vector.load %arg4[%c0_10, %c0_11] : memref<64x64xbf16, #tpu.memory_space<vmem>>, vector<64x64xbf16>
    %cst_12 = arith.constant dense<0.000000e+00> : vector<512x64xf32>
    %25 = tpu.matmul %18, %24, %cst_12 {dimension_numbers = #tpu.dot_dimension_numbers<[1], [0], [0], [1], [0, 0, 1, 1], [], []>} : vector<512x64xbf16>, vector<64x64xbf16>, vector<512x64xf32> -> vector<512x64xf32>
    %26 = arith.addf %23, %25 : vector<512x64xf32>
    %c0_13 = arith.constant 0 : index
    %c0_14 = arith.constant 0 : index
    %27 = vector.load %arg5[%c0_13, %c0_14] : memref<1x64xf32, #tpu.memory_space<vmem>>, vector<1x64xf32>
    %28 = vector.broadcast %27 : vector<1x64xf32> to vector<512x64xf32>
    %29 = arith.addf %26, %28 : vector<512x64xf32>
    %cst_15 = arith.constant 2.000000e-01 : f32
    %30 = vector.broadcast %cst_15 : f32 to vector<512x64xf32>
    %31 = arith.mulf %30, %29 : vector<512x64xf32>
    %32 = arith.maximumf %29, %31 : vector<512x64xf32>
    %33 = arith.truncf %32 : vector<512x64xf32> to vector<512x64xbf16>
    %c0_16 = arith.constant 0 : index
    %c0_17 = arith.constant 0 : index
    %34 = vector.load %arg6[%c0_16, %c0_17] : memref<64x64xbf16, #tpu.memory_space<vmem>>, vector<64x64xbf16>
    %cst_18 = arith.constant dense<0.000000e+00> : vector<512x64xf32>
    %35 = tpu.matmul %33, %34, %cst_18 {dimension_numbers = #tpu.dot_dimension_numbers<[1], [0], [0], [1], [0, 0, 1, 1], [], []>} : vector<512x64xbf16>, vector<64x64xbf16>, vector<512x64xf32> -> vector<512x64xf32>
    %c0_19 = arith.constant 0 : index
    %c0_20 = arith.constant 0 : index
    %36 = vector.load %arg7[%c0_19, %c0_20] : memref<1x64xf32, #tpu.memory_space<vmem>>, vector<1x64xf32>
    %37 = vector.broadcast %36 : vector<1x64xf32> to vector<512x64xf32>
    %38 = arith.addf %35, %37 : vector<512x64xf32>
    %cst_21 = arith.constant 2.000000e-01 : f32
    %39 = vector.broadcast %cst_21 : f32 to vector<512x64xf32>
    %40 = arith.mulf %39, %38 : vector<512x64xf32>
    %41 = arith.maximumf %38, %40 : vector<512x64xf32>
    %42 = vector.shape_cast %41 : vector<512x64xf32> to vector<8x64x64xf32>
    %cst_22 = arith.constant dense<0xFF800000> : vector<64x64xf32>
    %43 = vector.multi_reduction <maximumf>, %42, %cst_22 [0] : vector<8x64x64xf32> to vector<64x64xf32>
    %c0_23 = arith.constant 0 : index
    %c0_24 = arith.constant 0 : index
    %c0_25 = arith.constant 0 : index
    %44 = vector.load %arg8[%c0_23, %c0_24, %c0_25] : memref<1x64x64xf32, #tpu.memory_space<vmem>>, vector<1x64x64xf32>
    %45 = vector.shape_cast %44 : vector<1x64x64xf32> to vector<64x64xf32>
    %46 = vector.shape_cast %43 : vector<64x64xf32> to vector<1x64x64xf32>
    tpu.vector_store %arg8[%c0_23, %c0_24, %c0_25], %46 {strides = array<i32>} : memref<1x64x64xf32, #tpu.memory_space<vmem>>, vector<1x64x64xf32>,
    return
  }
  func.func @transform_0(%arg0: i32) -> (i32, i32, i32) {
    %c0_i32 = arith.constant 0 : i32
    %c0_i32_0 = arith.constant 0 : i32
    %c0_i32_1 = arith.constant 0 : i32
    return %arg0, %c0_i32, %c0_i32_0 : i32, i32, i32
  }
  func.func @transform_1(%arg0: i32) -> (i32, i32, i32) {
    %c0_i32 = arith.constant 0 : i32
    %c0_i32_0 = arith.constant 0 : i32
    %c0_i32_1 = arith.constant 0 : i32
    return %arg0, %c0_i32, %c0_i32_0 : i32, i32, i32
  }
  func.func @transform_2(%arg0: i32) -> (i32, i32) {
    %c0_i32 = arith.constant 0 : i32
    %c0_i32_0 = arith.constant 0 : i32
    %c0_i32_1 = arith.constant 0 : i32
    return %c0_i32, %c0_i32_0 : i32, i32
  }
  func.func @transform_3(%arg0: i32) -> (i32, i32) {
    %c0_i32 = arith.constant 0 : i32
    %c0_i32_0 = arith.constant 0 : i32
    %c0_i32_1 = arith.constant 0 : i32
    return %c0_i32, %c0_i32_0 : i32, i32
  }
  func.func @transform_4(%arg0: i32) -> (i32, i32) {
    %c0_i32 = arith.constant 0 : i32
    %c0_i32_0 = arith.constant 0 : i32
    %c0_i32_1 = arith.constant 0 : i32
    return %c0_i32, %c0_i32_0 : i32, i32
  }
  func.func @transform_5(%arg0: i32) -> (i32, i32) {
    %c0_i32 = arith.constant 0 : i32
    %c0_i32_0 = arith.constant 0 : i32
    %c0_i32_1 = arith.constant 0 : i32
    return %c0_i32, %c0_i32_0 : i32, i32
  }
  func.func @transform_6(%arg0: i32) -> (i32, i32) {
    %c0_i32 = arith.constant 0 : i32
    %c0_i32_0 = arith.constant 0 : i32
    %c0_i32_1 = arith.constant 0 : i32
    return %c0_i32, %c0_i32_0 : i32, i32
  }
  func.func @transform_7(%arg0: i32) -> (i32, i32, i32) {
    %c0_i32 = arith.constant 0 : i32
    %c0_i32_0 = arith.constant 0 : i32
    %c0_i32_1 = arith.constant 0 : i32
    return %arg0, %c0_i32, %c0_i32_0 : i32, i32, i32
  }
}

module attributes {stable_mosaic.version = 11 : i64} {
  func.func @kernel(%arg0: i32, %arg1: memref<1x64x64xf32, #tpu.memory_space<vmem>>, %arg2: memref<1x64x64xf32, #tpu.memory_space<vmem>>, %arg3: memref<1x64x64xf32, #tpu.memory_space<vmem>>, %arg4: memref<64x128xbf16, #tpu.memory_space<vmem>>, %arg5: memref<64x128xbf16, #tpu.memory_space<vmem>>, %arg6: memref<64x128xbf16, #tpu.memory_space<vmem>>, %arg7: memref<1x128xf32, #tpu.memory_space<vmem>>, %arg8: memref<128x128xbf16, #tpu.memory_space<vmem>>, %arg9: memref<1x128xf32, #tpu.memory_space<vmem>>, %arg10: memref<128x128xbf16, #tpu.memory_space<vmem>>, %arg11: memref<128x128xbf16, #tpu.memory_space<vmem>>, %arg12: memref<128x128xbf16, #tpu.memory_space<vmem>>, %arg13: memref<64x256xbf16, #tpu.memory_space<vmem>>, %arg14: memref<128x256xbf16, #tpu.memory_space<vmem>>, %arg15: memref<1x256xf32, #tpu.memory_space<vmem>>, %arg16: memref<256x128xbf16, #tpu.memory_space<vmem>>, %arg17: memref<1x128xf32, #tpu.memory_space<vmem>>, %arg18: memref<128x128xbf16, #tpu.memory_space<vmem>>, %arg19: memref<1x128xf32, #tpu.memory_space<vmem>>, %arg20: memref<1x64x128xf32, #tpu.memory_space<vmem>>) attributes {dimension_semantics = [#tpu.dimension_semantics<parallel>], iteration_bounds = array<i64: 2>, scalar_prefetch = 0 : i64, scratch_operands = 0 : i64, tpu.core_type = #tpu.core_type<tc>, window_params = [{transform_indices = @transform_0, window_bounds = array<i64: 1, 64, 64>}, {transform_indices = @transform_1, window_bounds = array<i64: 1, 64, 64>}, {transform_indices = @transform_2, window_bounds = array<i64: 1, 64, 64>}, {pipeline_mode = #tpu.pipeline_mode<synchronous>, transform_indices = @transform_3, window_bounds = array<i64: 64, 128>}, {pipeline_mode = #tpu.pipeline_mode<synchronous>, transform_indices = @transform_4, window_bounds = array<i64: 64, 128>}, {pipeline_mode = #tpu.pipeline_mode<synchronous>, transform_indices = @transform_5, window_bounds = array<i64: 64, 128>}, {pipeline_mode = #tpu.pipeline_mode<synchronous>, transform_indices = @transform_6, window_bounds = array<i64: 1, 128>}, {pipeline_mode = #tpu.pipeline_mode<synchronous>, transform_indices = @transform_7, window_bounds = array<i64: 128, 128>}, {pipeline_mode = #tpu.pipeline_mode<synchronous>, transform_indices = @transform_8, window_bounds = array<i64: 1, 128>}, {pipeline_mode = #tpu.pipeline_mode<synchronous>, transform_indices = @transform_9, window_bounds = array<i64: 128, 128>}, {pipeline_mode = #tpu.pipeline_mode<synchronous>, transform_indices = @transform_10, window_bounds = array<i64: 128, 128>}, {pipeline_mode = #tpu.pipeline_mode<synchronous>, transform_indices = @transform_11, window_bounds = array<i64: 128, 128>}, {pipeline_mode = #tpu.pipeline_mode<synchronous>, transform_indices = @transform_12, window_bounds = array<i64: 64, 256>}, {pipeline_mode = #tpu.pipeline_mode<synchronous>, transform_indices = @transform_13, window_bounds = array<i64: 128, 256>}, {pipeline_mode = #tpu.pipeline_mode<synchronous>, transform_indices = @transform_14, window_bounds = array<i64: 1, 256>}, {pipeline_mode = #tpu.pipeline_mode<synchronous>, transform_indices = @transform_15, window_bounds = array<i64: 256, 128>}, {pipeline_mode = #tpu.pipeline_mode<synchronous>, transform_indices = @transform_16, window_bounds = array<i64: 1, 128>}, {pipeline_mode = #tpu.pipeline_mode<synchronous>, transform_indices = @transform_17, window_bounds = array<i64: 128, 128>}, {pipeline_mode = #tpu.pipeline_mode<synchronous>, transform_indices = @transform_18, window_bounds = array<i64: 1, 128>}, {transform_indices = @transform_19, window_bounds = array<i64: 1, 64, 128>}]} {
    %c0 = arith.constant 0 : index
    %c0_0 = arith.constant 0 : index
    %c0_1 = arith.constant 0 : index
    %0 = vector.load %arg1[%c0, %c0_0, %c0_1] : memref<1x64x64xf32, #tpu.memory_space<vmem>>, vector<1x64x64xf32>
    %1 = vector.shape_cast %0 : vector<1x64x64xf32> to vector<64x64xf32>
    %2 = arith.truncf %1 : vector<64x64xf32> to vector<64x64xbf16>
    %c0_2 = arith.constant 0 : index
    %c0_3 = arith.constant 0 : index
    %c0_4 = arith.constant 0 : index
    %3 = vector.load %arg2[%c0_2, %c0_3, %c0_4] : memref<1x64x64xf32, #tpu.memory_space<vmem>>, vector<1x64x64xf32>
    %4 = vector.shape_cast %3 : vector<1x64x64xf32> to vector<64x64xf32>
    %5 = arith.truncf %4 : vector<64x64xf32> to vector<64x64xbf16>
    %c0_5 = arith.constant 0 : index
    %c0_6 = arith.constant 0 : index
    %c0_7 = arith.constant 0 : index
    %6 = vector.load %arg3[%c0_5, %c0_6, %c0_7] : memref<1x64x64xf32, #tpu.memory_space<vmem>>, vector<1x64x64xf32>
    %7 = vector.shape_cast %6 : vector<1x64x64xf32> to vector<64x64xf32>
    %8 = arith.truncf %7 : vector<64x64xf32> to vector<64x64xbf16>
    %c0_8 = arith.constant 0 : index
    %c0_9 = arith.constant 0 : index
    %9 = vector.load %arg4[%c0_8, %c0_9] : memref<64x128xbf16, #tpu.memory_space<vmem>>, vector<64x128xbf16>
    %cst = arith.constant dense<0.000000e+00> : vector<64x128xf32>
    %10 = tpu.matmul %2, %9, %cst {dimension_numbers = #tpu.dot_dimension_numbers<[1], [0], [0], [1], [0, 0, 1, 1], [], []>} : vector<64x64xbf16>, vector<64x128xbf16>, vector<64x128xf32> -> vector<64x128xf32>
    %c0_10 = arith.constant 0 : index
    %c0_11 = arith.constant 0 : index
    %11 = vector.load %arg5[%c0_10, %c0_11] : memref<64x128xbf16, #tpu.memory_space<vmem>>, vector<64x128xbf16>
    %cst_12 = arith.constant dense<0.000000e+00> : vector<64x128xf32>
    %12 = tpu.matmul %5, %11, %cst_12 {dimension_numbers = #tpu.dot_dimension_numbers<[1], [0], [0], [1], [0, 0, 1, 1], [], []>} : vector<64x64xbf16>, vector<64x128xbf16>, vector<64x128xf32> -> vector<64x128xf32>
    %13 = arith.addf %10, %12 : vector<64x128xf32>
    %c0_13 = arith.constant 0 : index
    %c0_14 = arith.constant 0 : index
    %14 = vector.load %arg6[%c0_13, %c0_14] : memref<64x128xbf16, #tpu.memory_space<vmem>>, vector<64x128xbf16>
    %cst_15 = arith.constant dense<0.000000e+00> : vector<64x128xf32>
    %15 = tpu.matmul %8, %14, %cst_15 {dimension_numbers = #tpu.dot_dimension_numbers<[1], [0], [0], [1], [0, 0, 1, 1], [], []>} : vector<64x64xbf16>, vector<64x128xbf16>, vector<64x128xf32> -> vector<64x128xf32>
    %16 = arith.addf %13, %15 : vector<64x128xf32>
    %c0_16 = arith.constant 0 : index
    %c0_17 = arith.constant 0 : index
    %17 = vector.load %arg7[%c0_16, %c0_17] : memref<1x128xf32, #tpu.memory_space<vmem>>, vector<1x128xf32>
    %18 = vector.broadcast %17 : vector<1x128xf32> to vector<64x128xf32>
    %19 = arith.addf %16, %18 : vector<64x128xf32>
    %cst_18 = arith.constant 2.000000e-01 : f32
    %20 = vector.broadcast %cst_18 : f32 to vector<64x128xf32>
    %21 = arith.mulf %20, %19 : vector<64x128xf32>
    %22 = arith.maximumf %19, %21 : vector<64x128xf32>
    %23 = arith.truncf %22 : vector<64x128xf32> to vector<64x128xbf16>
    %c0_19 = arith.constant 0 : index
    %c0_20 = arith.constant 0 : index
    %24 = vector.load %arg8[%c0_19, %c0_20] : memref<128x128xbf16, #tpu.memory_space<vmem>>, vector<128x128xbf16>
    %cst_21 = arith.constant dense<0.000000e+00> : vector<64x128xf32>
    %25 = tpu.matmul %23, %24, %cst_21 {dimension_numbers = #tpu.dot_dimension_numbers<[1], [0], [0], [1], [0, 0, 1, 1], [], []>} : vector<64x128xbf16>, vector<128x128xbf16>, vector<64x128xf32> -> vector<64x128xf32>
    %c0_22 = arith.constant 0 : index
    %c0_23 = arith.constant 0 : index
    %26 = vector.load %arg9[%c0_22, %c0_23] : memref<1x128xf32, #tpu.memory_space<vmem>>, vector<1x128xf32>
    %27 = vector.broadcast %26 : vector<1x128xf32> to vector<64x128xf32>
    %28 = arith.addf %25, %27 : vector<64x128xf32>
    %cst_24 = arith.constant 2.000000e-01 : f32
    %29 = vector.broadcast %cst_24 : f32 to vector<64x128xf32>
    %30 = arith.mulf %29, %28 : vector<64x128xf32>
    %31 = arith.maximumf %28, %30 : vector<64x128xf32>
    %32 = arith.truncf %31 : vector<64x128xf32> to vector<64x128xbf16>
    %c0_25 = arith.constant 0 : index
    %c0_26 = arith.constant 0 : index
    %33 = vector.load %arg10[%c0_25, %c0_26] : memref<128x128xbf16, #tpu.memory_space<vmem>>, vector<128x128xbf16>
    %cst_27 = arith.constant dense<0.000000e+00> : vector<64x128xf32>
    %34 = tpu.matmul %32, %33, %cst_27 {dimension_numbers = #tpu.dot_dimension_numbers<[1], [0], [0], [1], [0, 0, 1, 1], [], []>} : vector<64x128xbf16>, vector<128x128xbf16>, vector<64x128xf32> -> vector<64x128xf32>
    %c0_28 = arith.constant 0 : index
    %c0_29 = arith.constant 0 : index
    %35 = vector.load %arg11[%c0_28, %c0_29] : memref<128x128xbf16, #tpu.memory_space<vmem>>, vector<128x128xbf16>
    %cst_30 = arith.constant dense<0.000000e+00> : vector<64x128xf32>
    %36 = tpu.matmul %32, %35, %cst_30 {dimension_numbers = #tpu.dot_dimension_numbers<[1], [0], [0], [1], [0, 0, 1, 1], [], []>} : vector<64x128xbf16>, vector<128x128xbf16>, vector<64x128xf32> -> vector<64x128xf32>
    %c0_31 = arith.constant 0 : index
    %c0_32 = arith.constant 0 : index
    %37 = vector.load %arg12[%c0_31, %c0_32] : memref<128x128xbf16, #tpu.memory_space<vmem>>, vector<128x128xbf16>
    %cst_33 = arith.constant dense<0.000000e+00> : vector<64x128xf32>
    %38 = tpu.matmul %32, %37, %cst_33 {dimension_numbers = #tpu.dot_dimension_numbers<[1], [0], [0], [1], [0, 0, 1, 1], [], []>} : vector<64x128xbf16>, vector<128x128xbf16>, vector<64x128xf32> -> vector<64x128xf32>
    %39 = arith.truncf %34 : vector<64x128xf32> to vector<64x128xbf16>
    %40 = arith.truncf %36 : vector<64x128xf32> to vector<64x128xbf16>
    %cst_34 = arith.constant dense<0.000000e+00> : vector<64x64xf32>
    %41 = tpu.matmul %39, %40, %cst_34 {dimension_numbers = #tpu.dot_dimension_numbers<[1], [1], [0], [0], [0, 0, 1, 0], [], []>} : vector<64x128xbf16>, vector<64x128xbf16>, vector<64x64xf32> -> vector<64x64xf32>
    %cst_35 = arith.constant 0.0883883461 : f32
    %42 = vector.broadcast %cst_35 : f32 to vector<64x64xf32>
    %43 = arith.mulf %41, %42 : vector<64x64xf32>
    %cst_36 = arith.constant dense<0xFF800000> : vector<64xf32>
    %44 = vector.multi_reduction <maximumf>, %43, %cst_36 [1] : vector<64x64xf32> to vector<64xf32>
    %45 = vector.shape_cast %44 : vector<64xf32> to vector<64x1xf32>
    %46 = vector.broadcast %45 : vector<64x1xf32> to vector<64x64xf32>
    %47 = arith.subf %43, %46 : vector<64x64xf32>
    %48 = math.exp %47 : vector<64x64xf32>
    %cst_37 = arith.constant dense<0.000000e+00> : vector<64xf32>
    %49 = vector.multi_reduction <add>, %48, %cst_37 [1] : vector<64x64xf32> to vector<64xf32>
    %50 = vector.shape_cast %49 : vector<64xf32> to vector<64x1xf32>
    %51 = tpu.reciprocal %50 {approx = true} : vector<64x1xf32> -> vector<64x1xf32>
    %52 = vector.broadcast %51 : vector<64x1xf32> to vector<64x64xf32>
    %53 = arith.mulf %48, %52 : vector<64x64xf32>
    %54 = arith.truncf %53 : vector<64x64xf32> to vector<64x64xbf16>
    %55 = arith.truncf %38 : vector<64x128xf32> to vector<64x128xbf16>
    %cst_38 = arith.constant dense<0.000000e+00> : vector<64x128xf32>
    %56 = tpu.matmul %54, %55, %cst_38 {dimension_numbers = #tpu.dot_dimension_numbers<[1], [0], [0], [1], [0, 0, 1, 1], [], []>} : vector<64x64xbf16>, vector<64x128xbf16>, vector<64x128xf32> -> vector<64x128xf32>
    %c0_39 = arith.constant 0 : index
    %c0_40 = arith.constant 0 : index
    %57 = vector.load %arg13[%c0_39, %c0_40] : memref<64x256xbf16, #tpu.memory_space<vmem>>, vector<64x256xbf16>
    %cst_41 = arith.constant dense<0.000000e+00> : vector<64x256xf32>
    %58 = tpu.matmul %2, %57, %cst_41 {dimension_numbers = #tpu.dot_dimension_numbers<[1], [0], [0], [1], [0, 0, 1, 1], [], []>} : vector<64x64xbf16>, vector<64x256xbf16>, vector<64x256xf32> -> vector<64x256xf32>
    %59 = arith.truncf %56 : vector<64x128xf32> to vector<64x128xbf16>
    %c0_42 = arith.constant 0 : index
    %c0_43 = arith.constant 0 : index
    %60 = vector.load %arg14[%c0_42, %c0_43] : memref<128x256xbf16, #tpu.memory_space<vmem>>, vector<128x256xbf16>
    %cst_44 = arith.constant dense<0.000000e+00> : vector<64x256xf32>
    %61 = tpu.matmul %59, %60, %cst_44 {dimension_numbers = #tpu.dot_dimension_numbers<[1], [0], [0], [1], [0, 0, 1, 1], [], []>} : vector<64x128xbf16>, vector<128x256xbf16>, vector<64x256xf32> -> vector<64x256xf32>
    %62 = arith.addf %58, %61 : vector<64x256xf32>
    %c0_45 = arith.constant 0 : index
    %c0_46 = arith.constant 0 : index
    %63 = vector.load %arg15[%c0_45, %c0_46] : memref<1x256xf32, #tpu.memory_space<vmem>>, vector<1x256xf32>
    %64 = vector.broadcast %63 : vector<1x256xf32> to vector<64x256xf32>
    %65 = arith.addf %62, %64 : vector<64x256xf32>
    %cst_47 = arith.constant 2.000000e-01 : f32
    %66 = vector.broadcast %cst_47 : f32 to vector<64x256xf32>
    %67 = arith.mulf %66, %65 : vector<64x256xf32>
    %68 = arith.maximumf %65, %67 : vector<64x256xf32>
    %69 = arith.truncf %68 : vector<64x256xf32> to vector<64x256xbf16>
    %c0_48 = arith.constant 0 : index
    %c0_49 = arith.constant 0 : index
    %70 = vector.load %arg16[%c0_48, %c0_49] : memref<256x128xbf16, #tpu.memory_space<vmem>>, vector<256x128xbf16>
    %cst_50 = arith.constant dense<0.000000e+00> : vector<64x128xf32>
    %71 = tpu.matmul %69, %70, %cst_50 {dimension_numbers = #tpu.dot_dimension_numbers<[1], [0], [0], [1], [0, 0, 1, 1], [], []>} : vector<64x256xbf16>, vector<256x128xbf16>, vector<64x128xf32> -> vector<64x128xf32>
    %c0_51 = arith.constant 0 : index
    %c0_52 = arith.constant 0 : index
    %72 = vector.load %arg17[%c0_51, %c0_52] : memref<1x128xf32, #tpu.memory_space<vmem>>, vector<1x128xf32>
    %73 = vector.broadcast %72 : vector<1x128xf32> to vector<64x128xf32>
    %74 = arith.addf %71, %73 : vector<64x128xf32>
    %cst_53 = arith.constant 2.000000e-01 : f32
    %75 = vector.broadcast %cst_53 : f32 to vector<64x128xf32>
    %76 = arith.mulf %75, %74 : vector<64x128xf32>
    %77 = arith.maximumf %74, %76 : vector<64x128xf32>
    %78 = arith.truncf %77 : vector<64x128xf32> to vector<64x128xbf16>
    %c0_54 = arith.constant 0 : index
    %c0_55 = arith.constant 0 : index
    %79 = vector.load %arg18[%c0_54, %c0_55] : memref<128x128xbf16, #tpu.memory_space<vmem>>, vector<128x128xbf16>
    %cst_56 = arith.constant dense<0.000000e+00> : vector<64x128xf32>
    %80 = tpu.matmul %78, %79, %cst_56 {dimension_numbers = #tpu.dot_dimension_numbers<[1], [0], [0], [1], [0, 0, 1, 1], [], []>} : vector<64x128xbf16>, vector<128x128xbf16>, vector<64x128xf32> -> vector<64x128xf32>
    %c0_57 = arith.constant 0 : index
    %c0_58 = arith.constant 0 : index
    %81 = vector.load %arg19[%c0_57, %c0_58] : memref<1x128xf32, #tpu.memory_space<vmem>>, vector<1x128xf32>
    %82 = vector.broadcast %81 : vector<1x128xf32> to vector<64x128xf32>
    %83 = arith.addf %80, %82 : vector<64x128xf32>
    %c0_59 = arith.constant 0 : index
    %c0_60 = arith.constant 0 : index
    %c0_61 = arith.constant 0 : index
    %84 = vector.load %arg20[%c0_59, %c0_60, %c0_61] : memref<1x64x128xf32, #tpu.memory_space<vmem>>, vector<1x64x128xf32>
    %85 = vector.shape_cast %84 : vector<1x64x128xf32> to vector<64x128xf32>
    %86 = vector.shape_cast %83 : vector<64x128xf32> to vector<1x64x128xf32>
    tpu.vector_store %arg20[%c0_59, %c0_60, %c0_61], %86 {strides = array<i32>} : memref<1x64x128xf32, #tpu.memory_space<vmem>>, vector<1x64x128xf32>,
    return
  }
  func.func @transform_0(%arg0: i32) -> (i32, i32, i32) {
    %c0_i32 = arith.constant 0 : i32
    %c0_i32_0 = arith.constant 0 : i32
    %c0_i32_1 = arith.constant 0 : i32
    return %arg0, %c0_i32, %c0_i32_0 : i32, i32, i32
  }
  func.func @transform_1(%arg0: i32) -> (i32, i32, i32) {
    %c0_i32 = arith.constant 0 : i32
    %c0_i32_0 = arith.constant 0 : i32
    %c0_i32_1 = arith.constant 0 : i32
    return %arg0, %c0_i32, %c0_i32_0 : i32, i32, i32
  }
  func.func @transform_2(%arg0: i32) -> (i32, i32, i32) {
    %c0_i32 = arith.constant 0 : i32
    %c0_i32_0 = arith.constant 0 : i32
    %c0_i32_1 = arith.constant 0 : i32
    return %arg0, %c0_i32, %c0_i32_0 : i32, i32, i32
  }
  func.func @transform_3(%arg0: i32) -> (i32, i32) {
    %c0_i32 = arith.constant 0 : i32
    %c0_i32_0 = arith.constant 0 : i32
    %c0_i32_1 = arith.constant 0 : i32
    return %c0_i32, %c0_i32_0 : i32, i32
  }
  func.func @transform_4(%arg0: i32) -> (i32, i32) {
    %c0_i32 = arith.constant 0 : i32
    %c0_i32_0 = arith.constant 0 : i32
    %c0_i32_1 = arith.constant 0 : i32
    return %c0_i32, %c0_i32_0 : i32, i32
  }
  func.func @transform_5(%arg0: i32) -> (i32, i32) {
    %c0_i32 = arith.constant 0 : i32
    %c0_i32_0 = arith.constant 0 : i32
    %c0_i32_1 = arith.constant 0 : i32
    return %c0_i32, %c0_i32_0 : i32, i32
  }
  func.func @transform_6(%arg0: i32) -> (i32, i32) {
    %c0_i32 = arith.constant 0 : i32
    %c0_i32_0 = arith.constant 0 : i32
    %c0_i32_1 = arith.constant 0 : i32
    return %c0_i32, %c0_i32_0 : i32, i32
  }
  func.func @transform_7(%arg0: i32) -> (i32, i32) {
    %c0_i32 = arith.constant 0 : i32
    %c0_i32_0 = arith.constant 0 : i32
    %c0_i32_1 = arith.constant 0 : i32
    return %c0_i32, %c0_i32_0 : i32, i32
  }
  func.func @transform_8(%arg0: i32) -> (i32, i32) {
    %c0_i32 = arith.constant 0 : i32
    %c0_i32_0 = arith.constant 0 : i32
    %c0_i32_1 = arith.constant 0 : i32
    return %c0_i32, %c0_i32_0 : i32, i32
  }
  func.func @transform_9(%arg0: i32) -> (i32, i32) {
    %c0_i32 = arith.constant 0 : i32
    %c0_i32_0 = arith.constant 0 : i32
    %c0_i32_1 = arith.constant 0 : i32
    return %c0_i32, %c0_i32_0 : i32, i32
  }
  func.func @transform_10(%arg0: i32) -> (i32, i32) {
    %c0_i32 = arith.constant 0 : i32
    %c0_i32_0 = arith.constant 0 : i32
    %c0_i32_1 = arith.constant 0 : i32
    return %c0_i32, %c0_i32_0 : i32, i32
  }
  func.func @transform_11(%arg0: i32) -> (i32, i32) {
    %c0_i32 = arith.constant 0 : i32
    %c0_i32_0 = arith.constant 0 : i32
    %c0_i32_1 = arith.constant 0 : i32
    return %c0_i32, %c0_i32_0 : i32, i32
  }
  func.func @transform_12(%arg0: i32) -> (i32, i32) {
    %c0_i32 = arith.constant 0 : i32
    %c0_i32_0 = arith.constant 0 : i32
    %c0_i32_1 = arith.constant 0 : i32
    return %c0_i32, %c0_i32_0 : i32, i32
  }
  func.func @transform_13(%arg0: i32) -> (i32, i32) {
    %c0_i32 = arith.constant 0 : i32
    %c0_i32_0 = arith.constant 0 : i32
    %c0_i32_1 = arith.constant 0 : i32
    return %c0_i32, %c0_i32_0 : i32, i32
  }
  func.func @transform_14(%arg0: i32) -> (i32, i32) {
    %c0_i32 = arith.constant 0 : i32
    %c0_i32_0 = arith.constant 0 : i32
    %c0_i32_1 = arith.constant 0 : i32
    return %c0_i32, %c0_i32_0 : i32, i32
  }
  func.func @transform_15(%arg0: i32) -> (i32, i32) {
    %c0_i32 = arith.constant 0 : i32
    %c0_i32_0 = arith.constant 0 : i32
    %c0_i32_1 = arith.constant 0 : i32
    return %c0_i32, %c0_i32_0 : i32, i32
  }
  func.func @transform_16(%arg0: i32) -> (i32, i32) {
    %c0_i32 = arith.constant 0 : i32
    %c0_i32_0 = arith.constant 0 : i32
    %c0_i32_1 = arith.constant 0 : i32
    return %c0_i32, %c0_i32_0 : i32, i32
  }
  func.func @transform_17(%arg0: i32) -> (i32, i32) {
    %c0_i32 = arith.constant 0 : i32
    %c0_i32_0 = arith.constant 0 : i32
    %c0_i32_1 = arith.constant 0 : i32
    return %c0_i32, %c0_i32_0 : i32, i32
  }
  func.func @transform_18(%arg0: i32) -> (i32, i32) {
    %c0_i32 = arith.constant 0 : i32
    %c0_i32_0 = arith.constant 0 : i32
    %c0_i32_1 = arith.constant 0 : i32
    return %c0_i32, %c0_i32_0 : i32, i32
  }
  func.func @transform_19(%arg0: i32) -> (i32, i32, i32) {
    %c0_i32 = arith.constant 0 : i32
    %c0_i32_0 = arith.constant 0 : i32
    %c0_i32_1 = arith.constant 0 : i32
    return %arg0, %c0_i32, %c0_i32_0 : i32, i32, i32
  }
}

</mosaic_0001>

<bundles_post_ra>
// kernel: _lambda_.7
= control target key start
LH: loop header
LB: loop body
LE: loop exit
PB: predicated region body
PF: predicated region fallthrough
CT: control target
= control target key end

     0   :  { %s416_s6 = smov 0   ;;  %s532_s0 = inlined_call_operand.vmem [shape: f32[2,64,3], index: 0, kind: input, shape index: {}]   ;;  %s533_s1 = inlined_call_operand.vmem [shape: f32[2,64,64], index: 1, kind: output, shape index: {}]  }
   0x1 LB: > { %s336_s7 = sadd.s32 4294967295, %s404_s6   ;;  %p340_p0 = scmp.ge.s32.totalorder %s404_s6, 1  ;;  %s404_s6 = sphi %s416_s6, %s11_s6  }
   0x2   : > { %p87_p1 = scmp.lt.s32.totalorder %s404_s6, 3 }
   0x4   : > { %p88_p2 = pnand %p340_p0, %p87_p1 }
   0x5   : > { %p107_p3 = scmp.lt.s32.totalorder (!%p88_p2), %s336_s7, 1 }
   0x6   : > { %91 = sbr.rel (%p88_p2) target bundleno = 300 (0x12c), region = 24 }
   0xb   : > { %s535_s7 = smov (!%p107_p3, %s336_s7), 1  ;;  %vm133_vm0 = vcmask 23552   ;;  %vm272_vm1 = vcmask 523264  }
   0xc   : > { %s363_s8 = sshll.u32 %s535_s7, 6 }
   0xd   : > { %s111_s11 = scalar_lea.vmem %s532_s0, %s363_s8  ;;  %s116_s14 = scalar_lea.vmem %s533_s1, %s363_s8 }
   0xe   : > { %v432_v0 = vld [vmem:[%s111_s11] sm:$0xff]  ;;  %v434_v1 = vld [vmem:[%s111_s11 + $0x10] sm:$0xff]  ;;  %v440_v5 = vld [vmem:[%s111_s11 + $0x8] sm:$0xff] }
   0xf   : > { %v125_v2 = vmul.f32 %v432_v0, %v432_v0  ;;  %v127_v3 = vmul.f32 %v434_v1, %v434_v1  ;;  %v121_v4 = vld [vmem:[%s111_s11 + $0x20] sm:$0xff]  ;;  %v442_v6 = vld [vmem:[%s111_s11 + $0x18] sm:$0xff]  ;;  %v122_v11 = vld [vmem:[%s111_s11 + $0x28] sm:$0xff]  ;;  %v126_v13 = vmul.f32 %v440_v5, %v440_v5 }
  0x10   : > { %v129_v7 = vmul.f32 %v121_v4, %v121_v4  ;;  %v124_v8 = vld [vmem:[%s111_s11 + $0x38] sm:$0xff]  ;;  %v128_v14 = vmul.f32 %v442_v6, %v442_v6  ;;  %v130_v15 = vmul.f32 %v122_v11, %v122_v11  ;;  %v123_v16 = vld [vmem:[%s111_s11 + $0x30] sm:$0xff] }
  0x11   : > { %v134_v9 = vsel %vm133_vm0, %v125_v2, 0.0  ;;  %v140_v10 = vsel %vm133_vm0, %v127_v3, 0.0  ;;  %366 = vmatpush.xpose.msk.msra.mxu2 %vm133_vm0, %v124_v8  ;;  %367 = vmatpush.xpose.msk.msra.mxu3 %vm133_vm0, %v124_v8  ;;  %v137_v17 = vsel %vm133_vm0, %v126_v13, 0.0  ;;  %v131_v20 = vmul.f32 %v123_v16, %v123_v16 }
  0x12   : > { %135 = vadd.xlane.f32.xlu0 %v134_v9  ;;  %141 = vadd.xlane.f32.xlu1 %v140_v10  ;;  %v146_v12 = vsel %vm133_vm0, %v129_v7, 0.0  ;;  %v143_v18 = vsel %vm133_vm0, %v128_v14, 0.0  ;;  %v149_v19 = vsel %vm133_vm0, %v130_v15, 0.0  ;;  %v132_v21 = vmul.f32 %v124_v8, %v124_v8 }
  0x13   : > { %147 = vadd.xlane.f32.xlu2 %v146_v12  ;;  %345 = vmatpush.xpose.msk.msra.mxu0 %vm133_vm0, %v124_v8  ;;  %v152_v22 = vsel %vm133_vm0, %v131_v20, 0.0 }
  0x14   : > { %365 = vmatpush.xpose.msk.msra.mxu1 %vm133_vm0, %v124_v8  ;;  %v155_v23 = vsel %vm133_vm0, %v132_v21, 0.0 }
  0x15   : > { %369 = vmatpush.xpose.msk.msra.mxu2 %vm133_vm0, %v123_v16  ;;  %370 = vmatpush.xpose.msk.msra.mxu3 %vm133_vm0, %v123_v16 }
  0x17   : > { %346 = vmatpush.xpose.msk.msra.mxu0 %vm133_vm0, %v123_v16 }
  0x18   : > { %368 = vmatpush.xpose.msk.msra.mxu1 %vm133_vm0, %v123_v16 }
  0x19   : > { %372 = vmatpush.xpose.msk.msra.mxu2 %vm133_vm0, %v122_v11  ;;  %373 = vmatpush.xpose.msk.msra.mxu3 %vm133_vm0, %v122_v11 }
  0x1a   : > { %138 = vadd.xlane.f32.xlu0 %v137_v17  ;;  %144 = vadd.xlane.f32.xlu1 %v143_v18 }
  0x1b   : > { %150 = vadd.xlane.f32.xlu2 %v149_v19  ;;  %347 = vmatpush.xpose.msk.msra.mxu0 %vm133_vm0, %v122_v11 }
  0x1c   : > { %371 = vmatpush.xpose.msk.msra.mxu1 %vm133_vm0, %v122_v11 }
  0x1d   : > { %375 = vmatpush.xpose.msk.msra.mxu2 %vm133_vm0, %v121_v4  ;;  %376 = vmatpush.xpose.msk.msra.mxu3 %vm133_vm0, %v121_v4 }
  0x1f   : > { %348 = vmatpush.xpose.msk.msra.mxu0 %vm133_vm0, %v121_v4 }
  0x20   : > { %374 = vmatpush.xpose.msk.msra.mxu1 %vm133_vm0, %v121_v4 }
  0x21   : > { %378 = vmatpush.xpose.msk.msra.mxu2 %vm133_vm0, %v442_v6  ;;  %379 = vmatpush.xpose.msk.msra.mxu3 %vm133_vm0, %v442_v6 }
  0x22   : > { %153 = vadd.xlane.f32.xlu0 %v152_v22  ;;  %156 = vadd.xlane.f32.xlu1 %v155_v23 }
  0x23   : > { %349 = vmatpush.xpose.msk.msra.mxu0 %vm133_vm0, %v442_v6 }
  0x24   : > { %377 = vmatpush.xpose.msk.msra.mxu1 %vm133_vm0, %v442_v6 }
  0x25   : > { %381 = vmatpush.xpose.msk.msra.mxu2 %vm133_vm0, %v434_v1  ;;  %382 = vmatpush.xpose.msk.msra.mxu3 %vm133_vm0, %v434_v1 }
  0x27   : > { %350 = vmatpush.xpose.msk.msra.mxu0 %vm133_vm0, %v434_v1 }
  0x28   : > { %380 = vmatpush.xpose.msk.msra.mxu1 %vm133_vm0, %v434_v1 }
  0x29   : > { %384 = vmatpush.xpose.msk.msra.mxu2 %vm133_vm0, %v440_v5  ;;  %385 = vmatpush.xpose.msk.msra.mxu3 %vm133_vm0, %v440_v5 }
  0x2b   : > { %351 = vmatpush.xpose.msk.msra.mxu0 %vm133_vm0, %v440_v5 }
  0x2c   : > { %383 = vmatpush.xpose.msk.msra.mxu1 %vm133_vm0, %v440_v5 }
  0x2d   : > { %387 = vmatpush.xpose.msk.msra.mxu2 %vm133_vm0, %v432_v0  ;;  %388 = vmatpush.xpose.msk.msra.mxu3 %vm133_vm0, %v432_v0 }
  0x2f   : > { %352 = vmatpush.xpose.msk.msra.mxu0 %vm133_vm0, %v432_v0 }
  0x30   : > { %357 = vmatmul.msk.f32.vlgmr.msra.gmra.mxu2 %vm133_vm0, %v121_v4  ;;  %359 = vmatmul.msk.f32.vlgmr.msra.gmra.mxu3 %vm133_vm0, %v123_v16 }
  0x31   : > { %386 = vmatpush.xpose.msk.msra.mxu1 %vm133_vm0, %v432_v0 }
  0x32   : > { %353 = vmatmul.msk.f32.vlgmr.msra.gmra.mxu0 %vm133_vm0, %v432_v0 }
  0x34   : > { %355 = vmatmul.msk.f32.vlgmr.msra.gmra.mxu1 %vm133_vm0, %v434_v1 }
  0x38   : > { %358 = vmatmul.msk.f32.gmra.mxu2 %vm133_vm0, %v122_v11  ;;  %360 = vmatmul.msk.f32.gmra.mxu3 %vm133_vm0, %v124_v8 }
  0x3a   : > { %354 = vmatmul.msk.f32.gmra.mxu0 %vm133_vm0, %v440_v5 }
  0x3c   : > { %356 = vmatmul.msk.f32.gmra.mxu1 %vm133_vm0, %v442_v6 }
  0x85   : > { %v136_v24 = vpop.xlane.xlu0 %135  ;;  %v142_v26 = vpop.xlane.xlu1 %141 }
  0x86   : > { %231 = vxpose.xlu2.b32.start [1/8] (short) (narrow) %v136_v24, 8  ;;  %v148_v28 = vpop.xlane.xlu2 %147 }
  0x8d   : > { %v139_v25 = vpop.xlane.xlu0 %138  ;;  %v145_v27 = vpop.xlane.xlu1 %144 }
  0x8e   : > { %232 = vxpose.xlu2.b32.cont [2/8] (short) (narrow) %v139_v25, 8  ;;  %v151_v29 = vpop.xlane.xlu2 %150 }
  0x95   : > { %v154_v30 = vpop.xlane.xlu0 %153  ;;  %v157_v31 = vpop.xlane.xlu1 %156 }
  0x96   : > { %233 = vxpose.xlu2.b32.cont [3/8] (short) (narrow) %v142_v26, 8 }
  0x9e   : > { %234 = vxpose.xlu2.b32.cont [4/8] (short) (narrow) %v145_v27, 8 }
  0xa6   : > { %235 = vxpose.xlu2.b32.cont [5/8] (short) (narrow) %v148_v28, 8 }
  0xae   : > { %236 = vxpose.xlu2.b32.cont [6/8] (short) (narrow) %v151_v29, 8 }
  0xaf   : > { %v199_v32 = vpop.f32.mrf.mxu0 }
  0xb0   : > { %v223_v42 = vmul.f32 2.0, %v199_v32 }
  0xb1   : > { %v205_v33 = vpop.f32.mrf.mxu1 }
  0xb2   : > { %v225_v43 = vmul.f32 2.0, %v205_v33 }
  0xb3   : > { %v211_v34 = vpop.f32.mrf.mxu2  ;;  %v217_v35 = vpop.f32.mrf.mxu3 }
  0xb4   : > { %v227_v47 = vmul.f32 2.0, %v211_v34  ;;  %v229_v53 = vmul.f32 2.0, %v217_v35 }
  0xb6   : > { %237 = vxpose.xlu2.b32.cont [7/8] (short) (narrow) %v154_v30, 8 }
  0xb7   : > { %v202_v36 = vpop.f32.mrf.mxu0 }
  0xb8   : > { %v224_v38 = vmul.f32 2.0, %v202_v36 }
  0xb9   : > { %v208_v37 = vpop.f32.mrf.mxu1 }
  0xba   : > { %v226_v40 = vmul.f32 2.0, %v208_v37 }
  0xbb   : > { %v214_v39 = vpop.f32.mrf.mxu2  ;;  %v220_v44 = vpop.f32.mrf.mxu3 }
  0xbc   : > { %v228_v46 = vmul.f32 2.0, %v214_v39  ;;  %v230_v51 = vmul.f32 2.0, %v220_v44 }
  0xbe   : > { %238 = vxpose.xlu2.b32.end [8/8] (short) (narrow) %v157_v31, 8 }
 0x11f   : > { %v247_v41 = vpop.trf.xlu2 }
 0x120   : > { %v263_v45 = vperm.slane %v247_v41, 0 }
 0x122   : > { %v264_v48 = vsub.f32 %v223_v42, %v263_v45  ;;  %v265_v49 = vsub.f32 %v224_v38, %v263_v45  ;;  %v266_v50 = vsub.f32 %v225_v43, %v263_v45  ;;  %v267_v52 = vsub.f32 %v226_v40, %v263_v45 }
 0x123   : > { %v268_v54 = vsub.f32 %v227_v47, %v263_v45  ;;  %v269_v55 = vsub.f32 %v228_v46, %v263_v45  ;;  %v270_v56 = vsub.f32 %v229_v53, %v263_v45  ;;  %v271_v57 = vsub.f32 %v230_v51, %v263_v45 }
 0x124   : > { %273 = vst.msk [vmem:[%s116_s14] sm:$0xff] %vm272_vm1, %v264_v48 }
 0x125   : > { %274 = vst.msk [vmem:[%s116_s14 + $0x8] sm:$0xff] %vm272_vm1, %v265_v49 }
 0x126   : > { %275 = vst.msk [vmem:[%s116_s14 + $0x10] sm:$0xff] %vm272_vm1, %v266_v50 }
 0x127   : > { %276 = vst.msk [vmem:[%s116_s14 + $0x18] sm:$0xff] %vm272_vm1, %v267_v52 }
 0x128   : > { %277 = vst.msk [vmem:[%s116_s14 + $0x20] sm:$0xff] %vm272_vm1, %v268_v54 }
 0x129   : > { %278 = vst.msk [vmem:[%s116_s14 + $0x28] sm:$0xff] %vm272_vm1, %v269_v55 }
 0x12a   : > { %279 = vst.msk [vmem:[%s116_s14 + $0x30] sm:$0xff] %vm272_vm1, %v270_v56 }
 0x12b   : > { %280 = vst.msk [vmem:[%s116_s14 + $0x38] sm:$0xff] %vm272_vm1, %v271_v57 }
 0x12c PF: > { %s11_s6 = sadd.s32 1, %s404_s6  }
 0x12d   : > { %p8_p4 = scmp.ge.s32.totalorder %s11_s6, 4  }
 0x12f   :  { %10 = sbr.rel (!%p8_p4) target bundleno = 1 (0x1), region = 54 }

// kernel: _lambda_.9
= control target key start
LH: loop header
LB: loop body
LE: loop exit
PB: predicated region body
PF: predicated region fallthrough
CT: control target
= control target key end

     0   :  { %s415_s6 = smov 0   ;;  %s531_s0 = inlined_call_operand.vmem [shape: f32[2,64,64], index: 0, kind: input, shape index: {}]   ;;  %s532_s1 = inlined_call_operand.vmem [shape: f32[2,64,64], index: 1, kind: output, shape index: {}]  }
   0x1 LB: > { %s335_s7 = sadd.s32 4294967295, %s403_s6   ;;  %p339_p0 = scmp.ge.s32.totalorder %s403_s6, 1  ;;  %s403_s6 = sphi %s415_s6, %s11_s6  }
   0x2   : > { %p87_p1 = scmp.lt.s32.totalorder %s403_s6, 3 }
   0x4   : > { %p88_p2 = pnand %p339_p0, %p87_p1 }
   0x5   : > { %p107_p3 = scmp.lt.s32.totalorder (!%p88_p2), %s335_s7, 1 }
   0x6   : > { %91 = sbr.rel (%p88_p2) target bundleno = 300 (0x12c), region = 24 }
   0xb   : > { %s534_s7 = smov (!%p107_p3, %s335_s7), 1  ;;  %vm133_vm0 = vcmask 523264  }
   0xc   : > { %s362_s8 = sshll.u32 %s534_s7, 6 }
   0xd   : > { %s111_s11 = scalar_lea.vmem %s531_s0, %s362_s8  ;;  %s116_s14 = scalar_lea.vmem %s532_s1, %s362_s8 }
   0xe   : > { %v431_v0 = vld [vmem:[%s111_s11] sm:$0xff]  ;;  %v433_v1 = vld [vmem:[%s111_s11 + $0x10] sm:$0xff]  ;;  %v439_v5 = vld [vmem:[%s111_s11 + $0x8] sm:$0xff] }
   0xf   : > { %v125_v2 = vmul.f32 %v431_v0, %v431_v0  ;;  %v127_v3 = vmul.f32 %v433_v1, %v433_v1  ;;  %v121_v4 = vld [vmem:[%s111_s11 + $0x20] sm:$0xff]  ;;  %v441_v6 = vld [vmem:[%s111_s11 + $0x18] sm:$0xff]  ;;  %v122_v11 = vld [vmem:[%s111_s11 + $0x28] sm:$0xff]  ;;  %v126_v13 = vmul.f32 %v439_v5, %v439_v5 }
  0x10   : > { %v129_v7 = vmul.f32 %v121_v4, %v121_v4  ;;  %v124_v8 = vld [vmem:[%s111_s11 + $0x38] sm:$0xff]  ;;  %v128_v14 = vmul.f32 %v441_v6, %v441_v6  ;;  %v130_v15 = vmul.f32 %v122_v11, %v122_v11  ;;  %v123_v16 = vld [vmem:[%s111_s11 + $0x30] sm:$0xff] }
  0x11   : > { %v134_v9 = vsel %vm133_vm0, %v125_v2, 0.0  ;;  %v140_v10 = vsel %vm133_vm0, %v127_v3, 0.0  ;;  %365 = vmatpush.xpose.msk.msra.mxu2 %vm133_vm0, %v124_v8  ;;  %366 = vmatpush.xpose.msk.msra.mxu3 %vm133_vm0, %v124_v8  ;;  %v137_v17 = vsel %vm133_vm0, %v126_v13, 0.0  ;;  %v131_v20 = vmul.f32 %v123_v16, %v123_v16 }
  0x12   : > { %135 = vadd.xlane.f32.xlu0 %v134_v9  ;;  %141 = vadd.xlane.f32.xlu1 %v140_v10  ;;  %v146_v12 = vsel %vm133_vm0, %v129_v7, 0.0  ;;  %v143_v18 = vsel %vm133_vm0, %v128_v14, 0.0  ;;  %v149_v19 = vsel %vm133_vm0, %v130_v15, 0.0  ;;  %v132_v21 = vmul.f32 %v124_v8, %v124_v8 }
  0x13   : > { %147 = vadd.xlane.f32.xlu2 %v146_v12  ;;  %344 = vmatpush.xpose.msk.msra.mxu0 %vm133_vm0, %v124_v8  ;;  %v152_v22 = vsel %vm133_vm0, %v131_v20, 0.0 }
  0x14   : > { %364 = vmatpush.xpose.msk.msra.mxu1 %vm133_vm0, %v124_v8  ;;  %v155_v23 = vsel %vm133_vm0, %v132_v21, 0.0 }
  0x15   : > { %368 = vmatpush.xpose.msk.msra.mxu2 %vm133_vm0, %v123_v16  ;;  %369 = vmatpush.xpose.msk.msra.mxu3 %vm133_vm0, %v123_v16 }
  0x17   : > { %345 = vmatpush.xpose.msk.msra.mxu0 %vm133_vm0, %v123_v16 }
  0x18   : > { %367 = vmatpush.xpose.msk.msra.mxu1 %vm133_vm0, %v123_v16 }
  0x19   : > { %371 = vmatpush.xpose.msk.msra.mxu2 %vm133_vm0, %v122_v11  ;;  %372 = vmatpush.xpose.msk.msra.mxu3 %vm133_vm0, %v122_v11 }
  0x1a   : > { %138 = vadd.xlane.f32.xlu0 %v137_v17  ;;  %144 = vadd.xlane.f32.xlu1 %v143_v18 }
  0x1b   : > { %150 = vadd.xlane.f32.xlu2 %v149_v19  ;;  %346 = vmatpush.xpose.msk.msra.mxu0 %vm133_vm0, %v122_v11 }
  0x1c   : > { %370 = vmatpush.xpose.msk.msra.mxu1 %vm133_vm0, %v122_v11 }
  0x1d   : > { %374 = vmatpush.xpose.msk.msra.mxu2 %vm133_vm0, %v121_v4  ;;  %375 = vmatpush.xpose.msk.msra.mxu3 %vm133_vm0, %v121_v4 }
  0x1f   : > { %347 = vmatpush.xpose.msk.msra.mxu0 %vm133_vm0, %v121_v4 }
  0x20   : > { %373 = vmatpush.xpose.msk.msra.mxu1 %vm133_vm0, %v121_v4 }
  0x21   : > { %377 = vmatpush.xpose.msk.msra.mxu2 %vm133_vm0, %v441_v6  ;;  %378 = vmatpush.xpose.msk.msra.mxu3 %vm133_vm0, %v441_v6 }
  0x22   : > { %153 = vadd.xlane.f32.xlu0 %v152_v22  ;;  %156 = vadd.xlane.f32.xlu1 %v155_v23 }
  0x23   : > { %348 = vmatpush.xpose.msk.msra.mxu0 %vm133_vm0, %v441_v6 }
  0x24   : > { %376 = vmatpush.xpose.msk.msra.mxu1 %vm133_vm0, %v441_v6 }
  0x25   : > { %380 = vmatpush.xpose.msk.msra.mxu2 %vm133_vm0, %v433_v1  ;;  %381 = vmatpush.xpose.msk.msra.mxu3 %vm133_vm0, %v433_v1 }
  0x27   : > { %349 = vmatpush.xpose.msk.msra.mxu0 %vm133_vm0, %v433_v1 }
  0x28   : > { %379 = vmatpush.xpose.msk.msra.mxu1 %vm133_vm0, %v433_v1 }
  0x29   : > { %383 = vmatpush.xpose.msk.msra.mxu2 %vm133_vm0, %v439_v5  ;;  %384 = vmatpush.xpose.msk.msra.mxu3 %vm133_vm0, %v439_v5 }
  0x2b   : > { %350 = vmatpush.xpose.msk.msra.mxu0 %vm133_vm0, %v439_v5 }
  0x2c   : > { %382 = vmatpush.xpose.msk.msra.mxu1 %vm133_vm0, %v439_v5 }
  0x2d   : > { %386 = vmatpush.xpose.msk.msra.mxu2 %vm133_vm0, %v431_v0  ;;  %387 = vmatpush.xpose.msk.msra.mxu3 %vm133_vm0, %v431_v0 }
  0x2f   : > { %351 = vmatpush.xpose.msk.msra.mxu0 %vm133_vm0, %v431_v0 }
  0x30   : > { %356 = vmatmul.msk.f32.vlgmr.msra.gmra.mxu2 %vm133_vm0, %v121_v4  ;;  %358 = vmatmul.msk.f32.vlgmr.msra.gmra.mxu3 %vm133_vm0, %v123_v16 }
  0x31   : > { %385 = vmatpush.xpose.msk.msra.mxu1 %vm133_vm0, %v431_v0 }
  0x32   : > { %352 = vmatmul.msk.f32.vlgmr.msra.gmra.mxu0 %vm133_vm0, %v431_v0 }
  0x34   : > { %354 = vmatmul.msk.f32.vlgmr.msra.gmra.mxu1 %vm133_vm0, %v433_v1 }
  0x38   : > { %357 = vmatmul.msk.f32.gmra.mxu2 %vm133_vm0, %v122_v11  ;;  %359 = vmatmul.msk.f32.gmra.mxu3 %vm133_vm0, %v124_v8 }
  0x3a   : > { %353 = vmatmul.msk.f32.gmra.mxu0 %vm133_vm0, %v439_v5 }
  0x3c   : > { %355 = vmatmul.msk.f32.gmra.mxu1 %vm133_vm0, %v441_v6 }
  0x85   : > { %v136_v24 = vpop.xlane.xlu0 %135  ;;  %v142_v26 = vpop.xlane.xlu1 %141 }
  0x86   : > { %231 = vxpose.xlu2.b32.start [1/8] (short) (narrow) %v136_v24, 8  ;;  %v148_v28 = vpop.xlane.xlu2 %147 }
  0x8d   : > { %v139_v25 = vpop.xlane.xlu0 %138  ;;  %v145_v27 = vpop.xlane.xlu1 %144 }
  0x8e   : > { %232 = vxpose.xlu2.b32.cont [2/8] (short) (narrow) %v139_v25, 8  ;;  %v151_v29 = vpop.xlane.xlu2 %150 }
  0x95   : > { %v154_v30 = vpop.xlane.xlu0 %153  ;;  %v157_v31 = vpop.xlane.xlu1 %156 }
  0x96   : > { %233 = vxpose.xlu2.b32.cont [3/8] (short) (narrow) %v142_v26, 8 }
  0x9e   : > { %234 = vxpose.xlu2.b32.cont [4/8] (short) (narrow) %v145_v27, 8 }
  0xa6   : > { %235 = vxpose.xlu2.b32.cont [5/8] (short) (narrow) %v148_v28, 8 }
  0xae   : > { %236 = vxpose.xlu2.b32.cont [6/8] (short) (narrow) %v151_v29, 8 }
  0xaf   : > { %v199_v32 = vpop.f32.mrf.mxu0 }
  0xb0   : > { %v223_v42 = vmul.f32 2.0, %v199_v32 }
  0xb1   : > { %v205_v33 = vpop.f32.mrf.mxu1 }
  0xb2   : > { %v225_v43 = vmul.f32 2.0, %v205_v33 }
  0xb3   : > { %v211_v34 = vpop.f32.mrf.mxu2  ;;  %v217_v35 = vpop.f32.mrf.mxu3 }
  0xb4   : > { %v227_v47 = vmul.f32 2.0, %v211_v34  ;;  %v229_v53 = vmul.f32 2.0, %v217_v35 }
  0xb6   : > { %237 = vxpose.xlu2.b32.cont [7/8] (short) (narrow) %v154_v30, 8 }
  0xb7   : > { %v202_v36 = vpop.f32.mrf.mxu0 }
  0xb8   : > { %v224_v38 = vmul.f32 2.0, %v202_v36 }
  0xb9   : > { %v208_v37 = vpop.f32.mrf.mxu1 }
  0xba   : > { %v226_v40 = vmul.f32 2.0, %v208_v37 }
  0xbb   : > { %v214_v39 = vpop.f32.mrf.mxu2  ;;  %v220_v44 = vpop.f32.mrf.mxu3 }
  0xbc   : > { %v228_v46 = vmul.f32 2.0, %v214_v39  ;;  %v230_v51 = vmul.f32 2.0, %v220_v44 }
  0xbe   : > { %238 = vxpose.xlu2.b32.end [8/8] (short) (narrow) %v157_v31, 8 }
 0x11f   : > { %v247_v41 = vpop.trf.xlu2 }
 0x120   : > { %v263_v45 = vperm.slane %v247_v41, 0 }
 0x122   : > { %v264_v48 = vsub.f32 %v223_v42, %v263_v45  ;;  %v265_v49 = vsub.f32 %v224_v38, %v263_v45  ;;  %v266_v50 = vsub.f32 %v225_v43, %v263_v45  ;;  %v267_v52 = vsub.f32 %v226_v40, %v263_v45 }
 0x123   : > { %v268_v54 = vsub.f32 %v227_v47, %v263_v45  ;;  %v269_v55 = vsub.f32 %v228_v46, %v263_v45  ;;  %v270_v56 = vsub.f32 %v229_v53, %v263_v45  ;;  %v271_v57 = vsub.f32 %v230_v51, %v263_v45 }
 0x124   : > { %272 = vst.msk [vmem:[%s116_s14] sm:$0xff] %vm133_vm0, %v264_v48 }
 0x125   : > { %273 = vst.msk [vmem:[%s116_s14 + $0x8] sm:$0xff] %vm133_vm0, %v265_v49 }
 0x126   : > { %274 = vst.msk [vmem:[%s116_s14 + $0x10] sm:$0xff] %vm133_vm0, %v266_v50 }
 0x127   : > { %275 = vst.msk [vmem:[%s116_s14 + $0x18] sm:$0xff] %vm133_vm0, %v267_v52 }
 0x128   : > { %276 = vst.msk [vmem:[%s116_s14 + $0x20] sm:$0xff] %vm133_vm0, %v268_v54 }
 0x129   : > { %277 = vst.msk [vmem:[%s116_s14 + $0x28] sm:$0xff] %vm133_vm0, %v269_v55 }
 0x12a   : > { %278 = vst.msk [vmem:[%s116_s14 + $0x30] sm:$0xff] %vm133_vm0, %v270_v56 }
 0x12b   : > { %279 = vst.msk [vmem:[%s116_s14 + $0x38] sm:$0xff] %vm133_vm0, %v271_v57 }
 0x12c PF: > { %s11_s6 = sadd.s32 1, %s403_s6  }
 0x12d   : > { %p8_p4 = scmp.ge.s32.totalorder %s11_s6, 4  }
 0x12f   :  { %10 = sbr.rel (!%p8_p4) target bundleno = 1 (0x1), region = 54 }

// kernel: _lambda_.8
= control target key start
LH: loop header
LB: loop body
LE: loop exit
PB: predicated region body
PF: predicated region fallthrough
CT: control target
= control target key end

     0   :  { %s2863_s24 = smov 0   ;;  %s4062_s0 = inlined_call_operand.vmem [shape: f32[2,64,3], index: 0, kind: input, shape index: {}]   ;;  %s4063_s1 = inlined_call_operand.vmem [shape: s32[2,8,64], index: 1, kind: input, shape index: {}]   ;;  %s4064_s2 = inlined_call_operand.vmem [shape: bf16[3,64], index: 2, kind: input, shape index: {}]   ;;  %s4065_s3 = inlined_call_operand.vmem [shape: bf16[3,64], index: 3, kind: input, shape index: {}]   ;;  %s4066_s4 = inlined_call_operand.vmem [shape: f32[1,64], index: 4, kind: input, shape index: {}]   ;;  %s4067_s5 = inlined_call_operand.vmem [shape: bf16[64,64], index: 5, kind: input, shape index: {}]   ;;  %s4068_s6 = inlined_call_operand.vmem [shape: f32[1,64], index: 6, kind: input, shape index: {}]   ;;  %s4069_s7 = inlined_call_operand.vmem [shape: f32[2,64,64], index: 7, kind: output, shape index: {}]  }
   0x1 LB: > { %s2573_s25 = sadd.s32 4294967295, %s2819_s24   ;;  %p2577_p0 = scmp.ge.s32.totalorder %s2819_s24, 1  ;;  %s2819_s24 = sphi %s2863_s24, %s17_s24  }
   0x2   : > { %p246_p1 = scmp.lt.s32.totalorder %s2819_s24, 3 }
   0x4   : > { %p247_p2 = pnand %p2577_p0, %p246_p1 }
   0x5   : > { %p282_p3 = scmp.lt.s32.totalorder (!%p247_p2), %s2573_s25, 1 }
   0x6   : > { %250 = sbr.rel (%p247_p2) target bundleno = 1092 (0x444), region = 48 }
   0xb   : > { %v314_v0 = vlaneseq  ;;  %s4071_s25 = smov (!%p282_p3, %s2573_s25), 1  ;;  %v2821_v45 = vmov 0.0   ;;  %vm892_vm2 = vcmask 523264   ;;  %vm1277_vm15 = vcmask 1040384  }
   0xc   : > { %s2580_s26 = sshll.u32 %s4071_s25, 3  ;;  %s2729_s30 = sshll.u32 %s4071_s25, 6 }
   0xd   : > { %v2872_v1 = vshrl.u32 %v314_v0, 7  ;;  %s290_s29 = scalar_lea.vmem %s4063_s1, %s2580_s26  ;;  %s286_s10 = scalar_lea.vmem %s4062_s0, %s2729_s30  ;;  %v2971_v42 = vand.u32 127, %v314_v0 }
   0xe   : > { %v2888_v4 = vld [vmem:[%s290_s29] sm:$0xff]  ;;  %v303_v12 = vld [vmem:[%s286_s10 + $0x30] sm:$0xff]  ;;  %v304_v13 = vld [vmem:[%s286_s10 + $0x38] sm:$0xff]  ;;  %s3991_s13 = scalar_lea.vmem %s4069_s7, %s2729_s30 }
   0xf   : > { %2745 = vset.pattern.permute.xlu0 %v2872_v1  ;;  %v2878_v2 = vadd.s32 16, %v2872_v1  ;;  %v2882_v3 = vadd.s32 32, %v2872_v1  ;;  %v316_v5 = vperm.slane %v2888_v4, 0  ;;  %v2893_v6 = vadd.s32 8, %v2872_v1  ;;  %v301_v18 = vld [vmem:[%s286_s10 + $0x20] sm:$0xff]  ;;  %v302_v19 = vld [vmem:[%s286_s10 + $0x28] sm:$0xff] }
  0x10   : > { %v2896_v7 = vadd.s32 24, %v2872_v1  ;;  %v2899_v8 = vadd.s32 40, %v2872_v1  ;;  %v2905_v9 = vadd.s32 48, %v2872_v1  ;;  %v2908_v10 = vadd.s32 56, %v2872_v1  ;;  %v299_v23 = vld [vmem:[%s286_s10 + $0x10] sm:$0xff]  ;;  %v300_v24 = vld [vmem:[%s286_s10 + $0x18] sm:$0xff] }
  0x11   : > { %2747 = vset.pattern.permute.xlu1 %v2878_v2  ;;  %2749 = vset.pattern.permute.xlu2 %v2882_v3  ;;  %v365_v11 = vperm.slane %v2888_v4, 1  ;;  %v2928_v14 = vpack.c.bf16 %v303_v12, %v303_v12  ;;  %v2930_v15 = vpack.c.bf16 %v304_v13, %v304_v13  ;;  %v2936_v21 = vpack.c.bf16 %v301_v18, %v301_v18  ;;  %v297_v33 = vld [vmem:[%s286_s10] sm:$0xff]  ;;  %v298_v34 = vld [vmem:[%s286_s10 + $0x8] sm:$0xff] }
  0x12   : > { %v2938_v22 = vpack.c.bf16 %v302_v19, %v302_v19  ;;  %v2940_v25 = vpack.c.bf16 %v299_v23, %v299_v23  ;;  %v2942_v26 = vpack.c.bf16 %v300_v24, %v300_v24  ;;  %v2956_v35 = vpack.c.bf16 %v297_v33, %v297_v33 }
  0x13   : > { %v882_v16 = vunpack.c.l.b16 %v2928_v14  ;;  %v883_v17 = vunpack.c.l.b16 %v2930_v15  ;;  %v880_v27 = vunpack.c.l.b16 %v2936_v21  ;;  %v2958_v36 = vpack.c.bf16 %v298_v34, %v298_v34 }
  0x14   : > { %v881_v28 = vunpack.c.l.b16 %v2938_v22  ;;  %v878_v29 = vunpack.c.l.b16 %v2940_v25  ;;  %v879_v30 = vunpack.c.l.b16 %v2942_v26  ;;  %v876_v37 = vunpack.c.l.b16 %v2956_v35 }
  0x15   : > { %v2934_v20 = vpack.c.b16 %v883_v17, %v882_v16  ;;  %v877_v38 = vunpack.c.l.b16 %v2958_v36  ;;  %v414_v40 = vperm.slane %v2888_v4, 2  ;;  %v463_v58 = vperm.slane %v2888_v4, 3 }
  0x16   : > { %v2949_v31 = vpack.c.b16 %v881_v28, %v880_v27  ;;  %v2954_v32 = vpack.c.b16 %v879_v30, %v878_v29  ;;  %v2822_v33 = vmov 65535  }
  0x17   : > { %321 = vperm.xlu0 %2745, %v316_v5   ;;  %993 = vmatpush.bf16.msra.mxu0 %v2934_v20  ;;  %v2963_v39 = vpack.c.b16 %v877_v38, %v876_v37  ;;  %v1279_v34 = vsel %vm1277_vm15, 4294967295, %v2822_v33  ;;  %v1263_v37 = vld [vmem:[%s4065_s3] sm:$0x3] }
  0x19   : > { %333 = vperm.xlu1 %2747, %v316_v5   ;;  %345 = vperm.xlu2 %2749, %v316_v5  }
  0x1b   : > { %994 = vmatpush.bf16.msra.mxu0 %v2949_v31 }
  0x1f   : > { %2746 = vset.pattern.permute.xlu0 %v2893_v6  ;;  %995 = vmatpush.bf16.msra.mxu0 %v2954_v32 }
  0x21   : > { %2748 = vset.pattern.permute.xlu1 %v2896_v7  ;;  %2750 = vset.pattern.permute.xlu2 %v2899_v8 }
  0x23   : > { %996 = vmatpush.bf16.msra.mxu0 %v2963_v39 }
  0x27   : > { %327 = vperm.xlu0 %2746, %v316_v5  }
  0x29   : > { %339 = vperm.xlu1 %2748, %v316_v5   ;;  %351 = vperm.xlu2 %2750, %v316_v5  }
  0x2f   : > { %2753 = vset.pattern.permute.xlu0 %v2872_v1 }
  0x31   : > { %2751 = vset.pattern.permute.xlu1 %v2905_v9  ;;  %2752 = vset.pattern.permute.xlu2 %v2908_v10 }
  0x37   : > { %370 = vperm.xlu0 %2753, %v365_v11  }
  0x39   : > { %357 = vperm.xlu1 %2751, %v316_v5   ;;  %363 = vperm.xlu2 %2752, %v316_v5  }
  0x3f   : > { %2758 = vset.pattern.permute.xlu0 %v2899_v8 }
  0x41   : > { %2754 = vset.pattern.permute.xlu1 %v2893_v6  ;;  %2755 = vset.pattern.permute.xlu2 %v2878_v2 }
  0x47   : > { %400 = vperm.xlu0 %2758, %v365_v11  }
  0x49   : > { %376 = vperm.xlu1 %2754, %v365_v11   ;;  %382 = vperm.xlu2 %2755, %v365_v11  }
  0x4f   : > { %2763 = vset.pattern.permute.xlu0 %v2878_v2 }
  0x51   : > { %2756 = vset.pattern.permute.xlu1 %v2896_v7  ;;  %2757 = vset.pattern.permute.xlu2 %v2882_v3 }
  0x57   : > { %431 = vperm.xlu0 %2763, %v414_v40  }
  0x59   : > { %388 = vperm.xlu1 %2756, %v365_v11   ;;  %394 = vperm.xlu2 %2757, %v365_v11  }
  0x5f   : > { %2768 = vset.pattern.permute.xlu0 %v2908_v10 }
  0x61   : > { %2759 = vset.pattern.permute.xlu1 %v2905_v9  ;;  %2760 = vset.pattern.permute.xlu2 %v2908_v10 }
  0x67   : > { %461 = vperm.xlu0 %2768, %v414_v40  }
  0x69   : > { %406 = vperm.xlu1 %2759, %v365_v11   ;;  %412 = vperm.xlu2 %2760, %v365_v11  }
  0x6f   : > { %2773 = vset.pattern.permute.xlu0 %v2882_v3 }
  0x71   : > { %2761 = vset.pattern.permute.xlu1 %v2872_v1  ;;  %2762 = vset.pattern.permute.xlu2 %v2893_v6 }
  0x73   : > { %v346_v51 = vpop.permute.xlu2 %345 }
  0x74   : > { %vm712_vm5 = vcmp.eq.s32.totalorder %v346_v51, %v2971_v42 }
  0x75   : > { %v776_v55 = vsel %vm712_vm5, 1.0, %v2821_v45 }
  0x77   : > { %492 = vperm.xlu0 %2773, %v463_v58  }
  0x79   : > { %419 = vperm.xlu1 %2761, %v414_v40   ;;  %425 = vperm.xlu2 %2762, %v414_v40  }
  0x7f   : > { %2778 = vset.pattern.permute.xlu0 %v2893_v6 }
  0x81   : > { %2764 = vset.pattern.permute.xlu1 %v2896_v7  ;;  %2765 = vset.pattern.permute.xlu2 %v2882_v3 }
  0x83   : > { %v352_v54 = vpop.permute.xlu2 %351 }
  0x84   : > { %vm713_vm6 = vcmp.eq.s32.totalorder %v352_v54, %v2971_v42 }
  0x85   : > { %v777_v56 = vsel %vm713_vm6, 1.0, %v2821_v45 }
  0x86   : > { %v838_v57 = vpack.c.bf16 %v777_v56, %v776_v55 }
  0x89   : > { %437 = vperm.xlu1 %2764, %v414_v40   ;;  %v322_v41 = vpop.permute.xlu0 %321  ;;  %443 = vperm.xlu2 %2765, %v414_v40  }
  0x8a   : > { %vm708_vm0 = vcmp.eq.s32.totalorder %v322_v41, %v2971_v42 }
  0x8b   : > { %v334_v43 = vpop.permute.xlu1 %333  ;;  %v772_v46 = vsel %vm708_vm0, 1.0, %v2821_v45  ;;  %vm1278_vm0 = vcmask 1041408  }
  0x8c   : > { %vm710_vm4 = vcmp.eq.s32.totalorder %v334_v43, %v2971_v42  ;;  %v1280_v38 = vsel %vm1278_vm0, %v1279_v34, 0 }
  0x8d   : > { %v774_v52 = vsel %vm710_vm4, 1.0, %v2821_v45  ;;  %v1282_v43 = vand.u32 %v1280_v38, %v1263_v37  ;;  %vm1264_vm4 = vcmask 23552  }
  0x8f   : > { %1291 = vmatpush.bf16.msra.mxu1 %v1282_v43 }
  0x91   : > { %2766 = vset.pattern.permute.xlu1 %v2899_v8  ;;  %2767 = vset.pattern.permute.xlu2 %v2905_v9 }
  0x92   : > { %2615 = vmatmul.msk.bf16.vlgmr.msra.gmra.mxu1 %vm1264_vm4, %v2963_v39 }
  0x93   : > { %v364_v59 = vpop.permute.xlu2 %363 }
  0x94   : > { %vm715_vm7 = vcmp.eq.s32.totalorder %v364_v59, %v2971_v42 }
  0x95   : > { %v779_v61 = vsel %vm715_vm7, 1.0, %v2821_v45 }
  0x99   : > { %v328_v44 = vpop.permute.xlu0 %327  ;;  %449 = vperm.xlu1 %2766, %v414_v40   ;;  %455 = vperm.xlu2 %2767, %v414_v40  }
  0x9a   : > { %vm709_vm1 = vcmp.eq.s32.totalorder %v328_v44, %v2971_v42  ;;  %v1262_v44 = vld [vmem:[%s4064_s2] sm:$0x3] }
  0x9b   : > { %v773_v47 = vsel %vm709_vm1, 1.0, %v2821_v45  ;;  %v340_v49 = vpop.permute.xlu1 %339 }
  0x9c   : > { %v836_v48 = vpack.c.bf16 %v773_v47, %v772_v46  ;;  %vm711_vm3 = vcmp.eq.s32.totalorder %v340_v49, %v2971_v42  ;;  %v1550_v46 = vand.u32 %v1280_v38, %v1262_v44  ;;  %v512_v47 = vperm.slane %v2888_v4, 4 }
  0x9d   : > { %v775_v50 = vsel %vm711_vm3, 1.0, %v2821_v45 }
  0x9e   : > { %2583 = vmatmul.msk.bf16.vlgmr.msra.gmra.mxu0 %vm892_vm2, %v836_v48  ;;  %v837_v53 = vpack.c.bf16 %v775_v50, %v774_v52  ;;  %1559 = vmatpush.bf16.msra.mxu2 %v1550_v46 }
  0x9f   : > { %523 = vperm.xlu0 %2778, %v512_v47  }
  0xa1   : > { %2769 = vset.pattern.permute.xlu1 %v2872_v1  ;;  %2770 = vset.pattern.permute.xlu2 %v2893_v6 }
  0xa2   : > { %2616 = vmatmul.msk.bf16.gmra.mxu1 %vm1264_vm4, %v2954_v32 }
  0xa3   : > { %v383_v16 = vpop.permute.xlu2 %382 }
  0xa4   : > { %vm718_vm11 = vcmp.eq.s32.totalorder %v383_v16, %v2971_v42 }
  0xa5   : > { %v782_v18 = vsel %vm718_vm11, 1.0, %v2821_v45 }
  0xa7   : > { %2783 = vset.pattern.permute.xlu0 %v2905_v9 }
  0xa9   : > { %468 = vperm.xlu1 %2769, %v463_v58   ;;  %474 = vperm.xlu2 %2770, %v463_v58   ;;  %v371_v5 = vpop.permute.xlu0 %370 }
  0xaa   : > { %vm716_vm10 = vcmp.eq.s32.totalorder %v371_v5, %v2971_v42 }
  0xab   : > { %v358_v60 = vpop.permute.xlu1 %357  ;;  %v780_v12 = vsel %vm716_vm10, 1.0, %v2821_v45 }
  0xac   : > { %vm714_vm8 = vcmp.eq.s32.totalorder %v358_v60, %v2971_v42 }
  0xad   : > { %v778_v62 = vsel %vm714_vm8, 1.0, %v2821_v45 }
  0xae   : > { %2584 = vmatmul.msk.bf16.gmra.mxu0 %vm892_vm2, %v837_v53  ;;  %v839_v63 = vpack.c.bf16 %v779_v61, %v778_v62 }
  0xaf   : > { %553 = vperm.xlu0 %2783, %v512_v47  }
  0xb1   : > { %2771 = vset.pattern.permute.xlu1 %v2878_v2  ;;  %2772 = vset.pattern.permute.xlu2 %v2896_v7 }
  0xb2   : > { %2617 = vmatmul.msk.bf16.gmra.mxu1 %vm1264_vm4, %v2949_v31 }
  0xb3   : > { %v395_v24 = vpop.permute.xlu2 %394 }
  0xb4   : > { %vm720_vm13 = vcmp.eq.s32.totalorder %v395_v24, %v2971_v42 }
  0xb5   : > { %v784_v28 = vsel %vm720_vm13, 1.0, %v2821_v45 }
  0xb7   : > { %2788 = vset.pattern.permute.xlu0 %v2896_v7 }
  0xb9   : > { %480 = vperm.xlu1 %2771, %v463_v58   ;;  %486 = vperm.xlu2 %2772, %v463_v58   ;;  %v401_v27 = vpop.permute.xlu0 %400 }
  0xba   : > { %vm721_vm14 = vcmp.eq.s32.totalorder %v401_v27, %v2971_v42 }
  0xbb   : > { %v377_v0 = vpop.permute.xlu1 %376  ;;  %v785_v29 = vsel %vm721_vm14, 1.0, %v2821_v45 }
  0xbc   : > { %vm717_vm9 = vcmp.eq.s32.totalorder %v377_v0, %v2971_v42  ;;  %v842_v30 = vpack.c.bf16 %v785_v29, %v784_v28  ;;  %v3084_v29 = vunpack.c.l.bf16 %v2936_v21 }
  0xbd   : > { %v781_v11 = vsel %vm717_vm9, 1.0, %v2821_v45 }
  0xbe   : > { %2585 = vmatmul.msk.bf16.gmra.mxu0 %vm892_vm2, %v838_v57  ;;  %v840_v13 = vpack.c.bf16 %v781_v11, %v780_v12  ;;  %v3049_v57 = vunpack.c.l.bf16 %v2956_v35  ;;  %v3067_v12 = vunpack.c.l.bf16 %v2940_v25 }
  0xc1   : > { %2774 = vset.pattern.permute.xlu1 %v2899_v8  ;;  %2775 = vset.pattern.permute.xlu2 %v2905_v9 }
  0xc2   : > { %2618 = vmatmul.msk.bf16.gmra.mxu1 %vm1264_vm4, %v2934_v20 }
  0xc3   : > { %v413_v40 = vpop.permute.xlu2 %412 }
  0xc4   : > { %vm723_vm1 = vcmp.eq.s32.totalorder %v413_v40, %v2971_v42 }
  0xc5   : > { %v787_v48 = vsel %vm723_vm1, 1.0, %v2821_v45 }
  0xc9   : > { %498 = vperm.xlu1 %2774, %v463_v58   ;;  %504 = vperm.xlu2 %2775, %v463_v58   ;;  %v432_v60 = vpop.permute.xlu0 %431 }
  0xca   : > { %vm726_vm8 = vcmp.eq.s32.totalorder %v432_v60, %v2971_v42 }
  0xcb   : > { %v389_v17 = vpop.permute.xlu1 %388 }
  0xcc   : > { %vm719_vm12 = vcmp.eq.s32.totalorder %v389_v17, %v2971_v42 }
  0xcd   : > { %v783_v19 = vsel %vm719_vm12, 1.0, %v2821_v45 }
  0xce   : > { %2586 = vmatmul.msk.bf16.gmra.mxu0 %vm892_vm2, %v839_v63  ;;  %v841_v23 = vpack.c.bf16 %v783_v19, %v782_v18 }
  0xd1   : > { %2776 = vset.pattern.permute.xlu1 %v2908_v10  ;;  %2777 = vset.pattern.permute.xlu2 %v2872_v1 }
  0xd2   : > { %2619 = vmatmul.msk.bf16.gmra.mxu1 %vm1264_vm4, %v2963_v39 }
  0xd3   : > { %v426_v51 = vpop.permute.xlu2 %425 }
  0xd4   : > { %vm725_vm5 = vcmp.eq.s32.totalorder %v426_v51, %v2971_v42 }
  0xd5   : > { %v789_v53 = vsel %vm725_vm5, 1.0, %v2821_v45 }
  0xd9   : > { %510 = vperm.xlu1 %2776, %v463_v58   ;;  %517 = vperm.xlu2 %2777, %v512_v47   ;;  %v3052_v58 = vunpack.c.l.bf16 %v2958_v36  ;;  %v790_v36 = vsel %vm726_vm8, 1.0, %v2821_v45  ;;  %v462_v34 = vpop.permute.xlu0 %461 }
  0xda   : > { %vm731_vm12 = vcmp.eq.s32.totalorder %v462_v34, %v2971_v42 }
  0xdb   : > { %v407_v41 = vpop.permute.xlu1 %406 }
  0xdc   : > { %vm722_vm3 = vcmp.eq.s32.totalorder %v407_v41, %v2971_v42  ;;  %v3094_v41 = vperm.slane %v2888_v4, 5 }
  0xdd   : > { %v786_v49 = vsel %vm722_vm3, 1.0, %v2821_v45 }
  0xde   : > { %2587 = vmatmul.msk.bf16.gmra.mxu0 %vm892_vm2, %v840_v13  ;;  %v843_v50 = vpack.c.bf16 %v787_v48, %v786_v49  ;;  %v3070_v13 = vunpack.c.l.bf16 %v2942_v26  ;;  %584 = vperm.xlu0 %2788, %v3094_v41   ;;  %v3111_v48 = vunpack.c.l.bf16 %v2930_v15 }
  0xe1   : > { %2779 = vset.pattern.permute.xlu1 %v2878_v2  ;;  %2780 = vset.pattern.permute.xlu2 %v2896_v7 }
  0xe2   : > { %2620 = vmatmul.msk.bf16.gmra.mxu1 %vm1264_vm4, %v2954_v32 }
  0xe3   : > { %v444_v16 = vpop.permute.xlu2 %443 }
  0xe4   : > { %vm728_vm9 = vcmp.eq.s32.totalorder %v444_v16, %v2971_v42 }
  0xe5   : > { %v792_v25 = vsel %vm728_vm9, 1.0, %v2821_v45 }
  0xe6   : > { %2793 = vset.pattern.permute.xlu0 %v2872_v1 }
  0xe9   : > { %529 = vperm.xlu1 %2779, %v512_v47   ;;  %535 = vperm.xlu2 %2780, %v512_v47  }
  0xeb   : > { %v420_v52 = vpop.permute.xlu1 %419 }
  0xec   : > { %vm724_vm6 = vcmp.eq.s32.totalorder %v420_v52, %v2971_v42 }
  0xed   : > { %v788_v54 = vsel %vm724_vm6, 1.0, %v2821_v45 }
  0xee   : > { %2588 = vmatmul.msk.bf16.gmra.mxu0 %vm892_vm2, %v841_v23  ;;  %v844_v55 = vpack.c.bf16 %v789_v53, %v788_v54 }
  0xf1   : > { %2781 = vset.pattern.permute.xlu1 %v2882_v3  ;;  %2782 = vset.pattern.permute.xlu2 %v2899_v8 }
  0xf2   : > { %2621 = vmatmul.msk.bf16.gmra.mxu1 %vm1264_vm4, %v2949_v31 }
  0xf3   : > { %v456_v33 = vpop.permute.xlu2 %455 }
  0xf4   : > { %vm730_vm11 = vcmp.eq.s32.totalorder %v456_v33, %v2971_v42 }
  0xf5   : > { %v794_v21 = vsel %vm730_vm11, 1.0, %v2821_v45 }
  0xf9   : > { %541 = vperm.xlu1 %2781, %v512_v47   ;;  %547 = vperm.xlu2 %2782, %v512_v47  }
  0xfb   : > { %v438_v59 = vpop.permute.xlu1 %437 }
  0xfc   : > { %vm727_vm7 = vcmp.eq.s32.totalorder %v438_v59, %v2971_v42 }
  0xfd   : > { %v791_v35 = vsel %vm727_vm7, 1.0, %v2821_v45 }
  0xfe   : > { %2589 = vmatmul.msk.bf16.gmra.mxu0 %vm892_vm2, %v842_v30  ;;  %v845_v5 = vpack.c.bf16 %v791_v35, %v790_v36  ;;  %v3087_v30 = vunpack.c.l.bf16 %v2938_v22  ;;  %v795_v22 = vsel %vm731_vm12, 1.0, %v2821_v45 }
  0xff   : > { %v847_v44 = vpack.c.bf16 %v795_v22, %v794_v21 }
 0x101   : > { %2784 = vset.pattern.permute.xlu1 %v2908_v10  ;;  %2785 = vset.pattern.permute.xlu2 %v2872_v1 }
 0x102   : > { %2622 = vmatmul.msk.bf16.gmra.mxu1 %vm1264_vm4, %v2934_v20 }
 0x103   : > { %v475_v49 = vpop.permute.xlu2 %474 }
 0x104   : > { %vm733_vm13 = vcmp.eq.s32.totalorder %v475_v49, %v2971_v42 }
 0x109   : > { %559 = vperm.xlu1 %2784, %v512_v47   ;;  %566 = vperm.xlu2 %2785, %v3094_v41   ;;  %v3108_v47 = vunpack.c.l.bf16 %v2928_v14  ;;  %v797_v14 = vsel %vm733_vm13, 1.0, %v2821_v45 }
 0x10b   : > { %v450_v17 = vpop.permute.xlu1 %449 }
 0x10c   : > { %vm729_vm10 = vcmp.eq.s32.totalorder %v450_v17, %v2971_v42  ;;  %v493_v17 = vpop.permute.xlu0 %492 }
 0x10d   : > { %v793_v26 = vsel %vm729_vm10, 1.0, %v2821_v45  ;;  %vm736_vm3 = vcmp.eq.s32.totalorder %v493_v17, %v2971_v42 }
 0x10e   : > { %2590 = vmatmul.msk.bf16.gmra.mxu0 %vm892_vm2, %v843_v50  ;;  %v846_v27 = vpack.c.bf16 %v793_v26, %v792_v25  ;;  %v800_v26 = vsel %vm736_vm3, 1.0, %v2821_v45 }
 0x111   : > { %2786 = vset.pattern.permute.xlu1 %v2893_v6  ;;  %2787 = vset.pattern.permute.xlu2 %v2878_v2 }
 0x112   : > { %2623 = vmatmul.msk.bf16.gmra.mxu1 %vm1264_vm4, %v2963_v39 }
 0x113   : > { %v487_v59 = vpop.permute.xlu2 %486 }
 0x114   : > { %vm735_vm15 = vcmp.eq.s32.totalorder %v487_v59, %v2971_v42  ;;  %v2732_v59 = vld [vmem:[%s4067_s5 + $0x8] sm:$0xff] }
 0x115   : > { %v799_v35 = vsel %vm735_vm15, 1.0, %v2821_v45 }
 0x119   : > { %572 = vperm.xlu1 %2786, %v3094_v41   ;;  %578 = vperm.xlu2 %2787, %v3094_v41  }
 0x11b   : > { %v998_v56 = vpop.f32.mrf.mxu0  ;;  %v469_v50 = vpop.permute.xlu1 %468 }
 0x11c   : > { %v1166_v62 = vsub.f32 %v998_v56, %v3049_v57  ;;  %vm732_vm14 = vcmp.eq.s32.totalorder %v469_v50, %v2971_v42 }
 0x11d   : > { %v796_v15 = vsel %vm732_vm14, 1.0, %v2821_v45 }
 0x11e   : > { %2591 = vmatmul.msk.bf16.gmra.mxu0 %vm892_vm2, %v844_v55  ;;  %v848_v55 = vpack.c.bf16 %v797_v14, %v796_v15 }
 0x121   : > { %2789 = vset.pattern.permute.xlu1 %v2882_v3  ;;  %2790 = vset.pattern.permute.xlu2 %v2899_v8 }
 0x122   : > { %2624 = vmatmul.msk.bf16.gmra.mxu1 %vm1264_vm4, %v2954_v32 }
 0x123   : > { %v1000_v61 = vpop.f32.mrf.mxu0  ;;  %v505_v33 = vpop.permute.xlu2 %504 }
 0x124   : > { %v1167_v63 = vsub.f32 %v1000_v61, %v3052_v58  ;;  %vm738_vm5 = vcmp.eq.s32.totalorder %v505_v33, %v2971_v42 }
 0x125   : > { %v802_v22 = vsel %vm738_vm5, 1.0, %v2821_v45 }
 0x126   : > { %v1230_v0 = vpack.c.bf16 %v1167_v63, %v1166_v62 }
 0x128   : > { %2647 = vmatmul.msk.bf16.vlgmr.msra.gmra.mxu2 %vm1264_vm4, %v1230_v0 }
 0x129   : > { %590 = vperm.xlu1 %2789, %v3094_v41   ;;  %596 = vperm.xlu2 %2790, %v3094_v41  }
 0x12b   : > { %v1003_v11 = vpop.f32.mrf.mxu0  ;;  %v481_v60 = vpop.permute.xlu1 %480 }
 0x12c   : > { %v1168_v19 = vsub.f32 %v1003_v11, %v3067_v12  ;;  %vm734_vm0 = vcmp.eq.s32.totalorder %v481_v60, %v2971_v42 }
 0x12d   : > { %v798_v36 = vsel %vm734_vm0, 1.0, %v2821_v45 }
 0x12e   : > { %2592 = vmatmul.msk.bf16.gmra.mxu0 %vm892_vm2, %v845_v5  ;;  %v849_v5 = vpack.c.bf16 %v799_v35, %v798_v36 }
 0x131   : > { %2791 = vset.pattern.permute.xlu1 %v2905_v9  ;;  %2792 = vset.pattern.permute.xlu2 %v2908_v10 }
 0x132   : > { %2625 = vmatmul.msk.bf16.gmra.mxu1 %vm1264_vm4, %v2949_v31 }
 0x133   : > { %v1005_v18 = vpop.f32.mrf.mxu0 }
 0x134   : > { %v1169_v23 = vsub.f32 %v1005_v18, %v3070_v13 }
 0x136   : > { %v1231_v24 = vpack.c.bf16 %v1169_v23, %v1168_v19 }
 0x138   : > { %2648 = vmatmul.msk.bf16.gmra.mxu2 %vm1264_vm4, %v1231_v24 }
 0x139   : > { %602 = vperm.xlu1 %2791, %v3094_v41   ;;  %608 = vperm.xlu2 %2792, %v3094_v41   ;;  %v610_v41 = vperm.slane %v2888_v4, 6 }
 0x13b   : > { %v1008_v28 = vpop.f32.mrf.mxu0  ;;  %v499_v16 = vpop.permute.xlu1 %498  ;;  %615 = vperm.xlu0 %2793, %v610_v41  }
 0x13c   : > { %v1170_v38 = vsub.f32 %v1008_v28, %v3084_v29  ;;  %vm737_vm1 = vcmp.eq.s32.totalorder %v499_v16, %v2971_v42 }
 0x13d   : > { %v801_v25 = vsel %vm737_vm1, 1.0, %v2821_v45 }
 0x13e   : > { %2593 = vmatmul.msk.bf16.gmra.mxu0 %vm892_vm2, %v846_v27  ;;  %v850_v27 = vpack.c.bf16 %v801_v25, %v800_v26 }
 0x141   : > { %2794 = vset.pattern.permute.xlu1 %v2893_v6  ;;  %2795 = vset.pattern.permute.xlu2 %v2878_v2 }
 0x142   : > { %2626 = vmatmul.msk.bf16.gmra.mxu1 %vm1264_vm4, %v2934_v20 }
 0x143   : > { %v1010_v37 = vpop.f32.mrf.mxu0  ;;  %2798 = vset.pattern.permute.xlu0 %v2899_v8 }
 0x144   : > { %v1171_v40 = vsub.f32 %v1010_v37, %v3087_v30 }
 0x146   : > { %v1232_v43 = vpack.c.bf16 %v1171_v40, %v1170_v38  ;;  %v3154_v38 = vpop.f32.mrf.mxu1 }
 0x148   : > { %2649 = vmatmul.msk.bf16.gmra.mxu2 %vm1264_vm4, %v1232_v43 }
 0x149   : > { %621 = vperm.xlu1 %2794, %v610_v41   ;;  %627 = vperm.xlu2 %2795, %v610_v41  }
 0x14b   : > { %v1013_v46 = vpop.f32.mrf.mxu0  ;;  %v511_v34 = vpop.permute.xlu1 %510  ;;  %645 = vperm.xlu0 %2798, %v610_v41  }
 0x14c   : > { %v1172_v52 = vsub.f32 %v1013_v46, %v3108_v47  ;;  %vm739_vm6 = vcmp.eq.s32.totalorder %v511_v34, %v2971_v42  ;;  %v3218_v34 = vld [vmem:[%s4066_s4] ss:$0 sm:$0xff] }
 0x14e   : > { %2594 = vmatmul.msk.bf16.gmra.mxu0 %vm892_vm2, %v847_v44  ;;  %v803_v44 = vsel %vm739_vm6, 1.0, %v2821_v45  ;;  %v3166_v50 = vpop.f32.mrf.mxu1 }
 0x14f   : > { %v851_v46 = vpack.c.bf16 %v803_v44, %v802_v22 }
 0x151   : > { %2796 = vset.pattern.permute.xlu1 %v2896_v7  ;;  %2797 = vset.pattern.permute.xlu2 %v2882_v3 }
 0x152   : > { %2627 = vmatmul.msk.bf16.gmra.mxu1 %vm1264_vm4, %v2963_v39 }
 0x153   : > { %v1015_v51 = vpop.f32.mrf.mxu0  ;;  %2803 = vset.pattern.permute.xlu0 %v2878_v2 }
 0x154   : > { %v1173_v53 = vsub.f32 %v1015_v51, %v3111_v48  ;;  %v2734_v51 = vld [vmem:[%s4067_s5 + $0x18] sm:$0xff] }
 0x155   : > { %2085 = vmatpush.bf16.msra.mxu3 %v2734_v51 }
 0x156   : > { %v1233_v54 = vpack.c.bf16 %v1173_v53, %v1172_v52  ;;  %v518_v52 = vpop.permute.xlu2 %517  ;;  %v524_v53 = vpop.permute.xlu0 %523 }
 0x157   : > { %v3178_v15 = vpop.f32.mrf.mxu1  ;;  %vm740_vm7 = vcmp.eq.s32.totalorder %v518_v52, %v2971_v42  ;;  %vm741_vm8 = vcmp.eq.s32.totalorder %v524_v53, %v2971_v42 }
 0x158   : > { %2650 = vmatmul.msk.bf16.gmra.mxu2 %vm1264_vm4, %v1233_v54  ;;  %v2733_v54 = vld [vmem:[%s4067_s5 + $0x10] sm:$0xff] }
 0x159   : > { %2086 = vmatpush.bf16.msra.mxu3 %v2733_v54  ;;  %633 = vperm.xlu1 %2796, %v610_v41  }
 0x15a   : > { %639 = vperm.xlu2 %2797, %v610_v41  }
 0x15b   : > { %v1018_v56 = vpop.f32.mrf.mxu0 }
 0x15c   : > { %v1174_v62 = vsub.f32 %v1018_v56, %v3049_v57 }
 0x15d   : > { %2087 = vmatpush.bf16.msra.mxu3 %v2732_v59 }
 0x15e   : > { %2595 = vmatmul.msk.bf16.gmra.mxu0 %vm892_vm2, %v848_v55 }
 0x15f   : > { %v3195_v36 = vpop.f32.mrf.mxu1 }
 0x161   : > { %2799 = vset.pattern.permute.xlu1 %v2905_v9 }
 0x162   : > { %2800 = vset.pattern.permute.xlu2 %v2908_v10  ;;  %2628 = vmatmul.msk.bf16.gmra.mxu1 %vm1264_vm4, %v2954_v32 }
 0x163   : > { %v1020_v61 = vpop.f32.mrf.mxu0 }
 0x164   : > { %v1175_v63 = vsub.f32 %v1020_v61, %v3052_v58  ;;  %v804_v61 = vsel %vm740_vm7, 1.0, %v2821_v45 }
 0x166   : > { %v1234_v0 = vpack.c.bf16 %v1175_v63, %v1174_v62  ;;  %v805_v62 = vsel %vm741_vm8, 1.0, %v2821_v45  ;;  %v2731_v63 = vld [vmem:[%s4067_s5] sm:$0xff] }
 0x167   : > { %2088 = vmatpush.bf16.msra.mxu3 %v2731_v63  ;;  %v3201_v17 = vpop.f32.mrf.mxu1  ;;  %v554_v63 = vpop.permute.xlu0 %553 }
 0x168   : > { %2651 = vmatmul.msk.bf16.gmra.mxu2 %vm1264_vm4, %v1234_v0  ;;  %v852_v0 = vpack.c.bf16 %v805_v62, %v804_v61  ;;  %vm746_vm14 = vcmp.eq.s32.totalorder %v554_v63, %v2971_v42 }
 0x169   : > { %651 = vperm.xlu1 %2799, %v610_v41  }
 0x16a   : > { %657 = vperm.xlu2 %2800, %v610_v41  }
 0x16b   : > { %v1023_v11 = vpop.f32.mrf.mxu0 }
 0x16c   : > { %v1176_v19 = vsub.f32 %v1023_v11, %v3067_v12  ;;  %v530_v11 = vpop.permute.xlu1 %529 }
 0x16d   : > { %vm742_vm10 = vcmp.eq.s32.totalorder %v530_v11, %v2971_v42 }
 0x16e   : > { %2596 = vmatmul.msk.bf16.gmra.mxu0 %vm892_vm2, %v849_v5  ;;  %v536_v5 = vpop.permute.xlu2 %535 }
 0x16f   : > { %vm743_vm9 = vcmp.eq.s32.totalorder %v536_v5, %v2971_v42 }
 0x170   : > { %v807_v2 = vsel %vm743_vm9, 1.0, %v2821_v45 }
 0x171   : > { %2801 = vset.pattern.permute.xlu1 %v2872_v1 }
 0x172   : > { %2802 = vset.pattern.permute.xlu2 %v2893_v6 }
 0x173   : > { %v1025_v18 = vpop.f32.mrf.mxu0 }
 0x174   : > { %v1177_v23 = vsub.f32 %v1025_v18, %v3070_v13 }
 0x176   : > { %v1235_v24 = vpack.c.bf16 %v1177_v23, %v1176_v19 }
 0x178   : > { %2652 = vmatmul.msk.bf16.gmra.mxu2 %vm1264_vm4, %v1235_v24  ;;  %v806_v24 = vsel %vm742_vm10, 1.0, %v2821_v45 }
 0x179   : > { %v853_v25 = vpack.c.bf16 %v807_v2, %v806_v24 }
 0x17b   : > { %v1028_v28 = vpop.f32.mrf.mxu0 }
 0x17c   : > { %v1178_v40 = vsub.f32 %v1028_v28, %v3084_v29  ;;  %v3212_v28 = vpop.f32.mrf.mxu1  ;;  %2629 = vmatmul.msk.bf16.gmra.mxu1 %vm1264_vm4, %v2949_v31 }
 0x17e   : > { %2597 = vmatmul.msk.bf16.gmra.mxu0 %vm892_vm2, %v850_v27 }
 0x183   : > { %v1030_v37 = vpop.f32.mrf.mxu0 }
 0x184   : > { %v1179_v43 = vsub.f32 %v1030_v37, %v3087_v30  ;;  %v548_v37 = vpop.permute.xlu2 %547 }
 0x185   : > { %vm745_vm11 = vcmp.eq.s32.totalorder %v548_v37, %v2971_v42 }
 0x186   : > { %v1236_v21 = vpack.c.bf16 %v1179_v43, %v1178_v40  ;;  %v542_v40 = vpop.permute.xlu1 %541  ;;  %v809_v51 = vsel %vm745_vm11, 1.0, %v2821_v45 }
 0x187   : > { %vm744_vm12 = vcmp.eq.s32.totalorder %v542_v40, %v2971_v42 }
 0x188   : > { %2653 = vmatmul.msk.bf16.gmra.mxu2 %vm1264_vm4, %v1236_v21  ;;  %v808_v52 = vsel %vm744_vm12, 1.0, %v2821_v45 }
 0x18b   : > { %v1033_v49 = vpop.f32.mrf.mxu0 }
 0x18c   : > { %v1180_v55 = vsub.f32 %v1033_v49, %v3108_v47 }
 0x18e   : > { %2598 = vmatmul.msk.bf16.gmra.mxu0 %vm892_vm2, %v851_v46  ;;  %v3229_v46 = vpop.f32.mrf.mxu1  ;;  %v560_v62 = vpop.permute.xlu1 %559 }
 0x18f   : > { %vm747_vm13 = vcmp.eq.s32.totalorder %v560_v62, %v2971_v42 }
 0x193   : > { %v1035_v14 = vpop.f32.mrf.mxu0 }
 0x194   : > { %v1181_v56 = vsub.f32 %v1035_v14, %v3111_v48  ;;  %v854_v14 = vpack.c.bf16 %v809_v51, %v808_v52 }
 0x196   : > { %v1237_v60 = vpack.c.bf16 %v1181_v56, %v1180_v55 }
 0x198   : > { %2654 = vmatmul.msk.bf16.gmra.mxu2 %vm1264_vm4, %v1237_v60  ;;  %v3237_v60 = vpop.f32.mrf.mxu1  ;;  %2630 = vmatmul.msk.bf16.gmra.mxu1 %vm1264_vm4, %v2934_v20 }
 0x19b   : > { %v1038_v35 = vpop.f32.mrf.mxu0 }
 0x19c   : > { %v1182_v18 = vsub.f32 %v1038_v35, %v3049_v57 }
 0x19e   : > { %2599 = vmatmul.msk.bf16.gmra.mxu0 %vm892_vm2, %v852_v0 }
 0x1a3   : > { %v1040_v16 = vpop.f32.mrf.mxu0 }
 0x1a4   : > { %v1183_v19 = vsub.f32 %v1040_v16, %v3052_v58 }
 0x1a6   : > { %v1238_v23 = vpack.c.bf16 %v1183_v19, %v1182_v18  ;;  %v3251_v19 = vperm.slane %v2888_v4, 7 }
 0x1a8   : > { %2655 = vmatmul.msk.bf16.gmra.mxu2 %vm1264_vm4, %v1238_v23  ;;  %664 = vperm.xlu1 %2801, %v3251_v19  }
 0x1a9   : > { %676 = vperm.xlu0 %2803, %v3251_v19   ;;  %670 = vperm.xlu2 %2802, %v3251_v19  }
 0x1ab   : > { %v1043_v26 = vpop.f32.mrf.mxu0  ;;  %v1561_v27 = vpop.f32.mrf.mxu2 }
 0x1ac   : > { %v1562_v33 = vadd.f32 %v1561_v27, %v3154_v38  ;;  %v1184_v38 = vsub.f32 %v1043_v26, %v3067_v12  ;;  %v810_v26 = vsel %vm746_vm14, 1.0, %v2821_v45 }
 0x1ae   : > { %2600 = vmatmul.msk.bf16.gmra.mxu0 %vm892_vm2, %v853_v25  ;;  %v1725_v43 = vadd.f32 %v3218_v34, %v1562_v33  ;;  %v811_v25 = vsel %vm747_vm13, 1.0, %v2821_v45 }
 0x1af   : > { %v855_v33 = vpack.c.bf16 %v811_v25, %v810_v26 }
 0x1b0   : > { %v1789_v1 = vmul.f32 0.2, %v1725_v43  ;;  %2804 = vset.pattern.permute.xlu1 %v2896_v7 }
 0x1b1   : > { %2808 = vset.pattern.permute.xlu0 %v2908_v10  ;;  %2805 = vset.pattern.permute.xlu2 %v2882_v3 }
 0x1b2   : > { %v1853_v54 = vmax.f32 %v1725_v43, %v1789_v1 }
 0x1b3   : > { %v1045_v41 = vpop.f32.mrf.mxu0  ;;  %v1563_v21 = vpop.f32.mrf.mxu2 }
 0x1b4   : > { %v1185_v22 = vsub.f32 %v1045_v41, %v3070_v13  ;;  %v1564_v44 = vadd.f32 %v1563_v21, %v3166_v50 }
 0x1b6   : > { %v1239_v49 = vpack.c.bf16 %v1185_v22, %v1184_v38  ;;  %v1726_v6 = vadd.f32 %v3218_v34, %v1564_v44  ;;  %v567_v38 = vpop.permute.xlu2 %566  ;;  %v573_v22 = vpop.permute.xlu1 %572 }
 0x1b7   : > { %vm748_vm15 = vcmp.eq.s32.totalorder %v567_v38, %v2971_v42  ;;  %vm749_vm0 = vcmp.eq.s32.totalorder %v573_v22, %v2971_v42 }
 0x1b8   : > { %v1790_v53 = vmul.f32 0.2, %v1726_v6  ;;  %2656 = vmatmul.msk.bf16.gmra.mxu2 %vm1264_vm4, %v1239_v49  ;;  %682 = vperm.xlu1 %2804, %v3251_v19  }
 0x1b9   : > { %706 = vperm.xlu0 %2808, %v3251_v19   ;;  %688 = vperm.xlu2 %2805, %v3251_v19  }
 0x1ba   : > { %v1854_v50 = vmax.f32 %v1726_v6, %v1790_v53  ;;  %v812_v53 = vsel %vm748_vm15, 1.0, %v2821_v45 }
 0x1bb   : > { %v1048_v55 = vpop.f32.mrf.mxu0  ;;  %v1566_v56 = vpop.f32.mrf.mxu2 }
 0x1bc   : > { %v1917_v59 = vpack.c.bf16 %v1854_v50, %v1853_v54  ;;  %v1567_v61 = vadd.f32 %v1566_v56, %v3178_v15  ;;  %v1186_v11 = vsub.f32 %v1048_v55, %v3084_v29  ;;  %v3248_v15 = vpop.f32.mrf.mxu1  ;;  %v813_v54 = vsel %vm749_vm0, 1.0, %v2821_v45 }
 0x1bd   : > { %v856_v55 = vpack.c.bf16 %v813_v54, %v812_v53 }
 0x1be   : > { %2601 = vmatmul.msk.bf16.gmra.mxu0 %vm892_vm2, %v854_v14  ;;  %2695 = vmatmul.msk.bf16.vlgmr.msra.gmra.mxu3 %vm892_vm2, %v1917_v59  ;;  %v1727_v0 = vadd.f32 %v3218_v34, %v1567_v61  ;;  %v591_v22 = vpop.permute.xlu1 %590 }
 0x1bf   : > { %vm752_vm6 = vcmp.eq.s32.totalorder %v591_v22, %v2971_v42 }
 0x1c0   : > { %v1791_v23 = vmul.f32 0.2, %v1727_v0  ;;  %2806 = vset.pattern.permute.xlu1 %v2899_v8  ;;  %v816_v53 = vsel %vm752_vm6, 1.0, %v2821_v45 }
 0x1c1   : > { %2807 = vset.pattern.permute.xlu2 %v2905_v9 }
 0x1c2   : > { %v1855_v4 = vmax.f32 %v1727_v0, %v1791_v23  ;;  %v579_v0 = vpop.permute.xlu2 %578 }
 0x1c3   : > { %v1050_v35 = vpop.f32.mrf.mxu0  ;;  %v1568_v5 = vpop.f32.mrf.mxu2  ;;  %vm750_vm1 = vcmp.eq.s32.totalorder %v579_v0, %v2971_v42 }
 0x1c4   : > { %v1187_v16 = vsub.f32 %v1050_v35, %v3087_v30  ;;  %v1569_v18 = vadd.f32 %v1568_v5, %v3195_v36  ;;  %v3262_v41 = vpop.f32.mrf.mxu1  ;;  %v585_v35 = vpop.permute.xlu0 %584  ;;  %v814_v25 = vsel %vm750_vm1, 1.0, %v2821_v45  ;;  %2631 = vmatmul.msk.bf16.gmra.mxu1 %vm1264_vm4, %v2963_v39 }
 0x1c5   : > { %vm751_vm3 = vcmp.eq.s32.totalorder %v585_v35, %v2971_v42 }
 0x1c6   : > { %v1240_v2 = vpack.c.bf16 %v1187_v16, %v1186_v11  ;;  %v1728_v24 = vadd.f32 %v3218_v34, %v1569_v18  ;;  %v815_v26 = vsel %vm751_vm3, 1.0, %v2821_v45  ;;  %v603_v0 = vpop.permute.xlu1 %602 }
 0x1c7   : > { %vm754_vm8 = vcmp.eq.s32.totalorder %v603_v0, %v2971_v42 }
 0x1c8   : > { %v1792_v36 = vmul.f32 0.2, %v1728_v24  ;;  %2657 = vmatmul.msk.bf16.gmra.mxu2 %vm1264_vm4, %v1240_v2  ;;  %694 = vperm.xlu1 %2806, %v3251_v19  }
 0x1c9   : > { %700 = vperm.xlu2 %2807, %v3251_v19  }
 0x1ca   : > { %v1856_v27 = vmax.f32 %v1728_v24, %v1792_v36  ;;  %v597_v38 = vpop.permute.xlu2 %596 }
 0x1cb   : > { %v1053_v37 = vpop.f32.mrf.mxu0  ;;  %v1571_v40 = vpop.f32.mrf.mxu2  ;;  %vm753_vm5 = vcmp.eq.s32.totalorder %v597_v38, %v2971_v42 }
 0x1cc   : > { %v1918_v43 = vpack.c.bf16 %v1856_v27, %v1855_v4  ;;  %v1572_v21 = vadd.f32 %v1571_v40, %v3201_v17  ;;  %v1188_v17 = vsub.f32 %v1053_v37, %v3108_v47  ;;  %v3276_v7 = vpop.f32.mrf.mxu1  ;;  %v857_v27 = vpack.c.bf16 %v815_v26, %v814_v25  ;;  %v616_v38 = vpop.permute.xlu0 %615 }
 0x1cd   : > { %v818_v25 = vsel %vm754_vm8, 1.0, %v2821_v45  ;;  %vm756_vm10 = vcmp.eq.s32.totalorder %v616_v38, %v2971_v42 }
 0x1ce   : > { %2602 = vmatmul.msk.bf16.gmra.mxu0 %vm892_vm2, %v855_v33  ;;  %2696 = vmatmul.msk.bf16.gmra.mxu3 %vm892_vm2, %v1918_v43  ;;  %v1729_v44 = vadd.f32 %v3218_v34, %v1572_v21 }
 0x1d0   : > { %v1793_v10 = vmul.f32 0.2, %v1729_v44 }
 0x1d2   : > { %v1857_v50 = vmax.f32 %v1729_v44, %v1793_v10 }
 0x1d3   : > { %v1055_v1 = vpop.f32.mrf.mxu0  ;;  %v1573_v49 = vpop.f32.mrf.mxu2 }
 0x1d4   : > { %v1189_v6 = vsub.f32 %v1055_v1, %v3111_v48  ;;  %v1574_v51 = vadd.f32 %v1573_v49, %v3212_v28  ;;  %v3287_v62 = vpop.f32.mrf.mxu1  ;;  %2632 = vmatmul.msk.bf16.gmra.mxu1 %vm1264_vm4, %v2954_v32 }
 0x1d6   : > { %v1241_v52 = vpack.c.bf16 %v1189_v6, %v1188_v17  ;;  %v1730_v3 = vadd.f32 %v3218_v34, %v1574_v51 }
 0x1d8   : > { %v1794_v28 = vmul.f32 0.2, %v1730_v3  ;;  %2658 = vmatmul.msk.bf16.gmra.mxu2 %vm1264_vm4, %v1241_v52 }
 0x1da   : > { %v1858_v14 = vmax.f32 %v1730_v3, %v1794_v28  ;;  %v817_v3 = vsel %vm753_vm5, 1.0, %v2821_v45 }
 0x1db   : > { %v1058_v56 = vpop.f32.mrf.mxu0  ;;  %v1576_v59 = vpop.f32.mrf.mxu2 }
 0x1dc   : > { %v1919_v61 = vpack.c.bf16 %v1858_v14, %v1857_v50  ;;  %v1577_v63 = vadd.f32 %v1576_v59, %v3229_v46  ;;  %v1190_v18 = vsub.f32 %v1058_v56, %v3049_v57  ;;  %v3300_v2 = vpop.f32.mrf.mxu1  ;;  %v858_v50 = vpack.c.bf16 %v817_v3, %v816_v53 }
 0x1dd   : > { %v820_v3 = vsel %vm756_vm10, 1.0, %v2821_v45 }
 0x1de   : > { %2603 = vmatmul.msk.bf16.gmra.mxu0 %vm892_vm2, %v856_v55  ;;  %2697 = vmatmul.msk.bf16.gmra.mxu3 %vm892_vm2, %v1919_v61  ;;  %v1731_v5 = vadd.f32 %v3218_v34, %v1577_v63  ;;  %v609_v63 = vpop.permute.xlu2 %608 }
 0x1df   : > { %vm755_vm7 = vcmp.eq.s32.totalorder %v609_v63, %v2971_v42 }
 0x1e0   : > { %v1795_v8 = vmul.f32 0.2, %v1731_v5 }
 0x1e3   : > { %v1060_v11 = vpop.f32.mrf.mxu0  ;;  %v1578_v16 = vpop.f32.mrf.mxu2 }
 0x1e4   : > { %v1191_v46 = vsub.f32 %v1060_v11, %v3052_v58  ;;  %v1579_v23 = vadd.f32 %v1578_v16, %v3237_v60  ;;  %v1859_v60 = vmax.f32 %v1731_v5, %v1795_v8  ;;  %v3310_v43 = vpop.f32.mrf.mxu1  ;;  %2633 = vmatmul.msk.bf16.gmra.mxu1 %vm1264_vm4, %v2949_v31 }
 0x1e6   : > { %v1242_v24 = vpack.c.bf16 %v1191_v46, %v1190_v18  ;;  %v1732_v9 = vadd.f32 %v3218_v34, %v1579_v23 }
 0x1e8   : > { %v1796_v36 = vmul.f32 0.2, %v1732_v9  ;;  %2659 = vmatmul.msk.bf16.gmra.mxu2 %vm1264_vm4, %v1242_v24 }
 0x1ea   : > { %v1860_v4 = vmax.f32 %v1732_v9, %v1796_v36  ;;  %v819_v9 = vsel %vm755_vm7, 1.0, %v2821_v45 }
 0x1eb   : > { %v1063_v33 = vpop.f32.mrf.mxu0  ;;  %v1581_v37 = vpop.f32.mrf.mxu2 }
 0x1ec   : > { %v1920_v40 = vpack.c.bf16 %v1860_v4, %v1859_v60  ;;  %v1582_v21 = vadd.f32 %v1581_v37, %v3248_v15  ;;  %v1192_v49 = vsub.f32 %v1063_v33, %v3067_v12  ;;  %v3321_v15 = vpop.f32.mrf.mxu1  ;;  %v859_v60 = vpack.c.bf16 %v819_v9, %v818_v25 }
 0x1ee   : > { %2604 = vmatmul.msk.bf16.gmra.mxu0 %vm892_vm2, %v857_v27  ;;  %2698 = vmatmul.msk.bf16.gmra.mxu3 %vm892_vm2, %v1920_v40  ;;  %v1733_v44 = vadd.f32 %v3218_v34, %v1582_v21  ;;  %v622_v21 = vpop.permute.xlu1 %621 }
 0x1ef   : > { %vm757_vm9 = vcmp.eq.s32.totalorder %v622_v21, %v2971_v42  ;;  %v646_v21 = vpop.permute.xlu0 %645 }
 0x1f0   : > { %v1797_v51 = vmul.f32 0.2, %v1733_v44  ;;  %vm761_vm14 = vcmp.eq.s32.totalorder %v646_v21, %v2971_v42 }
 0x1f2   : > { %v1861_v28 = vmax.f32 %v1733_v44, %v1797_v51 }
 0x1f3   : > { %v1065_v1 = vpop.f32.mrf.mxu0  ;;  %v1583_v19 = vpop.f32.mrf.mxu2 }
 0x1f4   : > { %v1193_v17 = vsub.f32 %v1065_v1, %v3070_v13  ;;  %v1584_v6 = vadd.f32 %v1583_v19, %v3262_v41  ;;  %v3329_v59 = vpop.f32.mrf.mxu1  ;;  %2634 = vmatmul.msk.bf16.gmra.mxu1 %vm1264_vm4, %v2934_v20 }
 0x1f6   : > { %v1243_v10 = vpack.c.bf16 %v1193_v17, %v1192_v49  ;;  %v1734_v52 = vadd.f32 %v3218_v34, %v1584_v6  ;;  %v634_v63 = vpop.permute.xlu1 %633 }
 0x1f7   : > { %vm759_vm12 = vcmp.eq.s32.totalorder %v634_v63, %v2971_v42 }
 0x1f8   : > { %v1798_v54 = vmul.f32 0.2, %v1734_v52  ;;  %2660 = vmatmul.msk.bf16.gmra.mxu2 %vm1264_vm4, %v1243_v10  ;;  %v823_v9 = vsel %vm759_vm12, 1.0, %v2821_v45 }
 0x1fa   : > { %v1862_v41 = vmax.f32 %v1734_v52, %v1798_v54  ;;  %v821_v52 = vsel %vm757_vm9, 1.0, %v2821_v45 }
 0x1fb   : > { %v1068_v14 = vpop.f32.mrf.mxu0  ;;  %v1586_v55 = vpop.f32.mrf.mxu2 }
 0x1fc   : > { %v1921_v56 = vpack.c.bf16 %v1862_v41, %v1861_v28  ;;  %v1587_v61 = vadd.f32 %v1586_v55, %v3276_v7  ;;  %v1194_v16 = vsub.f32 %v1068_v14, %v3084_v29  ;;  %v3340_v7 = vpop.f32.mrf.mxu1  ;;  %v860_v28 = vpack.c.bf16 %v821_v52, %v820_v3 }
 0x1fd   : > { %v825_v52 = vsel %vm761_vm14, 1.0, %v2821_v45 }
 0x1fe   : > { %2605 = vmatmul.msk.bf16.gmra.mxu0 %vm892_vm2, %v858_v50  ;;  %2699 = vmatmul.msk.bf16.gmra.mxu3 %vm892_vm2, %v1921_v56  ;;  %v1735_v35 = vadd.f32 %v3218_v34, %v1587_v61  ;;  %v628_v61 = vpop.permute.xlu2 %627  ;;  %v652_v63 = vpop.permute.xlu1 %651 }
 0x1ff   : > { %vm758_vm11 = vcmp.eq.s32.totalorder %v628_v61, %v2971_v42  ;;  %vm762_vm0 = vcmp.eq.s32.totalorder %v652_v63, %v2971_v42 }
 0x200   : > { %v1799_v23 = vmul.f32 0.2, %v1735_v35 }
 0x202   : > { %v1863_v36 = vmax.f32 %v1735_v35, %v1799_v23 }
 0x203   : > { %v1070_v5 = vpop.f32.mrf.mxu0  ;;  %v1588_v11 = vpop.f32.mrf.mxu2 }
 0x204   : > { %v1195_v18 = vsub.f32 %v1070_v5, %v3087_v30  ;;  %v1589_v46 = vadd.f32 %v1588_v11, %v3287_v62  ;;  %v3348_v37 = vpop.f32.mrf.mxu1  ;;  %2635 = vmatmul.msk.bf16.gmra.mxu1 %vm1264_vm4, %v2963_v39 }
 0x206   : > { %v1244_v8 = vpack.c.bf16 %v1195_v18, %v1194_v16  ;;  %v1736_v24 = vadd.f32 %v3218_v34, %v1589_v46 }
 0x208   : > { %v1800_v26 = vmul.f32 0.2, %v1736_v24  ;;  %2661 = vmatmul.msk.bf16.gmra.mxu2 %vm1264_vm4, %v1244_v8 }
 0x20a   : > { %v1864_v62 = vmax.f32 %v1736_v24, %v1800_v26  ;;  %v822_v24 = vsel %vm758_vm11, 1.0, %v2821_v45 }
 0x20b   : > { %v1073_v4 = vpop.f32.mrf.mxu0  ;;  %v1591_v27 = vpop.f32.mrf.mxu2 }
 0x20c   : > { %v1922_v33 = vpack.c.bf16 %v1864_v62, %v1863_v36  ;;  %v1592_v40 = vadd.f32 %v1591_v27, %v3300_v2  ;;  %v1196_v19 = vsub.f32 %v1073_v4, %v3108_v47  ;;  %v3359_v2 = vpop.f32.mrf.mxu1  ;;  %v861_v36 = vpack.c.bf16 %v823_v9, %v822_v24 }
 0x20d   : > { %v826_v9 = vsel %vm762_vm0, 1.0, %v2821_v45 }
 0x20e   : > { %2606 = vmatmul.msk.bf16.gmra.mxu0 %vm892_vm2, %v859_v60  ;;  %2700 = vmatmul.msk.bf16.gmra.mxu3 %vm892_vm2, %v1922_v33  ;;  %v1737_v22 = vadd.f32 %v3218_v34, %v1592_v40  ;;  %v640_v40 = vpop.permute.xlu2 %639 }
 0x20f   : > { %vm760_vm13 = vcmp.eq.s32.totalorder %v640_v40, %v2971_v42 }
 0x210   : > { %v1801_v6 = vmul.f32 0.2, %v1737_v22 }
 0x212   : > { %v1865_v54 = vmax.f32 %v1737_v22, %v1801_v6 }
 0x213   : > { %v1075_v44 = vpop.f32.mrf.mxu0  ;;  %v1593_v1 = vpop.f32.mrf.mxu2 }
 0x214   : > { %v1197_v49 = vsub.f32 %v1075_v44, %v3111_v48  ;;  %v1594_v17 = vadd.f32 %v1593_v1, %v3310_v43  ;;  %v3367_v55 = vpop.f32.mrf.mxu1  ;;  %2636 = vmatmul.msk.bf16.gmra.mxu1 %vm1264_vm4, %v2954_v32 }
 0x216   : > { %v1245_v51 = vpack.c.bf16 %v1197_v49, %v1196_v19  ;;  %v1738_v10 = vadd.f32 %v3218_v34, %v1594_v17 }
 0x218   : > { %v1802_v53 = vmul.f32 0.2, %v1738_v10  ;;  %2662 = vmatmul.msk.bf16.gmra.mxu2 %vm1264_vm4, %v1245_v51 }
 0x21a   : > { %v1866_v43 = vmax.f32 %v1738_v10, %v1802_v53  ;;  %v824_v10 = vsel %vm760_vm13, 1.0, %v2821_v45 }
 0x21b   : > { %v1078_v41 = vpop.f32.mrf.mxu0  ;;  %v1596_v50 = vpop.f32.mrf.mxu2 }
 0x21c   : > { %v1923_v14 = vpack.c.bf16 %v1866_v43, %v1865_v54  ;;  %v1597_v56 = vadd.f32 %v1596_v50, %v3321_v15  ;;  %v1198_v11 = vsub.f32 %v1078_v41, %v3049_v57  ;;  %v3378_v15 = vpop.f32.mrf.mxu1  ;;  %v862_v54 = vpack.c.bf16 %v825_v52, %v824_v10 }
 0x21e   : > { %2607 = vmatmul.msk.bf16.gmra.mxu0 %vm892_vm2, %v860_v28  ;;  %2701 = vmatmul.msk.bf16.gmra.mxu3 %vm892_vm2, %v1923_v14  ;;  %v1739_v0 = vadd.f32 %v3218_v34, %v1597_v56  ;;  %v658_v56 = vpop.permute.xlu2 %657 }
 0x21f   : > { %vm763_vm15 = vcmp.eq.s32.totalorder %v658_v56, %v2971_v42 }
 0x220   : > { %v1803_v46 = vmul.f32 0.2, %v1739_v0  ;;  %v827_v24 = vsel %vm763_vm15, 1.0, %v2821_v45 }
 0x222   : > { %v1867_v26 = vmax.f32 %v1739_v0, %v1803_v46 }
 0x223   : > { %v1080_v35 = vpop.f32.mrf.mxu0  ;;  %v1598_v5 = vpop.f32.mrf.mxu2 }
 0x224   : > { %v1199_v16 = vsub.f32 %v1080_v35, %v3052_v58  ;;  %v1599_v18 = vadd.f32 %v1598_v5, %v3329_v59  ;;  %v3386_v27 = vpop.f32.mrf.mxu1  ;;  %2637 = vmatmul.msk.bf16.gmra.mxu1 %vm1264_vm4, %v2949_v31 }
 0x226   : > { %v1246_v23 = vpack.c.bf16 %v1199_v16, %v1198_v11  ;;  %v1740_v8 = vadd.f32 %v3218_v34, %v1599_v18  ;;  %v671_v21 = vpop.permute.xlu2 %670 }
 0x227   : > { %vm765_vm1 = vcmp.eq.s32.totalorder %v671_v21, %v2971_v42 }
 0x228   : > { %v1804_v25 = vmul.f32 0.2, %v1740_v8  ;;  %2663 = vmatmul.msk.bf16.gmra.mxu2 %vm1264_vm4, %v1246_v23 }
 0x22a   : > { %v1868_v59 = vmax.f32 %v1740_v8, %v1804_v25 }
 0x22b   : > { %v1083_v62 = vpop.f32.mrf.mxu0  ;;  %v1601_v60 = vpop.f32.mrf.mxu2 }
 0x22c   : > { %v1924_v4 = vpack.c.bf16 %v1868_v59, %v1867_v26  ;;  %v1602_v33 = vadd.f32 %v1601_v60, %v3340_v7  ;;  %v1200_v1 = vsub.f32 %v1083_v62, %v3067_v12  ;;  %v3397_v7 = vpop.f32.mrf.mxu1 }
 0x22e   : > { %2608 = vmatmul.msk.bf16.gmra.mxu0 %vm892_vm2, %v861_v36  ;;  %2702 = vmatmul.msk.bf16.gmra.mxu3 %vm892_vm2, %v1924_v4  ;;  %v1741_v38 = vadd.f32 %v3218_v34, %v1602_v33  ;;  %v863_v36 = vpack.c.bf16 %v827_v24, %v826_v9 }
 0x230   : > { %v1805_v17 = vmul.f32 0.2, %v1741_v38 }
 0x232   : > { %v1869_v53 = vmax.f32 %v1741_v38, %v1805_v17 }
 0x233   : > { %v1085_v22 = vpop.f32.mrf.mxu0  ;;  %v1603_v44 = vpop.f32.mrf.mxu2 }
 0x234   : > { %v1201_v19 = vsub.f32 %v1085_v22, %v3070_v13  ;;  %v1604_v49 = vadd.f32 %v1603_v44, %v3348_v37  ;;  %v3405_v50 = vpop.f32.mrf.mxu1  ;;  %v665_v22 = vpop.permute.xlu1 %664  ;;  %2638 = vmatmul.msk.bf16.gmra.mxu1 %vm1264_vm4, %v2934_v20 }
 0x235   : > { %vm764_vm3 = vcmp.eq.s32.totalorder %v665_v22, %v2971_v42 }
 0x236   : > { %v1247_v6 = vpack.c.bf16 %v1201_v19, %v1200_v1  ;;  %v1742_v51 = vadd.f32 %v3218_v34, %v1604_v49 }
 0x238   : > { %v1806_v3 = vmul.f32 0.2, %v1742_v51  ;;  %2664 = vmatmul.msk.bf16.gmra.mxu2 %vm1264_vm4, %v1247_v6 }
 0x23a   : > { %v1870_v37 = vmax.f32 %v1742_v51, %v1806_v3  ;;  %v829_v3 = vsel %vm765_vm1, 1.0, %v2821_v45 }
 0x23b   : > { %v1088_v43 = vpop.f32.mrf.mxu0  ;;  %v1606_v28 = vpop.f32.mrf.mxu2 }
 0x23c   : > { %v1925_v41 = vpack.c.bf16 %v1870_v37, %v1869_v53  ;;  %v1607_v14 = vadd.f32 %v1606_v28, %v3359_v2  ;;  %v1202_v11 = vsub.f32 %v1088_v43, %v3084_v29  ;;  %v3418_v18 = vpop.f32.mrf.mxu1  ;;  %v828_v53 = vsel %vm764_vm3, 1.0, %v2821_v45 }
 0x23d   : > { %v864_v28 = vpack.c.bf16 %v829_v3, %v828_v53 }
 0x23e   : > { %2609 = vmatmul.msk.bf16.gmra.mxu0 %vm892_vm2, %v862_v54  ;;  %2703 = vmatmul.msk.bf16.gmra.mxu3 %vm892_vm2, %v1925_v41  ;;  %v1743_v0 = vadd.f32 %v3218_v34, %v1607_v14 }
 0x240   : > { %v1807_v46 = vmul.f32 0.2, %v1743_v0 }
 0x241   : > { %v3410_v61 = vpop.f32.mrf.mxu3 }
 0x243   : > { %v1090_v35 = vpop.f32.mrf.mxu0  ;;  %v1608_v5 = vpop.f32.mrf.mxu2 }
 0x244   : > { %v1203_v16 = vsub.f32 %v1090_v35, %v3087_v30  ;;  %v1609_v2 = vadd.f32 %v1608_v5, %v3367_v55  ;;  %v1871_v55 = vmax.f32 %v1743_v0, %v1807_v46  ;;  %v3428_v33 = vpop.f32.mrf.mxu1  ;;  %v683_v35 = vpop.permute.xlu1 %682  ;;  %2639 = vmatmul.msk.bf16.gmra.mxu1 %vm1264_vm4, %v2963_v39 }
 0x245   : > { %vm767_vm5 = vcmp.eq.s32.totalorder %v683_v35, %v2971_v42 }
 0x246   : > { %v1248_v23 = vpack.c.bf16 %v1203_v16, %v1202_v11  ;;  %v1744_v8 = vadd.f32 %v3218_v34, %v1609_v2  ;;  %v677_v11 = vpop.permute.xlu0 %676 }
 0x247   : > { %vm766_vm6 = vcmp.eq.s32.totalorder %v677_v11, %v2971_v42 }
 0x248   : > { %v1808_v25 = vmul.f32 0.2, %v1744_v8  ;;  %2665 = vmatmul.msk.bf16.gmra.mxu2 %vm1264_vm4, %v1248_v23 }
 0x249   : > { %v3426_v26 = vpop.f32.mrf.mxu3 }
 0x24a   : > { %v1872_v59 = vmax.f32 %v1744_v8, %v1808_v25 }
 0x24b   : > { %v1093_v62 = vpop.f32.mrf.mxu0  ;;  %v1611_v60 = vpop.f32.mrf.mxu2 }
 0x24c   : > { %v1926_v4 = vpack.c.bf16 %v1872_v59, %v1871_v55  ;;  %v1612_v40 = vadd.f32 %v1611_v60, %v3378_v15  ;;  %v1204_v49 = vsub.f32 %v1093_v62, %v3108_v47  ;;  %v3441_v6 = vpop.f32.mrf.mxu1  ;;  %v831_v59 = vsel %vm767_vm5, 1.0, %v2821_v45 }
 0x24e   : > { %2610 = vmatmul.msk.bf16.gmra.mxu0 %vm892_vm2, %v863_v36  ;;  %2704 = vmatmul.msk.bf16.gmra.mxu3 %vm892_vm2, %v1926_v4  ;;  %v1745_v44 = vadd.f32 %v3218_v34, %v1612_v40  ;;  %v830_v36 = vsel %vm766_vm6, 1.0, %v2821_v45 }
 0x24f   : > { %v865_v40 = vpack.c.bf16 %v831_v59, %v830_v36  ;;  %v707_v59 = vpop.permute.xlu0 %706 }
 0x250   : > { %v1809_v51 = vmul.f32 0.2, %v1745_v44  ;;  %vm771_vm10 = vcmp.eq.s32.totalorder %v707_v59, %v2971_v42 }
 0x251   : > { %v3433_v38 = vpop.f32.mrf.mxu3 }
 0x253   : > { %v1095_v1 = vpop.f32.mrf.mxu0  ;;  %v1613_v19 = vpop.f32.mrf.mxu2 }
 0x254   : > { %v1205_v17 = vsub.f32 %v1095_v1, %v3111_v48  ;;  %v1614_v15 = vadd.f32 %v1613_v19, %v3386_v27  ;;  %v1873_v27 = vmax.f32 %v1745_v44, %v1809_v51  ;;  %v3451_v63 = vpop.f32.mrf.mxu1  ;;  %2640 = vmatmul.msk.bf16.gmra.mxu1 %vm1264_vm4, %v2954_v32 }
 0x256   : > { %v1249_v10 = vpack.c.bf16 %v1205_v17, %v1204_v49  ;;  %v1746_v52 = vadd.f32 %v3218_v34, %v1614_v15  ;;  %v689_v49 = vpop.permute.xlu2 %688  ;;  %v695_v15 = vpop.permute.xlu1 %694 }
 0x257   : > { %vm768_vm7 = vcmp.eq.s32.totalorder %v689_v49, %v2971_v42  ;;  %vm769_vm8 = vcmp.eq.s32.totalorder %v695_v15, %v2971_v42 }
 0x258   : > { %v1810_v37 = vmul.f32 0.2, %v1746_v52  ;;  %2666 = vmatmul.msk.bf16.gmra.mxu2 %vm1264_vm4, %v1249_v10 }
 0x259   : > { %v3449_v54 = vpop.f32.mrf.mxu3 }
 0x25a   : > { %v1874_v43 = vmax.f32 %v1746_v52, %v1810_v37 }
 0x25b   : > { %v1098_v41 = vpop.f32.mrf.mxu0  ;;  %v1616_v14 = vpop.f32.mrf.mxu2 }
 0x25c   : > { %v1927_v56 = vpack.c.bf16 %v1874_v43, %v1873_v27  ;;  %v1617_v0 = vadd.f32 %v1616_v14, %v3397_v7  ;;  %v1206_v23 = vsub.f32 %v1098_v41, %v3049_v57  ;;  %v3464_v24 = vpop.f32.mrf.mxu1  ;;  %v3495_v41 = vld [vmem:[%s4068_s6] ss:$0 sm:$0xff]  ;;  %v832_v14 = vsel %vm768_vm7, 1.0, %v2821_v45 }
 0x25e   : > { %2611 = vmatmul.msk.bf16.gmra.mxu0 %vm892_vm2, %v864_v28  ;;  %2705 = vmatmul.msk.bf16.gmra.mxu3 %vm892_vm2, %v1927_v56  ;;  %v1747_v16 = vadd.f32 %v3218_v34, %v1617_v0 }
 0x260   : > { %v1811_v9 = vmul.f32 0.2, %v1747_v16 }
 0x261   : > { %v3456_v5 = vpop.f32.mrf.mxu3 }
 0x263   : > { %v1100_v2 = vpop.f32.mrf.mxu0  ;;  %v1618_v46 = vpop.f32.mrf.mxu2 }
 0x264   : > { %v1207_v8 = vsub.f32 %v1100_v2, %v3052_v58  ;;  %v1619_v7 = vadd.f32 %v1618_v46, %v3405_v50  ;;  %v1875_v50 = vmax.f32 %v1747_v16, %v1811_v9  ;;  %v3474_v1 = vpop.f32.mrf.mxu1  ;;  %v2091_v2 = vadd.f32 %v3495_v41, %v3410_v61  ;;  %2641 = vmatmul.msk.bf16.gmra.mxu1 %vm1264_vm4, %v2949_v31 }
 0x266   : > { %v1250_v25 = vpack.c.bf16 %v1207_v8, %v1206_v23  ;;  %v1748_v55 = vadd.f32 %v3218_v34, %v1619_v7 }
 0x268   : > { %v1812_v62 = vmul.f32 0.2, %v1748_v55  ;;  %2667 = vmatmul.msk.bf16.gmra.mxu2 %vm1264_vm4, %v1250_v25  ;;  %v2250_v25 = vmul.f32 0.2, %v2091_v2 }
 0x269   : > { %v3472_v60 = vpop.f32.mrf.mxu3 }
 0x26a   : > { %v1876_v4 = vmax.f32 %v1748_v55, %v1812_v62  ;;  %v701_v55 = vpop.permute.xlu2 %700  ;;  %v2314_v61 = vmax.f32 %v2091_v2, %v2250_v25 }
 0x26b   : > { %v1103_v21 = vpop.f32.mrf.mxu0  ;;  %v1621_v22 = vpop.f32.mrf.mxu2  ;;  %vm770_vm9 = vcmp.eq.s32.totalorder %v701_v55, %v2971_v42  ;;  %v835_v42 = vsel %vm771_vm10, 1.0, %v2821_v45 }
 0x26c   : > { %v1928_v44 = vpack.c.bf16 %v1876_v4, %v1875_v50  ;;  %v1622_v19 = vadd.f32 %v1621_v22, %v3418_v18  ;;  %v1208_v3 = vsub.f32 %v1103_v21, %v3067_v12  ;;  %v3487_v37 = vpop.f32.mrf.mxu1  ;;  %v2093_v4 = vadd.f32 %v3495_v41, %v3426_v26 }
 0x26e   : > { %2612 = vmatmul.msk.bf16.gmra.mxu0 %vm892_vm2, %v865_v40  ;;  %2706 = vmatmul.msk.bf16.gmra.mxu3 %vm892_vm2, %v1928_v44  ;;  %v1749_v51 = vadd.f32 %v3218_v34, %v1622_v19 }
 0x270   : > { %v1813_v27 = vmul.f32 0.2, %v1749_v51 }
 0x271   : > { %v3479_v17 = vpop.f32.mrf.mxu3 }
 0x272   : > { %v1877_v35 = vmax.f32 %v1749_v51, %v1813_v27 }
 0x273   : > { %v1105_v10 = vpop.f32.mrf.mxu0  ;;  %v1623_v52 = vpop.f32.mrf.mxu2 }
 0x274   : > { %v1209_v53 = vsub.f32 %v1105_v10, %v3070_v13  ;;  %v1624_v18 = vadd.f32 %v1623_v52, %v3428_v33  ;;  %v833_v33 = vsel %vm769_vm8, 1.0, %v2821_v45  ;;  %v3504_v7 = vpop.f32.mrf.mxu1  ;;  %v834_v52 = vsel %vm770_vm9, 1.0, %v2821_v45  ;;  %2642 = vmatmul.msk.bf16.gmra.mxu1 %vm1264_vm4, %v2934_v20 }
 0x275   : > { %v866_v16 = vpack.c.bf16 %v833_v33, %v832_v14  ;;  %v867_v33 = vpack.c.bf16 %v835_v42, %v834_v52  ;;  %v2096_v45 = vadd.f32 %v3495_v41, %v3433_v38 }
 0x276   : > { %v1251_v43 = vpack.c.bf16 %v1209_v53, %v1208_v3  ;;  %v1750_v28 = vadd.f32 %v3218_v34, %v1624_v18  ;;  %v3526_v3 = vsel %vm892_vm2, %v2314_v61, -inf  ;;  %v2251_v53 = vmul.f32 0.2, %v2093_v4 }
 0x277   : > { %v2252_v25 = vmul.f32 0.2, %v2096_v45  ;;  %v2098_v61 = vadd.f32 %v3495_v41, %v3449_v54 }
 0x278   : > { %v1814_v56 = vmul.f32 0.2, %v1750_v28  ;;  %2668 = vmatmul.msk.bf16.gmra.mxu2 %vm1264_vm4, %v1251_v43 }
 0x279   : > { %v3500_v0 = vpop.f32.mrf.mxu3  ;;  %v2253_v52 = vmul.f32 0.2, %v2098_v61 }
 0x27a   : > { %v1878_v11 = vmax.f32 %v1750_v28, %v1814_v56 }
 0x27b   : > { %v1108_v46 = vpop.f32.mrf.mxu0  ;;  %v1626_v23 = vpop.f32.mrf.mxu2 }
 0x27c   : > { %v1929_v8 = vpack.c.bf16 %v1878_v11, %v1877_v35  ;;  %v1627_v9 = vadd.f32 %v1626_v23, %v3441_v6  ;;  %v1210_v6 = vsub.f32 %v1108_v46, %v3084_v29  ;;  %v3518_v49 = vpop.f32.mrf.mxu1 }
 0x27e   : > { %2613 = vmatmul.msk.bf16.gmra.mxu0 %vm892_vm2, %v866_v16  ;;  %2707 = vmatmul.msk.bf16.gmra.mxu3 %vm892_vm2, %v1929_v8  ;;  %v1751_v62 = vadd.f32 %v3218_v34, %v1627_v9  ;;  %v2315_v16 = vmax.f32 %v2093_v4, %v2251_v53 }
 0x280   : > { %v1815_v15 = vmul.f32 0.2, %v1751_v62  ;;  %v3543_v55 = vsel %vm892_vm2, %v2315_v16, -inf }
 0x281   : > { %v2110_v36 = vpop.f32.mrf.mxu3 }
 0x282   : > { %v2111_v50 = vadd.f32 %v3495_v41, %v2110_v36  ;;  %v1879_v28 = vmax.f32 %v1751_v62, %v1815_v15 }
 0x283   : > { %v1110_v40 = vpop.f32.mrf.mxu0  ;;  %v1628_v21 = vpop.f32.mrf.mxu2 }
 0x284   : > { %v2258_v22 = vmul.f32 0.2, %v2111_v50  ;;  %v1211_v44 = vsub.f32 %v1110_v40, %v3087_v30  ;;  %v1629_v19 = vadd.f32 %v1628_v21, %v3451_v63  ;;  %v3537_v23 = vpop.f32.mrf.mxu1  ;;  %2643 = vmatmul.msk.bf16.gmra.mxu1 %vm1264_vm4, %v2963_v39 }
 0x286   : > { %v2322_v51 = vmax.f32 %v2111_v50, %v2258_v22  ;;  %v1252_v10 = vpack.c.bf16 %v1211_v44, %v1210_v6  ;;  %v1752_v26 = vadd.f32 %v3218_v34, %v1629_v19 }
 0x288   : > { %v3529_v63 = vsel %vm892_vm2, %v2322_v51, -inf  ;;  %v1816_v18 = vmul.f32 0.2, %v1752_v26  ;;  %2669 = vmatmul.msk.bf16.gmra.mxu2 %vm1264_vm4, %v1252_v10 }
 0x289   : > { %v2380_v27 = vmax.f32 %v3526_v3, %v3529_v63  ;;  %v2112_v43 = vpop.f32.mrf.mxu3 }
 0x28a   : > { %v1880_v14 = vmax.f32 %v1752_v26, %v1816_v18  ;;  %v2113_v56 = vadd.f32 %v3495_v41, %v2112_v43 }
 0x28b   : > { %v1113_v35 = vpop.f32.mrf.mxu0  ;;  %v1631_v11 = vpop.f32.mrf.mxu2 }
 0x28c   : > { %v2259_v2 = vmul.f32 0.2, %v2113_v56  ;;  %v1930_v46 = vpack.c.bf16 %v1880_v14, %v1879_v28  ;;  %v1632_v9 = vadd.f32 %v1631_v11, %v3464_v24  ;;  %v2316_v24 = vmax.f32 %v2096_v45, %v2252_v25  ;;  %v3557_v19 = vpop.f32.mrf.mxu1 }
 0x28d   : > { %v1212_v21 = vsub.f32 %v1113_v35, %v3108_v47  ;;  %v2317_v35 = vmax.f32 %v2098_v61, %v2253_v52 }
 0x28e   : > { %v2323_v8 = vmax.f32 %v2113_v56, %v2259_v2  ;;  %2614 = vmatmul.msk.bf16.gmra.mxu0 %vm892_vm2, %v867_v33  ;;  %2708 = vmatmul.msk.bf16.gmra.mxu3 %vm892_vm2, %v1930_v46  ;;  %v1753_v62 = vadd.f32 %v3218_v34, %v1632_v9  ;;  %v3563_v54 = vsel %vm892_vm2, %v2316_v24, -inf  ;;  %v2101_v33 = vadd.f32 %v3495_v41, %v3456_v5 }
 0x28f   : > { %v3579_v25 = vsel %vm892_vm2, %v2317_v35, -inf }
 0x290   : > { %v3546_v38 = vsel %vm892_vm2, %v2323_v8, -inf  ;;  %v1817_v15 = vmul.f32 0.2, %v1753_v62  ;;  %v2254_v9 = vmul.f32 0.2, %v2101_v33 }
 0x291   : > { %v2395_v59 = vmax.f32 %v3543_v55, %v3546_v38  ;;  %v2115_v36 = vpop.f32.mrf.mxu3 }
 0x292   : > { %v2116_v50 = vadd.f32 %v3495_v41, %v2115_v36  ;;  %v1881_v43 = vmax.f32 %v1753_v62, %v1817_v15  ;;  %v2318_v61 = vmax.f32 %v2101_v33, %v2254_v9 }
 0x293   : > { %v1115_v4 = vpop.f32.mrf.mxu0  ;;  %v1633_v40 = vpop.f32.mrf.mxu2 }
 0x294   : > { %v2260_v6 = vmul.f32 0.2, %v2116_v50  ;;  %v1213_v22 = vsub.f32 %v1115_v4, %v3111_v48  ;;  %v1634_v44 = vadd.f32 %v1633_v40, %v3474_v1  ;;  %v3574_v2 = vpop.f32.mrf.mxu1  ;;  %2644 = vmatmul.msk.bf16.gmra.mxu1 %vm1264_vm4, %v2954_v32 }
 0x296   : > { %v2324_v51 = vmax.f32 %v2116_v50, %v2260_v6  ;;  %v1253_v10 = vpack.c.bf16 %v1213_v22, %v1212_v21  ;;  %v1754_v26 = vadd.f32 %v3218_v34, %v1634_v44 }
 0x298   : > { %v3566_v42 = vsel %vm892_vm2, %v2324_v51, -inf  ;;  %v1818_v53 = vmul.f32 0.2, %v1754_v26  ;;  %2670 = vmatmul.msk.bf16.gmra.mxu2 %vm1264_vm4, %v1253_v10 }
 0x299   : > { %v2410_v1 = vmax.f32 %v3563_v54, %v3566_v42  ;;  %v2117_v18 = vpop.f32.mrf.mxu3 }
 0x29a   : > { %v1882_v28 = vmax.f32 %v1754_v26, %v1818_v53  ;;  %v2118_v14 = vadd.f32 %v3495_v41, %v2117_v18 }
 0x29b   : > { %v1118_v56 = vpop.f32.mrf.mxu0  ;;  %v1636_v45 = vpop.f32.mrf.mxu2 }
 0x29c   : > { %v2261_v11 = vmul.f32 0.2, %v2118_v14  ;;  %v1931_v16 = vpack.c.bf16 %v1882_v28, %v1881_v43  ;;  %v1637_v8 = vadd.f32 %v1636_v45, %v3487_v37  ;;  %v2103_v37 = vadd.f32 %v3495_v41, %v3472_v60  ;;  %v3593_v15 = vpop.f32.mrf.mxu1 }
 0x29d   : > { %v1214_v21 = vsub.f32 %v1118_v56, %v3049_v57  ;;  %v3599_v60 = vsel %vm892_vm2, %v2318_v61, -inf  ;;  %v2106_v56 = vadd.f32 %v3495_v41, %v3479_v17 }
 0x29e   : > { %v2325_v46 = vmax.f32 %v2118_v14, %v2261_v11  ;;  %2709 = vmatmul.msk.bf16.gmra.mxu3 %vm892_vm2, %v1931_v16  ;;  %v1755_v50 = vadd.f32 %v3218_v34, %v1637_v8  ;;  %v2255_v53 = vmul.f32 0.2, %v2103_v37 }
 0x2a0   : > { %v3582_v36 = vsel %vm892_vm2, %v2325_v46, -inf  ;;  %v1819_v51 = vmul.f32 0.2, %v1755_v50  ;;  %v2319_v11 = vmax.f32 %v2103_v37, %v2255_v53 }
 0x2a1   : > { %v2425_v5 = vmax.f32 %v3579_v25, %v3582_v36  ;;  %v2120_v62 = vpop.f32.mrf.mxu3 }
 0x2a2   : > { %v2121_v24 = vadd.f32 %v3495_v41, %v2120_v62  ;;  %v1883_v14 = vmax.f32 %v1755_v50, %v1819_v51  ;;  %v3615_v50 = vsel %vm892_vm2, %v2319_v11, -inf }
 0x2a3   : > { %v1120_v4 = vpop.f32.mrf.mxu0  ;;  %v1638_v40 = vpop.f32.mrf.mxu2 }
 0x2a4   : > { %v2262_v6 = vmul.f32 0.2, %v2121_v24  ;;  %v1215_v22 = vsub.f32 %v1120_v4, %v3052_v58  ;;  %v1639_v44 = vadd.f32 %v1638_v40, %v3504_v7  ;;  %v3610_v8 = vpop.f32.mrf.mxu1  ;;  %v3625_v4 = vld [vmem:[%s4066_s4] ss:$0 sm:$0xff]  ;;  %2645 = vmatmul.msk.bf16.gmra.mxu1 %vm1264_vm4, %v2949_v31 }
 0x2a6   : > { %v2326_v10 = vmax.f32 %v2121_v24, %v2262_v6  ;;  %v1254_v26 = vpack.c.bf16 %v1215_v22, %v1214_v21  ;;  %v1756_v52 = vadd.f32 %v3218_v34, %v1639_v44  ;;  %v2256_v24 = vmul.f32 0.2, %v2106_v56 }
 0x2a7   : > { %v2108_v6 = vadd.f32 %v3495_v41, %v3500_v0 }
 0x2a8   : > { %v3602_v18 = vsel %vm892_vm2, %v2326_v10, -inf  ;;  %v1820_v43 = vmul.f32 0.2, %v1756_v52  ;;  %2671 = vmatmul.msk.bf16.gmra.mxu2 %vm1264_vm4, %v1254_v26  ;;  %v2320_v21 = vmax.f32 %v2106_v56, %v2256_v24 }
 0x2a9   : > { %v2440_v7 = vmax.f32 %v3599_v60, %v3602_v18  ;;  %v2122_v28 = vpop.f32.mrf.mxu3 }
 0x2aa   : > { %v1884_v33 = vmax.f32 %v1756_v52, %v1820_v43  ;;  %v2123_v34 = vadd.f32 %v3495_v41, %v2122_v28  ;;  %v3640_v0 = vsel %vm892_vm2, %v2320_v21, -inf }
 0x2ab   : > { %v1123_v45 = vpop.f32.mrf.mxu0  ;;  %v1641_v35 = vpop.f32.mrf.mxu2 }
 0x2ac   : > { %v2263_v16 = vmul.f32 0.2, %v2123_v34  ;;  %v1932_v46 = vpack.c.bf16 %v1884_v33, %v1883_v14  ;;  %v1642_v62 = vadd.f32 %v1641_v35, %v3518_v49  ;;  %v1216_v51 = vsub.f32 %v1123_v45, %v3067_v12  ;;  %v3634_v53 = vpop.f32.mrf.mxu1 }
 0x2ae   : > { %v2327_v9 = vmax.f32 %v2123_v34, %v2263_v16  ;;  %2710 = vmatmul.msk.bf16.gmra.mxu3 %vm892_vm2, %v1932_v46  ;;  %v1757_v49 = vadd.f32 %v3625_v4, %v1642_v62  ;;  %v2257_v34 = vmul.f32 0.2, %v2108_v6 }
 0x2b0   : > { %v3618_v61 = vsel %vm892_vm2, %v2327_v9, -inf  ;;  %v1821_v43 = vmul.f32 0.2, %v1757_v49  ;;  %v2321_v24 = vmax.f32 %v2108_v6, %v2257_v34 }
 0x2b1   : > { %v2455_v17 = vmax.f32 %v3615_v50, %v3618_v61  ;;  %v2125_v37 = vpop.f32.mrf.mxu3 }
 0x2b2   : > { %v2126_v40 = vadd.f32 %v3495_v41, %v2125_v37  ;;  %v1885_v11 = vmax.f32 %v1757_v49, %v1821_v43 }
 0x2b3   : > { %v1125_v22 = vpop.f32.mrf.mxu0  ;;  %v1643_v44 = vpop.f32.mrf.mxu2 }
 0x2b4   : > { %v2264_v10 = vmul.f32 0.2, %v2126_v40  ;;  %v1217_v26 = vsub.f32 %v1125_v22, %v3070_v13  ;;  %v1644_v52 = vadd.f32 %v1643_v44, %v3537_v23  ;;  %v3649_v21 = vpop.f32.mrf.mxu1  ;;  %2646 = vmatmul.msk.bf16.gmra.mxu1 %vm1264_vm4, %v2934_v20 }
 0x2b6   : > { %v2328_v28 = vmax.f32 %v2126_v40, %v2264_v10  ;;  %v1255_v14 = vpack.c.bf16 %v1217_v26, %v1216_v51  ;;  %v1758_v33 = vadd.f32 %v3625_v4, %v1644_v52  ;;  %v3654_v51 = vsel %vm892_vm2, %v2321_v24, -inf }
 0x2b8   : > { %v3643_v56 = vsel %vm892_vm2, %v2328_v28, -inf  ;;  %v1822_v45 = vmul.f32 0.2, %v1758_v33  ;;  %2672 = vmatmul.msk.bf16.gmra.mxu2 %vm1264_vm4, %v1255_v14 }
 0x2b9   : > { %v2470_v23 = vmax.f32 %v3640_v0, %v3643_v56  ;;  %v2127_v35 = vpop.f32.mrf.mxu3 }
 0x2ba   : > { %v1886_v16 = vmax.f32 %v1758_v33, %v1822_v45  ;;  %v2128_v46 = vadd.f32 %v3495_v41, %v2127_v35 }
 0x2bb   : > { %v1128_v9 = vpop.f32.mrf.mxu0  ;;  %v1646_v62 = vpop.f32.mrf.mxu2 }
 0x2bc   : > { %v2265_v37 = vmul.f32 0.2, %v2128_v46  ;;  %v1933_v40 = vpack.c.bf16 %v1886_v16, %v1885_v11  ;;  %v1647_v44 = vadd.f32 %v1646_v62, %v3557_v19  ;;  %v1218_v19 = vsub.f32 %v1128_v9, %v3084_v29  ;;  %v3666_v45 = vpop.f32.mrf.mxu1 }
 0x2be   : > { %v2329_v22 = vmax.f32 %v2128_v46, %v2265_v37  ;;  %2711 = vmatmul.msk.bf16.gmra.mxu3 %vm892_vm2, %v1933_v40  ;;  %v1759_v6 = vadd.f32 %v3625_v4, %v1647_v44 }
 0x2c0   : > { %v3657_v49 = vsel %vm892_vm2, %v2329_v22, -inf  ;;  %v1823_v35 = vmul.f32 0.2, %v1759_v6 }
 0x2c1   : > { %v2485_v10 = vmax.f32 %v3654_v51, %v3657_v49  ;;  %v2130_v26 = vpop.f32.mrf.mxu3 }
 0x2c2   : > { %v2131_v52 = vadd.f32 %v3495_v41, %v2130_v26  ;;  %v1887_v37 = vmax.f32 %v1759_v6, %v1823_v35 }
 0x2c3   : > { %v1130_v43 = vpop.f32.mrf.mxu0  ;;  %v1648_v28 = vpop.f32.mrf.mxu2 }
 0x2c4   : > { %v2266_v14 = vmul.f32 0.2, %v2131_v52  ;;  %v1219_v33 = vsub.f32 %v1130_v43, %v3087_v30  ;;  %v1649_v34 = vadd.f32 %v1648_v28, %v3574_v2  ;;  %v3679_v39 = vpop.f32.mrf.mxu1 }
 0x2c6   : > { %v2330_v11 = vmax.f32 %v2131_v52, %v2266_v14  ;;  %v1256_v16 = vpack.c.bf16 %v1219_v33, %v1218_v19  ;;  %v1760_v46 = vadd.f32 %v3625_v4, %v1649_v34 }
 0x2c8   : > { %v2381_v62 = vsel %vm892_vm2, %v2330_v11, -inf  ;;  %v1824_v24 = vmul.f32 0.2, %v1760_v46  ;;  %2673 = vmatmul.msk.bf16.gmra.mxu2 %vm1264_vm4, %v1256_v16 }
 0x2c9   : > { %v3676_v9 = vmax.f32 %v2380_v27, %v2381_v62  ;;  %v2132_v2 = vpop.f32.mrf.mxu3 }
 0x2ca   : > { %v1888_v40 = vmax.f32 %v1760_v46, %v1824_v24  ;;  %v2133_v22 = vadd.f32 %v3495_v41, %v2132_v2 }
 0x2cb   : > { %v1133_v44 = vpop.f32.mrf.mxu0  ;;  %v1651_v26 = vpop.f32.mrf.mxu2 }
 0x2cc   : > { %v2267_v52 = vmul.f32 0.2, %v2133_v22  ;;  %v1934_v43 = vpack.c.bf16 %v1888_v40, %v1887_v37  ;;  %v1652_v19 = vadd.f32 %v1651_v26, %v3593_v15  ;;  %v1220_v35 = vsub.f32 %v1133_v44, %v3108_v47  ;;  %v3694_v46 = vpop.f32.mrf.mxu1 }
 0x2ce   : > { %v2331_v28 = vmax.f32 %v2133_v22, %v2267_v52  ;;  %2712 = vmatmul.msk.bf16.gmra.mxu3 %vm892_vm2, %v1934_v43  ;;  %v1761_v6 = vadd.f32 %v3625_v4, %v1652_v19 }
 0x2d0   : > { %v2396_v3 = vsel %vm892_vm2, %v2331_v28, -inf  ;;  %v1825_v62 = vmul.f32 0.2, %v1761_v6 }
 0x2d1   : > { %v3687_v63 = vmax.f32 %v2395_v59, %v2396_v3  ;;  %v2135_v27 = vpop.f32.mrf.mxu3 }
 0x2d2   : > { %v2136_v14 = vadd.f32 %v3495_v41, %v2135_v27  ;;  %v1889_v40 = vmax.f32 %v1761_v6, %v1825_v62 }
 0x2d3   : > { %v1135_v33 = vpop.f32.mrf.mxu0  ;;  %v1653_v34 = vpop.f32.mrf.mxu2 }
 0x2d4   : > { %v2268_v11 = vmul.f32 0.2, %v2136_v14  ;;  %v1221_v15 = vsub.f32 %v1135_v33, %v3111_v48  ;;  %v1654_v16 = vadd.f32 %v1653_v34, %v3610_v8  ;;  %v3707_v32 = vpop.f32.mrf.mxu1 }
 0x2d6   : > { %v2332_v55 = vmax.f32 %v2136_v14, %v2268_v11  ;;  %v1257_v38 = vpack.c.bf16 %v1221_v15, %v1220_v35  ;;  %v1762_v59 = vadd.f32 %v3625_v4, %v1654_v16 }
 0x2d8   : > { %v2411_v24 = vsel %vm892_vm2, %v2332_v55, -inf  ;;  %v1826_v2 = vmul.f32 0.2, %v1762_v59  ;;  %2674 = vmatmul.msk.bf16.gmra.mxu2 %vm1264_vm4, %v1257_v38 }
 0x2d9   : > { %v3704_v37 = vmax.f32 %v2410_v1, %v2411_v24  ;;  %v2137_v8 = vpop.f32.mrf.mxu3 }
 0x2da   : > { %v1890_v22 = vmax.f32 %v1762_v59, %v1826_v2  ;;  %v2138_v44 = vadd.f32 %v3495_v41, %v2137_v8 }
 0x2db   : > { %v1138_v26 = vpop.f32.mrf.mxu0  ;;  %v1656_v52 = vpop.f32.mrf.mxu2 }
 0x2dc   : > { %v2269_v43 = vmul.f32 0.2, %v2138_v44  ;;  %v1935_v28 = vpack.c.bf16 %v1890_v22, %v1889_v40  ;;  %v1657_v3 = vadd.f32 %v1656_v52, %v3634_v53  ;;  %v1222_v34 = vsub.f32 %v1138_v26, %v3049_v57  ;;  %v3722_v15 = vpop.f32.mrf.mxu1 }
 0x2de   : > { %v2333_v19 = vmax.f32 %v2138_v44, %v2269_v43  ;;  %2713 = vmatmul.msk.bf16.gmra.mxu3 %vm892_vm2, %v1935_v28  ;;  %v1763_v27 = vadd.f32 %v3625_v4, %v1657_v3 }
 0x2e0   : > { %v2426_v54 = vsel %vm892_vm2, %v2333_v19, -inf  ;;  %v1827_v16 = vmul.f32 0.2, %v1763_v27 }
 0x2e1   : > { %v3715_v42 = vmax.f32 %v2425_v5, %v2426_v54  ;;  %v2140_v1 = vpop.f32.mrf.mxu3 }
 0x2e2   : > { %v2141_v6 = vadd.f32 %v3495_v41, %v2140_v1 }
 0x2e3   : > { %v1140_v14 = vpop.f32.mrf.mxu0  ;;  %v1658_v33 = vpop.f32.mrf.mxu2 }
 0x2e4   : > { %v2270_v35 = vmul.f32 0.2, %v2141_v6  ;;  %v1223_v53 = vsub.f32 %v1140_v14, %v3052_v58  ;;  %v1659_v11 = vadd.f32 %v1658_v33, %v3649_v21  ;;  %v1891_v21 = vmax.f32 %v1763_v27, %v1827_v16  ;;  %v3737_v44 = vpop.f32.mrf.mxu1 }
 0x2e6   : > { %v2334_v25 = vmax.f32 %v2141_v6, %v2270_v35  ;;  %v1258_v36 = vpack.c.bf16 %v1223_v53, %v1222_v34  ;;  %v1764_v5 = vadd.f32 %v3625_v4, %v1659_v11 }
 0x2e8   : > { %v2441_v62 = vsel %vm892_vm2, %v2334_v25, -inf  ;;  %v1828_v55 = vmul.f32 0.2, %v1764_v5  ;;  %2675 = vmatmul.msk.bf16.gmra.mxu2 %vm1264_vm4, %v1258_v36 }
 0x2e9   : > { %v3732_v57 = vmax.f32 %v2440_v7, %v2441_v62  ;;  %v2142_v58 = vpop.f32.mrf.mxu3 }
 0x2ea   : > { %v1892_v38 = vmax.f32 %v1764_v5, %v1828_v55  ;;  %v2143_v59 = vadd.f32 %v3495_v41, %v2142_v58 }
 0x2eb   : > { %v1143_v24 = vpop.f32.mrf.mxu0  ;;  %v1661_v2 = vpop.f32.mrf.mxu2 }
 0x2ec   : > { %v2271_v8 = vmul.f32 0.2, %v2143_v59  ;;  %v1936_v40 = vpack.c.bf16 %v1892_v38, %v1891_v21  ;;  %v1662_v22 = vadd.f32 %v1661_v2, %v3666_v45  ;;  %v1224_v45 = vsub.f32 %v1143_v24, %v3067_v12  ;;  %v3755_v14 = vpop.f32.mrf.mxu1 }
 0x2ee   : > { %v2335_v31 = vmax.f32 %v2143_v59, %v2271_v8  ;;  %2714 = vmatmul.msk.bf16.gmra.mxu3 %vm892_vm2, %v1936_v40  ;;  %v1765_v26 = vadd.f32 %v3625_v4, %v1662_v22 }
 0x2f0   : > { %v2456_v60 = vsel %vm892_vm2, %v2335_v31, -inf  ;;  %v1829_v1 = vmul.f32 0.2, %v1765_v26 }
 0x2f1   : > { %v3743_v18 = vmax.f32 %v2455_v17, %v2456_v60  ;;  %v2145_v7 = vpop.f32.mrf.mxu3 }
 0x2f2   : > { %v2146_v52 = vadd.f32 %v3495_v41, %v2145_v7 }
 0x2f3   : > { %v1145_v43 = vpop.f32.mrf.mxu0  ;;  %v1663_v28 = vpop.f32.mrf.mxu2 }
 0x2f4   : > { %v2272_v19 = vmul.f32 0.2, %v2146_v52  ;;  %v1225_v3 = vsub.f32 %v1145_v43, %v3070_v13  ;;  %v1664_v54 = vadd.f32 %v1663_v28, %v3679_v39  ;;  %v1893_v39 = vmax.f32 %v1765_v26, %v1829_v1  ;;  %v3773_v62 = vpop.f32.mrf.mxu1 }
 0x2f6   : > { %v2336_v27 = vmax.f32 %v2146_v52, %v2272_v19  ;;  %v1259_v6 = vpack.c.bf16 %v1225_v3, %v1224_v45  ;;  %v1766_v50 = vadd.f32 %v3625_v4, %v1664_v54 }
 0x2f8   : > { %v2471_v61 = vsel %vm892_vm2, %v2336_v27, -inf  ;;  %v1830_v17 = vmul.f32 0.2, %v1766_v50  ;;  %2676 = vmatmul.msk.bf16.gmra.mxu2 %vm1264_vm4, %v1259_v6 }
 0x2f9   : > { %v3760_v12 = vmax.f32 %v2470_v23, %v2471_v61  ;;  %v2147_v13 = vpop.f32.mrf.mxu3 }
 0x2fa   : > { %v1894_v33 = vmax.f32 %v1766_v50, %v1830_v17  ;;  %v2148_v34 = vadd.f32 %v3495_v41, %v2147_v13 }
 0x2fb   : > { %v1148_v35 = vpop.f32.mrf.mxu0  ;;  %v1666_v53 = vpop.f32.mrf.mxu2 }
 0x2fc   : > { %v1937_v20 = vpack.c.bf16 %v1894_v33, %v1893_v39  ;;  %v2273_v11 = vmul.f32 0.2, %v2148_v34  ;;  %v1667_v25 = vadd.f32 %v1666_v53, %v3694_v46  ;;  %v1226_v46 = vsub.f32 %v1148_v35, %v3084_v29  ;;  %v1413_v52 = vpop.f32.mrf.mxu1 }
 0x2fe   : > { %v2337_v16 = vmax.f32 %v2148_v34, %v2273_v11  ;;  %2715 = vmatmul.msk.bf16.gmra.mxu3 %vm892_vm2, %v1937_v20  ;;  %v1767_v23 = vadd.f32 %v3625_v4, %v1667_v25 }
 0x300   : > { %v2486_v36 = vsel %vm892_vm2, %v2337_v16, -inf  ;;  %v1831_v24 = vmul.f32 0.2, %v1767_v23 }
 0x301   : > { %v3769_v0 = vmax.f32 %v2485_v10, %v2486_v36  ;;  %v2150_v56 = vpop.f32.mrf.mxu3 }
 0x302   : > { %v2151_v5 = vadd.f32 %v3495_v41, %v2150_v56  ;;  %v1895_v31 = vmax.f32 %v1767_v23, %v1831_v24 }
 0x303   : > { %v1150_v55 = vpop.f32.mrf.mxu0  ;;  %v1668_v58 = vpop.f32.mrf.mxu2 }
 0x304   : > { %v2274_v21 = vmul.f32 0.2, %v2151_v5  ;;  %v1227_v38 = vsub.f32 %v1150_v55, %v3087_v30  ;;  %v1669_v59 = vadd.f32 %v1668_v58, %v3707_v32  ;;  %v1415_v35 = vpop.f32.mrf.mxu1 }
 0x306   : > { %v2338_v51 = vmax.f32 %v2151_v5, %v2274_v21  ;;  %v1260_v49 = vpack.c.bf16 %v1227_v38, %v1226_v46  ;;  %v1768_v10 = vadd.f32 %v3625_v4, %v1669_v59 }
 0x308   : > { %v3780_v2 = vsel %vm892_vm2, %v2338_v51, -inf  ;;  %v1832_v8 = vmul.f32 0.2, %v1768_v10  ;;  %2677 = vmatmul.msk.bf16.gmra.mxu2 %vm1264_vm4, %v1260_v49 }
 0x309   : > { %v2384_v40 = vmax.f32 %v3676_v9, %v3780_v2  ;;  %v2152_v29 = vpop.f32.mrf.mxu3 }
 0x30a   : > { %v1896_v22 = vmax.f32 %v1768_v10, %v1832_v8  ;;  %v2153_v30 = vadd.f32 %v3495_v41, %v2152_v29 }
 0x30b   : > { %v1153_v32 = vpop.f32.mrf.mxu0  ;;  %v1671_v60 = vpop.f32.mrf.mxu2 }
 0x30c   : > { %v1938_v7 = vpack.c.bf16 %v1896_v22, %v1895_v31  ;;  %v2275_v26 = vmul.f32 0.2, %v2153_v30  ;;  %v1672_v28 = vadd.f32 %v1671_v60, %v3722_v15  ;;  %v1228_v50 = vsub.f32 %v1153_v32, %v3108_v47  ;;  %v1418_v21 = vpop.f32.mrf.mxu1 }
 0x30e   : > { %v2339_v43 = vmax.f32 %v2153_v30, %v2275_v26  ;;  %2716 = vmatmul.msk.bf16.gmra.mxu3 %vm892_vm2, %v1938_v7  ;;  %v1769_v54 = vadd.f32 %v3625_v4, %v1672_v28 }
 0x310   : > { %v3789_v45 = vsel %vm892_vm2, %v2339_v43, -inf  ;;  %v1833_v13 = vmul.f32 0.2, %v1769_v54 }
 0x311   : > { %v2399_v19 = vmax.f32 %v3687_v63, %v3789_v45  ;;  %v2155_v3 = vpop.f32.mrf.mxu3 }
 0x312   : > { %v2156_v1 = vadd.f32 %v3495_v41, %v2155_v3  ;;  %v1897_v16 = vmax.f32 %v1769_v54, %v1833_v13 }
 0x313   : > { %v1155_v27 = vpop.f32.mrf.mxu0  ;;  %v1673_v6 = vpop.f32.mrf.mxu2 }
 0x314   : > { %v2276_v61 = vmul.f32 0.2, %v2156_v1  ;;  %v1229_v15 = vsub.f32 %v1155_v27, %v3111_v48  ;;  %v1674_v17 = vadd.f32 %v1673_v6, %v3737_v44  ;;  %v1420_v43 = vpop.f32.mrf.mxu1 }
 0x316   : > { %v2340_v39 = vmax.f32 %v2156_v1, %v2276_v61  ;;  %v1261_v33 = vpack.c.bf16 %v1229_v15, %v1228_v50  ;;  %v1770_v34 = vadd.f32 %v3625_v4, %v1674_v17 }
 0x318   : > { %v3800_v53 = vsel %vm892_vm2, %v2340_v39, -inf  ;;  %v1834_v20 = vmul.f32 0.2, %v1770_v34  ;;  %2678 = vmatmul.msk.bf16.gmra.mxu2 %vm1264_vm4, %v1261_v33 }
 0x319   : > { %v2414_v47 = vmax.f32 %v3704_v37, %v3800_v53  ;;  %v2157_v11 = vpop.f32.mrf.mxu3 }
 0x31a   : > { %v1898_v48 = vmax.f32 %v1770_v34, %v1834_v20  ;;  %v2158_v44 = vadd.f32 %v3495_v41, %v2157_v11 }
 0x31b   : > { %v1676_v25 = vpop.f32.mrf.mxu2 }
 0x31c   : > { %v1939_v36 = vpack.c.bf16 %v1898_v48, %v1897_v16  ;;  %v2277_v56 = vmul.f32 0.2, %v2158_v44  ;;  %v1677_v5 = vadd.f32 %v1676_v25, %v3755_v14  ;;  %v1423_v39 = vpop.f32.mrf.mxu1 }
 0x31e   : > { %v2341_v23 = vmax.f32 %v2158_v44, %v2277_v56  ;;  %2717 = vmatmul.msk.bf16.gmra.mxu3 %vm892_vm2, %v1939_v36  ;;  %v1771_v38 = vadd.f32 %v3625_v4, %v1677_v5 }
 0x320   : > { %v3809_v55 = vsel %vm892_vm2, %v2341_v23, -inf  ;;  %v1835_v10 = vmul.f32 0.2, %v1771_v38 }
 0x321   : > { %v2429_v58 = vmax.f32 %v3715_v42, %v3809_v55  ;;  %v2160_v46 = vpop.f32.mrf.mxu3 }
 0x322   : > { %v2161_v59 = vadd.f32 %v3495_v41, %v2160_v46  ;;  %v1899_v32 = vmax.f32 %v1771_v38, %v1835_v10 }
 0x323   : > { %v1678_v24 = vpop.f32.mrf.mxu2 }
 0x324   : > { %v2278_v51 = vmul.f32 0.2, %v2161_v59  ;;  %v1679_v49 = vadd.f32 %v1678_v24, %v3773_v62  ;;  %v1425_v38 = vpop.f32.mrf.mxu1 }
 0x326   : > { %v2342_v14 = vmax.f32 %v2161_v59, %v2278_v51  ;;  %v1772_v8 = vadd.f32 %v3625_v4, %v1679_v49 }
 0x328   : > { %v3818_v29 = vsel %vm892_vm2, %v2342_v14, -inf  ;;  %v1836_v31 = vmul.f32 0.2, %v1772_v8 }
 0x329   : > { %v2444_v22 = vmax.f32 %v3732_v57, %v3818_v29  ;;  %v2162_v30 = vpop.f32.mrf.mxu3 }
 0x32a   : > { %v1900_v60 = vmax.f32 %v1772_v8, %v1836_v31  ;;  %v2163_v7 = vadd.f32 %v3495_v41, %v2162_v30 }
 0x32b   : > { %v1681_v26 = vpop.f32.mrf.mxu2 }
 0x32c   : > { %v1940_v28 = vpack.c.bf16 %v1900_v60, %v1899_v32  ;;  %v2279_v62 = vmul.f32 0.2, %v2163_v7  ;;  %v1682_v54 = vadd.f32 %v1681_v26, %v1413_v52 }
 0x32e   : > { %v2343_v3 = vmax.f32 %v2163_v7, %v2279_v62  ;;  %2718 = vmatmul.msk.bf16.gmra.mxu3 %vm892_vm2, %v1940_v28  ;;  %v1773_v50 = vadd.f32 %v3625_v4, %v1682_v54  ;;  %v1428_v62 = vpop.f32.mrf.mxu1 }
 0x330   : > { %v3825_v1 = vsel %vm892_vm2, %v2343_v3, -inf  ;;  %v1837_v33 = vmul.f32 0.2, %v1773_v50 }
 0x331   : > { %v2459_v27 = vmax.f32 %v3743_v18, %v3825_v1  ;;  %v2165_v6 = vpop.f32.mrf.mxu3 }
 0x332   : > { %v2166_v61 = vadd.f32 %v3495_v41, %v2165_v6  ;;  %v1901_v44 = vmax.f32 %v1773_v50, %v1837_v33 }
 0x333   : > { %v1683_v15 = vpop.f32.mrf.mxu2 }
 0x334   : > { %v2280_v17 = vmul.f32 0.2, %v2166_v61  ;;  %v1684_v13 = vadd.f32 %v1683_v15, %v1415_v35 }
 0x336   : > { %v2344_v34 = vmax.f32 %v2166_v61, %v2280_v17  ;;  %v1774_v52 = vadd.f32 %v3625_v4, %v1684_v13 }
 0x338   : > { %v3833_v20 = vsel %vm892_vm2, %v2344_v34, -inf  ;;  %v1838_v11 = vmul.f32 0.2, %v1774_v52 }
 0x339   : > { %v2474_v16 = vmax.f32 %v3760_v12, %v3833_v20  ;;  %v2167_v48 = vpop.f32.mrf.mxu3 }
 0x33a   : > { %v1902_v25 = vmax.f32 %v1774_v52, %v1838_v11  ;;  %v2168_v36 = vadd.f32 %v3495_v41, %v2167_v48  ;;  %v1430_v52 = vpop.f32.mrf.mxu1 }
 0x33b   : > { %v1686_v56 = vpop.f32.mrf.mxu2 }
 0x33c   : > { %v1941_v23 = vpack.c.bf16 %v1902_v25, %v1901_v44  ;;  %v2281_v35 = vmul.f32 0.2, %v2168_v36  ;;  %v1687_v46 = vadd.f32 %v1686_v56, %v1418_v21 }
 0x33e   : > { %v2345_v5 = vmax.f32 %v2168_v36, %v2281_v35  ;;  %2719 = vmatmul.msk.bf16.gmra.mxu3 %vm892_vm2, %v1941_v23  ;;  %v1775_v49 = vadd.f32 %v3625_v4, %v1687_v46 }
 0x340   : > { %v3840_v59 = vsel %vm892_vm2, %v2345_v5, -inf  ;;  %v1839_v30 = vmul.f32 0.2, %v1775_v49 }
 0x341   : > { %v2489_v24 = vmax.f32 %v3769_v0, %v3840_v59  ;;  %v2170_v51 = vpop.f32.mrf.mxu3 }
 0x342   : > { %v2171_v10 = vadd.f32 %v3495_v41, %v2170_v51  ;;  %v1903_v3 = vmax.f32 %v1775_v49, %v1839_v30  ;;  %v1433_v51 = vpop.f32.mrf.mxu1 }
 0x343   : > { %v1688_v14 = vpop.f32.mrf.mxu2 }
 0x344   : > { %v2282_v8 = vmul.f32 0.2, %v2171_v10  ;;  %v1689_v31 = vadd.f32 %v1688_v14, %v1420_v43 }
 0x346   : > { %v2346_v32 = vmax.f32 %v2171_v10, %v2282_v8  ;;  %v1776_v21 = vadd.f32 %v3625_v4, %v1689_v31 }
 0x348   : > { %v2385_v60 = vsel %vm892_vm2, %v2346_v32, -inf  ;;  %v1840_v7 = vmul.f32 0.2, %v1776_v21 }
 0x349   : > { %v3851_v26 = vmax.f32 %v2384_v40, %v2385_v60  ;;  %v2172_v28 = vpop.f32.mrf.mxu3 }
 0x34a   : > { %v1904_v54 = vmax.f32 %v1776_v21, %v1840_v7  ;;  %v2173_v6 = vadd.f32 %v3495_v41, %v2172_v28  ;;  %v1435_v28 = vpop.f32.mrf.mxu1 }
 0x34b   : > { %v1691_v50 = vpop.f32.mrf.mxu2 }
 0x34c   : > { %v1942_v43 = vpack.c.bf16 %v1904_v54, %v1903_v3  ;;  %v2283_v61 = vmul.f32 0.2, %v2173_v6  ;;  %v1692_v17 = vadd.f32 %v1691_v50, %v1423_v39 }
 0x34e   : > { %v2347_v15 = vmax.f32 %v2173_v6, %v2283_v61  ;;  %2720 = vmatmul.msk.bf16.gmra.mxu3 %vm892_vm2, %v1942_v43  ;;  %v1777_v40 = vadd.f32 %v3625_v4, %v1692_v17 }
 0x350   : > { %v2400_v13 = vsel %vm892_vm2, %v2347_v15, -inf  ;;  %v1841_v44 = vmul.f32 0.2, %v1777_v40 }
 0x351   : > { %v3859_v9 = vmax.f32 %v2399_v19, %v2400_v13  ;;  %v2175_v2 = vpop.f32.mrf.mxu3 }
 0x352   : > { %v2176_v33 = vadd.f32 %v3495_v41, %v2175_v2  ;;  %v1905_v19 = vmax.f32 %v1777_v40, %v1841_v44 }
 0x353   : > { %v1693_v34 = vpop.f32.mrf.mxu2 }
 0x354   : > { %v2284_v11 = vmul.f32 0.2, %v2176_v33  ;;  %v1694_v48 = vadd.f32 %v1693_v34, %v1425_v38 }
 0x356   : > { %v2348_v39 = vmax.f32 %v2176_v33, %v2284_v11  ;;  %v1778_v25 = vadd.f32 %v3625_v4, %v1694_v48 }
 0x358   : > { %v2415_v36 = vsel %vm892_vm2, %v2348_v39, -inf  ;;  %v1842_v56 = vmul.f32 0.2, %v1778_v25 }
 0x359   : > { %v3868_v63 = vmax.f32 %v2414_v47, %v2415_v36  ;;  %v2177_v45 = vpop.f32.mrf.mxu3 }
 0x35a   : > { %v1906_v23 = vmax.f32 %v1778_v25, %v1842_v56  ;;  %v2178_v35 = vadd.f32 %v3495_v41, %v2177_v45 }
 0x35b   : > { %v1696_v5 = vpop.f32.mrf.mxu2 }
 0x35c   : > { %v1943_v46 = vpack.c.bf16 %v1906_v23, %v1905_v19  ;;  %v2285_v38 = vmul.f32 0.2, %v2178_v35  ;;  %v1697_v10 = vadd.f32 %v1696_v5, %v1428_v62 }
 0x35e   : > { %v2349_v49 = vmax.f32 %v2178_v35, %v2285_v38  ;;  %2721 = vmatmul.msk.bf16.gmra.mxu3 %vm892_vm2, %v1943_v46  ;;  %v1779_v47 = vadd.f32 %v3625_v4, %v1697_v10 }
 0x360   : > { %v2430_v14 = vsel %vm892_vm2, %v2349_v49, -inf  ;;  %v1843_v21 = vmul.f32 0.2, %v1779_v47 }
 0x361   : > { %v3876_v37 = vmax.f32 %v2429_v58, %v2430_v14  ;;  %v2180_v53 = vpop.f32.mrf.mxu3 }
 0x362   : > { %v2181_v8 = vadd.f32 %v3495_v41, %v2180_v53  ;;  %v1907_v58 = vmax.f32 %v1779_v47, %v1843_v21 }
 0x363   : > { %v1698_v31 = vpop.f32.mrf.mxu2 }
 0x364   : > { %v2286_v30 = vmul.f32 0.2, %v2181_v8  ;;  %v1699_v32 = vadd.f32 %v1698_v31, %v1430_v52 }
 0x366   : > { %v2350_v60 = vmax.f32 %v2181_v8, %v2286_v30  ;;  %v1780_v7 = vadd.f32 %v3625_v4, %v1699_v32 }
 0x368   : > { %v2445_v62 = vsel %vm892_vm2, %v2350_v60, -inf  ;;  %v1844_v3 = vmul.f32 0.2, %v1780_v7 }
 0x369   : > { %v3885_v42 = vmax.f32 %v2444_v22, %v2445_v62  ;;  %v2182_v55 = vpop.f32.mrf.mxu3  ;;  %v1438_v22 = vpop.f32.mrf.mxu1 }
 0x36a   : > { %v1908_v54 = vmax.f32 %v1780_v7, %v1844_v3  ;;  %v2183_v6 = vadd.f32 %v3495_v41, %v2182_v55  ;;  %v3899_v41 = vld [vmem:[%s4068_s6] ss:$0 sm:$0xff] }
 0x36b   : > { %v1701_v50 = vpop.f32.mrf.mxu2 }
 0x36c   : > { %v1944_v43 = vpack.c.bf16 %v1908_v54, %v1907_v58  ;;  %v2287_v61 = vmul.f32 0.2, %v2183_v6  ;;  %v1702_v17 = vadd.f32 %v1701_v50, %v1433_v51 }
 0x36e   : > { %v2351_v15 = vmax.f32 %v2183_v6, %v2287_v61  ;;  %2722 = vmatmul.msk.bf16.gmra.mxu3 %vm892_vm2, %v1944_v43  ;;  %v1781_v2 = vadd.f32 %v3625_v4, %v1702_v17 }
 0x370   : > { %v2460_v13 = vsel %vm892_vm2, %v2351_v15, -inf  ;;  %v1845_v11 = vmul.f32 0.2, %v1781_v2 }
 0x371   : > { %v3893_v57 = vmax.f32 %v2459_v27, %v2460_v13  ;;  %v2185_v29 = vpop.f32.mrf.mxu3  ;;  %v1440_v45 = vpop.f32.mrf.mxu1 }
 0x372   : > { %v2186_v40 = vadd.f32 %v3899_v41, %v2185_v29  ;;  %v1909_v25 = vmax.f32 %v1781_v2, %v1845_v11 }
 0x373   : > { %v1703_v33 = vpop.f32.mrf.mxu2 }
 0x374   : > { %v2288_v34 = vmul.f32 0.2, %v2186_v40  ;;  %v1704_v52 = vadd.f32 %v1703_v33, %v1435_v28 }
 0x376   : > { %v2352_v48 = vmax.f32 %v2186_v40, %v2288_v34  ;;  %v1782_v18 = vadd.f32 %v3625_v4, %v1704_v52 }
 0x378   : > { %v2475_v1 = vsel %vm892_vm2, %v2352_v48, -inf  ;;  %v1846_v27 = vmul.f32 0.2, %v1782_v18 }
 0x379   : > { %v3907_v44 = vmax.f32 %v2474_v16, %v2475_v1  ;;  %v2187_v39 = vpop.f32.mrf.mxu3  ;;  %v1443_v53 = vpop.f32.mrf.mxu1 }
 0x37a   : > { %v1910_v36 = vmax.f32 %v1782_v18, %v1846_v27  ;;  %v2188_v56 = vadd.f32 %v3899_v41, %v2187_v39 }
 0x37b   : > { %v1706_v19 = vpop.f32.mrf.mxu2 }
 0x37c   : > { %v1945_v23 = vpack.c.bf16 %v1910_v36, %v1909_v25  ;;  %v2289_v35 = vmul.f32 0.2, %v2188_v56  ;;  %v1707_v46 = vadd.f32 %v1706_v19, %v1438_v22 }
 0x37e   : > { %v2353_v5 = vmax.f32 %v2188_v56, %v2289_v35  ;;  %2723 = vmatmul.msk.bf16.gmra.mxu3 %vm892_vm2, %v1945_v23  ;;  %v1783_v16 = vadd.f32 %v3625_v4, %v1707_v46 }
 0x380   : > { %v2490_v38 = vsel %vm892_vm2, %v2353_v5, -inf  ;;  %v1847_v47 = vmul.f32 0.2, %v1783_v16 }
 0x381   : > { %v3915_v12 = vmax.f32 %v2489_v24, %v2490_v38  ;;  %v2190_v20 = vpop.f32.mrf.mxu3  ;;  %v1445_v58 = vpop.f32.mrf.mxu1 }
 0x382   : > { %v2191_v51 = vadd.f32 %v3899_v41, %v2190_v20  ;;  %v1911_v24 = vmax.f32 %v1783_v16, %v1847_v47 }
 0x383   : > { %v1708_v49 = vpop.f32.mrf.mxu2 }
 0x384   : > { %v2290_v10 = vmul.f32 0.2, %v2191_v51  ;;  %v1709_v14 = vadd.f32 %v1708_v49, %v1440_v45 }
 0x386   : > { %v2354_v8 = vmax.f32 %v2191_v51, %v2290_v10  ;;  %v1784_v31 = vadd.f32 %v3625_v4, %v1709_v14 }
 0x388   : > { %v3921_v30 = vsel %vm892_vm2, %v2354_v8, -inf  ;;  %v1848_v32 = vmul.f32 0.2, %v1784_v31 }
 0x389   : > { %v2388_v0 = vmax.f32 %v3851_v26, %v3921_v30  ;;  %v2192_v59 = vpop.f32.mrf.mxu3  ;;  %v1448_v52 = vpop.f32.mrf.mxu1 }
 0x38a   : > { %v1912_v21 = vmax.f32 %v1784_v31, %v1848_v32  ;;  %v2193_v60 = vadd.f32 %v3899_v41, %v2192_v59 }
 0x38b   : > { %v1711_v7 = vpop.f32.mrf.mxu2 }
 0x38c   : > { %v1946_v28 = vpack.c.bf16 %v1912_v21, %v1911_v24  ;;  %v2291_v62 = vmul.f32 0.2, %v2193_v60  ;;  %v1712_v55 = vadd.f32 %v1711_v7, %v1443_v53 }
 0x38e   : > { %v2355_v3 = vmax.f32 %v2193_v60, %v2291_v62  ;;  %2724 = vmatmul.msk.bf16.gmra.mxu3 %vm892_vm2, %v1946_v28  ;;  %v1785_v43 = vadd.f32 %v3625_v4, %v1712_v55 }
 0x390   : > { %v3928_v54 = vsel %vm892_vm2, %v2355_v3, -inf  ;;  %v1849_v29 = vmul.f32 0.2, %v1785_v43 }
 0x391   : > { %v2403_v6 = vmax.f32 %v3859_v9, %v3928_v54  ;;  %v2195_v50 = vpop.f32.mrf.mxu3  ;;  %v1450_v46 = vpop.f32.mrf.mxu1 }
 0x392   : > { %v2196_v61 = vadd.f32 %v3899_v41, %v2195_v50  ;;  %v1913_v48 = vmax.f32 %v1785_v43, %v1849_v29 }
 0x393   : > { %v1713_v15 = vpop.f32.mrf.mxu2 }
 0x394   : > { %v2292_v17 = vmul.f32 0.2, %v2196_v61  ;;  %v1714_v13 = vadd.f32 %v1713_v15, %v1445_v58 }
 0x396   : > { %v2356_v22 = vmax.f32 %v2196_v61, %v2292_v17  ;;  %v1786_v2 = vadd.f32 %v3625_v4, %v1714_v13 }
 0x398   : > { %v3936_v40 = vsel %vm892_vm2, %v2356_v22, -inf  ;;  %v1850_v33 = vmul.f32 0.2, %v1786_v2 }
 0x399   : > { %v2418_v34 = vmax.f32 %v3868_v63, %v3936_v40  ;;  %v2197_v11 = vpop.f32.mrf.mxu3 }
 0x39a   : > { %v1914_v18 = vmax.f32 %v1786_v2, %v1850_v33  ;;  %v2198_v1 = vadd.f32 %v3899_v41, %v2197_v11 }
 0x39b   : > { %v1716_v27 = vpop.f32.mrf.mxu2 }
 0x39c   : > { %v1947_v39 = vpack.c.bf16 %v1914_v18, %v1913_v48  ;;  %v2293_v25 = vmul.f32 0.2, %v2198_v1  ;;  %v1717_v56 = vadd.f32 %v1716_v27, %v1448_v52 }
 0x39e   : > { %v2357_v36 = vmax.f32 %v2198_v1, %v2293_v25  ;;  %2725 = vmatmul.msk.bf16.gmra.mxu3 %vm892_vm2, %v1947_v39  ;;  %v1787_v35 = vadd.f32 %v3625_v4, %v1717_v56 }
 0x3a0   : > { %v3943_v45 = vsel %vm892_vm2, %v2357_v36, -inf  ;;  %v1851_v51 = vmul.f32 0.2, %v1787_v35 }
 0x3a1   : > { %v2433_v19 = vmax.f32 %v3876_v37, %v3943_v45  ;;  %v2200_v23 = vpop.f32.mrf.mxu3 }
 0x3a2   : > { %v2201_v5 = vadd.f32 %v3899_v41, %v2200_v23  ;;  %v1915_v31 = vmax.f32 %v1787_v35, %v1851_v51 }
 0x3a3   : > { %v1718_v38 = vpop.f32.mrf.mxu2 }
 0x3a4   : > { %v2294_v20 = vmul.f32 0.2, %v2201_v5  ;;  %v1719_v16 = vadd.f32 %v1718_v38, %v1450_v46 }
 0x3a6   : > { %v2358_v49 = vmax.f32 %v2201_v5, %v2294_v20  ;;  %v1788_v10 = vadd.f32 %v3625_v4, %v1719_v16 }
 0x3a8   : > { %v3951_v14 = vsel %vm892_vm2, %v2358_v49, -inf  ;;  %v1852_v53 = vmul.f32 0.2, %v1788_v10 }
 0x3a9   : > { %v2448_v47 = vmax.f32 %v3885_v42, %v3951_v14  ;;  %v2202_v8 = vpop.f32.mrf.mxu3 }
 0x3aa   : > { %v1916_v32 = vmax.f32 %v1788_v10, %v1852_v53  ;;  %v2203_v59 = vadd.f32 %v3899_v41, %v2202_v8 }
 0x3ac   : > { %v1948_v24 = vpack.c.bf16 %v1916_v32, %v1915_v31  ;;  %v2295_v21 = vmul.f32 0.2, %v2203_v59 }
 0x3ae   : > { %v2359_v60 = vmax.f32 %v2203_v59, %v2295_v21  ;;  %2726 = vmatmul.msk.bf16.gmra.mxu3 %vm892_vm2, %v1948_v24 }
 0x3b0   : > { %v3958_v7 = vsel %vm892_vm2, %v2359_v60, -inf }
 0x3b1   : > { %v2463_v4 = vmax.f32 %v3893_v57, %v3958_v7  ;;  %v2205_v28 = vpop.f32.mrf.mxu3 }
 0x3b2   : > { %v2206_v62 = vadd.f32 %v3899_v41, %v2205_v28 }
 0x3b4   : > { %v2296_v3 = vmul.f32 0.2, %v2206_v62 }
 0x3b6   : > { %v2360_v55 = vmax.f32 %v2206_v62, %v2296_v3 }
 0x3b8   : > { %v3964_v58 = vsel %vm892_vm2, %v2360_v55, -inf }
 0x3b9   : > { %v2478_v50 = vmax.f32 %v3907_v44, %v3964_v58  ;;  %v2207_v43 = vpop.f32.mrf.mxu3 }
 0x3ba   : > { %v2208_v61 = vadd.f32 %v3899_v41, %v2207_v43 }
 0x3bc   : > { %v2297_v15 = vmul.f32 0.2, %v2208_v61 }
 0x3be   : > { %v2361_v17 = vmax.f32 %v2208_v61, %v2297_v15 }
 0x3c0   : > { %v3970_v13 = vsel %vm892_vm2, %v2361_v17, -inf }
 0x3c1   : > { %v2493_v29 = vmax.f32 %v3915_v12, %v3970_v13  ;;  %v2210_v22 = vpop.f32.mrf.mxu3 }
 0x3c2   : > { %v2211_v1 = vadd.f32 %v3899_v41, %v2210_v22 }
 0x3c4   : > { %v2298_v39 = vmul.f32 0.2, %v2211_v1 }
 0x3c6   : > { %v2362_v25 = vmax.f32 %v2211_v1, %v2298_v39 }
 0x3c8   : > { %v2389_v35 = vsel %vm892_vm2, %v2362_v25, -inf }
 0x3c9   : > { %v2212_v2 = vpop.f32.mrf.mxu3  ;;  %v2390_v20 = vmax.f32 %v2388_v0, %v2389_v35 }
 0x3ca   : > { %v2213_v36 = vadd.f32 %v3899_v41, %v2212_v2 }
 0x3cc   : > { %v2299_v5 = vmul.f32 0.2, %v2213_v36 }
 0x3ce   : > { %v2363_v16 = vmax.f32 %v2213_v36, %v2299_v5 }
 0x3d0   : > { %v2404_v26 = vsel %vm892_vm2, %v2363_v16, -inf }
 0x3d1   : > { %v2215_v33 = vpop.f32.mrf.mxu3  ;;  %v2405_v32 = vmax.f32 %v2403_v6, %v2404_v26 }
 0x3d2   : > { %v2216_v51 = vadd.f32 %v3899_v41, %v2215_v33 }
 0x3d4   : > { %v2300_v30 = vmul.f32 0.2, %v2216_v51 }
 0x3d6   : > { %v2364_v59 = vmax.f32 %v2216_v51, %v2300_v30 }
 0x3d8   : > { %v2419_v3 = vsel %vm892_vm2, %v2364_v59, -inf }
 0x3d9   : > { %v2217_v52 = vpop.f32.mrf.mxu3  ;;  %v2420_v9 = vmax.f32 %v2418_v34, %v2419_v3 }
 0x3da   : > { %v2218_v24 = vadd.f32 %v3899_v41, %v2217_v52 }
 0x3dc   : > { %v2301_v55 = vmul.f32 0.2, %v2218_v24 }
 0x3de   : > { %v2365_v54 = vmax.f32 %v2218_v24, %v2301_v55 }
 0x3e0   : > { %v2434_v33 = vsel %vm892_vm2, %v2365_v54, -inf }
 0x3e1   : > { %v2220_v11 = vpop.f32.mrf.mxu3  ;;  %v2435_v63 = vmax.f32 %v2433_v19, %v2434_v33 }
 0x3e2   : > { %v2221_v6 = vadd.f32 %v3899_v41, %v2220_v11 }
 0x3e4   : > { %v2302_v52 = vmul.f32 0.2, %v2221_v6 }
 0x3e6   : > { %v2366_v40 = vmax.f32 %v2221_v6, %v2302_v52 }
 0x3e9   : > { %v2222_v48 = vpop.f32.mrf.mxu3 }
 0x3ea   : > { %v2223_v34 = vadd.f32 %v3899_v41, %v2222_v48 }
 0x3ec   : > { %v2303_v35 = vmul.f32 0.2, %v2223_v34 }
 0x3ee   : > { %v2367_v45 = vmax.f32 %v2223_v34, %v2303_v35 }
 0x3f0   : > { %v2464_v51 = vsel %vm892_vm2, %v2367_v45, -inf }
 0x3f1   : > { %v3974_v18 = vpop.f32.mrf.mxu3  ;;  %v2465_v42 = vmax.f32 %v2463_v4, %v2464_v51 }
 0x3f2   : > { %v2226_v19 = vadd.f32 %v3899_v41, %v3974_v18 }
 0x3f9   : > { %v3977_v27 = vpop.f32.mrf.mxu3 }
 0x401   : > { %v2230_v56 = vpop.f32.mrf.mxu3 }
 0x402   : > { %v2231_v23 = vadd.f32 %v3899_v41, %v2230_v56 }
 0x404   : > { %v2306_v46 = vmul.f32 0.2, %v2231_v23 }
 0x406   : > { %v2370_v38 = vmax.f32 %v2231_v23, %v2306_v46  ;;  %v2449_v23 = vsel %vm892_vm2, %v2366_v40, -inf }
 0x407   : > { %v2450_v37 = vmax.f32 %v2448_v47, %v2449_v23  ;;  %v2228_v47 = vadd.f32 %v3899_v41, %v3977_v27 }
 0x408   : > { %v2391_v49 = vsel %vm892_vm2, %v2370_v38, -inf }
 0x409   : > { %v2392_v10 = vmax.f32 %v2390_v20, %v2391_v49  ;;  %v2232_v53 = vpop.f32.mrf.mxu3  ;;  %v2304_v49 = vmul.f32 0.2, %v2226_v19 }
 0x40a   : > { %v2233_v8 = vadd.f32 %v3899_v41, %v2232_v53 }
 0x40b   : > { %2498 = vst.msk [vmem:[%s3991_s13] sm:$0xff] %vm892_vm2, %v2392_v10  ;;  %v2368_v14 = vmax.f32 %v2226_v19, %v2304_v49 }
 0x40c   : > { %v2307_v0 = vmul.f32 0.2, %v2233_v8 }
 0x40e   : > { %v2371_v31 = vmax.f32 %v2233_v8, %v2307_v0  ;;  %v2479_v0 = vsel %vm892_vm2, %v2368_v14, -inf }
 0x40f   : > { %v2480_v7 = vmax.f32 %v2478_v50, %v2479_v0 }
 0x410   : > { %v2406_v21 = vsel %vm892_vm2, %v2371_v31, -inf  ;;  %v2305_v31 = vmul.f32 0.2, %v2228_v47 }
 0x411   : > { %v2407_v60 = vmax.f32 %v2405_v32, %v2406_v21  ;;  %v2235_v28 = vpop.f32.mrf.mxu3 }
 0x412   : > { %v2236_v62 = vadd.f32 %v3899_v41, %v2235_v28  ;;  %v2369_v4 = vmax.f32 %v2228_v47, %v2305_v31 }
 0x413   : > { %2499 = vst.msk [vmem:[%s3991_s13 + $0x8] sm:$0xff] %vm892_vm2, %v2407_v60 }
 0x414   : > { %v2308_v43 = vmul.f32 0.2, %v2236_v62  ;;  %v2494_v60 = vsel %vm892_vm2, %v2369_v4, -inf }
 0x415   : > { %v2495_v3 = vmax.f32 %v2493_v29, %v2494_v60 }
 0x416   : > { %v2372_v61 = vmax.f32 %v2236_v62, %v2308_v43 }
 0x418   : > { %v2421_v15 = vsel %vm892_vm2, %v2372_v61, -inf }
 0x419   : > { %v2422_v17 = vmax.f32 %v2420_v9, %v2421_v15  ;;  %v2237_v22 = vpop.f32.mrf.mxu3 }
 0x41a   : > { %v2238_v2 = vadd.f32 %v3899_v41, %v2237_v22 }
 0x41b   : > { %2500 = vst.msk [vmem:[%s3991_s13 + $0x10] sm:$0xff] %vm892_vm2, %v2422_v17 }
 0x41c   : > { %v2309_v1 = vmul.f32 0.2, %v2238_v2 }
 0x41e   : > { %v2373_v39 = vmax.f32 %v2238_v2, %v2309_v1 }
 0x420   : > { %v2436_v11 = vsel %vm892_vm2, %v2373_v39, -inf }
 0x421   : > { %v2437_v25 = vmax.f32 %v2435_v63, %v2436_v11  ;;  %v2240_v36 = vpop.f32.mrf.mxu3 }
 0x422   : > { %v2241_v56 = vadd.f32 %v3899_v41, %v2240_v36 }
 0x423   : > { %2501 = vst.msk [vmem:[%s3991_s13 + $0x18] sm:$0xff] %vm892_vm2, %v2437_v25 }
 0x424   : > { %v2310_v5 = vmul.f32 0.2, %v2241_v56 }
 0x426   : > { %v2374_v46 = vmax.f32 %v2241_v56, %v2310_v5 }
 0x428   : > { %v2451_v48 = vsel %vm892_vm2, %v2374_v46, -inf }
 0x429   : > { %v2452_v38 = vmax.f32 %v2450_v37, %v2451_v48  ;;  %v2242_v20 = vpop.f32.mrf.mxu3 }
 0x42a   : > { %v2243_v16 = vadd.f32 %v3899_v41, %v2242_v20 }
 0x42b   : > { %2502 = vst.msk [vmem:[%s3991_s13 + $0x20] sm:$0xff] %vm892_vm2, %v2452_v38 }
 0x42c   : > { %v2311_v10 = vmul.f32 0.2, %v2243_v16 }
 0x42e   : > { %v2375_v53 = vmax.f32 %v2243_v16, %v2311_v10 }
 0x430   : > { %v2466_v18 = vsel %vm892_vm2, %v2375_v53, -inf }
 0x431   : > { %v2467_v8 = vmax.f32 %v2465_v42, %v2466_v18  ;;  %v2245_v26 = vpop.f32.mrf.mxu3 }
 0x432   : > { %v2246_v30 = vadd.f32 %v3899_v41, %v2245_v26 }
 0x433   : > { %2503 = vst.msk [vmem:[%s3991_s13 + $0x28] sm:$0xff] %vm892_vm2, %v2467_v8 }
 0x434   : > { %v2312_v32 = vmul.f32 0.2, %v2246_v30 }
 0x436   : > { %v2376_v57 = vmax.f32 %v2246_v30, %v2312_v32 }
 0x438   : > { %v2481_v27 = vsel %vm892_vm2, %v2376_v57, -inf }
 0x439   : > { %v2482_v59 = vmax.f32 %v2480_v7, %v2481_v27  ;;  %v2247_v24 = vpop.f32.mrf.mxu3 }
 0x43a   : > { %v2248_v21 = vadd.f32 %v3899_v41, %v2247_v24 }
 0x43b   : > { %2504 = vst.msk [vmem:[%s3991_s13 + $0x30] sm:$0xff] %vm892_vm2, %v2482_v59 }
 0x43c   : > { %v2313_v28 = vmul.f32 0.2, %v2248_v21 }
 0x43e   : > { %v2377_v62 = vmax.f32 %v2248_v21, %v2313_v28 }
 0x440   : > { %v2496_v44 = vsel %vm892_vm2, %v2377_v62, -inf }
 0x441   : > { %v2497_v58 = vmax.f32 %v2495_v3, %v2496_v44 }
 0x443   : > { %2505 = vst.msk [vmem:[%s3991_s13 + $0x38] sm:$0xff] %vm892_vm2, %v2497_v58 }
 0x444 PF: > { %s17_s24 = sadd.s32 1, %s2819_s24  }
 0x445   : > { %p14_p4 = scmp.ge.s32.totalorder %s17_s24, 4  }
 0x447   :  { %16 = sbr.rel (!%p14_p4) target bundleno = 1 (0x1), region = 81 }

// kernel: _lambda_.10
= control target key start
LH: loop header
LB: loop body
LE: loop exit
PB: predicated region body
PF: predicated region fallthrough
CT: control target
= control target key end

     0   :  { %s2952_s24 = smov 0   ;;  %s4169_s0 = inlined_call_operand.vmem [shape: f32[2,64,64], index: 0, kind: input, shape index: {}]   ;;  %s4170_s1 = inlined_call_operand.vmem [shape: s32[2,8,64], index: 1, kind: input, shape index: {}]   ;;  %s4171_s2 = inlined_call_operand.vmem [shape: bf16[64,64], index: 2, kind: input, shape index: {}]   ;;  %s4172_s3 = inlined_call_operand.vmem [shape: bf16[64,64], index: 3, kind: input, shape index: {}]   ;;  %s4173_s4 = inlined_call_operand.vmem [shape: f32[1,64], index: 4, kind: input, shape index: {}]   ;;  %s4174_s5 = inlined_call_operand.vmem [shape: bf16[64,64], index: 5, kind: input, shape index: {}]   ;;  %s4175_s6 = inlined_call_operand.vmem [shape: f32[1,64], index: 6, kind: input, shape index: {}]   ;;  %s4176_s7 = inlined_call_operand.vmem [shape: f32[2,64,64], index: 7, kind: output, shape index: {}]  }
   0x1 LB: > { %s2624_s25 = sadd.s32 4294967295, %s2909_s24   ;;  %p2628_p0 = scmp.ge.s32.totalorder %s2909_s24, 1  ;;  %s2909_s24 = sphi %s2952_s24, %s17_s24  }
   0x2   : > { %p246_p1 = scmp.lt.s32.totalorder %s2909_s24, 3 }
   0x4   : > { %p247_p2 = pnand %p2628_p0, %p246_p1 }
   0x5   : > { %p282_p3 = scmp.lt.s32.totalorder (!%p247_p2), %s2624_s25, 1 }
   0x6   : > { %250 = sbr.rel (%p247_p2) target bundleno = 1092 (0x444), region = 48 }
   0xb   : > { %v314_v0 = vlaneseq  ;;  %s4178_s25 = smov (!%p282_p3, %s2624_s25), 1  ;;  %v2911_v45 = vmov 0.0   ;;  %vm892_vm2 = vcmask 523264  }
   0xc   : > { %s2631_s26 = sshll.u32 %s4178_s25, 3  ;;  %s2812_s30 = sshll.u32 %s4178_s25, 6 }
   0xd   : > { %v2961_v1 = vshrl.u32 %v314_v0, 7  ;;  %s290_s29 = scalar_lea.vmem %s4170_s1, %s2631_s26  ;;  %s286_s10 = scalar_lea.vmem %s4169_s0, %s2812_s30  ;;  %v3060_v42 = vand.u32 127, %v314_v0 }
   0xe   : > { %v2977_v4 = vld [vmem:[%s290_s29] sm:$0xff]  ;;  %v303_v12 = vld [vmem:[%s286_s10 + $0x30] sm:$0xff]  ;;  %v304_v13 = vld [vmem:[%s286_s10 + $0x38] sm:$0xff]  ;;  %s4098_s27 = scalar_lea.vmem %s4176_s7, %s2812_s30 }
   0xf   : > { %2835 = vset.pattern.permute.xlu0 %v2961_v1  ;;  %v2967_v2 = vadd.s32 16, %v2961_v1  ;;  %v2971_v3 = vadd.s32 32, %v2961_v1  ;;  %v316_v5 = vperm.slane %v2977_v4, 0  ;;  %v2982_v6 = vadd.s32 8, %v2961_v1  ;;  %v301_v18 = vld [vmem:[%s286_s10 + $0x20] sm:$0xff]  ;;  %v302_v19 = vld [vmem:[%s286_s10 + $0x28] sm:$0xff] }
  0x10   : > { %v2985_v7 = vadd.s32 24, %v2961_v1  ;;  %v2988_v8 = vadd.s32 40, %v2961_v1  ;;  %v2994_v9 = vadd.s32 48, %v2961_v1  ;;  %v2997_v10 = vadd.s32 56, %v2961_v1  ;;  %v299_v23 = vld [vmem:[%s286_s10 + $0x10] sm:$0xff]  ;;  %v300_v24 = vld [vmem:[%s286_s10 + $0x18] sm:$0xff] }
  0x11   : > { %2837 = vset.pattern.permute.xlu1 %v2967_v2  ;;  %2839 = vset.pattern.permute.xlu2 %v2971_v3  ;;  %v365_v11 = vperm.slane %v2977_v4, 1  ;;  %v3017_v14 = vpack.c.bf16 %v303_v12, %v303_v12  ;;  %v3019_v15 = vpack.c.bf16 %v304_v13, %v304_v13  ;;  %v3025_v21 = vpack.c.bf16 %v301_v18, %v301_v18  ;;  %v297_v33 = vld [vmem:[%s286_s10] sm:$0xff]  ;;  %v298_v34 = vld [vmem:[%s286_s10 + $0x8] sm:$0xff] }
  0x12   : > { %v3027_v22 = vpack.c.bf16 %v302_v19, %v302_v19  ;;  %v3029_v25 = vpack.c.bf16 %v299_v23, %v299_v23  ;;  %v3031_v26 = vpack.c.bf16 %v300_v24, %v300_v24  ;;  %v3045_v35 = vpack.c.bf16 %v297_v33, %v297_v33  ;;  %v2821_v24 = vld [vmem:[%s4172_s3 + $0x18] sm:$0xff] }
  0x13   : > { %v882_v16 = vunpack.c.l.b16 %v3017_v14  ;;  %v883_v17 = vunpack.c.l.b16 %v3019_v15  ;;  %v880_v27 = vunpack.c.l.b16 %v3025_v21  ;;  %v3047_v36 = vpack.c.bf16 %v298_v34, %v298_v34  ;;  %1318 = vmatpush.bf16.msra.mxu1 %v2821_v24  ;;  %v2820_v34 = vld [vmem:[%s4172_s3 + $0x10] sm:$0xff] }
  0x14   : > { %v881_v28 = vunpack.c.l.b16 %v3027_v22  ;;  %v878_v29 = vunpack.c.l.b16 %v3029_v25  ;;  %v879_v30 = vunpack.c.l.b16 %v3031_v26  ;;  %v876_v37 = vunpack.c.l.b16 %v3045_v35 }
  0x15   : > { %v3023_v20 = vpack.c.b16 %v883_v17, %v882_v16  ;;  %v877_v38 = vunpack.c.l.b16 %v3047_v36  ;;  %v414_v40 = vperm.slane %v2977_v4, 2  ;;  %v463_v58 = vperm.slane %v2977_v4, 3 }
  0x16   : > { %v3038_v31 = vpack.c.b16 %v881_v28, %v880_v27  ;;  %v3043_v32 = vpack.c.b16 %v879_v30, %v878_v29  ;;  %v2817_v27 = vld [vmem:[%s4171_s2 + $0x18] sm:$0xff] }
  0x17   : > { %321 = vperm.xlu0 %2835, %v316_v5   ;;  %993 = vmatpush.bf16.msra.mxu0 %v3023_v20  ;;  %v3052_v39 = vpack.c.b16 %v877_v38, %v876_v37  ;;  %v2816_v38 = vld [vmem:[%s4171_s2 + $0x10] sm:$0xff] }
  0x18   : > { %1607 = vmatpush.bf16.msra.mxu2 %v2817_v27  ;;  %1319 = vmatpush.bf16.msra.mxu1 %v2820_v34 }
  0x19   : > { %333 = vperm.xlu1 %2837, %v316_v5   ;;  %345 = vperm.xlu2 %2839, %v316_v5  }
  0x1b   : > { %994 = vmatpush.bf16.msra.mxu0 %v3038_v31 }
  0x1c   : > { %1608 = vmatpush.bf16.msra.mxu2 %v2816_v38 }
  0x1f   : > { %2836 = vset.pattern.permute.xlu0 %v2982_v6  ;;  %995 = vmatpush.bf16.msra.mxu0 %v3043_v32 }
  0x21   : > { %2838 = vset.pattern.permute.xlu1 %v2985_v7  ;;  %2840 = vset.pattern.permute.xlu2 %v2988_v8 }
  0x23   : > { %996 = vmatpush.bf16.msra.mxu0 %v3052_v39 }
  0x27   : > { %327 = vperm.xlu0 %2836, %v316_v5  }
  0x29   : > { %339 = vperm.xlu1 %2838, %v316_v5   ;;  %351 = vperm.xlu2 %2840, %v316_v5  }
  0x2f   : > { %2843 = vset.pattern.permute.xlu0 %v2961_v1 }
  0x31   : > { %2841 = vset.pattern.permute.xlu1 %v2994_v9  ;;  %2842 = vset.pattern.permute.xlu2 %v2997_v10 }
  0x37   : > { %370 = vperm.xlu0 %2843, %v365_v11  }
  0x39   : > { %357 = vperm.xlu1 %2841, %v316_v5   ;;  %363 = vperm.xlu2 %2842, %v316_v5  }
  0x3f   : > { %2848 = vset.pattern.permute.xlu0 %v2988_v8 }
  0x41   : > { %2844 = vset.pattern.permute.xlu1 %v2982_v6  ;;  %2845 = vset.pattern.permute.xlu2 %v2967_v2 }
  0x47   : > { %400 = vperm.xlu0 %2848, %v365_v11  }
  0x49   : > { %376 = vperm.xlu1 %2844, %v365_v11   ;;  %382 = vperm.xlu2 %2845, %v365_v11  }
  0x4f   : > { %2853 = vset.pattern.permute.xlu0 %v2967_v2 }
  0x51   : > { %2846 = vset.pattern.permute.xlu1 %v2985_v7  ;;  %2847 = vset.pattern.permute.xlu2 %v2971_v3 }
  0x57   : > { %431 = vperm.xlu0 %2853, %v414_v40  }
  0x59   : > { %388 = vperm.xlu1 %2846, %v365_v11   ;;  %394 = vperm.xlu2 %2847, %v365_v11  }
  0x5f   : > { %2858 = vset.pattern.permute.xlu0 %v2997_v10 }
  0x61   : > { %2849 = vset.pattern.permute.xlu1 %v2994_v9  ;;  %2850 = vset.pattern.permute.xlu2 %v2997_v10 }
  0x67   : > { %461 = vperm.xlu0 %2858, %v414_v40  }
  0x69   : > { %406 = vperm.xlu1 %2849, %v365_v11   ;;  %412 = vperm.xlu2 %2850, %v365_v11  }
  0x6f   : > { %2863 = vset.pattern.permute.xlu0 %v2971_v3 }
  0x71   : > { %2851 = vset.pattern.permute.xlu1 %v2961_v1  ;;  %2852 = vset.pattern.permute.xlu2 %v2982_v6 }
  0x73   : > { %v346_v51 = vpop.permute.xlu2 %345 }
  0x74   : > { %vm712_vm5 = vcmp.eq.s32.totalorder %v346_v51, %v3060_v42 }
  0x75   : > { %v776_v55 = vsel %vm712_vm5, 1.0, %v2911_v45 }
  0x77   : > { %492 = vperm.xlu0 %2863, %v463_v58  }
  0x79   : > { %419 = vperm.xlu1 %2851, %v414_v40   ;;  %425 = vperm.xlu2 %2852, %v414_v40  }
  0x7f   : > { %2868 = vset.pattern.permute.xlu0 %v2982_v6 }
  0x81   : > { %2854 = vset.pattern.permute.xlu1 %v2985_v7  ;;  %2855 = vset.pattern.permute.xlu2 %v2971_v3 }
  0x83   : > { %v352_v54 = vpop.permute.xlu2 %351 }
  0x84   : > { %vm713_vm6 = vcmp.eq.s32.totalorder %v352_v54, %v3060_v42 }
  0x85   : > { %v777_v56 = vsel %vm713_vm6, 1.0, %v2911_v45 }
  0x86   : > { %v838_v57 = vpack.c.bf16 %v777_v56, %v776_v55 }
  0x89   : > { %437 = vperm.xlu1 %2854, %v414_v40   ;;  %v322_v41 = vpop.permute.xlu0 %321  ;;  %443 = vperm.xlu2 %2855, %v414_v40  }
  0x8a   : > { %vm708_vm0 = vcmp.eq.s32.totalorder %v322_v41, %v3060_v42  ;;  %v2815_v41 = vld [vmem:[%s4171_s2 + $0x8] sm:$0xff] }
  0x8b   : > { %v334_v43 = vpop.permute.xlu1 %333  ;;  %v772_v46 = vsel %vm708_vm0, 1.0, %v2911_v45  ;;  %1609 = vmatpush.bf16.msra.mxu2 %v2815_v41 }
  0x8c   : > { %vm710_vm4 = vcmp.eq.s32.totalorder %v334_v43, %v3060_v42 }
  0x8d   : > { %v774_v52 = vsel %vm710_vm4, 1.0, %v2911_v45 }
  0x91   : > { %2856 = vset.pattern.permute.xlu1 %v2988_v8  ;;  %2857 = vset.pattern.permute.xlu2 %v2994_v9 }
  0x93   : > { %v364_v59 = vpop.permute.xlu2 %363 }
  0x94   : > { %vm715_vm7 = vcmp.eq.s32.totalorder %v364_v59, %v3060_v42  ;;  %v3159_v59 = vunpack.c.l.bf16 %v3047_v36 }
  0x95   : > { %v779_v61 = vsel %vm715_vm7, 1.0, %v2911_v45 }
  0x99   : > { %v328_v44 = vpop.permute.xlu0 %327  ;;  %449 = vperm.xlu1 %2856, %v414_v40   ;;  %455 = vperm.xlu2 %2857, %v414_v40   ;;  %v2819_v40 = vld [vmem:[%s4172_s3 + $0x8] sm:$0xff] }
  0x9a   : > { %vm709_vm1 = vcmp.eq.s32.totalorder %v328_v44, %v3060_v42  ;;  %1320 = vmatpush.bf16.msra.mxu1 %v2819_v40 }
  0x9b   : > { %v773_v47 = vsel %vm709_vm1, 1.0, %v2911_v45  ;;  %v340_v49 = vpop.permute.xlu1 %339 }
  0x9c   : > { %v836_v48 = vpack.c.bf16 %v773_v47, %v772_v46  ;;  %vm711_vm3 = vcmp.eq.s32.totalorder %v340_v49, %v3060_v42  ;;  %v2818_v46 = vld [vmem:[%s4172_s3] sm:$0xff] }
  0x9d   : > { %v775_v50 = vsel %vm711_vm3, 1.0, %v2911_v45  ;;  %v2814_v47 = vld [vmem:[%s4171_s2] sm:$0xff] }
  0x9e   : > { %2634 = vmatmul.msk.bf16.vlgmr.msra.gmra.mxu0 %vm892_vm2, %v836_v48  ;;  %v837_v53 = vpack.c.bf16 %v775_v50, %v774_v52  ;;  %1321 = vmatpush.bf16.msra.mxu1 %v2818_v46  ;;  %v512_v48 = vperm.slane %v2977_v4, 4 }
  0x9f   : > { %1610 = vmatpush.bf16.msra.mxu2 %v2814_v47 }
  0xa0   : > { %523 = vperm.xlu0 %2868, %v512_v48  }
  0xa1   : > { %2859 = vset.pattern.permute.xlu1 %v2961_v1  ;;  %2860 = vset.pattern.permute.xlu2 %v2982_v6 }
  0xa2   : > { %2682 = vmatmul.msk.bf16.vlgmr.msra.gmra.mxu1 %vm892_vm2, %v3052_v39 }
  0xa3   : > { %v383_v16 = vpop.permute.xlu2 %382 }
  0xa4   : > { %vm718_vm11 = vcmp.eq.s32.totalorder %v383_v16, %v3060_v42  ;;  %v3177_v16 = vunpack.c.l.bf16 %v3031_v26 }
  0xa5   : > { %v782_v18 = vsel %vm718_vm11, 1.0, %v2911_v45 }
  0xa8   : > { %2873 = vset.pattern.permute.xlu0 %v2994_v9 }
  0xa9   : > { %468 = vperm.xlu1 %2859, %v463_v58   ;;  %474 = vperm.xlu2 %2860, %v463_v58   ;;  %v371_v5 = vpop.permute.xlu0 %370 }
  0xaa   : > { %vm716_vm10 = vcmp.eq.s32.totalorder %v371_v5, %v3060_v42 }
  0xab   : > { %v358_v60 = vpop.permute.xlu1 %357  ;;  %v780_v12 = vsel %vm716_vm10, 1.0, %v2911_v45 }
  0xac   : > { %vm714_vm8 = vcmp.eq.s32.totalorder %v358_v60, %v3060_v42 }
  0xad   : > { %v778_v62 = vsel %vm714_vm8, 1.0, %v2911_v45 }
  0xae   : > { %2635 = vmatmul.msk.bf16.gmra.mxu0 %vm892_vm2, %v837_v53  ;;  %v839_v63 = vpack.c.bf16 %v779_v61, %v778_v62 }
  0xb0   : > { %553 = vperm.xlu0 %2873, %v512_v48  }
  0xb1   : > { %2861 = vset.pattern.permute.xlu1 %v2967_v2  ;;  %2862 = vset.pattern.permute.xlu2 %v2985_v7 }
  0xb2   : > { %2683 = vmatmul.msk.bf16.gmra.mxu1 %vm892_vm2, %v3043_v32 }
  0xb3   : > { %v395_v28 = vpop.permute.xlu2 %394 }
  0xb4   : > { %vm720_vm13 = vcmp.eq.s32.totalorder %v395_v28, %v3060_v42 }
  0xb5   : > { %v784_v30 = vsel %vm720_vm13, 1.0, %v2911_v45 }
  0xb8   : > { %2878 = vset.pattern.permute.xlu0 %v2985_v7 }
  0xb9   : > { %480 = vperm.xlu1 %2861, %v463_v58   ;;  %486 = vperm.xlu2 %2862, %v463_v58   ;;  %v401_v29 = vpop.permute.xlu0 %400 }
  0xba   : > { %vm721_vm14 = vcmp.eq.s32.totalorder %v401_v29, %v3060_v42 }
  0xbb   : > { %v377_v0 = vpop.permute.xlu1 %376  ;;  %v785_v33 = vsel %vm721_vm14, 1.0, %v2911_v45 }
  0xbc   : > { %vm717_vm9 = vcmp.eq.s32.totalorder %v377_v0, %v3060_v42  ;;  %v842_v37 = vpack.c.bf16 %v785_v33, %v784_v30  ;;  %v3191_v30 = vunpack.c.l.bf16 %v3025_v21  ;;  %v3194_v33 = vunpack.c.l.bf16 %v3027_v22 }
  0xbd   : > { %v781_v11 = vsel %vm717_vm9, 1.0, %v2911_v45 }
  0xbe   : > { %2636 = vmatmul.msk.bf16.gmra.mxu0 %vm892_vm2, %v838_v57  ;;  %v840_v13 = vpack.c.bf16 %v781_v11, %v780_v12 }
  0xc1   : > { %2864 = vset.pattern.permute.xlu1 %v2988_v8  ;;  %2865 = vset.pattern.permute.xlu2 %v2994_v9 }
  0xc2   : > { %2684 = vmatmul.msk.bf16.gmra.mxu1 %vm892_vm2, %v3038_v31 }
  0xc3   : > { %v413_v43 = vpop.permute.xlu2 %412 }
  0xc4   : > { %vm723_vm15 = vcmp.eq.s32.totalorder %v413_v43, %v3060_v42  ;;  %v3201_v43 = vperm.slane %v2977_v4, 5 }
  0xc5   : > { %v787_v49 = vsel %vm723_vm15, 1.0, %v2911_v45 }
  0xc6   : > { %584 = vperm.xlu0 %2878, %v3201_v43  }
  0xc9   : > { %498 = vperm.xlu1 %2864, %v463_v58   ;;  %504 = vperm.xlu2 %2865, %v463_v58   ;;  %v432_v61 = vpop.permute.xlu0 %431 }
  0xca   : > { %vm726_vm5 = vcmp.eq.s32.totalorder %v432_v61, %v3060_v42 }
  0xcb   : > { %v389_v17 = vpop.permute.xlu1 %388  ;;  %v790_v36 = vsel %vm726_vm5, 1.0, %v2911_v45 }
  0xcc   : > { %vm719_vm12 = vcmp.eq.s32.totalorder %v389_v17, %v3060_v42 }
  0xcd   : > { %v783_v19 = vsel %vm719_vm12, 1.0, %v2911_v45 }
  0xce   : > { %2637 = vmatmul.msk.bf16.gmra.mxu0 %vm892_vm2, %v839_v63  ;;  %v841_v23 = vpack.c.bf16 %v783_v19, %v782_v18  ;;  %2883 = vset.pattern.permute.xlu0 %v2961_v1 }
  0xd1   : > { %2866 = vset.pattern.permute.xlu1 %v2997_v10  ;;  %2867 = vset.pattern.permute.xlu2 %v2961_v1 }
  0xd2   : > { %2685 = vmatmul.msk.bf16.gmra.mxu1 %vm892_vm2, %v3023_v20 }
  0xd3   : > { %v426_v52 = vpop.permute.xlu2 %425 }
  0xd4   : > { %vm725_vm1 = vcmp.eq.s32.totalorder %v426_v52, %v3060_v42 }
  0xd5   : > { %v789_v54 = vsel %vm725_vm1, 1.0, %v2911_v45 }
  0xd9   : > { %510 = vperm.xlu1 %2866, %v463_v58   ;;  %517 = vperm.xlu2 %2867, %v512_v48   ;;  %v3156_v58 = vunpack.c.l.bf16 %v3045_v35 }
  0xdb   : > { %v407_v44 = vpop.permute.xlu1 %406 }
  0xdc   : > { %vm722_vm0 = vcmp.eq.s32.totalorder %v407_v44, %v3060_v42 }
  0xdd   : > { %v786_v50 = vsel %vm722_vm0, 1.0, %v2911_v45 }
  0xde   : > { %2638 = vmatmul.msk.bf16.gmra.mxu0 %vm892_vm2, %v840_v13  ;;  %v843_v51 = vpack.c.bf16 %v787_v49, %v786_v50  ;;  %v3174_v13 = vunpack.c.l.bf16 %v3029_v25  ;;  %v3218_v49 = vunpack.c.l.bf16 %v3019_v15 }
  0xe1   : > { %2869 = vset.pattern.permute.xlu1 %v2967_v2  ;;  %2870 = vset.pattern.permute.xlu2 %v2985_v7 }
  0xe2   : > { %2686 = vmatmul.msk.bf16.gmra.mxu1 %vm892_vm2, %v3052_v39 }
  0xe3   : > { %v444_v17 = vpop.permute.xlu2 %443 }
  0xe4   : > { %vm728_vm6 = vcmp.eq.s32.totalorder %v444_v17, %v3060_v42 }
  0xe5   : > { %v792_v25 = vsel %vm728_vm6, 1.0, %v2911_v45 }
  0xe9   : > { %529 = vperm.xlu1 %2869, %v512_v48   ;;  %535 = vperm.xlu2 %2870, %v512_v48  }
  0xeb   : > { %v420_v53 = vpop.permute.xlu1 %419 }
  0xec   : > { %vm724_vm3 = vcmp.eq.s32.totalorder %v420_v53, %v3060_v42 }
  0xed   : > { %v788_v55 = vsel %vm724_vm3, 1.0, %v2911_v45 }
  0xee   : > { %2639 = vmatmul.msk.bf16.gmra.mxu0 %vm892_vm2, %v841_v23  ;;  %v844_v56 = vpack.c.bf16 %v789_v54, %v788_v55 }
  0xf1   : > { %2871 = vset.pattern.permute.xlu1 %v2971_v3  ;;  %2872 = vset.pattern.permute.xlu2 %v2988_v8 }
  0xf2   : > { %2687 = vmatmul.msk.bf16.gmra.mxu1 %vm892_vm2, %v3043_v32 }
  0xf3   : > { %v456_v34 = vpop.permute.xlu2 %455 }
  0xf4   : > { %vm730_vm8 = vcmp.eq.s32.totalorder %v456_v34, %v3060_v42 }
  0xf5   : > { %v794_v21 = vsel %vm730_vm8, 1.0, %v2911_v45 }
  0xf9   : > { %541 = vperm.xlu1 %2871, %v512_v48   ;;  %547 = vperm.xlu2 %2872, %v512_v48  }
  0xfb   : > { %v438_v60 = vpop.permute.xlu1 %437 }
  0xfc   : > { %vm727_vm4 = vcmp.eq.s32.totalorder %v438_v60, %v3060_v42 }
  0xfd   : > { %v791_v35 = vsel %vm727_vm4, 1.0, %v2911_v45 }
  0xfe   : > { %2640 = vmatmul.msk.bf16.gmra.mxu0 %vm892_vm2, %v842_v37  ;;  %v845_v11 = vpack.c.bf16 %v791_v35, %v790_v36  ;;  %v462_v37 = vpop.permute.xlu0 %461 }
  0xff   : > { %vm731_vm9 = vcmp.eq.s32.totalorder %v462_v37, %v3060_v42 }
 0x100   : > { %v795_v22 = vsel %vm731_vm9, 1.0, %v2911_v45 }
 0x101   : > { %2874 = vset.pattern.permute.xlu1 %v2997_v10  ;;  %2875 = vset.pattern.permute.xlu2 %v2961_v1  ;;  %v847_v46 = vpack.c.bf16 %v795_v22, %v794_v21 }
 0x102   : > { %2688 = vmatmul.msk.bf16.gmra.mxu1 %vm892_vm2, %v3038_v31 }
 0x103   : > { %v475_v50 = vpop.permute.xlu2 %474 }
 0x104   : > { %vm733_vm10 = vcmp.eq.s32.totalorder %v475_v50, %v3060_v42 }
 0x109   : > { %559 = vperm.xlu1 %2874, %v512_v48   ;;  %566 = vperm.xlu2 %2875, %v3201_v43   ;;  %v3215_v48 = vunpack.c.l.bf16 %v3017_v14  ;;  %v797_v14 = vsel %vm733_vm10, 1.0, %v2911_v45 }
 0x10b   : > { %v450_v18 = vpop.permute.xlu1 %449 }
 0x10c   : > { %vm729_vm7 = vcmp.eq.s32.totalorder %v450_v18, %v3060_v42  ;;  %v493_v18 = vpop.permute.xlu0 %492 }
 0x10d   : > { %v793_v26 = vsel %vm729_vm7, 1.0, %v2911_v45  ;;  %vm736_vm15 = vcmp.eq.s32.totalorder %v493_v18, %v3060_v42 }
 0x10e   : > { %2641 = vmatmul.msk.bf16.gmra.mxu0 %vm892_vm2, %v843_v51  ;;  %v846_v28 = vpack.c.bf16 %v793_v26, %v792_v25  ;;  %v800_v26 = vsel %vm736_vm15, 1.0, %v2911_v45 }
 0x111   : > { %2876 = vset.pattern.permute.xlu1 %v2982_v6  ;;  %2877 = vset.pattern.permute.xlu2 %v2967_v2 }
 0x112   : > { %2689 = vmatmul.msk.bf16.gmra.mxu1 %vm892_vm2, %v3023_v20 }
 0x113   : > { %v487_v60 = vpop.permute.xlu2 %486 }
 0x114   : > { %vm735_vm12 = vcmp.eq.s32.totalorder %v487_v60, %v3060_v42  ;;  %v2823_v60 = vld [vmem:[%s4174_s5 + $0x8] sm:$0xff] }
 0x115   : > { %v799_v35 = vsel %vm735_vm12, 1.0, %v2911_v45 }
 0x119   : > { %572 = vperm.xlu1 %2876, %v3201_v43   ;;  %578 = vperm.xlu2 %2877, %v3201_v43  }
 0x11b   : > { %v998_v57 = vpop.f32.mrf.mxu0  ;;  %v469_v51 = vpop.permute.xlu1 %468 }
 0x11c   : > { %v1166_v63 = vsub.f32 %v998_v57, %v3156_v58  ;;  %vm732_vm11 = vcmp.eq.s32.totalorder %v469_v51, %v3060_v42 }
 0x11d   : > { %v796_v15 = vsel %vm732_vm11, 1.0, %v2911_v45 }
 0x11e   : > { %2642 = vmatmul.msk.bf16.gmra.mxu0 %vm892_vm2, %v844_v56  ;;  %v848_v56 = vpack.c.bf16 %v797_v14, %v796_v15 }
 0x121   : > { %2879 = vset.pattern.permute.xlu1 %v2971_v3  ;;  %2880 = vset.pattern.permute.xlu2 %v2988_v8 }
 0x122   : > { %2690 = vmatmul.msk.bf16.gmra.mxu1 %vm892_vm2, %v3052_v39 }
 0x123   : > { %v1000_v62 = vpop.f32.mrf.mxu0  ;;  %v505_v34 = vpop.permute.xlu2 %504 }
 0x124   : > { %v1167_v0 = vsub.f32 %v1000_v62, %v3159_v59  ;;  %vm738_vm0 = vcmp.eq.s32.totalorder %v505_v34, %v3060_v42 }
 0x125   : > { %v802_v22 = vsel %vm738_vm0, 1.0, %v2911_v45 }
 0x126   : > { %v1230_v5 = vpack.c.bf16 %v1167_v0, %v1166_v63 }
 0x128   : > { %2730 = vmatmul.msk.bf16.vlgmr.msra.gmra.mxu2 %vm892_vm2, %v1230_v5 }
 0x129   : > { %590 = vperm.xlu1 %2879, %v3201_v43   ;;  %596 = vperm.xlu2 %2880, %v3201_v43  }
 0x12b   : > { %v1003_v12 = vpop.f32.mrf.mxu0  ;;  %v481_v61 = vpop.permute.xlu1 %480 }
 0x12c   : > { %v1168_v23 = vsub.f32 %v1003_v12, %v3174_v13  ;;  %vm734_vm13 = vcmp.eq.s32.totalorder %v481_v61, %v3060_v42 }
 0x12d   : > { %v798_v36 = vsel %vm734_vm13, 1.0, %v2911_v45 }
 0x12e   : > { %2643 = vmatmul.msk.bf16.gmra.mxu0 %vm892_vm2, %v845_v11  ;;  %v849_v11 = vpack.c.bf16 %v799_v35, %v798_v36 }
 0x131   : > { %2881 = vset.pattern.permute.xlu1 %v2994_v9  ;;  %2882 = vset.pattern.permute.xlu2 %v2997_v10 }
 0x132   : > { %2691 = vmatmul.msk.bf16.gmra.mxu1 %vm892_vm2, %v3043_v32 }
 0x133   : > { %v1005_v19 = vpop.f32.mrf.mxu0 }
 0x134   : > { %v1169_v24 = vsub.f32 %v1005_v19, %v3177_v16 }
 0x136   : > { %v1231_v27 = vpack.c.bf16 %v1169_v24, %v1168_v23 }
 0x138   : > { %2731 = vmatmul.msk.bf16.gmra.mxu2 %vm892_vm2, %v1231_v27 }
 0x139   : > { %602 = vperm.xlu1 %2881, %v3201_v43   ;;  %608 = vperm.xlu2 %2882, %v3201_v43   ;;  %v610_v43 = vperm.slane %v2977_v4, 6 }
 0x13b   : > { %v1008_v29 = vpop.f32.mrf.mxu0  ;;  %v499_v17 = vpop.permute.xlu1 %498  ;;  %615 = vperm.xlu0 %2883, %v610_v43  }
 0x13c   : > { %v1170_v40 = vsub.f32 %v1008_v29, %v3191_v30  ;;  %vm737_vm14 = vcmp.eq.s32.totalorder %v499_v17, %v3060_v42 }
 0x13d   : > { %v801_v25 = vsel %vm737_vm14, 1.0, %v2911_v45 }
 0x13e   : > { %2644 = vmatmul.msk.bf16.gmra.mxu0 %vm892_vm2, %v846_v28  ;;  %v850_v28 = vpack.c.bf16 %v801_v25, %v800_v26 }
 0x141   : > { %2884 = vset.pattern.permute.xlu1 %v2982_v6  ;;  %2885 = vset.pattern.permute.xlu2 %v2967_v2 }
 0x142   : > { %2692 = vmatmul.msk.bf16.gmra.mxu1 %vm892_vm2, %v3038_v31 }
 0x143   : > { %v1010_v38 = vpop.f32.mrf.mxu0  ;;  %2888 = vset.pattern.permute.xlu0 %v2988_v8 }
 0x144   : > { %v1171_v41 = vsub.f32 %v1010_v38, %v3194_v33 }
 0x146   : > { %v1232_v44 = vpack.c.bf16 %v1171_v41, %v1170_v40  ;;  %v3261_v40 = vpop.f32.mrf.mxu1 }
 0x148   : > { %2732 = vmatmul.msk.bf16.gmra.mxu2 %vm892_vm2, %v1232_v44 }
 0x149   : > { %621 = vperm.xlu1 %2884, %v610_v43   ;;  %627 = vperm.xlu2 %2885, %v610_v43  }
 0x14b   : > { %v1013_v47 = vpop.f32.mrf.mxu0  ;;  %v511_v37 = vpop.permute.xlu1 %510  ;;  %645 = vperm.xlu0 %2888, %v610_v43  }
 0x14c   : > { %v1172_v53 = vsub.f32 %v1013_v47, %v3215_v48  ;;  %vm739_vm1 = vcmp.eq.s32.totalorder %v511_v37, %v3060_v42  ;;  %v3325_v37 = vld [vmem:[%s4173_s4] ss:$0 sm:$0xff] }
 0x14e   : > { %2645 = vmatmul.msk.bf16.gmra.mxu0 %vm892_vm2, %v847_v46  ;;  %v803_v46 = vsel %vm739_vm1, 1.0, %v2911_v45  ;;  %v3273_v51 = vpop.f32.mrf.mxu1 }
 0x14f   : > { %v851_v47 = vpack.c.bf16 %v803_v46, %v802_v22 }
 0x151   : > { %2886 = vset.pattern.permute.xlu1 %v2985_v7  ;;  %2887 = vset.pattern.permute.xlu2 %v2971_v3 }
 0x152   : > { %2693 = vmatmul.msk.bf16.gmra.mxu1 %vm892_vm2, %v3023_v20 }
 0x153   : > { %v1015_v52 = vpop.f32.mrf.mxu0  ;;  %2893 = vset.pattern.permute.xlu0 %v2967_v2 }
 0x154   : > { %v1173_v54 = vsub.f32 %v1015_v52, %v3218_v49  ;;  %v2825_v52 = vld [vmem:[%s4174_s5 + $0x18] sm:$0xff] }
 0x155   : > { %2136 = vmatpush.bf16.msra.mxu3 %v2825_v52 }
 0x156   : > { %v1233_v55 = vpack.c.bf16 %v1173_v54, %v1172_v53  ;;  %v518_v53 = vpop.permute.xlu2 %517  ;;  %v524_v54 = vpop.permute.xlu0 %523 }
 0x157   : > { %v3285_v15 = vpop.f32.mrf.mxu1  ;;  %vm740_vm3 = vcmp.eq.s32.totalorder %v518_v53, %v3060_v42  ;;  %vm741_vm4 = vcmp.eq.s32.totalorder %v524_v54, %v3060_v42 }
 0x158   : > { %2733 = vmatmul.msk.bf16.gmra.mxu2 %vm892_vm2, %v1233_v55  ;;  %v2824_v55 = vld [vmem:[%s4174_s5 + $0x10] sm:$0xff] }
 0x159   : > { %2137 = vmatpush.bf16.msra.mxu3 %v2824_v55  ;;  %633 = vperm.xlu1 %2886, %v610_v43  }
 0x15a   : > { %639 = vperm.xlu2 %2887, %v610_v43  }
 0x15b   : > { %v1018_v57 = vpop.f32.mrf.mxu0 }
 0x15c   : > { %v1174_v63 = vsub.f32 %v1018_v57, %v3156_v58 }
 0x15d   : > { %2138 = vmatpush.bf16.msra.mxu3 %v2823_v60 }
 0x15e   : > { %2646 = vmatmul.msk.bf16.gmra.mxu0 %vm892_vm2, %v848_v56 }
 0x15f   : > { %v3302_v36 = vpop.f32.mrf.mxu1 }
 0x161   : > { %2889 = vset.pattern.permute.xlu1 %v2994_v9 }
 0x162   : > { %2890 = vset.pattern.permute.xlu2 %v2997_v10  ;;  %2694 = vmatmul.msk.bf16.gmra.mxu1 %vm892_vm2, %v3052_v39 }
 0x163   : > { %v1020_v62 = vpop.f32.mrf.mxu0 }
 0x164   : > { %v1175_v0 = vsub.f32 %v1020_v62, %v3159_v59  ;;  %v804_v62 = vsel %vm740_vm3, 1.0, %v2911_v45 }
 0x166   : > { %v1234_v5 = vpack.c.bf16 %v1175_v0, %v1174_v63  ;;  %v805_v63 = vsel %vm741_vm4, 1.0, %v2911_v45  ;;  %v2822_v0 = vld [vmem:[%s4174_s5] sm:$0xff] }
 0x167   : > { %2139 = vmatpush.bf16.msra.mxu3 %v2822_v0  ;;  %v3308_v18 = vpop.f32.mrf.mxu1  ;;  %v554_v0 = vpop.permute.xlu0 %553 }
 0x168   : > { %2734 = vmatmul.msk.bf16.gmra.mxu2 %vm892_vm2, %v1234_v5  ;;  %v852_v5 = vpack.c.bf16 %v805_v63, %v804_v62  ;;  %vm746_vm10 = vcmp.eq.s32.totalorder %v554_v0, %v3060_v42 }
 0x169   : > { %651 = vperm.xlu1 %2889, %v610_v43  }
 0x16a   : > { %657 = vperm.xlu2 %2890, %v610_v43  }
 0x16b   : > { %v1023_v12 = vpop.f32.mrf.mxu0 }
 0x16c   : > { %v1176_v23 = vsub.f32 %v1023_v12, %v3174_v13  ;;  %v530_v12 = vpop.permute.xlu1 %529 }
 0x16d   : > { %vm742_vm6 = vcmp.eq.s32.totalorder %v530_v12, %v3060_v42 }
 0x16e   : > { %2647 = vmatmul.msk.bf16.gmra.mxu0 %vm892_vm2, %v849_v11  ;;  %v536_v11 = vpop.permute.xlu2 %535 }
 0x16f   : > { %vm743_vm5 = vcmp.eq.s32.totalorder %v536_v11, %v3060_v42 }
 0x170   : > { %v807_v2 = vsel %vm743_vm5, 1.0, %v2911_v45 }
 0x171   : > { %2891 = vset.pattern.permute.xlu1 %v2961_v1 }
 0x172   : > { %2892 = vset.pattern.permute.xlu2 %v2982_v6  ;;  %2695 = vmatmul.msk.bf16.gmra.mxu1 %vm892_vm2, %v3043_v32 }
 0x173   : > { %v1025_v19 = vpop.f32.mrf.mxu0 }
 0x174   : > { %v1177_v24 = vsub.f32 %v1025_v19, %v3177_v16 }
 0x176   : > { %v1235_v27 = vpack.c.bf16 %v1177_v24, %v1176_v23 }
 0x178   : > { %2735 = vmatmul.msk.bf16.gmra.mxu2 %vm892_vm2, %v1235_v27  ;;  %v806_v27 = vsel %vm742_vm6, 1.0, %v2911_v45 }
 0x179   : > { %v853_v25 = vpack.c.bf16 %v807_v2, %v806_v27 }
 0x17b   : > { %v1028_v29 = vpop.f32.mrf.mxu0 }
 0x17c   : > { %v1178_v41 = vsub.f32 %v1028_v29, %v3191_v30  ;;  %v3319_v29 = vpop.f32.mrf.mxu1 }
 0x17e   : > { %2648 = vmatmul.msk.bf16.gmra.mxu0 %vm892_vm2, %v850_v28 }
 0x182   : > { %2696 = vmatmul.msk.bf16.gmra.mxu1 %vm892_vm2, %v3038_v31 }
 0x183   : > { %v1030_v38 = vpop.f32.mrf.mxu0 }
 0x184   : > { %v1179_v44 = vsub.f32 %v1030_v38, %v3194_v33  ;;  %v548_v38 = vpop.permute.xlu2 %547 }
 0x185   : > { %vm745_vm7 = vcmp.eq.s32.totalorder %v548_v38, %v3060_v42 }
 0x186   : > { %v1236_v21 = vpack.c.bf16 %v1179_v44, %v1178_v41  ;;  %v542_v41 = vpop.permute.xlu1 %541  ;;  %v809_v52 = vsel %vm745_vm7, 1.0, %v2911_v45 }
 0x187   : > { %vm744_vm8 = vcmp.eq.s32.totalorder %v542_v41, %v3060_v42 }
 0x188   : > { %2736 = vmatmul.msk.bf16.gmra.mxu2 %vm892_vm2, %v1236_v21  ;;  %v808_v53 = vsel %vm744_vm8, 1.0, %v2911_v45 }
 0x18b   : > { %v1033_v50 = vpop.f32.mrf.mxu0 }
 0x18c   : > { %v1180_v56 = vsub.f32 %v1033_v50, %v3215_v48 }
 0x18e   : > { %2649 = vmatmul.msk.bf16.gmra.mxu0 %vm892_vm2, %v851_v47  ;;  %v3336_v47 = vpop.f32.mrf.mxu1  ;;  %v560_v63 = vpop.permute.xlu1 %559 }
 0x18f   : > { %vm747_vm9 = vcmp.eq.s32.totalorder %v560_v63, %v3060_v42 }
 0x193   : > { %v1035_v14 = vpop.f32.mrf.mxu0 }
 0x194   : > { %v1181_v57 = vsub.f32 %v1035_v14, %v3218_v49  ;;  %v854_v14 = vpack.c.bf16 %v809_v52, %v808_v53 }
 0x196   : > { %v1237_v61 = vpack.c.bf16 %v1181_v57, %v1180_v56 }
 0x198   : > { %2737 = vmatmul.msk.bf16.gmra.mxu2 %vm892_vm2, %v1237_v61  ;;  %v3344_v61 = vpop.f32.mrf.mxu1  ;;  %2697 = vmatmul.msk.bf16.gmra.mxu1 %vm892_vm2, %v3023_v20 }
 0x19b   : > { %v1038_v35 = vpop.f32.mrf.mxu0 }
 0x19c   : > { %v1182_v19 = vsub.f32 %v1038_v35, %v3156_v58 }
 0x19e   : > { %2650 = vmatmul.msk.bf16.gmra.mxu0 %vm892_vm2, %v852_v5 }
 0x1a3   : > { %v1040_v17 = vpop.f32.mrf.mxu0 }
 0x1a4   : > { %v1183_v23 = vsub.f32 %v1040_v17, %v3159_v59 }
 0x1a6   : > { %v1238_v24 = vpack.c.bf16 %v1183_v23, %v1182_v19  ;;  %v3358_v23 = vperm.slane %v2977_v4, 7 }
 0x1a8   : > { %2738 = vmatmul.msk.bf16.gmra.mxu2 %vm892_vm2, %v1238_v24  ;;  %664 = vperm.xlu1 %2891, %v3358_v23  }
 0x1a9   : > { %676 = vperm.xlu0 %2893, %v3358_v23   ;;  %670 = vperm.xlu2 %2892, %v3358_v23  }
 0x1ab   : > { %v1043_v26 = vpop.f32.mrf.mxu0  ;;  %v1612_v28 = vpop.f32.mrf.mxu2 }
 0x1ac   : > { %v1613_v34 = vadd.f32 %v1612_v28, %v3261_v40  ;;  %v1184_v40 = vsub.f32 %v1043_v26, %v3174_v13  ;;  %v810_v26 = vsel %vm746_vm10, 1.0, %v2911_v45 }
 0x1ae   : > { %2651 = vmatmul.msk.bf16.gmra.mxu0 %vm892_vm2, %v853_v25  ;;  %v1776_v44 = vadd.f32 %v3325_v37, %v1613_v34  ;;  %v811_v25 = vsel %vm747_vm9, 1.0, %v2911_v45 }
 0x1af   : > { %v855_v34 = vpack.c.bf16 %v811_v25, %v810_v26 }
 0x1b0   : > { %v1840_v1 = vmul.f32 0.2, %v1776_v44  ;;  %2894 = vset.pattern.permute.xlu1 %v2985_v7 }
 0x1b1   : > { %2898 = vset.pattern.permute.xlu0 %v2997_v10  ;;  %2895 = vset.pattern.permute.xlu2 %v2971_v3 }
 0x1b2   : > { %v1904_v55 = vmax.f32 %v1776_v44, %v1840_v1 }
 0x1b3   : > { %v1045_v43 = vpop.f32.mrf.mxu0  ;;  %v1614_v21 = vpop.f32.mrf.mxu2 }
 0x1b4   : > { %v1185_v22 = vsub.f32 %v1045_v43, %v3177_v16  ;;  %v1615_v46 = vadd.f32 %v1614_v21, %v3273_v51 }
 0x1b6   : > { %v1239_v50 = vpack.c.bf16 %v1185_v22, %v1184_v40  ;;  %v1777_v6 = vadd.f32 %v3325_v37, %v1615_v46  ;;  %v567_v40 = vpop.permute.xlu2 %566  ;;  %v573_v22 = vpop.permute.xlu1 %572 }
 0x1b7   : > { %vm748_vm11 = vcmp.eq.s32.totalorder %v567_v40, %v3060_v42  ;;  %vm749_vm12 = vcmp.eq.s32.totalorder %v573_v22, %v3060_v42 }
 0x1b8   : > { %v1841_v54 = vmul.f32 0.2, %v1777_v6  ;;  %2739 = vmatmul.msk.bf16.gmra.mxu2 %vm892_vm2, %v1239_v50  ;;  %682 = vperm.xlu1 %2894, %v3358_v23  }
 0x1b9   : > { %706 = vperm.xlu0 %2898, %v3358_v23   ;;  %688 = vperm.xlu2 %2895, %v3358_v23  }
 0x1ba   : > { %v1905_v51 = vmax.f32 %v1777_v6, %v1841_v54  ;;  %v812_v54 = vsel %vm748_vm11, 1.0, %v2911_v45 }
 0x1bb   : > { %v1048_v56 = vpop.f32.mrf.mxu0  ;;  %v1617_v57 = vpop.f32.mrf.mxu2 }
 0x1bc   : > { %v1968_v60 = vpack.c.bf16 %v1905_v51, %v1904_v55  ;;  %v1618_v62 = vadd.f32 %v1617_v57, %v3285_v15  ;;  %v1186_v12 = vsub.f32 %v1048_v56, %v3191_v30  ;;  %v3355_v15 = vpop.f32.mrf.mxu1  ;;  %v813_v55 = vsel %vm749_vm12, 1.0, %v2911_v45 }
 0x1bd   : > { %v856_v56 = vpack.c.bf16 %v813_v55, %v812_v54 }
 0x1be   : > { %2652 = vmatmul.msk.bf16.gmra.mxu0 %vm892_vm2, %v854_v14  ;;  %2778 = vmatmul.msk.bf16.vlgmr.msra.gmra.mxu3 %vm892_vm2, %v1968_v60  ;;  %v1778_v5 = vadd.f32 %v3325_v37, %v1618_v62  ;;  %v591_v22 = vpop.permute.xlu1 %590 }
 0x1bf   : > { %vm752_vm0 = vcmp.eq.s32.totalorder %v591_v22, %v3060_v42 }
 0x1c0   : > { %v1842_v24 = vmul.f32 0.2, %v1778_v5  ;;  %2896 = vset.pattern.permute.xlu1 %v2988_v8  ;;  %v816_v54 = vsel %vm752_vm0, 1.0, %v2911_v45 }
 0x1c1   : > { %2897 = vset.pattern.permute.xlu2 %v2994_v9 }
 0x1c2   : > { %v1906_v4 = vmax.f32 %v1778_v5, %v1842_v24  ;;  %v579_v5 = vpop.permute.xlu2 %578 }
 0x1c3   : > { %v1050_v35 = vpop.f32.mrf.mxu0  ;;  %v1619_v11 = vpop.f32.mrf.mxu2  ;;  %vm750_vm13 = vcmp.eq.s32.totalorder %v579_v5, %v3060_v42 }
 0x1c4   : > { %v1187_v17 = vsub.f32 %v1050_v35, %v3194_v33  ;;  %v1620_v19 = vadd.f32 %v1619_v11, %v3302_v36  ;;  %v3369_v43 = vpop.f32.mrf.mxu1  ;;  %v585_v35 = vpop.permute.xlu0 %584  ;;  %v814_v25 = vsel %vm750_vm13, 1.0, %v2911_v45  ;;  %2698 = vmatmul.msk.bf16.gmra.mxu1 %vm892_vm2, %v3052_v39 }
 0x1c5   : > { %vm751_vm14 = vcmp.eq.s32.totalorder %v585_v35, %v3060_v42 }
 0x1c6   : > { %v1240_v2 = vpack.c.bf16 %v1187_v17, %v1186_v12  ;;  %v1779_v27 = vadd.f32 %v3325_v37, %v1620_v19  ;;  %v815_v26 = vsel %vm751_vm14, 1.0, %v2911_v45  ;;  %v603_v5 = vpop.permute.xlu1 %602 }
 0x1c7   : > { %vm754_vm3 = vcmp.eq.s32.totalorder %v603_v5, %v3060_v42 }
 0x1c8   : > { %v1843_v36 = vmul.f32 0.2, %v1779_v27  ;;  %2740 = vmatmul.msk.bf16.gmra.mxu2 %vm892_vm2, %v1240_v2  ;;  %694 = vperm.xlu1 %2896, %v3358_v23  }
 0x1c9   : > { %700 = vperm.xlu2 %2897, %v3358_v23  }
 0x1ca   : > { %v1907_v28 = vmax.f32 %v1779_v27, %v1843_v36  ;;  %v597_v40 = vpop.permute.xlu2 %596 }
 0x1cb   : > { %v1053_v38 = vpop.f32.mrf.mxu0  ;;  %v1622_v41 = vpop.f32.mrf.mxu2  ;;  %vm753_vm15 = vcmp.eq.s32.totalorder %v597_v40, %v3060_v42 }
 0x1cc   : > { %v1969_v44 = vpack.c.bf16 %v1907_v28, %v1906_v4  ;;  %v1623_v21 = vadd.f32 %v1622_v41, %v3308_v18  ;;  %v1188_v18 = vsub.f32 %v1053_v38, %v3215_v48  ;;  %v3383_v7 = vpop.f32.mrf.mxu1  ;;  %v857_v28 = vpack.c.bf16 %v815_v26, %v814_v25  ;;  %v616_v40 = vpop.permute.xlu0 %615 }
 0x1cd   : > { %v818_v25 = vsel %vm754_vm3, 1.0, %v2911_v45  ;;  %vm756_vm5 = vcmp.eq.s32.totalorder %v616_v40, %v3060_v42 }
 0x1ce   : > { %2653 = vmatmul.msk.bf16.gmra.mxu0 %vm892_vm2, %v855_v34  ;;  %2779 = vmatmul.msk.bf16.gmra.mxu3 %vm892_vm2, %v1969_v44  ;;  %v1780_v46 = vadd.f32 %v3325_v37, %v1623_v21 }
 0x1d0   : > { %v1844_v10 = vmul.f32 0.2, %v1780_v46 }
 0x1d2   : > { %v1908_v51 = vmax.f32 %v1780_v46, %v1844_v10 }
 0x1d3   : > { %v1055_v1 = vpop.f32.mrf.mxu0  ;;  %v1624_v50 = vpop.f32.mrf.mxu2 }
 0x1d4   : > { %v1189_v6 = vsub.f32 %v1055_v1, %v3218_v49  ;;  %v1625_v52 = vadd.f32 %v1624_v50, %v3319_v29  ;;  %v3394_v63 = vpop.f32.mrf.mxu1  ;;  %2699 = vmatmul.msk.bf16.gmra.mxu1 %vm892_vm2, %v3043_v32 }
 0x1d6   : > { %v1241_v53 = vpack.c.bf16 %v1189_v6, %v1188_v18  ;;  %v1781_v3 = vadd.f32 %v3325_v37, %v1625_v52 }
 0x1d8   : > { %v1845_v29 = vmul.f32 0.2, %v1781_v3  ;;  %2741 = vmatmul.msk.bf16.gmra.mxu2 %vm892_vm2, %v1241_v53 }
 0x1da   : > { %v1909_v14 = vmax.f32 %v1781_v3, %v1845_v29  ;;  %v817_v3 = vsel %vm753_vm15, 1.0, %v2911_v45 }
 0x1db   : > { %v1058_v57 = vpop.f32.mrf.mxu0  ;;  %v1627_v60 = vpop.f32.mrf.mxu2 }
 0x1dc   : > { %v1970_v62 = vpack.c.bf16 %v1909_v14, %v1908_v51  ;;  %v1628_v0 = vadd.f32 %v1627_v60, %v3336_v47  ;;  %v1190_v19 = vsub.f32 %v1058_v57, %v3156_v58  ;;  %v3407_v2 = vpop.f32.mrf.mxu1  ;;  %v858_v51 = vpack.c.bf16 %v817_v3, %v816_v54 }
 0x1dd   : > { %v820_v3 = vsel %vm756_vm5, 1.0, %v2911_v45 }
 0x1de   : > { %2654 = vmatmul.msk.bf16.gmra.mxu0 %vm892_vm2, %v856_v56  ;;  %2780 = vmatmul.msk.bf16.gmra.mxu3 %vm892_vm2, %v1970_v62  ;;  %v1782_v11 = vadd.f32 %v3325_v37, %v1628_v0  ;;  %v609_v0 = vpop.permute.xlu2 %608 }
 0x1df   : > { %vm755_vm1 = vcmp.eq.s32.totalorder %v609_v0, %v3060_v42 }
 0x1e0   : > { %v1846_v8 = vmul.f32 0.2, %v1782_v11 }
 0x1e3   : > { %v1060_v12 = vpop.f32.mrf.mxu0  ;;  %v1629_v17 = vpop.f32.mrf.mxu2 }
 0x1e4   : > { %v1191_v47 = vsub.f32 %v1060_v12, %v3159_v59  ;;  %v1630_v24 = vadd.f32 %v1629_v17, %v3344_v61  ;;  %v1910_v61 = vmax.f32 %v1782_v11, %v1846_v8  ;;  %v3417_v44 = vpop.f32.mrf.mxu1  ;;  %2700 = vmatmul.msk.bf16.gmra.mxu1 %vm892_vm2, %v3038_v31 }
 0x1e6   : > { %v1242_v27 = vpack.c.bf16 %v1191_v47, %v1190_v19  ;;  %v1783_v9 = vadd.f32 %v3325_v37, %v1630_v24 }
 0x1e8   : > { %v1847_v36 = vmul.f32 0.2, %v1783_v9  ;;  %2742 = vmatmul.msk.bf16.gmra.mxu2 %vm892_vm2, %v1242_v27 }
 0x1ea   : > { %v1911_v4 = vmax.f32 %v1783_v9, %v1847_v36  ;;  %v819_v9 = vsel %vm755_vm1, 1.0, %v2911_v45 }
 0x1eb   : > { %v1063_v34 = vpop.f32.mrf.mxu0  ;;  %v1632_v38 = vpop.f32.mrf.mxu2 }
 0x1ec   : > { %v1971_v41 = vpack.c.bf16 %v1911_v4, %v1910_v61  ;;  %v1633_v21 = vadd.f32 %v1632_v38, %v3355_v15  ;;  %v1192_v50 = vsub.f32 %v1063_v34, %v3174_v13  ;;  %v3428_v15 = vpop.f32.mrf.mxu1  ;;  %v859_v61 = vpack.c.bf16 %v819_v9, %v818_v25 }
 0x1ee   : > { %2655 = vmatmul.msk.bf16.gmra.mxu0 %vm892_vm2, %v857_v28  ;;  %2781 = vmatmul.msk.bf16.gmra.mxu3 %vm892_vm2, %v1971_v41  ;;  %v1784_v46 = vadd.f32 %v3325_v37, %v1633_v21  ;;  %v622_v21 = vpop.permute.xlu1 %621 }
 0x1ef   : > { %vm757_vm4 = vcmp.eq.s32.totalorder %v622_v21, %v3060_v42  ;;  %v646_v21 = vpop.permute.xlu0 %645 }
 0x1f0   : > { %v1848_v52 = vmul.f32 0.2, %v1784_v46  ;;  %vm761_vm9 = vcmp.eq.s32.totalorder %v646_v21, %v3060_v42 }
 0x1f2   : > { %v1912_v29 = vmax.f32 %v1784_v46, %v1848_v52 }
 0x1f3   : > { %v1065_v1 = vpop.f32.mrf.mxu0  ;;  %v1634_v23 = vpop.f32.mrf.mxu2 }
 0x1f4   : > { %v1193_v18 = vsub.f32 %v1065_v1, %v3177_v16  ;;  %v1635_v6 = vadd.f32 %v1634_v23, %v3369_v43  ;;  %v3436_v60 = vpop.f32.mrf.mxu1  ;;  %2701 = vmatmul.msk.bf16.gmra.mxu1 %vm892_vm2, %v3023_v20 }
 0x1f6   : > { %v1243_v10 = vpack.c.bf16 %v1193_v18, %v1192_v50  ;;  %v1785_v53 = vadd.f32 %v3325_v37, %v1635_v6  ;;  %v634_v0 = vpop.permute.xlu1 %633 }
 0x1f7   : > { %vm759_vm7 = vcmp.eq.s32.totalorder %v634_v0, %v3060_v42 }
 0x1f8   : > { %v1849_v55 = vmul.f32 0.2, %v1785_v53  ;;  %2743 = vmatmul.msk.bf16.gmra.mxu2 %vm892_vm2, %v1243_v10  ;;  %v823_v9 = vsel %vm759_vm7, 1.0, %v2911_v45 }
 0x1fa   : > { %v1913_v43 = vmax.f32 %v1785_v53, %v1849_v55  ;;  %v821_v53 = vsel %vm757_vm4, 1.0, %v2911_v45 }
 0x1fb   : > { %v1068_v14 = vpop.f32.mrf.mxu0  ;;  %v1637_v56 = vpop.f32.mrf.mxu2 }
 0x1fc   : > { %v1972_v57 = vpack.c.bf16 %v1913_v43, %v1912_v29  ;;  %v1638_v62 = vadd.f32 %v1637_v56, %v3383_v7  ;;  %v1194_v17 = vsub.f32 %v1068_v14, %v3191_v30  ;;  %v3447_v7 = vpop.f32.mrf.mxu1  ;;  %v860_v29 = vpack.c.bf16 %v821_v53, %v820_v3 }
 0x1fd   : > { %v825_v53 = vsel %vm761_vm9, 1.0, %v2911_v45 }
 0x1fe   : > { %2656 = vmatmul.msk.bf16.gmra.mxu0 %vm892_vm2, %v858_v51  ;;  %2782 = vmatmul.msk.bf16.gmra.mxu3 %vm892_vm2, %v1972_v57  ;;  %v1786_v35 = vadd.f32 %v3325_v37, %v1638_v62  ;;  %v628_v62 = vpop.permute.xlu2 %627  ;;  %v652_v0 = vpop.permute.xlu1 %651 }
 0x1ff   : > { %vm758_vm6 = vcmp.eq.s32.totalorder %v628_v62, %v3060_v42  ;;  %vm762_vm11 = vcmp.eq.s32.totalorder %v652_v0, %v3060_v42 }
 0x200   : > { %v1850_v24 = vmul.f32 0.2, %v1786_v35 }
 0x202   : > { %v1914_v36 = vmax.f32 %v1786_v35, %v1850_v24 }
 0x203   : > { %v1070_v11 = vpop.f32.mrf.mxu0  ;;  %v1639_v12 = vpop.f32.mrf.mxu2 }
 0x204   : > { %v1195_v19 = vsub.f32 %v1070_v11, %v3194_v33  ;;  %v1640_v47 = vadd.f32 %v1639_v12, %v3394_v63  ;;  %v3455_v38 = vpop.f32.mrf.mxu1  ;;  %2702 = vmatmul.msk.bf16.gmra.mxu1 %vm892_vm2, %v3052_v39 }
 0x206   : > { %v1244_v8 = vpack.c.bf16 %v1195_v19, %v1194_v17  ;;  %v1787_v27 = vadd.f32 %v3325_v37, %v1640_v47 }
 0x208   : > { %v1851_v26 = vmul.f32 0.2, %v1787_v27  ;;  %2744 = vmatmul.msk.bf16.gmra.mxu2 %vm892_vm2, %v1244_v8 }
 0x20a   : > { %v1915_v63 = vmax.f32 %v1787_v27, %v1851_v26  ;;  %v822_v27 = vsel %vm758_vm6, 1.0, %v2911_v45 }
 0x20b   : > { %v1073_v4 = vpop.f32.mrf.mxu0  ;;  %v1642_v28 = vpop.f32.mrf.mxu2 }
 0x20c   : > { %v1973_v34 = vpack.c.bf16 %v1915_v63, %v1914_v36  ;;  %v1643_v41 = vadd.f32 %v1642_v28, %v3407_v2  ;;  %v1196_v23 = vsub.f32 %v1073_v4, %v3215_v48  ;;  %v3466_v2 = vpop.f32.mrf.mxu1  ;;  %v861_v36 = vpack.c.bf16 %v823_v9, %v822_v27 }
 0x20d   : > { %v826_v9 = vsel %vm762_vm11, 1.0, %v2911_v45 }
 0x20e   : > { %2657 = vmatmul.msk.bf16.gmra.mxu0 %vm892_vm2, %v859_v61  ;;  %2783 = vmatmul.msk.bf16.gmra.mxu3 %vm892_vm2, %v1973_v34  ;;  %v1788_v22 = vadd.f32 %v3325_v37, %v1643_v41  ;;  %v640_v41 = vpop.permute.xlu2 %639 }
 0x20f   : > { %vm760_vm8 = vcmp.eq.s32.totalorder %v640_v41, %v3060_v42 }
 0x210   : > { %v1852_v6 = vmul.f32 0.2, %v1788_v22 }
 0x212   : > { %v1916_v55 = vmax.f32 %v1788_v22, %v1852_v6 }
 0x213   : > { %v1075_v46 = vpop.f32.mrf.mxu0  ;;  %v1644_v1 = vpop.f32.mrf.mxu2 }
 0x214   : > { %v1197_v50 = vsub.f32 %v1075_v46, %v3218_v49  ;;  %v1645_v18 = vadd.f32 %v1644_v1, %v3417_v44  ;;  %v3474_v56 = vpop.f32.mrf.mxu1  ;;  %2703 = vmatmul.msk.bf16.gmra.mxu1 %vm892_vm2, %v3043_v32 }
 0x216   : > { %v1245_v52 = vpack.c.bf16 %v1197_v50, %v1196_v23  ;;  %v1789_v10 = vadd.f32 %v3325_v37, %v1645_v18 }
 0x218   : > { %v1853_v54 = vmul.f32 0.2, %v1789_v10  ;;  %2745 = vmatmul.msk.bf16.gmra.mxu2 %vm892_vm2, %v1245_v52 }
 0x21a   : > { %v1917_v44 = vmax.f32 %v1789_v10, %v1853_v54  ;;  %v824_v10 = vsel %vm760_vm8, 1.0, %v2911_v45 }
 0x21b   : > { %v1078_v43 = vpop.f32.mrf.mxu0  ;;  %v1647_v51 = vpop.f32.mrf.mxu2 }
 0x21c   : > { %v1974_v14 = vpack.c.bf16 %v1917_v44, %v1916_v55  ;;  %v1648_v57 = vadd.f32 %v1647_v51, %v3428_v15  ;;  %v1198_v12 = vsub.f32 %v1078_v43, %v3156_v58  ;;  %v3485_v15 = vpop.f32.mrf.mxu1  ;;  %v862_v55 = vpack.c.bf16 %v825_v53, %v824_v10 }
 0x21e   : > { %2658 = vmatmul.msk.bf16.gmra.mxu0 %vm892_vm2, %v860_v29  ;;  %2784 = vmatmul.msk.bf16.gmra.mxu3 %vm892_vm2, %v1974_v14  ;;  %v1790_v5 = vadd.f32 %v3325_v37, %v1648_v57  ;;  %v658_v57 = vpop.permute.xlu2 %657 }
 0x21f   : > { %vm763_vm10 = vcmp.eq.s32.totalorder %v658_v57, %v3060_v42 }
 0x220   : > { %v1854_v47 = vmul.f32 0.2, %v1790_v5  ;;  %v827_v27 = vsel %vm763_vm10, 1.0, %v2911_v45 }
 0x222   : > { %v1918_v26 = vmax.f32 %v1790_v5, %v1854_v47 }
 0x223   : > { %v1080_v35 = vpop.f32.mrf.mxu0  ;;  %v1649_v11 = vpop.f32.mrf.mxu2 }
 0x224   : > { %v1199_v17 = vsub.f32 %v1080_v35, %v3159_v59  ;;  %v1650_v19 = vadd.f32 %v1649_v11, %v3436_v60  ;;  %v3493_v28 = vpop.f32.mrf.mxu1  ;;  %2704 = vmatmul.msk.bf16.gmra.mxu1 %vm892_vm2, %v3038_v31 }
 0x226   : > { %v1246_v24 = vpack.c.bf16 %v1199_v17, %v1198_v12  ;;  %v1791_v8 = vadd.f32 %v3325_v37, %v1650_v19  ;;  %v671_v21 = vpop.permute.xlu2 %670 }
 0x227   : > { %vm765_vm12 = vcmp.eq.s32.totalorder %v671_v21, %v3060_v42 }
 0x228   : > { %v1855_v25 = vmul.f32 0.2, %v1791_v8  ;;  %2746 = vmatmul.msk.bf16.gmra.mxu2 %vm892_vm2, %v1246_v24 }
 0x22a   : > { %v1919_v60 = vmax.f32 %v1791_v8, %v1855_v25 }
 0x22b   : > { %v1083_v63 = vpop.f32.mrf.mxu0  ;;  %v1652_v61 = vpop.f32.mrf.mxu2 }
 0x22c   : > { %v1975_v4 = vpack.c.bf16 %v1919_v60, %v1918_v26  ;;  %v1653_v34 = vadd.f32 %v1652_v61, %v3447_v7  ;;  %v1200_v1 = vsub.f32 %v1083_v63, %v3174_v13  ;;  %v3504_v7 = vpop.f32.mrf.mxu1 }
 0x22e   : > { %2659 = vmatmul.msk.bf16.gmra.mxu0 %vm892_vm2, %v861_v36  ;;  %2785 = vmatmul.msk.bf16.gmra.mxu3 %vm892_vm2, %v1975_v4  ;;  %v1792_v40 = vadd.f32 %v3325_v37, %v1653_v34  ;;  %v863_v36 = vpack.c.bf16 %v827_v27, %v826_v9 }
 0x230   : > { %v1856_v18 = vmul.f32 0.2, %v1792_v40 }
 0x232   : > { %v1920_v54 = vmax.f32 %v1792_v40, %v1856_v18 }
 0x233   : > { %v1085_v22 = vpop.f32.mrf.mxu0  ;;  %v1654_v46 = vpop.f32.mrf.mxu2 }
 0x234   : > { %v1201_v23 = vsub.f32 %v1085_v22, %v3177_v16  ;;  %v1655_v50 = vadd.f32 %v1654_v46, %v3455_v38  ;;  %v3512_v51 = vpop.f32.mrf.mxu1  ;;  %v665_v22 = vpop.permute.xlu1 %664  ;;  %2705 = vmatmul.msk.bf16.gmra.mxu1 %vm892_vm2, %v3023_v20 }
 0x235   : > { %vm764_vm13 = vcmp.eq.s32.totalorder %v665_v22, %v3060_v42 }
 0x236   : > { %v1247_v6 = vpack.c.bf16 %v1201_v23, %v1200_v1  ;;  %v1793_v52 = vadd.f32 %v3325_v37, %v1655_v50 }
 0x238   : > { %v1857_v3 = vmul.f32 0.2, %v1793_v52  ;;  %2747 = vmatmul.msk.bf16.gmra.mxu2 %vm892_vm2, %v1247_v6 }
 0x23a   : > { %v1921_v38 = vmax.f32 %v1793_v52, %v1857_v3  ;;  %v829_v3 = vsel %vm765_vm12, 1.0, %v2911_v45 }
 0x23b   : > { %v1088_v44 = vpop.f32.mrf.mxu0  ;;  %v1657_v29 = vpop.f32.mrf.mxu2 }
 0x23c   : > { %v1976_v43 = vpack.c.bf16 %v1921_v38, %v1920_v54  ;;  %v1658_v14 = vadd.f32 %v1657_v29, %v3466_v2  ;;  %v1202_v12 = vsub.f32 %v1088_v44, %v3191_v30  ;;  %v3525_v19 = vpop.f32.mrf.mxu1  ;;  %v828_v54 = vsel %vm764_vm13, 1.0, %v2911_v45 }
 0x23d   : > { %v864_v29 = vpack.c.bf16 %v829_v3, %v828_v54 }
 0x23e   : > { %2660 = vmatmul.msk.bf16.gmra.mxu0 %vm892_vm2, %v862_v55  ;;  %2786 = vmatmul.msk.bf16.gmra.mxu3 %vm892_vm2, %v1976_v43  ;;  %v1794_v5 = vadd.f32 %v3325_v37, %v1658_v14 }
 0x240   : > { %v1858_v47 = vmul.f32 0.2, %v1794_v5 }
 0x241   : > { %v3517_v62 = vpop.f32.mrf.mxu3 }
 0x243   : > { %v1090_v35 = vpop.f32.mrf.mxu0  ;;  %v1659_v11 = vpop.f32.mrf.mxu2 }
 0x244   : > { %v1203_v17 = vsub.f32 %v1090_v35, %v3194_v33  ;;  %v1660_v2 = vadd.f32 %v1659_v11, %v3474_v56  ;;  %v1922_v56 = vmax.f32 %v1794_v5, %v1858_v47  ;;  %v3535_v34 = vpop.f32.mrf.mxu1  ;;  %v683_v35 = vpop.permute.xlu1 %682  ;;  %2706 = vmatmul.msk.bf16.gmra.mxu1 %vm892_vm2, %v3052_v39 }
 0x245   : > { %vm767_vm14 = vcmp.eq.s32.totalorder %v683_v35, %v3060_v42 }
 0x246   : > { %v1248_v24 = vpack.c.bf16 %v1203_v17, %v1202_v12  ;;  %v1795_v8 = vadd.f32 %v3325_v37, %v1660_v2  ;;  %v677_v12 = vpop.permute.xlu0 %676 }
 0x247   : > { %vm766_vm15 = vcmp.eq.s32.totalorder %v677_v12, %v3060_v42 }
 0x248   : > { %v1859_v25 = vmul.f32 0.2, %v1795_v8  ;;  %2748 = vmatmul.msk.bf16.gmra.mxu2 %vm892_vm2, %v1248_v24 }
 0x249   : > { %v3533_v26 = vpop.f32.mrf.mxu3 }
 0x24a   : > { %v1923_v60 = vmax.f32 %v1795_v8, %v1859_v25 }
 0x24b   : > { %v1093_v63 = vpop.f32.mrf.mxu0  ;;  %v1662_v61 = vpop.f32.mrf.mxu2 }
 0x24c   : > { %v1977_v4 = vpack.c.bf16 %v1923_v60, %v1922_v56  ;;  %v1663_v41 = vadd.f32 %v1662_v61, %v3485_v15  ;;  %v1204_v50 = vsub.f32 %v1093_v63, %v3215_v48  ;;  %v3548_v6 = vpop.f32.mrf.mxu1  ;;  %v831_v60 = vsel %vm767_vm14, 1.0, %v2911_v45 }
 0x24e   : > { %2661 = vmatmul.msk.bf16.gmra.mxu0 %vm892_vm2, %v863_v36  ;;  %2787 = vmatmul.msk.bf16.gmra.mxu3 %vm892_vm2, %v1977_v4  ;;  %v1796_v46 = vadd.f32 %v3325_v37, %v1663_v41  ;;  %v830_v36 = vsel %vm766_vm15, 1.0, %v2911_v45 }
 0x24f   : > { %v865_v41 = vpack.c.bf16 %v831_v60, %v830_v36  ;;  %v707_v60 = vpop.permute.xlu0 %706 }
 0x250   : > { %v1860_v52 = vmul.f32 0.2, %v1796_v46  ;;  %vm771_vm4 = vcmp.eq.s32.totalorder %v707_v60, %v3060_v42 }
 0x251   : > { %v3540_v40 = vpop.f32.mrf.mxu3 }
 0x253   : > { %v1095_v1 = vpop.f32.mrf.mxu0  ;;  %v1664_v23 = vpop.f32.mrf.mxu2 }
 0x254   : > { %v1205_v18 = vsub.f32 %v1095_v1, %v3218_v49  ;;  %v1665_v15 = vadd.f32 %v1664_v23, %v3493_v28  ;;  %v1924_v28 = vmax.f32 %v1796_v46, %v1860_v52  ;;  %v3558_v0 = vpop.f32.mrf.mxu1  ;;  %2707 = vmatmul.msk.bf16.gmra.mxu1 %vm892_vm2, %v3043_v32 }
 0x256   : > { %v1249_v10 = vpack.c.bf16 %v1205_v18, %v1204_v50  ;;  %v1797_v53 = vadd.f32 %v3325_v37, %v1665_v15  ;;  %v689_v50 = vpop.permute.xlu2 %688  ;;  %v695_v15 = vpop.permute.xlu1 %694 }
 0x257   : > { %vm768_vm0 = vcmp.eq.s32.totalorder %v689_v50, %v3060_v42  ;;  %vm769_vm1 = vcmp.eq.s32.totalorder %v695_v15, %v3060_v42 }
 0x258   : > { %v1861_v38 = vmul.f32 0.2, %v1797_v53  ;;  %2749 = vmatmul.msk.bf16.gmra.mxu2 %vm892_vm2, %v1249_v10 }
 0x259   : > { %v3556_v55 = vpop.f32.mrf.mxu3 }
 0x25a   : > { %v1925_v44 = vmax.f32 %v1797_v53, %v1861_v38 }
 0x25b   : > { %v1098_v43 = vpop.f32.mrf.mxu0  ;;  %v1667_v14 = vpop.f32.mrf.mxu2 }
 0x25c   : > { %v1978_v57 = vpack.c.bf16 %v1925_v44, %v1924_v28  ;;  %v1668_v5 = vadd.f32 %v1667_v14, %v3504_v7  ;;  %v1206_v24 = vsub.f32 %v1098_v43, %v3156_v58  ;;  %v3571_v27 = vpop.f32.mrf.mxu1  ;;  %v3602_v43 = vld [vmem:[%s4175_s6] ss:$0 sm:$0xff]  ;;  %v832_v14 = vsel %vm768_vm0, 1.0, %v2911_v45 }
 0x25e   : > { %2662 = vmatmul.msk.bf16.gmra.mxu0 %vm892_vm2, %v864_v29  ;;  %2788 = vmatmul.msk.bf16.gmra.mxu3 %vm892_vm2, %v1978_v57  ;;  %v1798_v17 = vadd.f32 %v3325_v37, %v1668_v5 }
 0x260   : > { %v1862_v9 = vmul.f32 0.2, %v1798_v17 }
 0x261   : > { %v3563_v11 = vpop.f32.mrf.mxu3 }
 0x263   : > { %v1100_v2 = vpop.f32.mrf.mxu0  ;;  %v1669_v47 = vpop.f32.mrf.mxu2 }
 0x264   : > { %v1207_v8 = vsub.f32 %v1100_v2, %v3159_v59  ;;  %v1670_v7 = vadd.f32 %v1669_v47, %v3512_v51  ;;  %v1926_v51 = vmax.f32 %v1798_v17, %v1862_v9  ;;  %v3581_v1 = vpop.f32.mrf.mxu1  ;;  %v2142_v2 = vadd.f32 %v3602_v43, %v3517_v62  ;;  %2708 = vmatmul.msk.bf16.gmra.mxu1 %vm892_vm2, %v3038_v31 }
 0x266   : > { %v1250_v25 = vpack.c.bf16 %v1207_v8, %v1206_v24  ;;  %v1799_v56 = vadd.f32 %v3325_v37, %v1670_v7 }
 0x268   : > { %v1863_v63 = vmul.f32 0.2, %v1799_v56  ;;  %2750 = vmatmul.msk.bf16.gmra.mxu2 %vm892_vm2, %v1250_v25  ;;  %v2301_v25 = vmul.f32 0.2, %v2142_v2 }
 0x269   : > { %v3579_v61 = vpop.f32.mrf.mxu3 }
 0x26a   : > { %v1927_v4 = vmax.f32 %v1799_v56, %v1863_v63  ;;  %v701_v56 = vpop.permute.xlu2 %700  ;;  %v2365_v62 = vmax.f32 %v2142_v2, %v2301_v25 }
 0x26b   : > { %v1103_v21 = vpop.f32.mrf.mxu0  ;;  %v1672_v22 = vpop.f32.mrf.mxu2  ;;  %vm770_vm3 = vcmp.eq.s32.totalorder %v701_v56, %v3060_v42  ;;  %v835_v42 = vsel %vm771_vm4, 1.0, %v2911_v45 }
 0x26c   : > { %v1979_v46 = vpack.c.bf16 %v1927_v4, %v1926_v51  ;;  %v1673_v23 = vadd.f32 %v1672_v22, %v3525_v19  ;;  %v1208_v3 = vsub.f32 %v1103_v21, %v3174_v13  ;;  %v3594_v38 = vpop.f32.mrf.mxu1  ;;  %v2144_v4 = vadd.f32 %v3602_v43, %v3533_v26 }
 0x26e   : > { %2663 = vmatmul.msk.bf16.gmra.mxu0 %vm892_vm2, %v865_v41  ;;  %2789 = vmatmul.msk.bf16.gmra.mxu3 %vm892_vm2, %v1979_v46  ;;  %v1800_v52 = vadd.f32 %v3325_v37, %v1673_v23 }
 0x270   : > { %v1864_v28 = vmul.f32 0.2, %v1800_v52 }
 0x271   : > { %v3586_v18 = vpop.f32.mrf.mxu3 }
 0x272   : > { %v1928_v35 = vmax.f32 %v1800_v52, %v1864_v28 }
 0x273   : > { %v1105_v10 = vpop.f32.mrf.mxu0  ;;  %v1674_v53 = vpop.f32.mrf.mxu2 }
 0x274   : > { %v1209_v54 = vsub.f32 %v1105_v10, %v3177_v16  ;;  %v1675_v19 = vadd.f32 %v1674_v53, %v3535_v34  ;;  %v833_v34 = vsel %vm769_vm1, 1.0, %v2911_v45  ;;  %v3611_v7 = vpop.f32.mrf.mxu1  ;;  %v834_v53 = vsel %vm770_vm3, 1.0, %v2911_v45  ;;  %2709 = vmatmul.msk.bf16.gmra.mxu1 %vm892_vm2, %v3023_v20 }
 0x275   : > { %v866_v17 = vpack.c.bf16 %v833_v34, %v832_v14  ;;  %v867_v34 = vpack.c.bf16 %v835_v42, %v834_v53  ;;  %v2147_v45 = vadd.f32 %v3602_v43, %v3540_v40 }
 0x276   : > { %v1251_v44 = vpack.c.bf16 %v1209_v54, %v1208_v3  ;;  %v1801_v29 = vadd.f32 %v3325_v37, %v1675_v19  ;;  %v3633_v3 = vsel %vm892_vm2, %v2365_v62, -inf  ;;  %v2302_v54 = vmul.f32 0.2, %v2144_v4 }
 0x277   : > { %v2303_v25 = vmul.f32 0.2, %v2147_v45  ;;  %v2149_v62 = vadd.f32 %v3602_v43, %v3556_v55 }
 0x278   : > { %v1865_v57 = vmul.f32 0.2, %v1801_v29  ;;  %2751 = vmatmul.msk.bf16.gmra.mxu2 %vm892_vm2, %v1251_v44 }
 0x279   : > { %v3607_v5 = vpop.f32.mrf.mxu3  ;;  %v2304_v53 = vmul.f32 0.2, %v2149_v62 }
 0x27a   : > { %v1929_v12 = vmax.f32 %v1801_v29, %v1865_v57 }
 0x27b   : > { %v1108_v47 = vpop.f32.mrf.mxu0  ;;  %v1677_v24 = vpop.f32.mrf.mxu2 }
 0x27c   : > { %v1980_v8 = vpack.c.bf16 %v1929_v12, %v1928_v35  ;;  %v1678_v9 = vadd.f32 %v1677_v24, %v3548_v6  ;;  %v1210_v6 = vsub.f32 %v1108_v47, %v3191_v30  ;;  %v3625_v50 = vpop.f32.mrf.mxu1 }
 0x27e   : > { %2664 = vmatmul.msk.bf16.gmra.mxu0 %vm892_vm2, %v866_v17  ;;  %2790 = vmatmul.msk.bf16.gmra.mxu3 %vm892_vm2, %v1980_v8  ;;  %v1802_v63 = vadd.f32 %v3325_v37, %v1678_v9  ;;  %v2366_v17 = vmax.f32 %v2144_v4, %v2302_v54 }
 0x280   : > { %v1866_v15 = vmul.f32 0.2, %v1802_v63  ;;  %v3650_v56 = vsel %vm892_vm2, %v2366_v17, -inf }
 0x281   : > { %v2161_v36 = vpop.f32.mrf.mxu3 }
 0x282   : > { %v2162_v51 = vadd.f32 %v3602_v43, %v2161_v36  ;;  %v1930_v29 = vmax.f32 %v1802_v63, %v1866_v15 }
 0x283   : > { %v1110_v41 = vpop.f32.mrf.mxu0  ;;  %v1679_v21 = vpop.f32.mrf.mxu2 }
 0x284   : > { %v2309_v22 = vmul.f32 0.2, %v2162_v51  ;;  %v1211_v46 = vsub.f32 %v1110_v41, %v3194_v33  ;;  %v1680_v23 = vadd.f32 %v1679_v21, %v3558_v0  ;;  %v3644_v24 = vpop.f32.mrf.mxu1  ;;  %2710 = vmatmul.msk.bf16.gmra.mxu1 %vm892_vm2, %v3052_v39 }
 0x286   : > { %v2373_v52 = vmax.f32 %v2162_v51, %v2309_v22  ;;  %v1252_v10 = vpack.c.bf16 %v1211_v46, %v1210_v6  ;;  %v1803_v26 = vadd.f32 %v3325_v37, %v1680_v23 }
 0x288   : > { %v3636_v0 = vsel %vm892_vm2, %v2373_v52, -inf  ;;  %v1867_v19 = vmul.f32 0.2, %v1803_v26  ;;  %2752 = vmatmul.msk.bf16.gmra.mxu2 %vm892_vm2, %v1252_v10 }
 0x289   : > { %v2431_v28 = vmax.f32 %v3633_v3, %v3636_v0  ;;  %v2163_v44 = vpop.f32.mrf.mxu3 }
 0x28a   : > { %v1931_v14 = vmax.f32 %v1803_v26, %v1867_v19  ;;  %v2164_v57 = vadd.f32 %v3602_v43, %v2163_v44 }
 0x28b   : > { %v1113_v35 = vpop.f32.mrf.mxu0  ;;  %v1682_v12 = vpop.f32.mrf.mxu2 }
 0x28c   : > { %v2310_v2 = vmul.f32 0.2, %v2164_v57  ;;  %v1981_v47 = vpack.c.bf16 %v1931_v14, %v1930_v29  ;;  %v1683_v9 = vadd.f32 %v1682_v12, %v3571_v27  ;;  %v2367_v27 = vmax.f32 %v2147_v45, %v2303_v25  ;;  %v3664_v23 = vpop.f32.mrf.mxu1 }
 0x28d   : > { %v1212_v21 = vsub.f32 %v1113_v35, %v3215_v48  ;;  %v2368_v35 = vmax.f32 %v2149_v62, %v2304_v53 }
 0x28e   : > { %v2374_v8 = vmax.f32 %v2164_v57, %v2310_v2  ;;  %2665 = vmatmul.msk.bf16.gmra.mxu0 %vm892_vm2, %v867_v34  ;;  %2791 = vmatmul.msk.bf16.gmra.mxu3 %vm892_vm2, %v1981_v47  ;;  %v1804_v63 = vadd.f32 %v3325_v37, %v1683_v9  ;;  %v3670_v55 = vsel %vm892_vm2, %v2367_v27, -inf  ;;  %v2152_v34 = vadd.f32 %v3602_v43, %v3563_v11 }
 0x28f   : > { %v3686_v25 = vsel %vm892_vm2, %v2368_v35, -inf }
 0x290   : > { %v3653_v40 = vsel %vm892_vm2, %v2374_v8, -inf  ;;  %v1868_v15 = vmul.f32 0.2, %v1804_v63  ;;  %v2305_v9 = vmul.f32 0.2, %v2152_v34 }
 0x291   : > { %v2446_v60 = vmax.f32 %v3650_v56, %v3653_v40  ;;  %v2166_v36 = vpop.f32.mrf.mxu3 }
 0x292   : > { %v2167_v51 = vadd.f32 %v3602_v43, %v2166_v36  ;;  %v1932_v44 = vmax.f32 %v1804_v63, %v1868_v15  ;;  %v2369_v62 = vmax.f32 %v2152_v34, %v2305_v9 }
 0x293   : > { %v1115_v4 = vpop.f32.mrf.mxu0  ;;  %v1684_v41 = vpop.f32.mrf.mxu2 }
 0x294   : > { %v2311_v6 = vmul.f32 0.2, %v2167_v51  ;;  %v1213_v22 = vsub.f32 %v1115_v4, %v3218_v49  ;;  %v1685_v46 = vadd.f32 %v1684_v41, %v3581_v1  ;;  %v3681_v2 = vpop.f32.mrf.mxu1  ;;  %2711 = vmatmul.msk.bf16.gmra.mxu1 %vm892_vm2, %v3043_v32 }
 0x296   : > { %v2375_v52 = vmax.f32 %v2167_v51, %v2311_v6  ;;  %v1253_v10 = vpack.c.bf16 %v1213_v22, %v1212_v21  ;;  %v1805_v26 = vadd.f32 %v3325_v37, %v1685_v46 }
 0x298   : > { %v3673_v42 = vsel %vm892_vm2, %v2375_v52, -inf  ;;  %v1869_v54 = vmul.f32 0.2, %v1805_v26  ;;  %2753 = vmatmul.msk.bf16.gmra.mxu2 %vm892_vm2, %v1253_v10 }
 0x299   : > { %v2461_v1 = vmax.f32 %v3670_v55, %v3673_v42  ;;  %v2168_v19 = vpop.f32.mrf.mxu3 }
 0x29a   : > { %v1933_v29 = vmax.f32 %v1805_v26, %v1869_v54  ;;  %v2169_v14 = vadd.f32 %v3602_v43, %v2168_v19 }
 0x29b   : > { %v1118_v57 = vpop.f32.mrf.mxu0  ;;  %v1687_v45 = vpop.f32.mrf.mxu2 }
 0x29c   : > { %v2312_v12 = vmul.f32 0.2, %v2169_v14  ;;  %v1982_v17 = vpack.c.bf16 %v1933_v29, %v1932_v44  ;;  %v1688_v8 = vadd.f32 %v1687_v45, %v3594_v38  ;;  %v2154_v38 = vadd.f32 %v3602_v43, %v3579_v61  ;;  %v3700_v15 = vpop.f32.mrf.mxu1 }
 0x29d   : > { %v1214_v21 = vsub.f32 %v1118_v57, %v3156_v58  ;;  %v3706_v61 = vsel %vm892_vm2, %v2369_v62, -inf  ;;  %v2157_v57 = vadd.f32 %v3602_v43, %v3586_v18 }
 0x29e   : > { %v2376_v47 = vmax.f32 %v2169_v14, %v2312_v12  ;;  %2792 = vmatmul.msk.bf16.gmra.mxu3 %vm892_vm2, %v1982_v17  ;;  %v1806_v51 = vadd.f32 %v3325_v37, %v1688_v8  ;;  %v2306_v54 = vmul.f32 0.2, %v2154_v38 }
 0x2a0   : > { %v3689_v36 = vsel %vm892_vm2, %v2376_v47, -inf  ;;  %v1870_v52 = vmul.f32 0.2, %v1806_v51  ;;  %v2370_v12 = vmax.f32 %v2154_v38, %v2306_v54 }
 0x2a1   : > { %v2476_v11 = vmax.f32 %v3686_v25, %v3689_v36  ;;  %v2171_v63 = vpop.f32.mrf.mxu3 }
 0x2a2   : > { %v2172_v27 = vadd.f32 %v3602_v43, %v2171_v63  ;;  %v1934_v14 = vmax.f32 %v1806_v51, %v1870_v52  ;;  %v3722_v51 = vsel %vm892_vm2, %v2370_v12, -inf }
 0x2a3   : > { %v1120_v4 = vpop.f32.mrf.mxu0  ;;  %v1689_v41 = vpop.f32.mrf.mxu2 }
 0x2a4   : > { %v2313_v6 = vmul.f32 0.2, %v2172_v27  ;;  %v1215_v22 = vsub.f32 %v1120_v4, %v3159_v59  ;;  %v1690_v46 = vadd.f32 %v1689_v41, %v3611_v7  ;;  %v3717_v8 = vpop.f32.mrf.mxu1  ;;  %v3732_v4 = vld [vmem:[%s4173_s4] ss:$0 sm:$0xff]  ;;  %2712 = vmatmul.msk.bf16.gmra.mxu1 %vm892_vm2, %v3038_v31 }
 0x2a6   : > { %v2377_v10 = vmax.f32 %v2172_v27, %v2313_v6  ;;  %v1254_v26 = vpack.c.bf16 %v1215_v22, %v1214_v21  ;;  %v1807_v53 = vadd.f32 %v3325_v37, %v1690_v46  ;;  %v2307_v27 = vmul.f32 0.2, %v2157_v57 }
 0x2a7   : > { %v2159_v6 = vadd.f32 %v3602_v43, %v3607_v5 }
 0x2a8   : > { %v3709_v19 = vsel %vm892_vm2, %v2377_v10, -inf  ;;  %v1871_v44 = vmul.f32 0.2, %v1807_v53  ;;  %2754 = vmatmul.msk.bf16.gmra.mxu2 %vm892_vm2, %v1254_v26  ;;  %v2371_v21 = vmax.f32 %v2157_v57, %v2307_v27 }
 0x2a9   : > { %v2491_v7 = vmax.f32 %v3706_v61, %v3709_v19  ;;  %v2173_v29 = vpop.f32.mrf.mxu3 }
 0x2aa   : > { %v1935_v34 = vmax.f32 %v1807_v53, %v1871_v44  ;;  %v2174_v37 = vadd.f32 %v3602_v43, %v2173_v29  ;;  %v3747_v5 = vsel %vm892_vm2, %v2371_v21, -inf }
 0x2ab   : > { %v1123_v45 = vpop.f32.mrf.mxu0  ;;  %v1692_v35 = vpop.f32.mrf.mxu2 }
 0x2ac   : > { %v2314_v17 = vmul.f32 0.2, %v2174_v37  ;;  %v1983_v47 = vpack.c.bf16 %v1935_v34, %v1934_v14  ;;  %v1693_v63 = vadd.f32 %v1692_v35, %v3625_v50  ;;  %v1216_v52 = vsub.f32 %v1123_v45, %v3174_v13  ;;  %v3741_v54 = vpop.f32.mrf.mxu1 }
 0x2ae   : > { %v2378_v9 = vmax.f32 %v2174_v37, %v2314_v17  ;;  %2793 = vmatmul.msk.bf16.gmra.mxu3 %vm892_vm2, %v1983_v47  ;;  %v1808_v50 = vadd.f32 %v3732_v4, %v1693_v63  ;;  %v2308_v37 = vmul.f32 0.2, %v2159_v6 }
 0x2b0   : > { %v3725_v62 = vsel %vm892_vm2, %v2378_v9, -inf  ;;  %v1872_v44 = vmul.f32 0.2, %v1808_v50  ;;  %v2372_v27 = vmax.f32 %v2159_v6, %v2308_v37 }
 0x2b1   : > { %v2506_v18 = vmax.f32 %v3722_v51, %v3725_v62  ;;  %v2176_v38 = vpop.f32.mrf.mxu3 }
 0x2b2   : > { %v2177_v41 = vadd.f32 %v3602_v43, %v2176_v38  ;;  %v1936_v12 = vmax.f32 %v1808_v50, %v1872_v44 }
 0x2b3   : > { %v1125_v22 = vpop.f32.mrf.mxu0  ;;  %v1694_v46 = vpop.f32.mrf.mxu2 }
 0x2b4   : > { %v2315_v10 = vmul.f32 0.2, %v2177_v41  ;;  %v1217_v26 = vsub.f32 %v1125_v22, %v3177_v16  ;;  %v1695_v53 = vadd.f32 %v1694_v46, %v3644_v24  ;;  %v3756_v21 = vpop.f32.mrf.mxu1  ;;  %2713 = vmatmul.msk.bf16.gmra.mxu1 %vm892_vm2, %v3023_v20 }
 0x2b6   : > { %v2379_v29 = vmax.f32 %v2177_v41, %v2315_v10  ;;  %v1255_v14 = vpack.c.bf16 %v1217_v26, %v1216_v52  ;;  %v1809_v34 = vadd.f32 %v3732_v4, %v1695_v53  ;;  %v3761_v52 = vsel %vm892_vm2, %v2372_v27, -inf }
 0x2b8   : > { %v3750_v57 = vsel %vm892_vm2, %v2379_v29, -inf  ;;  %v1873_v45 = vmul.f32 0.2, %v1809_v34  ;;  %2755 = vmatmul.msk.bf16.gmra.mxu2 %vm892_vm2, %v1255_v14 }
 0x2b9   : > { %v2521_v24 = vmax.f32 %v3747_v5, %v3750_v57  ;;  %v2178_v35 = vpop.f32.mrf.mxu3 }
 0x2ba   : > { %v1937_v17 = vmax.f32 %v1809_v34, %v1873_v45  ;;  %v2179_v47 = vadd.f32 %v3602_v43, %v2178_v35 }
 0x2bb   : > { %v1128_v9 = vpop.f32.mrf.mxu0  ;;  %v1697_v63 = vpop.f32.mrf.mxu2 }
 0x2bc   : > { %v2316_v38 = vmul.f32 0.2, %v2179_v47  ;;  %v1984_v41 = vpack.c.bf16 %v1937_v17, %v1936_v12  ;;  %v1698_v46 = vadd.f32 %v1697_v63, %v3664_v23  ;;  %v1218_v23 = vsub.f32 %v1128_v9, %v3191_v30  ;;  %v3773_v45 = vpop.f32.mrf.mxu1 }
 0x2be   : > { %v2380_v22 = vmax.f32 %v2179_v47, %v2316_v38  ;;  %2794 = vmatmul.msk.bf16.gmra.mxu3 %vm892_vm2, %v1984_v41  ;;  %v1810_v6 = vadd.f32 %v3732_v4, %v1698_v46 }
 0x2c0   : > { %v3764_v50 = vsel %vm892_vm2, %v2380_v22, -inf  ;;  %v1874_v35 = vmul.f32 0.2, %v1810_v6 }
 0x2c1   : > { %v2536_v10 = vmax.f32 %v3761_v52, %v3764_v50  ;;  %v2181_v26 = vpop.f32.mrf.mxu3 }
 0x2c2   : > { %v2182_v53 = vadd.f32 %v3602_v43, %v2181_v26  ;;  %v1938_v38 = vmax.f32 %v1810_v6, %v1874_v35 }
 0x2c3   : > { %v1130_v44 = vpop.f32.mrf.mxu0  ;;  %v1699_v29 = vpop.f32.mrf.mxu2 }
 0x2c4   : > { %v2317_v14 = vmul.f32 0.2, %v2182_v53  ;;  %v1219_v34 = vsub.f32 %v1130_v44, %v3194_v33  ;;  %v1700_v37 = vadd.f32 %v1699_v29, %v3681_v2  ;;  %v3786_v39 = vpop.f32.mrf.mxu1 }
 0x2c6   : > { %v2381_v12 = vmax.f32 %v2182_v53, %v2317_v14  ;;  %v1256_v17 = vpack.c.bf16 %v1219_v34, %v1218_v23  ;;  %v1811_v47 = vadd.f32 %v3732_v4, %v1700_v37 }
 0x2c8   : > { %v2432_v63 = vsel %vm892_vm2, %v2381_v12, -inf  ;;  %v1875_v27 = vmul.f32 0.2, %v1811_v47  ;;  %2756 = vmatmul.msk.bf16.gmra.mxu2 %vm892_vm2, %v1256_v17 }
 0x2c9   : > { %v3783_v9 = vmax.f32 %v2431_v28, %v2432_v63  ;;  %v2183_v2 = vpop.f32.mrf.mxu3 }
 0x2ca   : > { %v1939_v41 = vmax.f32 %v1811_v47, %v1875_v27  ;;  %v2184_v22 = vadd.f32 %v3602_v43, %v2183_v2 }
 0x2cb   : > { %v1133_v46 = vpop.f32.mrf.mxu0  ;;  %v1702_v26 = vpop.f32.mrf.mxu2 }
 0x2cc   : > { %v2318_v53 = vmul.f32 0.2, %v2184_v22  ;;  %v1985_v44 = vpack.c.bf16 %v1939_v41, %v1938_v38  ;;  %v1703_v23 = vadd.f32 %v1702_v26, %v3700_v15  ;;  %v1220_v35 = vsub.f32 %v1133_v46, %v3215_v48  ;;  %v3801_v47 = vpop.f32.mrf.mxu1 }
 0x2ce   : > { %v2382_v29 = vmax.f32 %v2184_v22, %v2318_v53  ;;  %2795 = vmatmul.msk.bf16.gmra.mxu3 %vm892_vm2, %v1985_v44  ;;  %v1812_v6 = vadd.f32 %v3732_v4, %v1703_v23 }
 0x2d0   : > { %v2447_v3 = vsel %vm892_vm2, %v2382_v29, -inf  ;;  %v1876_v63 = vmul.f32 0.2, %v1812_v6 }
 0x2d1   : > { %v3794_v0 = vmax.f32 %v2446_v60, %v2447_v3  ;;  %v2186_v28 = vpop.f32.mrf.mxu3 }
 0x2d2   : > { %v2187_v14 = vadd.f32 %v3602_v43, %v2186_v28  ;;  %v1940_v41 = vmax.f32 %v1812_v6, %v1876_v63 }
 0x2d3   : > { %v1135_v34 = vpop.f32.mrf.mxu0  ;;  %v1704_v37 = vpop.f32.mrf.mxu2 }
 0x2d4   : > { %v2319_v12 = vmul.f32 0.2, %v2187_v14  ;;  %v1221_v15 = vsub.f32 %v1135_v34, %v3218_v49  ;;  %v1705_v17 = vadd.f32 %v1704_v37, %v3717_v8  ;;  %v3814_v32 = vpop.f32.mrf.mxu1 }
 0x2d6   : > { %v2383_v56 = vmax.f32 %v2187_v14, %v2319_v12  ;;  %v1257_v40 = vpack.c.bf16 %v1221_v15, %v1220_v35  ;;  %v1813_v60 = vadd.f32 %v3732_v4, %v1705_v17 }
 0x2d8   : > { %v2462_v27 = vsel %vm892_vm2, %v2383_v56, -inf  ;;  %v1877_v2 = vmul.f32 0.2, %v1813_v60  ;;  %2757 = vmatmul.msk.bf16.gmra.mxu2 %vm892_vm2, %v1257_v40 }
 0x2d9   : > { %v3811_v38 = vmax.f32 %v2461_v1, %v2462_v27  ;;  %v2188_v8 = vpop.f32.mrf.mxu3 }
 0x2da   : > { %v1941_v22 = vmax.f32 %v1813_v60, %v1877_v2  ;;  %v2189_v46 = vadd.f32 %v3602_v43, %v2188_v8 }
 0x2db   : > { %v1138_v26 = vpop.f32.mrf.mxu0  ;;  %v1707_v53 = vpop.f32.mrf.mxu2 }
 0x2dc   : > { %v2320_v44 = vmul.f32 0.2, %v2189_v46  ;;  %v1986_v29 = vpack.c.bf16 %v1941_v22, %v1940_v41  ;;  %v1708_v3 = vadd.f32 %v1707_v53, %v3741_v54  ;;  %v1222_v37 = vsub.f32 %v1138_v26, %v3156_v58  ;;  %v3829_v15 = vpop.f32.mrf.mxu1 }
 0x2de   : > { %v2384_v23 = vmax.f32 %v2189_v46, %v2320_v44  ;;  %2796 = vmatmul.msk.bf16.gmra.mxu3 %vm892_vm2, %v1986_v29  ;;  %v1814_v28 = vadd.f32 %v3732_v4, %v1708_v3 }
 0x2e0   : > { %v2477_v55 = vsel %vm892_vm2, %v2384_v23, -inf  ;;  %v1878_v17 = vmul.f32 0.2, %v1814_v28 }
 0x2e1   : > { %v3822_v42 = vmax.f32 %v2476_v11, %v2477_v55  ;;  %v2191_v1 = vpop.f32.mrf.mxu3 }
 0x2e2   : > { %v2192_v6 = vadd.f32 %v3602_v43, %v2191_v1 }
 0x2e3   : > { %v1140_v14 = vpop.f32.mrf.mxu0  ;;  %v1709_v34 = vpop.f32.mrf.mxu2 }
 0x2e4   : > { %v2321_v35 = vmul.f32 0.2, %v2192_v6  ;;  %v1223_v54 = vsub.f32 %v1140_v14, %v3159_v59  ;;  %v1710_v12 = vadd.f32 %v1709_v34, %v3756_v21  ;;  %v1942_v21 = vmax.f32 %v1814_v28, %v1878_v17  ;;  %v3844_v46 = vpop.f32.mrf.mxu1 }
 0x2e6   : > { %v2385_v25 = vmax.f32 %v2192_v6, %v2321_v35  ;;  %v1258_v36 = vpack.c.bf16 %v1223_v54, %v1222_v37  ;;  %v1815_v11 = vadd.f32 %v3732_v4, %v1710_v12 }
 0x2e8   : > { %v2492_v63 = vsel %vm892_vm2, %v2385_v25, -inf  ;;  %v1879_v56 = vmul.f32 0.2, %v1815_v11  ;;  %2758 = vmatmul.msk.bf16.gmra.mxu2 %vm892_vm2, %v1258_v36 }
 0x2e9   : > { %v3839_v58 = vmax.f32 %v2491_v7, %v2492_v63  ;;  %v2193_v59 = vpop.f32.mrf.mxu3 }
 0x2ea   : > { %v1943_v40 = vmax.f32 %v1815_v11, %v1879_v56  ;;  %v2194_v60 = vadd.f32 %v3602_v43, %v2193_v59 }
 0x2eb   : > { %v1143_v27 = vpop.f32.mrf.mxu0  ;;  %v1712_v2 = vpop.f32.mrf.mxu2 }
 0x2ec   : > { %v2322_v8 = vmul.f32 0.2, %v2194_v60  ;;  %v1987_v41 = vpack.c.bf16 %v1943_v40, %v1942_v21  ;;  %v1713_v22 = vadd.f32 %v1712_v2, %v3773_v45  ;;  %v1224_v45 = vsub.f32 %v1143_v27, %v3174_v13  ;;  %v3862_v14 = vpop.f32.mrf.mxu1 }
 0x2ee   : > { %v2386_v31 = vmax.f32 %v2194_v60, %v2322_v8  ;;  %2797 = vmatmul.msk.bf16.gmra.mxu3 %vm892_vm2, %v1987_v41  ;;  %v1816_v26 = vadd.f32 %v3732_v4, %v1713_v22 }
 0x2f0   : > { %v2507_v61 = vsel %vm892_vm2, %v2386_v31, -inf  ;;  %v1880_v1 = vmul.f32 0.2, %v1816_v26 }
 0x2f1   : > { %v3850_v19 = vmax.f32 %v2506_v18, %v2507_v61  ;;  %v2196_v7 = vpop.f32.mrf.mxu3 }
 0x2f2   : > { %v2197_v53 = vadd.f32 %v3602_v43, %v2196_v7 }
 0x2f3   : > { %v1145_v44 = vpop.f32.mrf.mxu0  ;;  %v1714_v29 = vpop.f32.mrf.mxu2 }
 0x2f4   : > { %v2323_v23 = vmul.f32 0.2, %v2197_v53  ;;  %v1225_v3 = vsub.f32 %v1145_v44, %v3177_v16  ;;  %v1715_v55 = vadd.f32 %v1714_v29, %v3786_v39  ;;  %v1944_v39 = vmax.f32 %v1816_v26, %v1880_v1  ;;  %v3880_v63 = vpop.f32.mrf.mxu1 }
 0x2f6   : > { %v2387_v28 = vmax.f32 %v2197_v53, %v2323_v23  ;;  %v1259_v6 = vpack.c.bf16 %v1225_v3, %v1224_v45  ;;  %v1817_v51 = vadd.f32 %v3732_v4, %v1715_v55 }
 0x2f8   : > { %v2522_v62 = vsel %vm892_vm2, %v2387_v28, -inf  ;;  %v1881_v18 = vmul.f32 0.2, %v1817_v51  ;;  %2759 = vmatmul.msk.bf16.gmra.mxu2 %vm892_vm2, %v1259_v6 }
 0x2f9   : > { %v3867_v13 = vmax.f32 %v2521_v24, %v2522_v62  ;;  %v2198_v16 = vpop.f32.mrf.mxu3 }
 0x2fa   : > { %v1945_v34 = vmax.f32 %v1817_v51, %v1881_v18  ;;  %v2199_v37 = vadd.f32 %v3602_v43, %v2198_v16 }
 0x2fb   : > { %v1148_v35 = vpop.f32.mrf.mxu0  ;;  %v1717_v54 = vpop.f32.mrf.mxu2 }
 0x2fc   : > { %v1988_v20 = vpack.c.bf16 %v1945_v34, %v1944_v39  ;;  %v2324_v12 = vmul.f32 0.2, %v2199_v37  ;;  %v1718_v25 = vadd.f32 %v1717_v54, %v3801_v47  ;;  %v1226_v47 = vsub.f32 %v1148_v35, %v3191_v30  ;;  %v1443_v53 = vpop.f32.mrf.mxu1 }
 0x2fe   : > { %v2388_v17 = vmax.f32 %v2199_v37, %v2324_v12  ;;  %2798 = vmatmul.msk.bf16.gmra.mxu3 %vm892_vm2, %v1988_v20  ;;  %v1818_v24 = vadd.f32 %v3732_v4, %v1718_v25 }
 0x300   : > { %v2537_v36 = vsel %vm892_vm2, %v2388_v17, -inf  ;;  %v1882_v27 = vmul.f32 0.2, %v1818_v24 }
 0x301   : > { %v3876_v5 = vmax.f32 %v2536_v10, %v2537_v36  ;;  %v2201_v57 = vpop.f32.mrf.mxu3 }
 0x302   : > { %v2202_v11 = vadd.f32 %v3602_v43, %v2201_v57  ;;  %v1946_v31 = vmax.f32 %v1818_v24, %v1882_v27 }
 0x303   : > { %v1150_v56 = vpop.f32.mrf.mxu0  ;;  %v1719_v59 = vpop.f32.mrf.mxu2 }
 0x304   : > { %v2325_v21 = vmul.f32 0.2, %v2202_v11  ;;  %v1227_v40 = vsub.f32 %v1150_v56, %v3194_v33  ;;  %v1720_v60 = vadd.f32 %v1719_v59, %v3814_v32  ;;  %v1445_v35 = vpop.f32.mrf.mxu1 }
 0x306   : > { %v2389_v52 = vmax.f32 %v2202_v11, %v2325_v21  ;;  %v1260_v50 = vpack.c.bf16 %v1227_v40, %v1226_v47  ;;  %v1819_v10 = vadd.f32 %v3732_v4, %v1720_v60 }
 0x308   : > { %v3887_v2 = vsel %vm892_vm2, %v2389_v52, -inf  ;;  %v1883_v8 = vmul.f32 0.2, %v1819_v10  ;;  %2760 = vmatmul.msk.bf16.gmra.mxu2 %vm892_vm2, %v1260_v50 }
 0x309   : > { %v2435_v41 = vmax.f32 %v3783_v9, %v3887_v2  ;;  %v2203_v30 = vpop.f32.mrf.mxu3 }
 0x30a   : > { %v1947_v22 = vmax.f32 %v1819_v10, %v1883_v8  ;;  %v2204_v33 = vadd.f32 %v3602_v43, %v2203_v30 }
 0x30b   : > { %v1153_v32 = vpop.f32.mrf.mxu0  ;;  %v1722_v61 = vpop.f32.mrf.mxu2 }
 0x30c   : > { %v1989_v7 = vpack.c.bf16 %v1947_v22, %v1946_v31  ;;  %v2326_v26 = vmul.f32 0.2, %v2204_v33  ;;  %v1723_v29 = vadd.f32 %v1722_v61, %v3829_v15  ;;  %v1228_v51 = vsub.f32 %v1153_v32, %v3215_v48  ;;  %v1448_v21 = vpop.f32.mrf.mxu1 }
 0x30e   : > { %v2390_v44 = vmax.f32 %v2204_v33, %v2326_v26  ;;  %2799 = vmatmul.msk.bf16.gmra.mxu3 %vm892_vm2, %v1989_v7  ;;  %v1820_v55 = vadd.f32 %v3732_v4, %v1723_v29 }
 0x310   : > { %v3896_v45 = vsel %vm892_vm2, %v2390_v44, -inf  ;;  %v1884_v16 = vmul.f32 0.2, %v1820_v55 }
 0x311   : > { %v2450_v23 = vmax.f32 %v3794_v0, %v3896_v45  ;;  %v2206_v3 = vpop.f32.mrf.mxu3 }
 0x312   : > { %v2207_v1 = vadd.f32 %v3602_v43, %v2206_v3  ;;  %v1948_v17 = vmax.f32 %v1820_v55, %v1884_v16 }
 0x313   : > { %v1155_v28 = vpop.f32.mrf.mxu0  ;;  %v1724_v6 = vpop.f32.mrf.mxu2 }
 0x314   : > { %v2327_v62 = vmul.f32 0.2, %v2207_v1  ;;  %v1229_v15 = vsub.f32 %v1155_v28, %v3218_v49  ;;  %v1725_v18 = vadd.f32 %v1724_v6, %v3844_v46  ;;  %v1450_v44 = vpop.f32.mrf.mxu1 }
 0x316   : > { %v2391_v39 = vmax.f32 %v2207_v1, %v2327_v62  ;;  %v1261_v34 = vpack.c.bf16 %v1229_v15, %v1228_v51  ;;  %v1821_v37 = vadd.f32 %v3732_v4, %v1725_v18 }
 0x318   : > { %v3907_v54 = vsel %vm892_vm2, %v2391_v39, -inf  ;;  %v1885_v20 = vmul.f32 0.2, %v1821_v37  ;;  %2761 = vmatmul.msk.bf16.gmra.mxu2 %vm892_vm2, %v1261_v34 }
 0x319   : > { %v2465_v48 = vmax.f32 %v3811_v38, %v3907_v54  ;;  %v2208_v12 = vpop.f32.mrf.mxu3 }
 0x31a   : > { %v1949_v49 = vmax.f32 %v1821_v37, %v1885_v20  ;;  %v2209_v46 = vadd.f32 %v3602_v43, %v2208_v12 }
 0x31b   : > { %v1727_v25 = vpop.f32.mrf.mxu2 }
 0x31c   : > { %v1990_v36 = vpack.c.bf16 %v1949_v49, %v1948_v17  ;;  %v2328_v57 = vmul.f32 0.2, %v2209_v46  ;;  %v1728_v11 = vadd.f32 %v1727_v25, %v3862_v14  ;;  %v1453_v39 = vpop.f32.mrf.mxu1 }
 0x31e   : > { %v2392_v24 = vmax.f32 %v2209_v46, %v2328_v57  ;;  %2800 = vmatmul.msk.bf16.gmra.mxu3 %vm892_vm2, %v1990_v36  ;;  %v1822_v40 = vadd.f32 %v3732_v4, %v1728_v11 }
 0x320   : > { %v3916_v56 = vsel %vm892_vm2, %v2392_v24, -inf  ;;  %v1886_v10 = vmul.f32 0.2, %v1822_v40 }
 0x321   : > { %v2480_v59 = vmax.f32 %v3822_v42, %v3916_v56  ;;  %v2211_v47 = vpop.f32.mrf.mxu3 }
 0x322   : > { %v2212_v60 = vadd.f32 %v3602_v43, %v2211_v47  ;;  %v1950_v32 = vmax.f32 %v1822_v40, %v1886_v10 }
 0x323   : > { %v1729_v27 = vpop.f32.mrf.mxu2 }
 0x324   : > { %v2329_v52 = vmul.f32 0.2, %v2212_v60  ;;  %v1730_v50 = vadd.f32 %v1729_v27, %v3880_v63  ;;  %v1455_v40 = vpop.f32.mrf.mxu1 }
 0x326   : > { %v2393_v14 = vmax.f32 %v2212_v60, %v2329_v52  ;;  %v1823_v8 = vadd.f32 %v3732_v4, %v1730_v50 }
 0x328   : > { %v3925_v30 = vsel %vm892_vm2, %v2393_v14, -inf  ;;  %v1887_v31 = vmul.f32 0.2, %v1823_v8 }
 0x329   : > { %v2495_v22 = vmax.f32 %v3839_v58, %v3925_v30  ;;  %v2213_v33 = vpop.f32.mrf.mxu3 }
 0x32a   : > { %v1951_v61 = vmax.f32 %v1823_v8, %v1887_v31  ;;  %v2214_v7 = vadd.f32 %v3602_v43, %v2213_v33 }
 0x32b   : > { %v1732_v26 = vpop.f32.mrf.mxu2 }
 0x32c   : > { %v1991_v29 = vpack.c.bf16 %v1951_v61, %v1950_v32  ;;  %v2330_v63 = vmul.f32 0.2, %v2214_v7  ;;  %v1733_v55 = vadd.f32 %v1732_v26, %v1443_v53 }
 0x32e   : > { %v2394_v3 = vmax.f32 %v2214_v7, %v2330_v63  ;;  %2801 = vmatmul.msk.bf16.gmra.mxu3 %vm892_vm2, %v1991_v29  ;;  %v1824_v51 = vadd.f32 %v3732_v4, %v1733_v55  ;;  %v1458_v63 = vpop.f32.mrf.mxu1 }
 0x330   : > { %v3932_v1 = vsel %vm892_vm2, %v2394_v3, -inf  ;;  %v1888_v34 = vmul.f32 0.2, %v1824_v51 }
 0x331   : > { %v2510_v28 = vmax.f32 %v3850_v19, %v3932_v1  ;;  %v2216_v6 = vpop.f32.mrf.mxu3 }
 0x332   : > { %v2217_v62 = vadd.f32 %v3602_v43, %v2216_v6  ;;  %v1952_v46 = vmax.f32 %v1824_v51, %v1888_v34 }
 0x333   : > { %v1734_v15 = vpop.f32.mrf.mxu2 }
 0x334   : > { %v2331_v18 = vmul.f32 0.2, %v2217_v62  ;;  %v1735_v16 = vadd.f32 %v1734_v15, %v1445_v35 }
 0x336   : > { %v2395_v37 = vmax.f32 %v2217_v62, %v2331_v18  ;;  %v1825_v53 = vadd.f32 %v3732_v4, %v1735_v16 }
 0x338   : > { %v3940_v20 = vsel %vm892_vm2, %v2395_v37, -inf  ;;  %v1889_v12 = vmul.f32 0.2, %v1825_v53 }
 0x339   : > { %v2525_v17 = vmax.f32 %v3867_v13, %v3940_v20  ;;  %v2218_v49 = vpop.f32.mrf.mxu3 }
 0x33a   : > { %v1953_v25 = vmax.f32 %v1825_v53, %v1889_v12  ;;  %v2219_v36 = vadd.f32 %v3602_v43, %v2218_v49  ;;  %v1460_v53 = vpop.f32.mrf.mxu1 }
 0x33b   : > { %v1737_v57 = vpop.f32.mrf.mxu2 }
 0x33c   : > { %v1992_v24 = vpack.c.bf16 %v1953_v25, %v1952_v46  ;;  %v2332_v35 = vmul.f32 0.2, %v2219_v36  ;;  %v1738_v47 = vadd.f32 %v1737_v57, %v1448_v21 }
 0x33e   : > { %v2396_v11 = vmax.f32 %v2219_v36, %v2332_v35  ;;  %2802 = vmatmul.msk.bf16.gmra.mxu3 %vm892_vm2, %v1992_v24  ;;  %v1826_v50 = vadd.f32 %v3732_v4, %v1738_v47 }
 0x340   : > { %v3947_v60 = vsel %vm892_vm2, %v2396_v11, -inf  ;;  %v1890_v33 = vmul.f32 0.2, %v1826_v50 }
 0x341   : > { %v2540_v27 = vmax.f32 %v3876_v5, %v3947_v60  ;;  %v2221_v52 = vpop.f32.mrf.mxu3 }
 0x342   : > { %v2222_v10 = vadd.f32 %v3602_v43, %v2221_v52  ;;  %v1954_v3 = vmax.f32 %v1826_v50, %v1890_v33  ;;  %v1463_v52 = vpop.f32.mrf.mxu1 }
 0x343   : > { %v1739_v14 = vpop.f32.mrf.mxu2 }
 0x344   : > { %v2333_v8 = vmul.f32 0.2, %v2222_v10  ;;  %v1740_v31 = vadd.f32 %v1739_v14, %v1450_v44 }
 0x346   : > { %v2397_v32 = vmax.f32 %v2222_v10, %v2333_v8  ;;  %v1827_v21 = vadd.f32 %v3732_v4, %v1740_v31 }
 0x348   : > { %v2436_v61 = vsel %vm892_vm2, %v2397_v32, -inf  ;;  %v1891_v7 = vmul.f32 0.2, %v1827_v21 }
 0x349   : > { %v3958_v26 = vmax.f32 %v2435_v41, %v2436_v61  ;;  %v2223_v29 = vpop.f32.mrf.mxu3 }
 0x34a   : > { %v1955_v55 = vmax.f32 %v1827_v21, %v1891_v7  ;;  %v2224_v6 = vadd.f32 %v3602_v43, %v2223_v29  ;;  %v1465_v29 = vpop.f32.mrf.mxu1 }
 0x34b   : > { %v1742_v51 = vpop.f32.mrf.mxu2 }
 0x34c   : > { %v1993_v44 = vpack.c.bf16 %v1955_v55, %v1954_v3  ;;  %v2334_v62 = vmul.f32 0.2, %v2224_v6  ;;  %v1743_v18 = vadd.f32 %v1742_v51, %v1453_v39 }
 0x34e   : > { %v2398_v15 = vmax.f32 %v2224_v6, %v2334_v62  ;;  %2803 = vmatmul.msk.bf16.gmra.mxu3 %vm892_vm2, %v1993_v44  ;;  %v1828_v41 = vadd.f32 %v3732_v4, %v1743_v18 }
 0x350   : > { %v2451_v16 = vsel %vm892_vm2, %v2398_v15, -inf  ;;  %v1892_v46 = vmul.f32 0.2, %v1828_v41 }
 0x351   : > { %v3966_v9 = vmax.f32 %v2450_v23, %v2451_v16  ;;  %v2226_v2 = vpop.f32.mrf.mxu3 }
 0x352   : > { %v2227_v34 = vadd.f32 %v3602_v43, %v2226_v2  ;;  %v1956_v23 = vmax.f32 %v1828_v41, %v1892_v46 }
 0x353   : > { %v1744_v37 = vpop.f32.mrf.mxu2 }
 0x354   : > { %v2335_v12 = vmul.f32 0.2, %v2227_v34  ;;  %v1745_v49 = vadd.f32 %v1744_v37, %v1455_v40 }
 0x356   : > { %v2399_v39 = vmax.f32 %v2227_v34, %v2335_v12  ;;  %v1829_v25 = vadd.f32 %v3732_v4, %v1745_v49 }
 0x358   : > { %v2466_v36 = vsel %vm892_vm2, %v2399_v39, -inf  ;;  %v1893_v57 = vmul.f32 0.2, %v1829_v25 }
 0x359   : > { %v3975_v0 = vmax.f32 %v2465_v48, %v2466_v36  ;;  %v2228_v45 = vpop.f32.mrf.mxu3 }
 0x35a   : > { %v1957_v24 = vmax.f32 %v1829_v25, %v1893_v57  ;;  %v2229_v35 = vadd.f32 %v3602_v43, %v2228_v45 }
 0x35b   : > { %v1747_v11 = vpop.f32.mrf.mxu2 }
 0x35c   : > { %v1994_v47 = vpack.c.bf16 %v1957_v24, %v1956_v23  ;;  %v2336_v40 = vmul.f32 0.2, %v2229_v35  ;;  %v1748_v10 = vadd.f32 %v1747_v11, %v1458_v63 }
 0x35e   : > { %v2400_v50 = vmax.f32 %v2229_v35, %v2336_v40  ;;  %2804 = vmatmul.msk.bf16.gmra.mxu3 %vm892_vm2, %v1994_v47  ;;  %v1830_v48 = vadd.f32 %v3732_v4, %v1748_v10 }
 0x360   : > { %v2481_v14 = vsel %vm892_vm2, %v2400_v50, -inf  ;;  %v1894_v21 = vmul.f32 0.2, %v1830_v48 }
 0x361   : > { %v3983_v38 = vmax.f32 %v2480_v59, %v2481_v14  ;;  %v2231_v54 = vpop.f32.mrf.mxu3 }
 0x362   : > { %v2232_v8 = vadd.f32 %v3602_v43, %v2231_v54  ;;  %v1958_v59 = vmax.f32 %v1830_v48, %v1894_v21 }
 0x363   : > { %v1749_v31 = vpop.f32.mrf.mxu2 }
 0x364   : > { %v2337_v33 = vmul.f32 0.2, %v2232_v8  ;;  %v1750_v32 = vadd.f32 %v1749_v31, %v1460_v53 }
 0x366   : > { %v2401_v61 = vmax.f32 %v2232_v8, %v2337_v33  ;;  %v1831_v7 = vadd.f32 %v3732_v4, %v1750_v32 }
 0x368   : > { %v2496_v63 = vsel %vm892_vm2, %v2401_v61, -inf  ;;  %v1895_v3 = vmul.f32 0.2, %v1831_v7 }
 0x369   : > { %v3992_v42 = vmax.f32 %v2495_v22, %v2496_v63  ;;  %v2233_v56 = vpop.f32.mrf.mxu3  ;;  %v1468_v22 = vpop.f32.mrf.mxu1 }
 0x36a   : > { %v1959_v55 = vmax.f32 %v1831_v7, %v1895_v3  ;;  %v2234_v6 = vadd.f32 %v3602_v43, %v2233_v56  ;;  %v4006_v43 = vld [vmem:[%s4175_s6] ss:$0 sm:$0xff] }
 0x36b   : > { %v1752_v51 = vpop.f32.mrf.mxu2 }
 0x36c   : > { %v1995_v44 = vpack.c.bf16 %v1959_v55, %v1958_v59  ;;  %v2338_v62 = vmul.f32 0.2, %v2234_v6  ;;  %v1753_v18 = vadd.f32 %v1752_v51, %v1463_v52 }
 0x36e   : > { %v2402_v15 = vmax.f32 %v2234_v6, %v2338_v62  ;;  %2805 = vmatmul.msk.bf16.gmra.mxu3 %vm892_vm2, %v1995_v44  ;;  %v1832_v2 = vadd.f32 %v3732_v4, %v1753_v18 }
 0x370   : > { %v2511_v16 = vsel %vm892_vm2, %v2402_v15, -inf  ;;  %v1896_v12 = vmul.f32 0.2, %v1832_v2 }
 0x371   : > { %v4000_v58 = vmax.f32 %v2510_v28, %v2511_v16  ;;  %v2236_v30 = vpop.f32.mrf.mxu3  ;;  %v1470_v45 = vpop.f32.mrf.mxu1 }
 0x372   : > { %v2237_v41 = vadd.f32 %v4006_v43, %v2236_v30  ;;  %v1960_v25 = vmax.f32 %v1832_v2, %v1896_v12 }
 0x373   : > { %v1754_v34 = vpop.f32.mrf.mxu2 }
 0x374   : > { %v2339_v37 = vmul.f32 0.2, %v2237_v41  ;;  %v1755_v53 = vadd.f32 %v1754_v34, %v1465_v29 }
 0x376   : > { %v2403_v49 = vmax.f32 %v2237_v41, %v2339_v37  ;;  %v1833_v19 = vadd.f32 %v3732_v4, %v1755_v53 }
 0x378   : > { %v2526_v1 = vsel %vm892_vm2, %v2403_v49, -inf  ;;  %v1897_v28 = vmul.f32 0.2, %v1833_v19 }
 0x379   : > { %v4014_v46 = vmax.f32 %v2525_v17, %v2526_v1  ;;  %v2238_v39 = vpop.f32.mrf.mxu3  ;;  %v1473_v54 = vpop.f32.mrf.mxu1 }
 0x37a   : > { %v1961_v36 = vmax.f32 %v1833_v19, %v1897_v28  ;;  %v2239_v57 = vadd.f32 %v4006_v43, %v2238_v39 }
 0x37b   : > { %v1757_v23 = vpop.f32.mrf.mxu2 }
 0x37c   : > { %v1996_v24 = vpack.c.bf16 %v1961_v36, %v1960_v25  ;;  %v2340_v35 = vmul.f32 0.2, %v2239_v57  ;;  %v1758_v47 = vadd.f32 %v1757_v23, %v1468_v22 }
 0x37e   : > { %v2404_v11 = vmax.f32 %v2239_v57, %v2340_v35  ;;  %2806 = vmatmul.msk.bf16.gmra.mxu3 %vm892_vm2, %v1996_v24  ;;  %v1834_v17 = vadd.f32 %v3732_v4, %v1758_v47 }
 0x380   : > { %v2541_v40 = vsel %vm892_vm2, %v2404_v11, -inf  ;;  %v1898_v48 = vmul.f32 0.2, %v1834_v17 }
 0x381   : > { %v4022_v13 = vmax.f32 %v2540_v27, %v2541_v40  ;;  %v2241_v20 = vpop.f32.mrf.mxu3  ;;  %v1475_v59 = vpop.f32.mrf.mxu1 }
 0x382   : > { %v2242_v52 = vadd.f32 %v4006_v43, %v2241_v20  ;;  %v1962_v27 = vmax.f32 %v1834_v17, %v1898_v48 }
 0x383   : > { %v1759_v50 = vpop.f32.mrf.mxu2 }
 0x384   : > { %v2341_v10 = vmul.f32 0.2, %v2242_v52  ;;  %v1760_v14 = vadd.f32 %v1759_v50, %v1470_v45 }
 0x386   : > { %v2405_v8 = vmax.f32 %v2242_v52, %v2341_v10  ;;  %v1835_v31 = vadd.f32 %v3732_v4, %v1760_v14 }
 0x388   : > { %v4028_v33 = vsel %vm892_vm2, %v2405_v8, -inf  ;;  %v1899_v32 = vmul.f32 0.2, %v1835_v31 }
 0x389   : > { %v2439_v5 = vmax.f32 %v3958_v26, %v4028_v33  ;;  %v2243_v60 = vpop.f32.mrf.mxu3  ;;  %v1478_v53 = vpop.f32.mrf.mxu1 }
 0x38a   : > { %v1963_v21 = vmax.f32 %v1835_v31, %v1899_v32  ;;  %v2244_v61 = vadd.f32 %v4006_v43, %v2243_v60 }
 0x38b   : > { %v1762_v7 = vpop.f32.mrf.mxu2 }
 0x38c   : > { %v1997_v29 = vpack.c.bf16 %v1963_v21, %v1962_v27  ;;  %v2342_v63 = vmul.f32 0.2, %v2244_v61  ;;  %v1763_v56 = vadd.f32 %v1762_v7, %v1473_v54 }
 0x38e   : > { %v2406_v3 = vmax.f32 %v2244_v61, %v2342_v63  ;;  %2807 = vmatmul.msk.bf16.gmra.mxu3 %vm892_vm2, %v1997_v29  ;;  %v1836_v44 = vadd.f32 %v3732_v4, %v1763_v56 }
 0x390   : > { %v4035_v55 = vsel %vm892_vm2, %v2406_v3, -inf  ;;  %v1900_v30 = vmul.f32 0.2, %v1836_v44 }
 0x391   : > { %v2454_v6 = vmax.f32 %v3966_v9, %v4035_v55  ;;  %v2246_v51 = vpop.f32.mrf.mxu3  ;;  %v1480_v47 = vpop.f32.mrf.mxu1 }
 0x392   : > { %v2247_v62 = vadd.f32 %v4006_v43, %v2246_v51  ;;  %v1964_v49 = vmax.f32 %v1836_v44, %v1900_v30 }
 0x393   : > { %v1764_v15 = vpop.f32.mrf.mxu2 }
 0x394   : > { %v2343_v18 = vmul.f32 0.2, %v2247_v62  ;;  %v1765_v16 = vadd.f32 %v1764_v15, %v1475_v59 }
 0x396   : > { %v2407_v22 = vmax.f32 %v2247_v62, %v2343_v18  ;;  %v1837_v2 = vadd.f32 %v3732_v4, %v1765_v16 }
 0x398   : > { %v4043_v41 = vsel %vm892_vm2, %v2407_v22, -inf  ;;  %v1901_v34 = vmul.f32 0.2, %v1837_v2 }
 0x399   : > { %v2469_v37 = vmax.f32 %v3975_v0, %v4043_v41  ;;  %v2248_v12 = vpop.f32.mrf.mxu3 }
 0x39a   : > { %v1965_v19 = vmax.f32 %v1837_v2, %v1901_v34  ;;  %v2249_v1 = vadd.f32 %v4006_v43, %v2248_v12 }
 0x39b   : > { %v1767_v28 = vpop.f32.mrf.mxu2 }
 0x39c   : > { %v1998_v39 = vpack.c.bf16 %v1965_v19, %v1964_v49  ;;  %v2344_v25 = vmul.f32 0.2, %v2249_v1  ;;  %v1768_v57 = vadd.f32 %v1767_v28, %v1478_v53 }
 0x39e   : > { %v2408_v36 = vmax.f32 %v2249_v1, %v2344_v25  ;;  %2808 = vmatmul.msk.bf16.gmra.mxu3 %vm892_vm2, %v1998_v39  ;;  %v1838_v35 = vadd.f32 %v3732_v4, %v1768_v57 }
 0x3a0   : > { %v4050_v45 = vsel %vm892_vm2, %v2408_v36, -inf  ;;  %v1902_v52 = vmul.f32 0.2, %v1838_v35 }
 0x3a1   : > { %v2484_v23 = vmax.f32 %v3983_v38, %v4050_v45  ;;  %v2251_v24 = vpop.f32.mrf.mxu3 }
 0x3a2   : > { %v2252_v11 = vadd.f32 %v4006_v43, %v2251_v24  ;;  %v1966_v31 = vmax.f32 %v1838_v35, %v1902_v52 }
 0x3a3   : > { %v1769_v40 = vpop.f32.mrf.mxu2 }
 0x3a4   : > { %v2345_v20 = vmul.f32 0.2, %v2252_v11  ;;  %v1770_v17 = vadd.f32 %v1769_v40, %v1480_v47 }
 0x3a6   : > { %v2409_v50 = vmax.f32 %v2252_v11, %v2345_v20  ;;  %v1839_v10 = vadd.f32 %v3732_v4, %v1770_v17 }
 0x3a8   : > { %v4058_v14 = vsel %vm892_vm2, %v2409_v50, -inf  ;;  %v1903_v54 = vmul.f32 0.2, %v1839_v10 }
 0x3a9   : > { %v2499_v48 = vmax.f32 %v3992_v42, %v4058_v14  ;;  %v2253_v8 = vpop.f32.mrf.mxu3 }
 0x3aa   : > { %v1967_v32 = vmax.f32 %v1839_v10, %v1903_v54  ;;  %v2254_v60 = vadd.f32 %v4006_v43, %v2253_v8 }
 0x3ac   : > { %v1999_v27 = vpack.c.bf16 %v1967_v32, %v1966_v31  ;;  %v2346_v21 = vmul.f32 0.2, %v2254_v60 }
 0x3ae   : > { %v2410_v61 = vmax.f32 %v2254_v60, %v2346_v21  ;;  %2809 = vmatmul.msk.bf16.gmra.mxu3 %vm892_vm2, %v1999_v27 }
 0x3b0   : > { %v4065_v7 = vsel %vm892_vm2, %v2410_v61, -inf }
 0x3b1   : > { %v2514_v4 = vmax.f32 %v4000_v58, %v4065_v7  ;;  %v2256_v29 = vpop.f32.mrf.mxu3 }
 0x3b2   : > { %v2257_v63 = vadd.f32 %v4006_v43, %v2256_v29 }
 0x3b4   : > { %v2347_v3 = vmul.f32 0.2, %v2257_v63 }
 0x3b6   : > { %v2411_v56 = vmax.f32 %v2257_v63, %v2347_v3 }
 0x3b8   : > { %v4071_v59 = vsel %vm892_vm2, %v2411_v56, -inf }
 0x3b9   : > { %v2529_v51 = vmax.f32 %v4014_v46, %v4071_v59  ;;  %v2258_v44 = vpop.f32.mrf.mxu3 }
 0x3ba   : > { %v2259_v62 = vadd.f32 %v4006_v43, %v2258_v44 }
 0x3bc   : > { %v2348_v15 = vmul.f32 0.2, %v2259_v62 }
 0x3be   : > { %v2412_v18 = vmax.f32 %v2259_v62, %v2348_v15 }
 0x3c0   : > { %v4077_v16 = vsel %vm892_vm2, %v2412_v18, -inf }
 0x3c1   : > { %v2544_v30 = vmax.f32 %v4022_v13, %v4077_v16  ;;  %v2261_v22 = vpop.f32.mrf.mxu3 }
 0x3c2   : > { %v2262_v1 = vadd.f32 %v4006_v43, %v2261_v22 }
 0x3c4   : > { %v2349_v39 = vmul.f32 0.2, %v2262_v1 }
 0x3c6   : > { %v2413_v25 = vmax.f32 %v2262_v1, %v2349_v39 }
 0x3c8   : > { %v2440_v35 = vsel %vm892_vm2, %v2413_v25, -inf }
 0x3c9   : > { %v2263_v2 = vpop.f32.mrf.mxu3  ;;  %v2441_v20 = vmax.f32 %v2439_v5, %v2440_v35 }
 0x3ca   : > { %v2264_v36 = vadd.f32 %v4006_v43, %v2263_v2 }
 0x3cc   : > { %v2350_v11 = vmul.f32 0.2, %v2264_v36 }
 0x3ce   : > { %v2414_v17 = vmax.f32 %v2264_v36, %v2350_v11 }
 0x3d0   : > { %v2455_v26 = vsel %vm892_vm2, %v2414_v17, -inf }
 0x3d1   : > { %v2266_v34 = vpop.f32.mrf.mxu3  ;;  %v2456_v32 = vmax.f32 %v2454_v6, %v2455_v26 }
 0x3d2   : > { %v2267_v52 = vadd.f32 %v4006_v43, %v2266_v34 }
 0x3d4   : > { %v2351_v33 = vmul.f32 0.2, %v2267_v52 }
 0x3d6   : > { %v2415_v60 = vmax.f32 %v2267_v52, %v2351_v33 }
 0x3d8   : > { %v2470_v3 = vsel %vm892_vm2, %v2415_v60, -inf }
 0x3d9   : > { %v2268_v53 = vpop.f32.mrf.mxu3  ;;  %v2471_v9 = vmax.f32 %v2469_v37, %v2470_v3 }
 0x3da   : > { %v2269_v27 = vadd.f32 %v4006_v43, %v2268_v53 }
 0x3dc   : > { %v2352_v56 = vmul.f32 0.2, %v2269_v27 }
 0x3de   : > { %v2416_v55 = vmax.f32 %v2269_v27, %v2352_v56 }
 0x3e0   : > { %v2485_v34 = vsel %vm892_vm2, %v2416_v55, -inf }
 0x3e1   : > { %v2271_v12 = vpop.f32.mrf.mxu3  ;;  %v2486_v0 = vmax.f32 %v2484_v23, %v2485_v34 }
 0x3e2   : > { %v2272_v6 = vadd.f32 %v4006_v43, %v2271_v12 }
 0x3e4   : > { %v2353_v53 = vmul.f32 0.2, %v2272_v6 }
 0x3e6   : > { %v2417_v41 = vmax.f32 %v2272_v6, %v2353_v53 }
 0x3e9   : > { %v2273_v49 = vpop.f32.mrf.mxu3 }
 0x3ea   : > { %v2274_v37 = vadd.f32 %v4006_v43, %v2273_v49 }
 0x3ec   : > { %v2354_v35 = vmul.f32 0.2, %v2274_v37 }
 0x3ee   : > { %v2418_v45 = vmax.f32 %v2274_v37, %v2354_v35 }
 0x3f0   : > { %v2515_v52 = vsel %vm892_vm2, %v2418_v45, -inf }
 0x3f1   : > { %v4081_v19 = vpop.f32.mrf.mxu3  ;;  %v2516_v42 = vmax.f32 %v2514_v4, %v2515_v52 }
 0x3f2   : > { %v2277_v23 = vadd.f32 %v4006_v43, %v4081_v19 }
 0x3f9   : > { %v4084_v28 = vpop.f32.mrf.mxu3 }
 0x401   : > { %v2281_v57 = vpop.f32.mrf.mxu3 }
 0x402   : > { %v2282_v24 = vadd.f32 %v4006_v43, %v2281_v57 }
 0x404   : > { %v2357_v47 = vmul.f32 0.2, %v2282_v24 }
 0x406   : > { %v2421_v40 = vmax.f32 %v2282_v24, %v2357_v47  ;;  %v2500_v24 = vsel %vm892_vm2, %v2417_v41, -inf }
 0x407   : > { %v2501_v38 = vmax.f32 %v2499_v48, %v2500_v24  ;;  %v2279_v48 = vadd.f32 %v4006_v43, %v4084_v28 }
 0x408   : > { %v2442_v50 = vsel %vm892_vm2, %v2421_v40, -inf }
 0x409   : > { %v2443_v10 = vmax.f32 %v2441_v20, %v2442_v50  ;;  %v2283_v54 = vpop.f32.mrf.mxu3  ;;  %v2355_v50 = vmul.f32 0.2, %v2277_v23 }
 0x40a   : > { %v2284_v8 = vadd.f32 %v4006_v43, %v2283_v54 }
 0x40b   : > { %2549 = vst.msk [vmem:[%s4098_s27] sm:$0xff] %vm892_vm2, %v2443_v10  ;;  %v2419_v14 = vmax.f32 %v2277_v23, %v2355_v50 }
 0x40c   : > { %v2358_v5 = vmul.f32 0.2, %v2284_v8 }
 0x40e   : > { %v2422_v31 = vmax.f32 %v2284_v8, %v2358_v5  ;;  %v2530_v5 = vsel %vm892_vm2, %v2419_v14, -inf }
 0x40f   : > { %v2531_v7 = vmax.f32 %v2529_v51, %v2530_v5 }
 0x410   : > { %v2457_v21 = vsel %vm892_vm2, %v2422_v31, -inf  ;;  %v2356_v31 = vmul.f32 0.2, %v2279_v48 }
 0x411   : > { %v2458_v61 = vmax.f32 %v2456_v32, %v2457_v21  ;;  %v2286_v29 = vpop.f32.mrf.mxu3 }
 0x412   : > { %v2287_v63 = vadd.f32 %v4006_v43, %v2286_v29  ;;  %v2420_v4 = vmax.f32 %v2279_v48, %v2356_v31 }
 0x413   : > { %2550 = vst.msk [vmem:[%s4098_s27 + $0x8] sm:$0xff] %vm892_vm2, %v2458_v61 }
 0x414   : > { %v2359_v44 = vmul.f32 0.2, %v2287_v63  ;;  %v2545_v61 = vsel %vm892_vm2, %v2420_v4, -inf }
 0x415   : > { %v2546_v3 = vmax.f32 %v2544_v30, %v2545_v61 }
 0x416   : > { %v2423_v62 = vmax.f32 %v2287_v63, %v2359_v44 }
 0x418   : > { %v2472_v15 = vsel %vm892_vm2, %v2423_v62, -inf }
 0x419   : > { %v2473_v18 = vmax.f32 %v2471_v9, %v2472_v15  ;;  %v2288_v22 = vpop.f32.mrf.mxu3 }
 0x41a   : > { %v2289_v2 = vadd.f32 %v4006_v43, %v2288_v22 }
 0x41b   : > { %2551 = vst.msk [vmem:[%s4098_s27 + $0x10] sm:$0xff] %vm892_vm2, %v2473_v18 }
 0x41c   : > { %v2360_v1 = vmul.f32 0.2, %v2289_v2 }
 0x41e   : > { %v2424_v39 = vmax.f32 %v2289_v2, %v2360_v1 }
 0x420   : > { %v2487_v12 = vsel %vm892_vm2, %v2424_v39, -inf }
 0x421   : > { %v2488_v25 = vmax.f32 %v2486_v0, %v2487_v12  ;;  %v2291_v36 = vpop.f32.mrf.mxu3 }
 0x422   : > { %v2292_v57 = vadd.f32 %v4006_v43, %v2291_v36 }
 0x423   : > { %2552 = vst.msk [vmem:[%s4098_s27 + $0x18] sm:$0xff] %vm892_vm2, %v2488_v25 }
 0x424   : > { %v2361_v11 = vmul.f32 0.2, %v2292_v57 }
 0x426   : > { %v2425_v47 = vmax.f32 %v2292_v57, %v2361_v11 }
 0x428   : > { %v2502_v49 = vsel %vm892_vm2, %v2425_v47, -inf }
 0x429   : > { %v2503_v40 = vmax.f32 %v2501_v38, %v2502_v49  ;;  %v2293_v20 = vpop.f32.mrf.mxu3 }
 0x42a   : > { %v2294_v17 = vadd.f32 %v4006_v43, %v2293_v20 }
 0x42b   : > { %2553 = vst.msk [vmem:[%s4098_s27 + $0x20] sm:$0xff] %vm892_vm2, %v2503_v40 }
 0x42c   : > { %v2362_v10 = vmul.f32 0.2, %v2294_v17 }
 0x42e   : > { %v2426_v54 = vmax.f32 %v2294_v17, %v2362_v10 }
 0x430   : > { %v2517_v19 = vsel %vm892_vm2, %v2426_v54, -inf }
 0x431   : > { %v2518_v8 = vmax.f32 %v2516_v42, %v2517_v19  ;;  %v2296_v26 = vpop.f32.mrf.mxu3 }
 0x432   : > { %v2297_v33 = vadd.f32 %v4006_v43, %v2296_v26 }
 0x433   : > { %2554 = vst.msk [vmem:[%s4098_s27 + $0x28] sm:$0xff] %vm892_vm2, %v2518_v8 }
 0x434   : > { %v2363_v32 = vmul.f32 0.2, %v2297_v33 }
 0x436   : > { %v2427_v58 = vmax.f32 %v2297_v33, %v2363_v32 }
 0x438   : > { %v2532_v28 = vsel %vm892_vm2, %v2427_v58, -inf }
 0x439   : > { %v2533_v60 = vmax.f32 %v2531_v7, %v2532_v28  ;;  %v2298_v27 = vpop.f32.mrf.mxu3 }
 0x43a   : > { %v2299_v21 = vadd.f32 %v4006_v43, %v2298_v27 }
 0x43b   : > { %2555 = vst.msk [vmem:[%s4098_s27 + $0x30] sm:$0xff] %vm892_vm2, %v2533_v60 }
 0x43c   : > { %v2364_v29 = vmul.f32 0.2, %v2299_v21 }
 0x43e   : > { %v2428_v63 = vmax.f32 %v2299_v21, %v2364_v29 }
 0x440   : > { %v2547_v46 = vsel %vm892_vm2, %v2428_v63, -inf }
 0x441   : > { %v2548_v59 = vmax.f32 %v2546_v3, %v2547_v46 }
 0x443   : > { %2556 = vst.msk [vmem:[%s4098_s27 + $0x38] sm:$0xff] %vm892_vm2, %v2548_v59 }
 0x444 PF: > { %s17_s24 = sadd.s32 1, %s2909_s24  }
 0x445   : > { %p14_p4 = scmp.ge.s32.totalorder %s17_s24, 4  }
 0x447   :  { %16 = sbr.rel (!%p14_p4) target bundleno = 1 (0x1), region = 81 }

// kernel: _lambda_.13
= control target key start
LH: loop header
LB: loop body
LE: loop exit
PB: predicated region body
PF: predicated region fallthrough
CT: control target
= control target key end

     0   :  { %s3421_s0 = inlined_call_operand.vmem [shape: f32[2,64,64], index: 0, kind: input, shape index: {}]   ;;  %s3422_s1 = inlined_call_operand.vmem [shape: f32[2,64,64], index: 1, kind: input, shape index: {}]   ;;  %s3423_s2 = inlined_call_operand.vmem [shape: f32[2,64,64], index: 2, kind: input, shape index: {}]   ;;  %s3424_s3 = inlined_call_operand.vmem [shape: bf16[64,128], index: 3, kind: input, shape index: {}]   ;;  %s3425_s4 = inlined_call_operand.vmem [shape: bf16[64,128], index: 4, kind: input, shape index: {}]   ;;  %s3426_s5 = inlined_call_operand.vmem [shape: bf16[64,128], index: 5, kind: input, shape index: {}]   ;;  %s3427_s6 = inlined_call_operand.vmem [shape: f32[1,128], index: 6, kind: input, shape index: {}]   ;;  %s3428_s7 = inlined_call_operand.vmem [shape: bf16[128,128], index: 7, kind: input, shape index: {}]   ;;  %s3429_s8 = inlined_call_operand.vmem [shape: f32[1,128], index: 8, kind: input, shape index: {}]   ;;  %s3430_s9 = inlined_call_operand.vmem [shape: bf16[128,128], index: 9, kind: input, shape index: {}]   ;;  %s3431_s10 = inlined_call_operand.vmem [shape: bf16[128,128], index: 10, kind: input, shape index: {}]   ;;  %s3432_s11 = inlined_call_operand.vmem [shape: bf16[128,128], index: 11, kind: input, shape index: {}]   ;;  %s3433_s12 = inlined_call_operand.vmem [shape: bf16[64,256], index: 12, kind: input, shape index: {}]   ;;  %s3434_s13 = inlined_call_operand.vmem [shape: bf16[128,256], index: 13, kind: input, shape index: {}]   ;;  %s3435_s14 = inlined_call_operand.vmem [shape: f32[1,256], index: 14, kind: input, shape index: {}]   ;;  %s3436_s15 = inlined_call_operand.vmem [shape: bf16[256,128], index: 15, kind: input, shape index: {}]   ;;  %s3437_s16 = inlined_call_operand.vmem [shape: f32[1,128], index: 16, kind: input, shape index: {}]   ;;  %s3438_s17 = inlined_call_operand.vmem [shape: bf16[128,128], index: 17, kind: input, shape index: {}]   ;;  %s3439_s18 = inlined_call_operand.vmem [shape: f32[1,128], index: 18, kind: input, shape index: {}]   ;;  %s3440_s19 = inlined_call_operand.vmem [shape: f32[2,64,128], index: 19, kind: output, shape index: {}]  }
   0x1   :  { %3443 = sst [smem:[#allocation3_spill]] %s3421_s0  ;;  %s2893_s0 = smov 0  }
   0x2   :  { %3444 = sst [smem:[#allocation4_spill]] %s3422_s1 }
   0x3   :  { %3445 = sst [smem:[#allocation5_spill]] %s3423_s2 }
   0x4   :  { %3446 = sst [smem:[#allocation6_spill]] %s3424_s3 }
   0x5 LB: > { %3447 = sst [smem:[#allocation2_spill]] %s2791_s0  ;;  %s2238_s30 = sadd.s32 4294967295, %s2791_s0   ;;  %s2791_s0 = sphi %s2893_s0, %s29_s0  }
   0x6   : > { %p2242_p0 = scmp.ge.s32.totalorder %s2791_s0, 1  ;;  %p557_p1 = scmp.lt.s32.totalorder %s2791_s0, 3 }
   0x8   : > { %p558_p2 = pnand %p2242_p0, %p557_p1 }
   0x9   : > { %s3448_s2 = sld [smem:[#allocation6_spill]] (!%p558_p2)  ;;  %p623_p3 = scmp.lt.s32.totalorder (!%p558_p2), %s2238_s30, 1 }
   0xa   : > { %561 = sbr.rel (%p558_p2) target bundleno = 1569 (0x621), region = 96  ;;  %s3449_s3 = sld [smem:[#allocation4_spill]] (!%p558_p2) }
   0xb   : > { %s3450_s21 = sld [smem:[#allocation3_spill]] (!%p558_p2) }
   0xc   : > { %s3451_s23 = sld [smem:[#allocation5_spill]] (!%p558_p2) }
   0xf   : > { %v2656_v0 = vld [vmem:[%s3425_s4 + $0x18] sm:$0xff]  ;;  %v2655_v3 = vld [vmem:[%s3425_s4 + $0x10] sm:$0xff]  ;;  %s3454_s30 = smov (!%p623_p3, %s2238_s30), 1  ;;  %v2654_v6 = vld [vmem:[%s3425_s4 + $0x8] sm:$0xff]  ;;  %vm720_vm0 = vcmask 523264  }
  0x10   : > { %v2652_v1 = vld [vmem:[%s3448_s2 + $0x18] sm:$0xff]  ;;  %737 = vmatpush.bf16.msra.mxu0 %v2656_v0  ;;  %v2651_v4 = vld [vmem:[%s3448_s2 + $0x10] sm:$0xff]  ;;  %s2919_s20 = sshll.u32 %s3454_s30, 6  ;;  %v2650_v7 = vld [vmem:[%s3448_s2 + $0x8] sm:$0xff] }
  0x11   : > { %v2660_v2 = vld [vmem:[%s3426_s5 + $0x18] sm:$0xff]  ;;  %802 = vmatpush.bf16.msra.mxu1 %v2652_v1  ;;  %v2659_v5 = vld [vmem:[%s3426_s5 + $0x10] sm:$0xff]  ;;  %s2931_s26 = scalar_lea.vmem %s3449_s3, %s2919_s20  ;;  %v2658_v8 = vld [vmem:[%s3426_s5 + $0x8] sm:$0xff]  ;;  %s2940_s1 = scalar_lea.vmem %s3450_s21, %s2919_s20 }
  0x12   : > { %875 = vmatpush.bf16.msra.mxu2 %v2660_v2  ;;  %s2946_s24 = scalar_lea.vmem %s3451_s23, %s2919_s20  ;;  %v2653_v9 = vld [vmem:[%s3425_s4] sm:$0xff]  ;;  %v657_v12 = vld [vmem:[%s2931_s26 + $0x8] sm:$0xff]  ;;  %v658_v21 = vld [vmem:[%s2931_s26 + $0x10] sm:$0xff]  ;;  %s642_s28 = scalar_lea.vmem %s3440_s19, %s2919_s20 }
  0x13   : > { %v2649_v10 = vld [vmem:[%s3448_s2] sm:$0xff]  ;;  %v645_v14 = vld [vmem:[%s2940_s1 + $0x8] sm:$0xff]  ;;  %v659_v22 = vld [vmem:[%s2931_s26 + $0x18] sm:$0xff] }
  0x14   : > { %738 = vmatpush.bf16.msra.mxu0 %v2655_v3  ;;  %v656_v11 = vld [vmem:[%s2931_s26] sm:$0xff]  ;;  %v669_v17 = vld [vmem:[%s2946_s24 + $0x8] sm:$0xff]  ;;  %v646_v23 = vld [vmem:[%s2940_s1 + $0x10] sm:$0xff]  ;;  %v665_v27 = vpack.c.bf16 %v659_v22, %v658_v21 }
  0x15   : > { %803 = vmatpush.bf16.msra.mxu1 %v2651_v4  ;;  %v644_v13 = vld [vmem:[%s2940_s1] sm:$0xff]  ;;  %v664_v18 = vpack.c.bf16 %v657_v12, %v656_v11  ;;  %v647_v24 = vld [vmem:[%s2940_s1 + $0x18] sm:$0xff]  ;;  %v670_v25 = vld [vmem:[%s2946_s24 + $0x10] sm:$0xff] }
  0x16   : > { %876 = vmatpush.bf16.msra.mxu2 %v2659_v5  ;;  %v2657_v15 = vld [vmem:[%s3426_s5] sm:$0xff]  ;;  %v2963_v19 = vpack.c.bf16 %v645_v14, %v644_v13  ;;  %v671_v26 = vld [vmem:[%s2946_s24 + $0x18] sm:$0xff]  ;;  %v2975_v28 = vpack.c.bf16 %v647_v24, %v646_v23  ;;  %v2667_v31 = vld [vmem:[%s3428_s7 + $0x30] sm:$0xff] }
  0x17   : > { %v668_v16 = vld [vmem:[%s2946_s24] sm:$0xff]  ;;  %v677_v29 = vpack.c.bf16 %v671_v26, %v670_v25  ;;  %v2668_v30 = vld [vmem:[%s3428_s7 + $0x38] sm:$0xff]  ;;  %v661_v33 = vld [vmem:[%s2931_s26 + $0x28] sm:$0xff] }
  0x18   : > { %739 = vmatpush.bf16.msra.mxu0 %v2654_v6  ;;  %v676_v20 = vpack.c.bf16 %v669_v17, %v668_v16  ;;  %1008 = vmatpush.bf16.msra.mxu3 %v2668_v30  ;;  %v660_v32 = vld [vmem:[%s2931_s26 + $0x20] sm:$0xff]  ;;  %v649_v35 = vld [vmem:[%s2940_s1 + $0x28] sm:$0xff]  ;;  %v662_v41 = vld [vmem:[%s2931_s26 + $0x30] sm:$0xff] }
  0x19   : > { %804 = vmatpush.bf16.msra.mxu1 %v2650_v7  ;;  %v648_v34 = vld [vmem:[%s2940_s1 + $0x20] sm:$0xff]  ;;  %v673_v37 = vld [vmem:[%s2946_s24 + $0x28] sm:$0xff]  ;;  %v666_v38 = vpack.c.bf16 %v661_v33, %v660_v32  ;;  %v663_v42 = vld [vmem:[%s2931_s26 + $0x38] sm:$0xff] }
  0x1a   : > { %877 = vmatpush.bf16.msra.mxu2 %v2658_v8  ;;  %v672_v36 = vld [vmem:[%s2946_s24 + $0x20] sm:$0xff]  ;;  %v2993_v39 = vpack.c.bf16 %v649_v35, %v648_v34  ;;  %v650_v43 = vld [vmem:[%s2940_s1 + $0x30] sm:$0xff]  ;;  %v651_v44 = vld [vmem:[%s2940_s1 + $0x38] sm:$0xff]  ;;  %v667_v47 = vpack.c.bf16 %v663_v42, %v662_v41 }
  0x1b   : > { %v678_v40 = vpack.c.bf16 %v673_v37, %v672_v36  ;;  %v674_v45 = vld [vmem:[%s2946_s24 + $0x30] sm:$0xff]  ;;  %v675_v46 = vld [vmem:[%s2946_s24 + $0x38] sm:$0xff]  ;;  %v3005_v48 = vpack.c.bf16 %v651_v44, %v650_v43  ;;  %v2666_v50 = vld [vmem:[%s3428_s7 + $0x28] sm:$0xff] }
  0x1c   : > { %740 = vmatpush.bf16.msra.mxu0 %v2653_v9  ;;  %1009 = vmatpush.bf16.msra.mxu3 %v2667_v31  ;;  %v679_v49 = vpack.c.bf16 %v675_v46, %v674_v45  ;;  %v2665_v51 = vld [vmem:[%s3428_s7 + $0x20] sm:$0xff]  ;;  %v2664_v52 = vld [vmem:[%s3428_s7 + $0x18] sm:$0xff]  ;;  %v2663_v53 = vld [vmem:[%s3428_s7 + $0x10] sm:$0xff] }
  0x1d   : > { %805 = vmatpush.bf16.msra.mxu1 %v2649_v10  ;;  %v2662_v54 = vld [vmem:[%s3428_s7 + $0x8] sm:$0xff]  ;;  %v2661_v55 = vld [vmem:[%s3428_s7] sm:$0xff]  ;;  %v2676_v36 = vld [vmem:[%s3430_s9 + $0x38] sm:$0xff] }
  0x1e   : > { %878 = vmatpush.bf16.msra.mxu2 %v2657_v15  ;;  %v3032_v63 = vld [vmem:[%s3427_s6] ss:$0 sm:$0xff]  ;;  %v2684_v37 = vld [vmem:[%s3431_s10 + $0x38] sm:$0xff]  ;;  %v2683_v41 = vld [vmem:[%s3431_s10 + $0x30] sm:$0xff] }
  0x1f   : > { %2267 = vmatmul.msk.bf16.vlgmr.msra.gmra.mxu0 %vm720_vm0, %v664_v18  ;;  %v2691_v42 = vld [vmem:[%s3432_s11 + $0x30] sm:$0xff] }
  0x20   : > { %2287 = vmatmul.msk.bf16.vlgmr.msra.gmra.mxu1 %vm720_vm0, %v2963_v19  ;;  %1010 = vmatpush.bf16.msra.mxu3 %v2666_v50 }
  0x21   : > { %2307 = vmatmul.msk.bf16.vlgmr.msra.gmra.mxu2 %vm720_vm0, %v676_v20  ;;  %1121 = vmatpush.bf16.msrb.mxu0 %v2676_v36 }
  0x22   : > { %1214 = vmatpush.bf16.msrb.mxu1 %v2684_v37 }
  0x24   : > { %1011 = vmatpush.bf16.msra.mxu3 %v2665_v51 }
  0x26   : > { %1215 = vmatpush.bf16.msrb.mxu1 %v2683_v41 }
  0x28   : > { %1012 = vmatpush.bf16.msra.mxu3 %v2664_v52  ;;  %v2690_v52 = vld [vmem:[%s3432_s11 + $0x28] sm:$0xff] }
  0x2c   : > { %1013 = vmatpush.bf16.msra.mxu3 %v2663_v53 }
  0x2f   : > { %2268 = vmatmul.msk.bf16.gmra.mxu0 %vm720_vm0, %v665_v27 }
  0x30   : > { %2288 = vmatmul.msk.bf16.gmra.mxu1 %vm720_vm0, %v2975_v28  ;;  %1014 = vmatpush.bf16.msra.mxu3 %v2662_v54 }
  0x31   : > { %2308 = vmatmul.msk.bf16.gmra.mxu2 %vm720_vm0, %v677_v29 }
  0x34   : > { %1015 = vmatpush.bf16.msra.mxu3 %v2661_v55 }
  0x3f   : > { %2269 = vmatmul.msk.bf16.gmra.mxu0 %vm720_vm0, %v666_v38  ;;  %v2692_v38 = vld [vmem:[%s3432_s11 + $0x38] sm:$0xff] }
  0x40   : > { %2289 = vmatmul.msk.bf16.gmra.mxu1 %vm720_vm0, %v2993_v39  ;;  %1307 = vmatpush.bf16.msrb.mxu2 %v2692_v38 }
  0x41   : > { %2309 = vmatmul.msk.bf16.gmra.mxu2 %vm720_vm0, %v678_v40  ;;  %v2675_v40 = vld [vmem:[%s3430_s9 + $0x30] sm:$0xff] }
  0x42   : > { %1122 = vmatpush.bf16.msrb.mxu0 %v2675_v40 }
  0x44   : > { %1308 = vmatpush.bf16.msrb.mxu2 %v2691_v42 }
  0x48   : > { %1309 = vmatpush.bf16.msrb.mxu2 %v2690_v52 }
  0x4f   : > { %2270 = vmatmul.msk.bf16.gmra.mxu0 %vm720_vm0, %v667_v47  ;;  %v2674_v47 = vld [vmem:[%s3430_s9 + $0x28] sm:$0xff] }
  0x50   : > { %2290 = vmatmul.msk.bf16.gmra.mxu1 %vm720_vm0, %v3005_v48  ;;  %1123 = vmatpush.bf16.msrb.mxu0 %v2674_v47 }
  0x51   : > { %2310 = vmatmul.msk.bf16.gmra.mxu2 %vm720_vm0, %v679_v49  ;;  %v2682_v49 = vld [vmem:[%s3431_s10 + $0x28] sm:$0xff] }
  0x52   : > { %1216 = vmatpush.bf16.msrb.mxu1 %v2682_v49 }
  0x9c   : > { %v742_v56 = vpop.f32.mrf.mxu0 }
  0x9d   : > { %v807_v57 = vpop.f32.mrf.mxu1 }
  0x9e   : > { %v808_v58 = vadd.f32 %v807_v57, %v742_v56  ;;  %v2673_v56 = vld [vmem:[%s3430_s9 + $0x20] sm:$0xff] }
  0x9f   : > { %v2681_v57 = vld [vmem:[%s3431_s10 + $0x20] sm:$0xff]  ;;  %1124 = vmatpush.bf16.msrb.mxu0 %v2673_v56 }
  0xa0   : > { %1217 = vmatpush.bf16.msrb.mxu1 %v2681_v57 }
  0xa4   : > { %v880_v59 = vpop.f32.mrf.mxu2  ;;  %v744_v60 = vpop.f32.mrf.mxu0 }
  0xa5   : > { %v809_v61 = vpop.f32.mrf.mxu1  ;;  %v900_v62 = vadd.f32 %v880_v59, %v808_v58  ;;  %v2689_v58 = vld [vmem:[%s3432_s11 + $0x20] sm:$0xff] }
  0xa6   : > { %v810_v1 = vadd.f32 %v809_v61, %v744_v60  ;;  %1310 = vmatpush.bf16.msrb.mxu2 %v2689_v58 }
  0xa7   : > { %v912_v0 = vadd.f32 %v3032_v63, %v900_v62 }
  0xa9   : > { %v920_v6 = vmul.f32 0.2, %v912_v0 }
  0xab   : > { %v928_v10 = vmax.f32 %v912_v0, %v920_v6 }
  0xac   : > { %v882_v2 = vpop.f32.mrf.mxu2  ;;  %v747_v4 = vpop.f32.mrf.mxu0 }
  0xad   : > { %v901_v3 = vadd.f32 %v882_v2, %v810_v1  ;;  %v812_v5 = vpop.f32.mrf.mxu1 }
  0xae   : > { %v813_v9 = vadd.f32 %v812_v5, %v747_v4 }
  0xaf   : > { %v913_v7 = vadd.f32 %v3032_v63, %v901_v3 }
  0xb1   : > { %v921_v8 = vmul.f32 0.2, %v913_v7 }
  0xb3   : > { %v929_v11 = vmax.f32 %v913_v7, %v921_v8 }
  0xb4   : > { %v885_v12 = vpop.f32.mrf.mxu2  ;;  %v749_v13 = vpop.f32.mrf.mxu0 }
  0xb5   : > { %v814_v14 = vpop.f32.mrf.mxu1  ;;  %v936_v15 = vpack.c.bf16 %v929_v11, %v928_v10  ;;  %v902_v16 = vadd.f32 %v885_v12, %v813_v9 }
  0xb6   : > { %v815_v18 = vadd.f32 %v814_v14, %v749_v13  ;;  %v2672_v14 = vld [vmem:[%s3430_s9 + $0x18] sm:$0xff] }
  0xb7   : > { %1016 = vmatmul.bf16.vlgmr.msra.gmra.mxu3 %v936_v15  ;;  %v914_v17 = vadd.f32 %v3032_v63, %v902_v16  ;;  %v2680_v15 = vld [vmem:[%s3431_s10 + $0x18] sm:$0xff]  ;;  %1125 = vmatpush.bf16.msrb.mxu0 %v2672_v14 }
  0xb8   : > { %v2688_v16 = vld [vmem:[%s3432_s11 + $0x18] sm:$0xff]  ;;  %1218 = vmatpush.bf16.msrb.mxu1 %v2680_v15 }
  0xb9   : > { %v922_v24 = vmul.f32 0.2, %v914_v17  ;;  %1311 = vmatpush.bf16.msrb.mxu2 %v2688_v16 }
  0xbb   : > { %v930_v29 = vmax.f32 %v914_v17, %v922_v24  ;;  %v2679_v17 = vld [vmem:[%s3431_s10 + $0x10] sm:$0xff]  ;;  %v2677_v24 = vld [vmem:[%s3431_s10] sm:$0xff] }
  0xbc   : > { %v887_v20 = vpop.f32.mrf.mxu2  ;;  %v752_v22 = vpop.f32.mrf.mxu0  ;;  %1219 = vmatpush.bf16.msrb.mxu1 %v2679_v17 }
  0xbd   : > { %v903_v21 = vadd.f32 %v887_v20, %v815_v18  ;;  %v817_v23 = vpop.f32.mrf.mxu1  ;;  %v2687_v18 = vld [vmem:[%s3432_s11 + $0x10] sm:$0xff]  ;;  %v2670_v20 = vld [vmem:[%s3430_s9 + $0x8] sm:$0xff] }
  0xbe   : > { %v818_v27 = vadd.f32 %v817_v23, %v752_v22  ;;  %1312 = vmatpush.bf16.msrb.mxu2 %v2687_v18  ;;  %v2686_v22 = vld [vmem:[%s3432_s11 + $0x8] sm:$0xff]  ;;  %v2669_v23 = vld [vmem:[%s3430_s9] sm:$0xff] }
  0xbf   : > { %v915_v25 = vadd.f32 %v3032_v63, %v903_v21  ;;  %v2678_v21 = vld [vmem:[%s3431_s10 + $0x8] sm:$0xff] }
  0xc0   : > { %1220 = vmatpush.bf16.msrb.mxu1 %v2678_v21 }
  0xc1   : > { %v923_v26 = vmul.f32 0.2, %v915_v25 }
  0xc2   : > { %1313 = vmatpush.bf16.msrb.mxu2 %v2686_v22 }
  0xc3   : > { %v931_v30 = vmax.f32 %v915_v25, %v923_v26  ;;  %v2685_v25 = vld [vmem:[%s3432_s11] sm:$0xff] }
  0xc4   : > { %v890_v31 = vpop.f32.mrf.mxu2  ;;  %v754_v32 = vpop.f32.mrf.mxu0  ;;  %1221 = vmatpush.bf16.msrb.mxu1 %v2677_v24 }
  0xc5   : > { %v819_v33 = vpop.f32.mrf.mxu1  ;;  %v937_v34 = vpack.c.bf16 %v931_v30, %v930_v29  ;;  %v904_v35 = vadd.f32 %v890_v31, %v818_v27  ;;  %v2750_v27 = vld [vmem:[%s3429_s8] ss:$0 sm:$0xff] }
  0xc6   : > { %v820_v44 = vadd.f32 %v819_v33, %v754_v32  ;;  %1314 = vmatpush.bf16.msrb.mxu2 %v2685_v25 }
  0xc7   : > { %1021 = vmatmul.bf16.gmra.mxu3 %v937_v34  ;;  %v916_v43 = vadd.f32 %v3032_v63, %v904_v35 }
  0xc9   : > { %v924_v53 = vmul.f32 0.2, %v916_v43 }
  0xcb   : > { %v932_v60 = vmax.f32 %v916_v43, %v924_v53 }
  0xcc   : > { %v892_v45 = vpop.f32.mrf.mxu2  ;;  %v757_v50 = vpop.f32.mrf.mxu0 }
  0xcd   : > { %v905_v46 = vadd.f32 %v892_v45, %v820_v44  ;;  %v822_v51 = vpop.f32.mrf.mxu1 }
  0xce   : > { %v823_v59 = vadd.f32 %v822_v51, %v757_v50 }
  0xcf   : > { %v917_v54 = vadd.f32 %v3032_v63, %v905_v46 }
  0xd1   : > { %v925_v55 = vmul.f32 0.2, %v917_v54 }
  0xd3   : > { %v933_v61 = vmax.f32 %v917_v54, %v925_v55 }
  0xd4   : > { %v895_v62 = vpop.f32.mrf.mxu2  ;;  %v759_v2 = vpop.f32.mrf.mxu0 }
  0xd5   : > { %v938_v0 = vpack.c.bf16 %v933_v61, %v932_v60  ;;  %v906_v1 = vadd.f32 %v895_v62, %v823_v59  ;;  %v824_v3 = vpop.f32.mrf.mxu1 }
  0xd6   : > { %v825_v5 = vadd.f32 %v824_v3, %v759_v2 }
  0xd7   : > { %1026 = vmatmul.bf16.gmra.mxu3 %v938_v0  ;;  %v918_v4 = vadd.f32 %v3032_v63, %v906_v1 }
  0xd9   : > { %v926_v8 = vmul.f32 0.2, %v918_v4 }
  0xdb   : > { %v934_v11 = vmax.f32 %v918_v4, %v926_v8 }
  0xdc   : > { %v897_v6 = vpop.f32.mrf.mxu2 }
  0xdd   : > { %v907_v7 = vadd.f32 %v897_v6, %v825_v5 }
  0xdf   : > { %v919_v9 = vadd.f32 %v3032_v63, %v907_v7  ;;  %v2671_v63 = vld [vmem:[%s3430_s9 + $0x10] sm:$0xff] }
  0xe0   : > { %1126 = vmatpush.bf16.msrb.mxu0 %v2671_v63 }
  0xe1   : > { %v927_v10 = vmul.f32 0.2, %v919_v9 }
  0xe3   : > { %v935_v12 = vmax.f32 %v919_v9, %v927_v10 }
  0xe4   : > { %1127 = vmatpush.bf16.msrb.mxu0 %v2670_v20 }
  0xe5   : > { %v939_v13 = vpack.c.bf16 %v935_v12, %v934_v11 }
  0xe7   : > { %1031 = vmatmul.bf16.gmra.mxu3 %v939_v13 }
  0xe8   : > { %1128 = vmatpush.bf16.msrb.mxu0 %v2669_v23 }
 0x13a   : > { %v1017_v26 = vpop.f32.mrf.mxu3 }
 0x13b   : > { %v1018_v29 = vadd.f32 %v2750_v27, %v1017_v26 }
 0x13d   : > { %v1037_v31 = vmul.f32 0.2, %v1018_v29 }
 0x13f   : > { %v1045_v34 = vmax.f32 %v1018_v29, %v1037_v31 }
 0x142   : > { %v1019_v30 = vpop.f32.mrf.mxu3 }
 0x143   : > { %v1020_v32 = vadd.f32 %v2750_v27, %v1019_v30 }
 0x145   : > { %v1038_v33 = vmul.f32 0.2, %v1020_v32 }
 0x147   : > { %v1046_v35 = vmax.f32 %v1020_v32, %v1038_v33 }
 0x149   : > { %v1053_v36 = vpack.c.bf16 %v1046_v35, %v1045_v34 }
 0x14a   : > { %v1022_v37 = vpop.f32.mrf.mxu3 }
 0x14b   : > { %1129 = vmatmul.bf16.vlgmr.msrb.gmra.mxu0 %v1053_v36  ;;  %1222 = vmatmul.bf16.vlgmr.msrb.gmra.mxu1 %v1053_v36  ;;  %v1023_v38 = vadd.f32 %v2750_v27, %v1022_v37 }
 0x14c   : > { %1315 = vmatmul.bf16.vlgmr.msrb.gmra.mxu2 %v1053_v36 }
 0x14d   : > { %v1039_v41 = vmul.f32 0.2, %v1023_v38 }
 0x14f   : > { %v1047_v44 = vmax.f32 %v1023_v38, %v1039_v41 }
 0x152   : > { %v1024_v40 = vpop.f32.mrf.mxu3 }
 0x153   : > { %v1025_v42 = vadd.f32 %v2750_v27, %v1024_v40 }
 0x155   : > { %v1040_v43 = vmul.f32 0.2, %v1025_v42 }
 0x157   : > { %v1048_v45 = vmax.f32 %v1025_v42, %v1040_v43 }
 0x159   : > { %v1054_v46 = vpack.c.bf16 %v1048_v45, %v1047_v44 }
 0x15a   : > { %v1027_v47 = vpop.f32.mrf.mxu3 }
 0x15b   : > { %1134 = vmatmul.bf16.gmra.mxu0 %v1054_v46  ;;  %1227 = vmatmul.bf16.gmra.mxu1 %v1054_v46  ;;  %v1028_v49 = vadd.f32 %v2750_v27, %v1027_v47 }
 0x15c   : > { %1320 = vmatmul.bf16.gmra.mxu2 %v1054_v46 }
 0x15d   : > { %v1041_v51 = vmul.f32 0.2, %v1028_v49 }
 0x15f   : > { %v1049_v54 = vmax.f32 %v1028_v49, %v1041_v51 }
 0x162   : > { %v1029_v50 = vpop.f32.mrf.mxu3 }
 0x163   : > { %v1030_v52 = vadd.f32 %v2750_v27, %v1029_v50 }
 0x165   : > { %v1042_v53 = vmul.f32 0.2, %v1030_v52 }
 0x167   : > { %v1050_v55 = vmax.f32 %v1030_v52, %v1042_v53 }
 0x169   : > { %v1055_v56 = vpack.c.bf16 %v1050_v55, %v1049_v54 }
 0x16a   : > { %v1032_v57 = vpop.f32.mrf.mxu3 }
 0x16b   : > { %1139 = vmatmul.bf16.gmra.mxu0 %v1055_v56  ;;  %1232 = vmatmul.bf16.gmra.mxu1 %v1055_v56  ;;  %v1033_v58 = vadd.f32 %v2750_v27, %v1032_v57 }
 0x16c   : > { %1325 = vmatmul.bf16.gmra.mxu2 %v1055_v56 }
 0x16d   : > { %v1043_v60 = vmul.f32 0.2, %v1033_v58 }
 0x16f   : > { %v1051_v0 = vmax.f32 %v1033_v58, %v1043_v60 }
 0x172   : > { %v1034_v59 = vpop.f32.mrf.mxu3 }
 0x173   : > { %v1035_v61 = vadd.f32 %v2750_v27, %v1034_v59 }
 0x175   : > { %v1044_v62 = vmul.f32 0.2, %v1035_v61 }
 0x177   : > { %v1052_v1 = vmax.f32 %v1035_v61, %v1044_v62 }
 0x179   : > { %v1056_v2 = vpack.c.bf16 %v1052_v1, %v1051_v0 }
 0x17b   : > { %1144 = vmatmul.bf16.gmra.mxu0 %v1056_v2  ;;  %1237 = vmatmul.bf16.gmra.mxu1 %v1056_v2 }
 0x17c   : > { %1330 = vmatmul.bf16.gmra.mxu2 %v1056_v2 }
 0x1c8   : > { %v1223_v3 = vpop.f32.mrf.mxu1  ;;  %v1130_v20 = vpop.f32.mrf.mxu0 }
 0x1cf   : > { %v1316_v4 = vpop.f32.mrf.mxu2 }
 0x1d0   : > { %v1225_v5 = vpop.f32.mrf.mxu1  ;;  %v1132_v26 = vpop.f32.mrf.mxu0 }
 0x1d1   : > { %v1340_v6 = vpack.c.bf16 %v1225_v5, %v1223_v3  ;;  %v1336_v31 = vpack.c.bf16 %v1132_v26, %v1130_v20 }
 0x1d7   : > { %v1318_v7 = vpop.f32.mrf.mxu2 }
 0x1d8   : > { %v1228_v8 = vpop.f32.mrf.mxu1  ;;  %v1473_v29 = vpack.c.bf16 %v1318_v7, %v1316_v4  ;;  %v1135_v30 = vpop.f32.mrf.mxu0 }
 0x1df   : > { %v1321_v9 = vpop.f32.mrf.mxu2 }
 0x1e0   : > { %v1230_v10 = vpop.f32.mrf.mxu1  ;;  %v1137_v32 = vpop.f32.mrf.mxu0 }
 0x1e1   : > { %v1341_v27 = vpack.c.bf16 %v1230_v10, %v1228_v8  ;;  %v1337_v34 = vpack.c.bf16 %v1137_v32, %v1135_v30 }
 0x1e7   : > { %v1323_v11 = vpop.f32.mrf.mxu2 }
 0x1e8   : > { %v1233_v12 = vpop.f32.mrf.mxu1  ;;  %v1474_v25 = vpack.c.bf16 %v1323_v11, %v1321_v9  ;;  %v1140_v33 = vpop.f32.mrf.mxu0 }
 0x1ef   : > { %v1326_v13 = vpop.f32.mrf.mxu2 }
 0x1f0   : > { %v1235_v14 = vpop.f32.mrf.mxu1  ;;  %v1142_v35 = vpop.f32.mrf.mxu0 }
 0x1f1   : > { %v1342_v23 = vpack.c.bf16 %v1235_v14, %v1233_v12  ;;  %v1338_v36 = vpack.c.bf16 %v1142_v35, %v1140_v33 }
 0x1f7   : > { %v1328_v15 = vpop.f32.mrf.mxu2 }
 0x1f8   : > { %v1238_v16 = vpop.f32.mrf.mxu1  ;;  %v1475_v24 = vpack.c.bf16 %v1328_v15, %v1326_v13  ;;  %v1145_v37 = vpop.f32.mrf.mxu0 }
 0x1ff   : > { %v1331_v63 = vpop.f32.mrf.mxu2 }
 0x200   : > { %v1240_v17 = vpop.f32.mrf.mxu1  ;;  %v1147_v38 = vpop.f32.mrf.mxu0 }
 0x201   : > { %v1343_v18 = vpack.c.bf16 %v1240_v17, %v1238_v16  ;;  %v1339_v40 = vpack.c.bf16 %v1147_v38, %v1145_v37 }
 0x203   : > { %1348 = vmatpush.bf16.xpose.msrb.mxu3 %v1343_v18 }
 0x207   : > { %v1333_v21 = vpop.f32.mrf.mxu2 }
 0x208   : > { %v1476_v22 = vpack.c.bf16 %v1333_v21, %v1331_v63 }
 0x20a   : > { %1493 = vmatpush.bf16.msra.mxu0 %v1476_v22 }
 0x20b   : > { %1349 = vmatpush.bf16.xpose.msrb.mxu3 %v1342_v23 }
 0x20e   : > { %1494 = vmatpush.bf16.msra.mxu0 %v1475_v24 }
 0x212   : > { %1495 = vmatpush.bf16.msra.mxu0 %v1474_v25 }
 0x213   : > { %1350 = vmatpush.bf16.xpose.msrb.mxu3 %v1341_v27 }
 0x216   : > { %1496 = vmatpush.bf16.msra.mxu0 %v1473_v29 }
 0x21b   : > { %1351 = vmatpush.bf16.xpose.msrb.mxu3 %v1340_v6 }
 0x222   : > { %1352 = vmatmul.bf16.vlgmr.msrb.gmra.mxu3 %v1336_v31 }
 0x232   : > { %1357 = vmatmul.bf16.gmra.mxu3 %v1337_v34 }
 0x242   : > { %1362 = vmatmul.bf16.gmra.mxu3 %v1338_v36 }
 0x252   : > { %1367 = vmatmul.bf16.gmra.mxu3 %v1339_v40 }
 0x2a5   : > { %v1353_v41 = vpop.f32.mrf.mxu3 }
 0x2a6   : > { %v1373_v42 = vmul.f32 0.088388346, %v1353_v41 }
 0x2a8   : > { %v1381_v43 = vsel %vm720_vm0, %v1373_v42, -inf }
 0x2a9   : > { %1382 = vmax.xlane.f32.xlu0 %v1381_v43 }
 0x2ad   : > { %v1355_v44 = vpop.f32.mrf.mxu3 }
 0x2ae   : > { %v1374_v45 = vmul.f32 0.088388346, %v1355_v44 }
 0x2b0   : > { %v1384_v46 = vsel %vm720_vm0, %v1374_v45, -inf }
 0x2b1   : > { %1385 = vmax.xlane.f32.xlu0 %v1384_v46 }
 0x2b5   : > { %v1358_v47 = vpop.f32.mrf.mxu3 }
 0x2b6   : > { %v1375_v49 = vmul.f32 0.088388346, %v1358_v47 }
 0x2b8   : > { %v1387_v50 = vsel %vm720_vm0, %v1375_v49, -inf }
 0x2b9   : > { %1388 = vmax.xlane.f32.xlu1 %v1387_v50 }
 0x2bd   : > { %v1360_v51 = vpop.f32.mrf.mxu3 }
 0x2be   : > { %v1376_v52 = vmul.f32 0.088388346, %v1360_v51 }
 0x2c0   : > { %v1390_v53 = vsel %vm720_vm0, %v1376_v52, -inf }
 0x2c1   : > { %1391 = vmax.xlane.f32.xlu1 %v1390_v53 }
 0x2c5   : > { %v1363_v54 = vpop.f32.mrf.mxu3 }
 0x2c6   : > { %v1377_v55 = vmul.f32 0.088388346, %v1363_v54 }
 0x2c8   : > { %v1393_v56 = vsel %vm720_vm0, %v1377_v55, -inf }
 0x2c9   : > { %1394 = vmax.xlane.f32.xlu2 %v1393_v56 }
 0x2cd   : > { %v1365_v57 = vpop.f32.mrf.mxu3 }
 0x2ce   : > { %v1378_v58 = vmul.f32 0.088388346, %v1365_v57 }
 0x2d0   : > { %v1396_v59 = vsel %vm720_vm0, %v1378_v58, -inf }
 0x2d1   : > { %1397 = vmax.xlane.f32.xlu2 %v1396_v59 }
 0x2d5   : > { %v1368_v60 = vpop.f32.mrf.mxu3 }
 0x2d6   : > { %v1379_v61 = vmul.f32 0.088388346, %v1368_v60 }
 0x2d8   : > { %v1399_v62 = vsel %vm720_vm0, %v1379_v61, -inf }
 0x2d9   : > { %1400 = vmax.xlane.f32.xlu0 %v1399_v62  ;;  %v2716_v62 = vld [vmem:[%s3434_s13 + $0x74] sm:$0xf0] }
 0x2dd   : > { %v1370_v0 = vpop.f32.mrf.mxu3 }
 0x2de   : > { %v1380_v1 = vmul.f32 0.088388346, %v1370_v0  ;;  %v2715_v0 = vld [vmem:[%s3434_s13 + $0x74] sm:$0xf] }
 0x2e0   : > { %v1402_v2 = vsel %vm720_vm0, %v1380_v1, -inf }
 0x2e1   : > { %1403 = vmax.xlane.f32.xlu1 %v1402_v2  ;;  %v2503_v2 = vld [vmem:[%s3434_s13 + $0x78] sm:$0xf0] }
 0x31c   : > { %v1383_v3 = vpop.xlane.xlu0 %1382 }
 0x31d   : > { %v1405_v4 = vsub.f32 %v1373_v42, %v1383_v3  ;;  %v2493_v3 = vld [vmem:[%s3434_s13 + $0x60] sm:$0xf] }
 0x31f   : > { %v1413_v5 = vmul.f32 1.442695, %v1405_v4  ;;  %v2714_v4 = vld [vmem:[%s3434_s13 + $0x64] sm:$0xf0] }
 0x321   : > { %2753 = vpow2.f32 %v1413_v5  ;;  %v2506_v5 = vor.u32 %v2715_v0, %v2503_v2  ;;  %v2463_v0 = vld [vmem:[%s3434_s13 + $0x28] sm:$0xf0]  ;;  %v2509_v2 = vld [vmem:[%s3433_s12] sm:$0xf] }
 0x323   : > { %1655 = vmatpush.bf16.msra.mxu2 %v2506_v5 }
 0x324   : > { %v1386_v6 = vpop.xlane.xlu0 %1385 }
 0x325   : > { %v1406_v7 = vsub.f32 %v1374_v45, %v1386_v6  ;;  %v2713_v6 = vld [vmem:[%s3434_s13 + $0x64] sm:$0xf] }
 0x327   : > { %v2754_v8 = vpop.eup %2753  ;;  %v1415_v9 = vmul.f32 1.442695, %v1406_v7  ;;  %v2495_v7 = vld [vmem:[%s3434_s13 + $0x68] sm:$0xf0] }
 0x328   : > { %v1429_v10 = vsel %vm720_vm0, %v2754_v8, 0.0 }
 0x329   : > { %2755 = vpow2.f32 %v1415_v9  ;;  %1430 = vadd.xlane.f32.xlu2 %v1429_v10  ;;  %v2494_v9 = vor.u32 %v2714_v4, %v2493_v3  ;;  %v2700_v10 = vld [vmem:[%s3433_s12 + $0x34] sm:$0xf0]  ;;  %v2694_v3 = vld [vmem:[%s3433_s12 + $0x4] sm:$0xf0]  ;;  %v2453_v4 = vld [vmem:[%s3434_s13 + $0x10] sm:$0xf] }
 0x32a   : > { %v2510_v5 = vor.u32 %v2694_v3, %v2509_v2 }
 0x32c   : > { %v1389_v11 = vpop.xlane.xlu1 %1388 }
 0x32d   : > { %v1407_v12 = vsub.f32 %v1375_v49, %v1389_v11  ;;  %v2699_v11 = vld [vmem:[%s3433_s12 + $0x34] sm:$0xf] }
 0x32f   : > { %v2756_v13 = vpop.eup %2755  ;;  %v1417_v14 = vmul.f32 1.442695, %v1407_v12  ;;  %v2535_v12 = vld [vmem:[%s3433_s12 + $0x38] sm:$0xf0] }
 0x330   : > { %v1432_v15 = vsel %vm720_vm0, %v2756_v13, 0.0 }
 0x331   : > { %2757 = vpow2.f32 %v1417_v14  ;;  %1433 = vadd.xlane.f32.xlu0 %v1432_v15  ;;  %v2498_v14 = vor.u32 %v2713_v6, %v2495_v7  ;;  %v2704_v6 = vld [vmem:[%s3434_s13 + $0x14] sm:$0xf0]  ;;  %v2703_v7 = vld [vmem:[%s3434_s13 + $0x14] sm:$0xf] }
 0x333   : > { %1656 = vmatpush.bf16.msra.mxu2 %v2498_v14  ;;  %v2693_v14 = vld [vmem:[%s3433_s12 + $0x4] sm:$0xf] }
 0x334   : > { %v1392_v16 = vpop.xlane.xlu1 %1391 }
 0x335   : > { %v1408_v63 = vsub.f32 %v1376_v52, %v1392_v16  ;;  %v2538_v16 = vor.u32 %v2699_v11, %v2535_v12  ;;  %v2695_v11 = vld [vmem:[%s3433_s12 + $0x14] sm:$0xf]  ;;  %v2519_v12 = vld [vmem:[%s3433_s12 + $0x18] sm:$0xf0] }
 0x337   : > { %v2758_v17 = vpop.eup %2757  ;;  %v1419_v18 = vmul.f32 1.442695, %v1408_v63  ;;  %v2485_v63 = vld [vmem:[%s3434_s13 + $0x50] sm:$0xf]  ;;  %1757 = vmatpush.bf16.msrb.mxu0 %v2538_v16 }
 0x338   : > { %v1435_v20 = vsel %vm720_vm0, %v2758_v17, 0.0 }
 0x339   : > { %2759 = vpow2.f32 %v1419_v18  ;;  %1436 = vadd.xlane.f32.xlu1 %v1435_v20  ;;  %v2711_v18 = vld [vmem:[%s3434_s13 + $0x54] sm:$0xf]  ;;  %v2487_v20 = vld [vmem:[%s3434_s13 + $0x58] sm:$0xf0] }
 0x33c   : > { %v1395_v21 = vpop.xlane.xlu2 %1394 }
 0x33d   : > { %v1409_v22 = vsub.f32 %v1377_v55, %v1395_v21  ;;  %v2525_v21 = vld [vmem:[%s3433_s12 + $0x20] sm:$0xf] }
 0x33f   : > { %v2760_v23 = vpop.eup %2759  ;;  %v1421_v24 = vmul.f32 1.442695, %v1409_v22 }
 0x340   : > { %v1438_v25 = vsel %vm720_vm0, %v2760_v23, 0.0 }
 0x341   : > { %2761 = vpow2.f32 %v1421_v24  ;;  %1439 = vadd.xlane.f32.xlu2 %v1438_v25  ;;  %v2490_v24 = vor.u32 %v2711_v18, %v2487_v20  ;;  %v2477_v25 = vld [vmem:[%s3434_s13 + $0x40] sm:$0xf]  ;;  %v2701_v18 = vld [vmem:[%s3434_s13 + $0x4] sm:$0xf] }
 0x343   : > { %1657 = vmatpush.bf16.msra.mxu2 %v2490_v24 }
 0x344   : > { %v1398_v26 = vpop.xlane.xlu2 %1397 }
 0x345   : > { %v1410_v27 = vsub.f32 %v1378_v58, %v1398_v26  ;;  %v2710_v26 = vld [vmem:[%s3434_s13 + $0x44] sm:$0xf0] }
 0x347   : > { %v3129_v29 = vpop.eup %2761  ;;  %v1423_v30 = vmul.f32 1.442695, %v1410_v27 }
 0x348   : > { %v1441_v31 = vsel %vm720_vm0, %v3129_v29, 0.0 }
 0x349   : > { %2763 = vpow2.f32 %v1423_v30  ;;  %1442 = vadd.xlane.f32.xlu0 %v1441_v31  ;;  %v2517_v30 = vld [vmem:[%s3433_s12 + $0x10] sm:$0xf] }
 0x34c   : > { %v1401_v32 = vpop.xlane.xlu0 %1400 }
 0x34d   : > { %v1411_v33 = vsub.f32 %v1379_v61, %v1401_v32  ;;  %v2501_v61 = vld [vmem:[%s3434_s13 + $0x70] sm:$0xf]  ;;  %v2709_v32 = vld [vmem:[%s3434_s13 + $0x44] sm:$0xf] }
 0x34f   : > { %v3133_v34 = vpop.eup %2763  ;;  %v1425_v35 = vmul.f32 1.442695, %v1411_v33  ;;  %v2479_v33 = vld [vmem:[%s3434_s13 + $0x48] sm:$0xf0] }
 0x350   : > { %v1444_v36 = vsel %vm720_vm0, %v3133_v34, 0.0 }
 0x351   : > { %2765 = vpow2.f32 %v1425_v35  ;;  %1445 = vadd.xlane.f32.xlu1 %v1444_v36  ;;  %v2696_v35 = vld [vmem:[%s3433_s12 + $0x14] sm:$0xf0] }
 0x352   : > { %v2518_v36 = vor.u32 %v2696_v35, %v2517_v30  ;;  %v2732_v30 = vld [vmem:[%s3436_s15 + $0x78] sm:$0xff] }
 0x354   : > { %v1404_v37 = vpop.xlane.xlu1 %1403 }
 0x355   : > { %v1412_v38 = vsub.f32 %v1380_v1, %v1404_v37  ;;  %v2502_v1 = vor.u32 %v2716_v62, %v2501_v61  ;;  %v2461_v61 = vld [vmem:[%s3434_s13 + $0x20] sm:$0xf] }
 0x357   : > { %v3137_v40 = vpop.eup %2765  ;;  %v1427_v41 = vmul.f32 1.442695, %v1412_v38  ;;  %1626 = vmatpush.bf16.msra.mxu1 %v2502_v1  ;;  %v2478_v38 = vor.u32 %v2710_v26, %v2477_v25 }
 0x358   : > { %v1447_v42 = vsel %vm720_vm0, %v3137_v40, 0.0 }
 0x359   : > { %2767 = vpow2.f32 %v1427_v41  ;;  %1448 = vadd.xlane.f32.xlu2 %v1447_v42 }
 0x35b   : > { %1627 = vmatpush.bf16.msra.mxu1 %v2494_v9  ;;  %v2454_v9 = vor.u32 %v2704_v6, %v2453_v4 }
 0x35f   : > { %v3141_v43 = vpop.eup %2767 }
 0x360   : > { %v1450_v44 = vsel %vm720_vm0, %v3141_v43, 0.0 }
 0x361   : > { %1451 = vadd.xlane.f32.xlu0 %v1450_v44  ;;  %v2482_v44 = vor.u32 %v2709_v32, %v2479_v33  ;;  %v2722_v33 = vld [vmem:[%s3436_s15 + $0x28] sm:$0xff] }
 0x363   : > { %1658 = vmatpush.bf16.msra.mxu2 %v2482_v44  ;;  %v2720_v44 = vld [vmem:[%s3436_s15 + $0x18] sm:$0xff] }
 0x39c   : > { %v1431_v45 = vpop.xlane.xlu2 %1430 }
 0x39d   : > { %2769 = vrcp.f32 %v1431_v45  ;;  %v2469_v45 = vld [vmem:[%s3434_s13 + $0x30] sm:$0xf] }
 0x3a3   : > { %v2770_v47 = vpop.eup %2769 }
 0x3a4   : > { %v1434_v46 = vpop.xlane.xlu0 %1433  ;;  %v1461_v50 = vmul.f32 %v2770_v47, %v2754_v8  ;;  %v2533_v8 = vld [vmem:[%s3433_s12 + $0x30] sm:$0xf]  ;;  %v2707_v47 = vld [vmem:[%s3434_s13 + $0x34] sm:$0xf] }
 0x3a5   : > { %2771 = vrcp.f32 %v1434_v46  ;;  %v2534_v15 = vor.u32 %v2700_v10, %v2533_v8  ;;  %v2708_v46 = vld [vmem:[%s3434_s13 + $0x34] sm:$0xf0]  ;;  %v2455_v8 = vld [vmem:[%s3434_s13 + $0x18] sm:$0xf0] }
 0x3a6   : > { %v2458_v10 = vor.u32 %v2703_v7, %v2455_v8 }
 0x3a7   : > { %1728 = vmatpush.bf16.msra.mxu3 %v2534_v15  ;;  %v2511_v15 = vld [vmem:[%s3433_s12 + $0x8] sm:$0xf0] }
 0x3a8   : > { %v2514_v16 = vor.u32 %v2693_v14, %v2511_v15 }
 0x3ab   : > { %v2772_v49 = vpop.eup %2771 }
 0x3ac   : > { %v1462_v51 = vmul.f32 %v2772_v49, %v2756_v13  ;;  %v1437_v53 = vpop.xlane.xlu1 %1436 }
 0x3ad   : > { %2773 = vrcp.f32 %v1437_v53 }
 0x3ae   : > { %v1469_v52 = vpack.c.bf16 %v1462_v51, %v1461_v50 }
 0x3b0   : > { %2439 = vmatmul.msk.bf16.vlgmr.msra.gmra.mxu0 %vm720_vm0, %v1469_v52 }
 0x3b3   : > { %v2774_v55 = vpop.eup %2773 }
 0x3b4   : > { %v1440_v54 = vpop.xlane.xlu2 %1439  ;;  %v1463_v57 = vmul.f32 %v2774_v55, %v2758_v17  ;;  %v2712_v17 = vld [vmem:[%s3434_s13 + $0x54] sm:$0xf0] }
 0x3b5   : > { %2775 = vrcp.f32 %v1440_v54  ;;  %v2486_v22 = vor.u32 %v2712_v17, %v2485_v63  ;;  %v2445_v63 = vld [vmem:[%s3434_s13] sm:$0xf]  ;;  %v2702_v17 = vld [vmem:[%s3434_s13 + $0x4] sm:$0xf0] }
 0x3b6   : > { %v2446_v20 = vor.u32 %v2702_v17, %v2445_v63 }
 0x3b7   : > { %1628 = vmatpush.bf16.msra.mxu1 %v2486_v22 }
 0x3bb   : > { %v2776_v56 = vpop.eup %2775  ;;  %1629 = vmatpush.bf16.msra.mxu1 %v2478_v38 }
 0x3bc   : > { %v1464_v58 = vmul.f32 %v2776_v56, %v2760_v23  ;;  %v1443_v60 = vpop.xlane.xlu0 %1442  ;;  %v2698_v23 = vld [vmem:[%s3433_s12 + $0x24] sm:$0xf0] }
 0x3bd   : > { %2777 = vrcp.f32 %v1443_v60  ;;  %v2526_v27 = vor.u32 %v2698_v23, %v2525_v21  ;;  %v2447_v21 = vld [vmem:[%s3434_s13 + $0x8] sm:$0xf0] }
 0x3be   : > { %v1470_v59 = vpack.c.bf16 %v1464_v58, %v1463_v57  ;;  %v2697_v58 = vld [vmem:[%s3433_s12 + $0x24] sm:$0xf]  ;;  %v2450_v22 = vor.u32 %v2701_v18, %v2447_v21 }
 0x3bf   : > { %1729 = vmatpush.bf16.msra.mxu3 %v2526_v27 }
 0x3c0   : > { %2440 = vmatmul.msk.bf16.gmra.mxu0 %vm720_vm0, %v1470_v59  ;;  %v2527_v59 = vld [vmem:[%s3433_s12 + $0x28] sm:$0xf0] }
 0x3c1   : > { %v2530_v60 = vor.u32 %v2697_v58, %v2527_v59 }
 0x3c3   : > { %v2778_v31 = vpop.eup %2777  ;;  %1730 = vmatpush.bf16.msra.mxu3 %v2518_v36  ;;  %1758 = vmatpush.bf16.msrb.mxu0 %v2530_v60 }
 0x3c4   : > { %v1446_v13 = vpop.xlane.xlu1 %1445  ;;  %v1465_v41 = vmul.f32 %v2778_v31, %v3129_v29  ;;  %v2471_v29 = vld [vmem:[%s3434_s13 + $0x38] sm:$0xf0]  ;;  %v2731_v31 = vld [vmem:[%s3436_s15 + $0x70] sm:$0xff] }
 0x3c5   : > { %2779 = vrcp.f32 %v1446_v13  ;;  %v2474_v51 = vor.u32 %v2707_v47, %v2471_v29  ;;  %v2522_v13 = vor.u32 %v2695_v11, %v2519_v12  ;;  %v2728_v47 = vld [vmem:[%s3436_s15 + $0x58] sm:$0xff]  ;;  %v2718_v29 = vld [vmem:[%s3436_s15 + $0x8] sm:$0xff] }
 0x3c7   : > { %1659 = vmatpush.bf16.msra.mxu2 %v2474_v51  ;;  %1731 = vmatpush.bf16.msra.mxu3 %v2510_v5  ;;  %v2726_v51 = vld [vmem:[%s3436_s15 + $0x48] sm:$0xff] }
 0x3c8   : > { %1759 = vmatpush.bf16.msrb.mxu0 %v2522_v13 }
 0x3ca   : > { %2539 = vmatmul.msk.bf16.vlgmr.msra.gmra.mxu3 %vm720_vm0, %v2963_v19 }
 0x3cb   : > { %v2780_v37 = vpop.eup %2779 }
 0x3cc   : > { %v1466_v42 = vmul.f32 %v2780_v37, %v3133_v34  ;;  %v2470_v34 = vor.u32 %v2708_v46, %v2469_v45  ;;  %v1449_v50 = vpop.xlane.xlu2 %1448  ;;  %1760 = vmatpush.bf16.msrb.mxu0 %v2514_v16  ;;  %v2729_v45 = vld [vmem:[%s3436_s15 + $0x60] sm:$0xff]  ;;  %v2719_v46 = vld [vmem:[%s3436_s15 + $0x10] sm:$0xff] }
 0x3cd   : > { %2781 = vrcp.f32 %v1449_v50 }
 0x3ce   : > { %v1471_v49 = vpack.c.bf16 %v1466_v42, %v1465_v41  ;;  %1630 = vmatpush.bf16.msra.mxu1 %v2470_v34  ;;  %v2721_v41 = vld [vmem:[%s3436_s15 + $0x20] sm:$0xff]  ;;  %v2730_v42 = vld [vmem:[%s3436_s15 + $0x68] sm:$0xff] }
 0x3cf   : > { %v2717_v34 = vld [vmem:[%s3436_s15] sm:$0xff] }
 0x3d0   : > { %2441 = vmatmul.msk.bf16.gmra.mxu0 %vm720_vm0, %v1471_v49  ;;  %v2727_v49 = vld [vmem:[%s3436_s15 + $0x50] sm:$0xff] }
 0x3d3   : > { %v2782_v53 = vpop.eup %2781 }
 0x3d4   : > { %v1452_v52 = vpop.xlane.xlu0 %1451  ;;  %v1467_v55 = vmul.f32 %v2782_v53, %v3137_v40  ;;  %v2706_v40 = vld [vmem:[%s3434_s13 + $0x24] sm:$0xf0] }
 0x3d5   : > { %2783 = vrcp.f32 %v1452_v52  ;;  %v2462_v62 = vor.u32 %v2706_v40, %v2461_v61  ;;  %v2725_v52 = vld [vmem:[%s3436_s15 + $0x40] sm:$0xff] }
 0x3d7   : > { %1631 = vmatpush.bf16.msra.mxu1 %v2462_v62 }
 0x3da   : > { %2540 = vmatmul.msk.bf16.gmra.mxu3 %vm720_vm0, %v2975_v28 }
 0x3db   : > { %v2784_v54 = vpop.eup %2783  ;;  %1632 = vmatpush.bf16.msra.mxu1 %v2454_v9 }
 0x3dc   : > { %v1468_v56 = vmul.f32 %v2784_v54, %v3141_v43  ;;  %v2705_v43 = vld [vmem:[%s3434_s13 + $0x24] sm:$0xf] }
 0x3dd   : > { %v2466_v1 = vor.u32 %v2705_v43, %v2463_v0 }
 0x3de   : > { %v1472_v57 = vpack.c.bf16 %v1468_v56, %v1467_v55  ;;  %v1782_v56 = vld [vmem:[%s3435_s14] sm:$0x3] }
 0x3df   : > { %1660 = vmatpush.bf16.msra.mxu2 %v2466_v1  ;;  %1633 = vmatpush.bf16.msra.mxu1 %v2446_v20  ;;  %v3364_v59 = vperm.slane %v1782_v56, 0  ;;  %v3367_v0 = vperm.slane %v1782_v56, 1 }
 0x3e0   : > { %2442 = vmatmul.msk.bf16.gmra.mxu0 %vm720_vm0, %v1472_v57 }
 0x3e3   : > { %1661 = vmatpush.bf16.msra.mxu2 %v2458_v10 }
 0x3e7   : > { %1662 = vmatpush.bf16.msra.mxu2 %v2450_v22 }
 0x3ea   : > { %2541 = vmatmul.msk.bf16.gmra.mxu3 %vm720_vm0, %v2993_v39 }
 0x3eb   : > { %2005 = vmatpush.bf16.msrb.mxu2 %v2732_v30 }
 0x3ef   : > { %2006 = vmatpush.bf16.msrb.mxu2 %v2731_v31 }
 0x3f0   : > { %2543 = vmatmul.msk.bf16.vlgmr.msrb.gmra.mxu0 %vm720_vm0, %v2963_v19 }
 0x3f3   : > { %2007 = vmatpush.bf16.msrb.mxu2 %v2730_v42 }
 0x3f7   : > { %2008 = vmatpush.bf16.msrb.mxu2 %v2729_v45 }
 0x3fa   : > { %2542 = vmatmul.msk.bf16.gmra.mxu3 %vm720_vm0, %v3005_v48 }
 0x3fb   : > { %2009 = vmatpush.bf16.msrb.mxu2 %v2728_v47 }
 0x3ff   : > { %2010 = vmatpush.bf16.msrb.mxu2 %v2727_v49 }
 0x400   : > { %2544 = vmatmul.msk.bf16.gmra.mxu0 %vm720_vm0, %v2975_v28  ;;  %v2724_v28 = vld [vmem:[%s3436_s15 + $0x38] sm:$0xff] }
 0x401   : > { %1976 = vmatpush.bf16.msrb.mxu1 %v2724_v28 }
 0x403   : > { %2011 = vmatpush.bf16.msrb.mxu2 %v2726_v51 }
 0x407   : > { %2012 = vmatpush.bf16.msrb.mxu2 %v2725_v52 }
 0x410   : > { %2545 = vmatmul.msk.bf16.gmra.mxu0 %vm720_vm0, %v2993_v39  ;;  %v2723_v39 = vld [vmem:[%s3436_s15 + $0x30] sm:$0xff] }
 0x411   : > { %1977 = vmatpush.bf16.msrb.mxu1 %v2723_v39 }
 0x415   : > { %1978 = vmatpush.bf16.msrb.mxu1 %v2722_v33 }
 0x419   : > { %1979 = vmatpush.bf16.msrb.mxu1 %v2721_v41 }
 0x41d   : > { %1980 = vmatpush.bf16.msrb.mxu1 %v2720_v44 }
 0x420   : > { %2546 = vmatmul.msk.bf16.gmra.mxu0 %vm720_vm0, %v3005_v48 }
 0x421   : > { %1981 = vmatpush.bf16.msrb.mxu1 %v2719_v46 }
 0x425   : > { %1982 = vmatpush.bf16.msrb.mxu1 %v2718_v29 }
 0x429   : > { %1983 = vmatpush.bf16.msrb.mxu1 %v2717_v34 }
 0x42d   : > { %v1498_v23 = vpop.f32.mrf.mxu0 }
 0x435   : > { %v1500_v24 = vpop.f32.mrf.mxu0 }
 0x436   : > { %v1526_v25 = vpack.c.bf16 %v1500_v24, %v1498_v23 }
 0x438   : > { %1634 = vmatmul.bf16.vlgmr.msra.gmra.mxu1 %v1526_v25  ;;  %1663 = vmatmul.bf16.vlgmr.msra.gmra.mxu2 %v1526_v25 }
 0x43d   : > { %v1503_v26 = vpop.f32.mrf.mxu0 }
 0x445   : > { %v1505_v19 = vpop.f32.mrf.mxu0 }
 0x446   : > { %v1527_v27 = vpack.c.bf16 %v1505_v19, %v1503_v26 }
 0x448   : > { %1639 = vmatmul.bf16.gmra.mxu1 %v1527_v27  ;;  %1668 = vmatmul.bf16.gmra.mxu2 %v1527_v27 }
 0x44d   : > { %v1508_v32 = vpop.f32.mrf.mxu0  ;;  %v1733_v50 = vpop.f32.mrf.mxu3 }
 0x455   : > { %v1510_v35 = vpop.f32.mrf.mxu0  ;;  %v1735_v54 = vpop.f32.mrf.mxu3 }
 0x456   : > { %v1528_v48 = vpack.c.bf16 %v1510_v35, %v1508_v32 }
 0x458   : > { %1644 = vmatmul.bf16.gmra.mxu1 %v1528_v48  ;;  %1673 = vmatmul.bf16.gmra.mxu2 %v1528_v48 }
 0x45d   : > { %v1513_v36 = vpop.f32.mrf.mxu0  ;;  %v1738_v60 = vpop.f32.mrf.mxu3 }
 0x465   : > { %v1515_v37 = vpop.f32.mrf.mxu0  ;;  %v1740_v8 = vpop.f32.mrf.mxu3 }
 0x466   : > { %v1529_v38 = vpack.c.bf16 %v1515_v37, %v1513_v36 }
 0x468   : > { %1649 = vmatmul.bf16.gmra.mxu1 %v1529_v38  ;;  %1678 = vmatmul.bf16.gmra.mxu2 %v1529_v38 }
 0x46d   : > { %v1762_v53 = vpop.f32.mrf.mxu0  ;;  %v1743_v25 = vpop.f32.mrf.mxu3 }
 0x475   : > { %v1764_v57 = vpop.f32.mrf.mxu0  ;;  %v1745_v42 = vpop.f32.mrf.mxu3 }
 0x47d   : > { %v1767_v4 = vpop.f32.mrf.mxu0 }
 0x485   : > { %v1769_v21 = vpop.f32.mrf.mxu0 }
 0x48d   : > { %v1772_v36 = vpop.f32.mrf.mxu0 }
 0x4b5   : > { %v1635_v55 = vpop.f32.mrf.mxu1 }
 0x4b6   : > { %v1734_v58 = vadd.f32 %v1733_v50, %v1635_v55 }
 0x4b8   : > { %v1788_v40 = vadd.f32 %v3364_v59, %v1734_v58 }
 0x4ba   : > { %v1804_v2 = vmul.f32 0.2, %v1788_v40 }
 0x4bb   : > { %v1664_v61 = vpop.f32.mrf.mxu2 }
 0x4bc   : > { %v1763_v62 = vadd.f32 %v1762_v53, %v1664_v61  ;;  %v1820_v9 = vmax.f32 %v1788_v40, %v1804_v2  ;;  %v2740_v53 = vld [vmem:[%s3438_s17 + $0x38] sm:$0xff] }
 0x4bd   : > { %v1637_v43 = vpop.f32.mrf.mxu1  ;;  %2122 = vmatpush.bf16.msrb.mxu3 %v2740_v53 }
 0x4be   : > { %v1736_v1 = vadd.f32 %v1735_v54, %v1637_v43  ;;  %v1789_v5 = vadd.f32 %v3367_v0, %v1763_v62  ;;  %v1774_v54 = vpop.f32.mrf.mxu0 }
 0x4c0   : > { %v1790_v3 = vadd.f32 %v3364_v59, %v1736_v1  ;;  %v1805_v13 = vmul.f32 0.2, %v1789_v5 }
 0x4c2   : > { %v1806_v6 = vmul.f32 0.2, %v1790_v3  ;;  %v1821_v17 = vmax.f32 %v1789_v5, %v1805_v13 }
 0x4c3   : > { %v1666_v7 = vpop.f32.mrf.mxu2 }
 0x4c4   : > { %v1822_v10 = vmax.f32 %v1790_v3, %v1806_v6  ;;  %v1765_v11 = vadd.f32 %v1764_v57, %v1666_v7  ;;  %v1748_v57 = vpop.f32.mrf.mxu3 }
 0x4c5   : > { %v1640_v12 = vpop.f32.mrf.mxu1 }
 0x4c6   : > { %v1836_v14 = vpack.c.bf16 %v1822_v10, %v1820_v9  ;;  %v1791_v15 = vadd.f32 %v3367_v0, %v1765_v11  ;;  %v1739_v63 = vadd.f32 %v1738_v60, %v1640_v12  ;;  %v1777_v7 = vpop.f32.mrf.mxu0 }
 0x4c8   : > { %v1807_v16 = vmul.f32 0.2, %v1791_v15  ;;  %1984 = vmatmul.bf16.vlgmr.msrb.gmra.mxu1 %v1836_v14  ;;  %v1792_v23 = vadd.f32 %v3364_v59, %v1739_v63 }
 0x4ca   : > { %v1823_v18 = vmax.f32 %v1791_v15, %v1807_v16  ;;  %v1808_v27 = vmul.f32 0.2, %v1792_v23 }
 0x4cb   : > { %v1669_v20 = vpop.f32.mrf.mxu2 }
 0x4cc   : > { %v1837_v22 = vpack.c.bf16 %v1823_v18, %v1821_v17  ;;  %v1768_v26 = vadd.f32 %v1767_v4, %v1669_v20  ;;  %v1824_v32 = vmax.f32 %v1792_v23, %v1808_v27  ;;  %v1750_v11 = vpop.f32.mrf.mxu3 }
 0x4cd   : > { %v1642_v24 = vpop.f32.mrf.mxu1 }
 0x4ce   : > { %v1741_v19 = vadd.f32 %v1740_v8, %v1642_v24  ;;  %2013 = vmatmul.bf16.vlgmr.msrb.gmra.mxu2 %v1837_v22  ;;  %v1793_v30 = vadd.f32 %v3367_v0, %v1768_v26  ;;  %v1779_v22 = vpop.f32.mrf.mxu0 }
 0x4d0   : > { %v1794_v28 = vadd.f32 %v3364_v59, %v1741_v19  ;;  %v1809_v37 = vmul.f32 0.2, %v1793_v30 }
 0x4d2   : > { %v1810_v39 = vmul.f32 0.2, %v1794_v28  ;;  %v1825_v46 = vmax.f32 %v1793_v30, %v1809_v37 }
 0x4d3   : > { %v1671_v31 = vpop.f32.mrf.mxu2 }
 0x4d4   : > { %v1826_v33 = vmax.f32 %v1794_v28, %v1810_v39  ;;  %v1770_v35 = vadd.f32 %v1769_v21, %v1671_v31 }
 0x4d5   : > { %v1645_v48 = vpop.f32.mrf.mxu1 }
 0x4d6   : > { %v1795_v38 = vadd.f32 %v3367_v0, %v1770_v35  ;;  %v1838_v41 = vpack.c.bf16 %v1826_v33, %v1824_v32  ;;  %v1744_v45 = vadd.f32 %v1743_v25, %v1645_v48  ;;  %v2738_v32 = vld [vmem:[%s3438_s17 + $0x28] sm:$0xff]  ;;  %v2736_v33 = vld [vmem:[%s3438_s17 + $0x18] sm:$0xff]  ;;  %v2735_v35 = vld [vmem:[%s3438_s17 + $0x10] sm:$0xff] }
 0x4d7   : > { %v2734_v48 = vld [vmem:[%s3438_s17 + $0x8] sm:$0xff] }
 0x4d8   : > { %v1811_v44 = vmul.f32 0.2, %v1795_v38  ;;  %1989 = vmatmul.bf16.gmra.mxu1 %v1838_v41  ;;  %v1796_v49 = vadd.f32 %v3364_v59, %v1744_v45  ;;  %v2751_v41 = vld [vmem:[%s3437_s16] ss:$0 sm:$0xff] }
 0x4da   : > { %v1827_v47 = vmax.f32 %v1795_v38, %v1811_v44  ;;  %v1812_v55 = vmul.f32 0.2, %v1796_v49 }
 0x4db   : > { %v1674_v29 = vpop.f32.mrf.mxu2 }
 0x4dc   : > { %v1839_v34 = vpack.c.bf16 %v1827_v47, %v1825_v46  ;;  %v1773_v51 = vadd.f32 %v1772_v36, %v1674_v29  ;;  %v1828_v40 = vmax.f32 %v1796_v49, %v1812_v55  ;;  %v2733_v36 = vld [vmem:[%s3438_s17] sm:$0xff] }
 0x4dd   : > { %v1647_v50 = vpop.f32.mrf.mxu1 }
 0x4de   : > { %v1746_v52 = vadd.f32 %v1745_v42, %v1647_v50  ;;  %2018 = vmatmul.bf16.gmra.mxu2 %v1839_v34  ;;  %v1797_v58 = vadd.f32 %v3367_v0, %v1773_v51 }
 0x4e0   : > { %v1798_v56 = vadd.f32 %v3364_v59, %v1746_v52  ;;  %v1813_v2 = vmul.f32 0.2, %v1797_v58 }
 0x4e2   : > { %v1814_v60 = vmul.f32 0.2, %v1798_v56  ;;  %v1829_v8 = vmax.f32 %v1797_v58, %v1813_v2 }
 0x4e3   : > { %v1676_v61 = vpop.f32.mrf.mxu2 }
 0x4e4   : > { %v1830_v43 = vmax.f32 %v1798_v56, %v1814_v60  ;;  %v1775_v62 = vadd.f32 %v1774_v54, %v1676_v61 }
 0x4e5   : > { %v1650_v1 = vpop.f32.mrf.mxu1 }
 0x4e6   : > { %v1799_v3 = vadd.f32 %v3367_v0, %v1775_v62  ;;  %v1840_v4 = vpack.c.bf16 %v1830_v43, %v1828_v40  ;;  %v1749_v6 = vadd.f32 %v1748_v57, %v1650_v1 }
 0x4e8   : > { %v1815_v5 = vmul.f32 0.2, %v1799_v3  ;;  %1994 = vmatmul.bf16.gmra.mxu1 %v1840_v4  ;;  %v1800_v12 = vadd.f32 %v3364_v59, %v1749_v6 }
 0x4ea   : > { %v1831_v9 = vmax.f32 %v1799_v3, %v1815_v5  ;;  %v1816_v63 = vmul.f32 0.2, %v1800_v12 }
 0x4eb   : > { %v1679_v10 = vpop.f32.mrf.mxu2 }
 0x4ec   : > { %v1841_v13 = vpack.c.bf16 %v1831_v9, %v1829_v8  ;;  %v1778_v15 = vadd.f32 %v1777_v7, %v1679_v10  ;;  %v1832_v23 = vmax.f32 %v1800_v12, %v1816_v63 }
 0x4ed   : > { %v1652_v14 = vpop.f32.mrf.mxu1 }
 0x4ee   : > { %v1751_v16 = vadd.f32 %v1750_v11, %v1652_v14  ;;  %2023 = vmatmul.bf16.gmra.mxu2 %v1841_v13  ;;  %v1801_v18 = vadd.f32 %v3367_v0, %v1778_v15 }
 0x4f0   : > { %v1802_v17 = vadd.f32 %v3364_v59, %v1751_v16  ;;  %v1817_v26 = vmul.f32 0.2, %v1801_v18  ;;  %v2739_v59 = vld [vmem:[%s3438_s17 + $0x30] sm:$0xff] }
 0x4f1   : > { %2123 = vmatpush.bf16.msrb.mxu3 %v2739_v59 }
 0x4f2   : > { %v1818_v20 = vmul.f32 0.2, %v1802_v17  ;;  %v1833_v30 = vmax.f32 %v1801_v18, %v1817_v26 }
 0x4f3   : > { %v1681_v21 = vpop.f32.mrf.mxu2 }
 0x4f4   : > { %v1834_v24 = vmax.f32 %v1802_v17, %v1818_v20  ;;  %v1780_v25 = vadd.f32 %v1779_v22, %v1681_v21 }
 0x4f5   : > { %2124 = vmatpush.bf16.msrb.mxu3 %v2738_v32 }
 0x4f6   : > { %v1803_v19 = vadd.f32 %v3367_v0, %v1780_v25  ;;  %v1842_v27 = vpack.c.bf16 %v1834_v24, %v1832_v23  ;;  %v2737_v0 = vld [vmem:[%s3438_s17 + $0x20] sm:$0xff] }
 0x4f8   : > { %v1819_v28 = vmul.f32 0.2, %v1803_v19  ;;  %1999 = vmatmul.bf16.gmra.mxu1 %v1842_v27 }
 0x4f9   : > { %2125 = vmatpush.bf16.msrb.mxu3 %v2737_v0 }
 0x4fa   : > { %v1835_v39 = vmax.f32 %v1803_v19, %v1819_v28  ;;  %v2752_v28 = vld [vmem:[%s3439_s18] ss:$0 sm:$0xff] }
 0x4fc   : > { %v1843_v31 = vpack.c.bf16 %v1835_v39, %v1833_v30 }
 0x4fd   : > { %2126 = vmatpush.bf16.msrb.mxu3 %v2736_v33 }
 0x4fe   : > { %2028 = vmatmul.bf16.gmra.mxu2 %v1843_v31 }
 0x501   : > { %2127 = vmatpush.bf16.msrb.mxu3 %v2735_v35 }
 0x505   : > { %2128 = vmatpush.bf16.msrb.mxu3 %v2734_v48 }
 0x509   : > { %2129 = vmatpush.bf16.msrb.mxu3 %v2733_v36 }
 0x545   : > { %v1985_v37 = vpop.f32.mrf.mxu1 }
 0x546   : > { %v1986_v44 = vadd.f32 %v2751_v41, %v1985_v37 }
 0x54d   : > { %v1987_v38 = vpop.f32.mrf.mxu1 }
 0x54e   : > { %v1988_v47 = vadd.f32 %v2751_v41, %v1987_v38 }
 0x551   : > { %v2014_v42 = vpop.f32.mrf.mxu2 }
 0x552   : > { %v2015_v46 = vadd.f32 %v2014_v42, %v1986_v44 }
 0x554   : > { %v2034_v49 = vmul.f32 0.2, %v2015_v46 }
 0x555   : > { %v1990_v45 = vpop.f32.mrf.mxu1 }
 0x556   : > { %v2042_v52 = vmax.f32 %v2015_v46, %v2034_v49  ;;  %v1991_v56 = vadd.f32 %v2751_v41, %v1990_v45 }
 0x559   : > { %v2016_v29 = vpop.f32.mrf.mxu2 }
 0x55a   : > { %v2017_v34 = vadd.f32 %v2016_v29, %v1988_v47 }
 0x55c   : > { %v2035_v50 = vmul.f32 0.2, %v2017_v34 }
 0x55d   : > { %v1992_v51 = vpop.f32.mrf.mxu1 }
 0x55e   : > { %v2043_v53 = vmax.f32 %v2017_v34, %v2035_v50  ;;  %v1993_v60 = vadd.f32 %v2751_v41, %v1992_v51 }
 0x560   : > { %v2050_v54 = vpack.c.bf16 %v2043_v53, %v2042_v52 }
 0x561   : > { %v2019_v55 = vpop.f32.mrf.mxu2 }
 0x562   : > { %2130 = vmatmul.bf16.vlgmr.msrb.gmra.mxu3 %v2050_v54  ;;  %v2020_v57 = vadd.f32 %v2019_v55, %v1991_v56 }
 0x564   : > { %v2036_v40 = vmul.f32 0.2, %v2020_v57 }
 0x565   : > { %v1995_v58 = vpop.f32.mrf.mxu1 }
 0x566   : > { %v2044_v1 = vmax.f32 %v2020_v57, %v2036_v40  ;;  %v1996_v6 = vadd.f32 %v2751_v41, %v1995_v58 }
 0x569   : > { %v2021_v61 = vpop.f32.mrf.mxu2 }
 0x56a   : > { %v2022_v43 = vadd.f32 %v2021_v61, %v1993_v60 }
 0x56c   : > { %v2037_v62 = vmul.f32 0.2, %v2022_v43 }
 0x56d   : > { %v1997_v4 = vpop.f32.mrf.mxu1 }
 0x56e   : > { %v2045_v2 = vmax.f32 %v2022_v43, %v2037_v62  ;;  %v1998_v8 = vadd.f32 %v2751_v41, %v1997_v4 }
 0x570   : > { %v2051_v3 = vpack.c.bf16 %v2045_v2, %v2044_v1 }
 0x571   : > { %v2024_v5 = vpop.f32.mrf.mxu2 }
 0x572   : > { %2135 = vmatmul.bf16.gmra.mxu3 %v2051_v3  ;;  %v2025_v7 = vadd.f32 %v2024_v5, %v1996_v6 }
 0x574   : > { %v2038_v10 = vmul.f32 0.2, %v2025_v7 }
 0x575   : > { %v2000_v12 = vpop.f32.mrf.mxu1 }
 0x576   : > { %v2046_v14 = vmax.f32 %v2025_v7, %v2038_v10  ;;  %v2001_v17 = vadd.f32 %v2751_v41, %v2000_v12 }
 0x579   : > { %v2026_v9 = vpop.f32.mrf.mxu2 }
 0x57a   : > { %v2027_v11 = vadd.f32 %v2026_v9, %v1998_v8 }
 0x57c   : > { %v2039_v13 = vmul.f32 0.2, %v2027_v11 }
 0x57d   : > { %v2002_v18 = vpop.f32.mrf.mxu1 }
 0x57e   : > { %v2047_v15 = vmax.f32 %v2027_v11, %v2039_v13  ;;  %v2003_v21 = vadd.f32 %v2751_v41, %v2002_v18 }
 0x580   : > { %v2052_v16 = vpack.c.bf16 %v2047_v15, %v2046_v14 }
 0x581   : > { %v2029_v63 = vpop.f32.mrf.mxu2 }
 0x582   : > { %2140 = vmatmul.bf16.gmra.mxu3 %v2052_v16  ;;  %v2030_v20 = vadd.f32 %v2029_v63, %v2001_v17 }
 0x584   : > { %v2040_v23 = vmul.f32 0.2, %v2030_v20 }
 0x586   : > { %v2048_v26 = vmax.f32 %v2030_v20, %v2040_v23 }
 0x589   : > { %v2031_v22 = vpop.f32.mrf.mxu2 }
 0x58a   : > { %v2032_v24 = vadd.f32 %v2031_v22, %v2003_v21 }
 0x58c   : > { %v2041_v25 = vmul.f32 0.2, %v2032_v24 }
 0x58e   : > { %v2049_v19 = vmax.f32 %v2032_v24, %v2041_v25 }
 0x590   : > { %v2053_v27 = vpack.c.bf16 %v2049_v19, %v2048_v26 }
 0x592   : > { %2145 = vmatmul.bf16.gmra.mxu3 %v2053_v27 }
 0x5e5   : > { %v2131_v30 = vpop.f32.mrf.mxu3 }
 0x5e6   : > { %v2132_v39 = vadd.f32 %v2752_v28, %v2131_v30 }
 0x5e8   : > { %2151 = vst [vmem:[%s642_s28] sm:$0xff] %v2132_v39 }
 0x5ed   : > { %v2133_v31 = vpop.f32.mrf.mxu3 }
 0x5ee   : > { %v2134_v59 = vadd.f32 %v2752_v28, %v2133_v31 }
 0x5f0   : > { %2152 = vst [vmem:[%s642_s28 + $0x8] sm:$0xff] %v2134_v59 }
 0x5f5   : > { %v2136_v32 = vpop.f32.mrf.mxu3 }
 0x5f6   : > { %v2137_v0 = vadd.f32 %v2752_v28, %v2136_v32 }
 0x5f8   : > { %2153 = vst [vmem:[%s642_s28 + $0x10] sm:$0xff] %v2137_v0 }
 0x5fd   : > { %v2138_v33 = vpop.f32.mrf.mxu3 }
 0x5fe   : > { %v2139_v35 = vadd.f32 %v2752_v28, %v2138_v33 }
 0x600   : > { %2154 = vst [vmem:[%s642_s28 + $0x18] sm:$0xff] %v2139_v35 }
 0x605   : > { %v2141_v48 = vpop.f32.mrf.mxu3 }
 0x606   : > { %v2142_v36 = vadd.f32 %v2752_v28, %v2141_v48 }
 0x608   : > { %2155 = vst [vmem:[%s642_s28 + $0x20] sm:$0xff] %v2142_v36 }
 0x60d   : > { %v2143_v37 = vpop.f32.mrf.mxu3 }
 0x60e   : > { %v2144_v38 = vadd.f32 %v2752_v28, %v2143_v37 }
 0x610   : > { %2156 = vst [vmem:[%s642_s28 + $0x28] sm:$0xff] %v2144_v38 }
 0x615   : > { %v2146_v41 = vpop.f32.mrf.mxu3 }
 0x616   : > { %v2147_v42 = vadd.f32 %v2752_v28, %v2146_v41 }
 0x618   : > { %2157 = vst [vmem:[%s642_s28 + $0x30] sm:$0xff] %v2147_v42 }
 0x61d   : > { %v2148_v44 = vpop.f32.mrf.mxu3 }
 0x61e   : > { %v2149_v45 = vadd.f32 %v2752_v28, %v2148_v44 }
 0x620   : > { %2158 = vst [vmem:[%s642_s28 + $0x38] sm:$0xff] %v2149_v45 }
 0x621 PF: > { %s3452_s20 = sld [smem:[#allocation2_spill]] }
 0x627   : > { %s29_s0 = sadd.s32 1, %s3452_s20  }
 0x628   : > { %p26_p4 = scmp.ge.s32.totalorder %s29_s0, 4  }
 0x62a   :  { %28 = sbr.rel (!%p26_p4) target bundleno = 5 (0x5), region = 132 }

</bundles_post_ra>
